<compile_context>
chip_gen: v7x
topology: tpu7x:2x2x1
jax: 0.10.0
libtpu: 0.0.40
codegen_flags: <defaults>
</compile_context>

<pallas_src>
import jax
import jax.numpy as jnp
from jax.experimental import pallas as pl
from jax.experimental.pallas import tpu as pltpu

BN_EPS = 1e-5
LANE = 128
VMEM_LIMIT = 64 * 1024 * 1024


def _round_up(x, m):
    return (x + m - 1) // m * m


def _cdiv(a, b):
    return (a + b - 1) // b


# ------------------------------ Pallas kernels -------------------------------
def _conv9_f32(x_f32, w_ref, rt, wp):
    """3x3/pad=1 conv as 9 flat-shifted MXU matmuls over an f32 slab (f32 acc)."""
    acc = None
    for ky in range(3):
        for kx in range(3):
            s = ky * wp + kx                                # flat shift
            lhs = x_f32[s:s + rt, :].astype(jnp.bfloat16)   # (RT, Cin) bf16
            part = jnp.dot(lhs, w_ref[ky * 3 + kx],
                           preferred_element_type=jnp.float32)
            acc = part if acc is None else acc + part
    return acc                                              # (RT, Cp) f32


def _masked_stats(acc, t, rt, wp, w_valid, hwp):
    """Per-tile (sum, sum-of-squares) over the valid N*H*W output pixels only."""
    r = t * rt + jax.lax.broadcasted_iota(jnp.int32, (rt, 1), 0)
    valid = ((r % wp) < w_valid) & (r < hwp)
    zm = jnp.where(valid, acc, 0.0)
    return jnp.concatenate([jnp.sum(zm, axis=0, keepdims=True),
                            jnp.sum(zm * zm, axis=0, keepdims=True)], axis=0)


def _make_conv_stats_kernel(rt, wp, w_valid, hwp, fuse_bn_relu_in):
    """conv3x3 + masked partial BN statistics; optionally fuse an input-side
    BN-apply + ReLU + spatial-padding mask (used for layer 2)."""

    if fuse_bn_relu_in:
        def kernel(slab_ref, w_ref, scale_ref, shift_ref, z_ref, stat_ref):
            # slab_ref: (1, 1, SLAB, Cin) bf16 — pre-BN z1 slab (shifted layout)
            # w_ref:    (9, Cin, Cp)      bf16 — tap-major weights
            # scale/shift: (1, Cin)       f32  — BN1 affine of the *input*
            t = pl.program_id(1)
            slab = slab_ref[0, 0]
            nrows = slab.shape[0]
            # rp = flat index into the spatially re-padded activation a1_pad of
            # shape (H+2, W+2); valid iff 1 <= y' <= H and 1 <= x' <= W.
            rp = t * rt + jax.lax.broadcasted_iota(jnp.int32, (nrows, 1), 0)
            col = rp % wp
            valid_in = (rp >= wp) & (rp < hwp + wp) & (col >= 1) & (col <= w_valid)
            a = slab.astype(jnp.float32) * scale_ref[...] + shift_ref[...]
            a = jnp.where(valid_in, jnp.maximum(a, 0.0), 0.0)   # BN1 + ReLU + pad
            acc = _conv9_f32(a, w_ref, rt, wp)
            z_ref[0, 0] = acc.astype(z_ref.dtype)
            stat_ref[0, 0] = _masked_stats(acc, t, rt, wp, w_valid, hwp)
        return kernel

    def kernel(slab_ref, w_ref, z_ref, stat_ref):
        # slab_ref: (1, 1, SLAB, Cin) bf16 — haloed slab of the padded image
        t = pl.program_id(1)
        acc = _conv9_f32(slab_ref[0, 0].astype(jnp.float32), w_ref, rt, wp)
        z_ref[0, 0] = acc.astype(z_ref.dtype)
        stat_ref[0, 0] = _masked_stats(acc, t, rt, wp, w_valid, hwp)
    return kernel


def _bn_relu_kernel(z_ref, scale_ref, shift_ref, o_ref):
    y = z_ref[...].astype(jnp.float32) * scale_ref[...] + shift_ref[...]
    o_ref[...] = jnp.maximum(y, 0.0).astype(o_ref.dtype)


# ------------------------------ Pallas wrappers ------------------------------
def _gather_slabs(flat, rt, t, slab, shift):
    """Build overlapping row slabs: out[:, j, s, :] = flat[:, j*rt + s - shift, :]
    (clamped / zero-padded; out-of-range rows are masked in-kernel)."""
    n, r, c = flat.shape
    if t == 1:
        lead = shift
        tail = max(0, slab - shift - r)
        sl = jnp.pad(flat, ((0, 0), (lead, tail), (0, 0)))[:, :slab, :]
        return sl[:, None]
    idx = jnp.arange(t)[:, None] * rt + jnp.arange(slab)[None, :] - shift
    idx = jnp.clip(idx, 0, r - 1)
    return flat[:, idx, :]


def _conv_stage(slabs, w9, *, rt, wp, w_valid, hwp, bn_in=None):
    """conv3x3 (+optional fused input BN+ReLU) + partial BN statistics.

    slabs: (N, T, SLAB, Cin) bf16;  w9: (9, Cin, Cp) bf16.
    Returns z_ext (N, T*RT, Cp) bf16 and the per-channel (sum, sum_sq)."""
    n, t, slab, cin = slabs.shape
    cp = w9.shape[-1]
    kernel = _make_conv_stats_kernel(rt, wp, w_valid, hwp, bn_in is not None)

    in_specs = [
        pl.BlockSpec((1, 1, slab, cin), lambda i, j: (i, j, 0, 0)),
        pl.BlockSpec((9, cin, cp), lambda i, j: (0, 0, 0)),
    ]
    args = [slabs, w9]
    if bn_in is not None:
        scale, shift = bn_in
        in_specs += [pl.BlockSpec((1, cin), lambda i, j: (0, 0)),
                     pl.BlockSpec((1, cin), lambda i, j: (0, 0))]
        args += [scale.reshape(1, cin).astype(jnp.float32),
                 shift.reshape(1, cin).astype(jnp.float32)]

    z_ext, stats = pl.pallas_call(
        kernel,
        grid=(n, t),
        in_specs=in_specs,
        out_specs=[
            pl.BlockSpec((1, 1, rt, cp), lambda i, j: (i, j, 0, 0)),
            pl.BlockSpec((1, 1, 2, cp), lambda i, j: (i, j, 0, 0)),
        ],
        out_shape=[
            jax.ShapeDtypeStruct((n, t, rt, cp), jnp.bfloat16),
            jax.ShapeDtypeStruct((n, t, 2, cp), jnp.float32),
        ],
        compiler_params=pltpu.CompilerParams(
            dimension_semantics=("parallel", "parallel"),
            vmem_limit_bytes=VMEM_LIMIT,
        ),
    )(*args)

    ch_sum = jnp.sum(stats[:, :, 0, :], axis=(0, 1))
    ch_sumsq = jnp.sum(stats[:, :, 1, :], axis=(0, 1))
    return z_ext.reshape(n, t * rt, cp), ch_sum, ch_sumsq


def _bn_relu_apply(z_flat, scale, shift, out_dtype, *, row_tile):
    r, cp = z_flat.shape
    return pl.pallas_call(
        _bn_relu_kernel,
        grid=(r // row_tile,),
        in_specs=[
            pl.BlockSpec((row_tile, cp), lambda i: (i, 0)),
            pl.BlockSpec((1, cp), lambda i: (0, 0)),
            pl.BlockSpec((1, cp), lambda i: (0, 0)),
        ],
        out_specs=pl.BlockSpec((row_tile, cp), lambda i: (i, 0)),
        out_shape=jax.ShapeDtypeStruct((r, cp), out_dtype),
        compiler_params=pltpu.CompilerParams(
            dimension_semantics=("parallel",),
            vmem_limit_bytes=VMEM_LIMIT,
        ),
    )(z_flat, scale.reshape(1, cp).astype(jnp.float32),
      shift.reshape(1, cp).astype(jnp.float32))


# ------------------------------ forward pipeline ------------------------------
def _prep_weights(w_oihw, gamma, beta, cin_pad, cp):
    """(Cout,Cin,3,3) -> tap-major (9, cin_pad, cp) bf16; pad gamma/beta to cp."""
    cout, cin_w = w_oihw.shape[0], w_oihw.shape[1]
    w9 = jnp.transpose(w_oihw, (2, 3, 1, 0)).reshape(9, cin_w, cout)
    w9 = jnp.pad(w9, ((0, 0), (0, cin_pad - cin_w), (0, cp - cout)))
    g = jnp.pad(gamma.astype(jnp.float32), (0, cp - cout))
    b = jnp.pad(beta.astype(jnp.float32), (0, cp - cout))
    return w9.astype(jnp.bfloat16), g, b


def _bn_scale_shift(ch_sum, ch_sumsq, count, g, b):
    """Training-mode BatchNorm: batch mean / biased variance over N*H*W."""
    mean = ch_sum / count
    var = jnp.maximum(ch_sumsq / count - mean * mean, 0.0)
    inv = jax.lax.rsqrt(var + BN_EPS)
    scale = g * inv
    shift = b - mean * scale          # zero-padded channels: scale = shift = 0
    return scale, shift


def double_conv_pallas(x_nchw, params, *, row_tile=512):
    """PyTorch-equivalent forward of double_conv.  NCHW in / NCHW out."""
    x = jnp.transpose(x_nchw, (0, 2, 3, 1)).astype(jnp.bfloat16)   # NCHW->NHWC
    n, h, w, cin = x.shape
    wp, hp = w + 2, h + 2
    hwp = h * wp                                   # flat output rows per image
    cnt = float(n * h * w)

    cout1, cout2 = params["w1"].shape[0], params["w2"].shape[0]
    cp1, cp2 = _round_up(cout1, LANE), _round_up(cout2, LANE)

    # Row tile: multiple of 8, scaled with the padded width so the 3x3 halo
    # (2*wp+2 rows) stays a small fraction of the tile.
    rt = min(_round_up(hwp, 8), _round_up(max(row_tile, 8 * wp), 8))
    t = _cdiv(hwp, rt)
    slab = rt + 2 * wp + 2

    # NOTE: conv biases are dropped — a per-channel constant added before a
    # training-mode BatchNorm cancels exactly in the normalized output.
    w9_1, g1, b1 = _prep_weights(params["w1"], params["g1"], params["be1"], cin, cp1)
    w9_2, g2, b2 = _prep_weights(params["w2"], params["g2"], params["be2"], cp1, cp2)

    # ---- Stage 1: conv1 + BN1 batch-statistic partials ----
    xp = jnp.pad(x, ((0, 0), (1, 1), (1, 1), (0, 0)))
    xpf = xp.reshape(n, hp * wp, cin)
    slabs1 = _gather_slabs(xpf, rt, t, slab, shift=0)
    z1, s1, ss1 = _conv_stage(slabs1, w9_1, rt=rt, wp=wp, w_valid=w, hwp=hwp)
    scale1, shift1 = _bn_scale_shift(s1, ss1, cnt, g1, b1)

    # ---- Stage 2: fused BN1-apply + ReLU + conv2 + BN2 statistic partials ----
    # The re-padded activation satisfies a1_pad[rp] = bn_relu(z1[rp - (Wp+1)])
    # (masked in-kernel), so the slabs are just shifted windows of z1.
    slabs2 = _gather_slabs(z1, rt, t, slab, shift=wp + 1)
    z2, s2, ss2 = _conv_stage(slabs2, w9_2, rt=rt, wp=wp, w_valid=w, hwp=hwp,
                              bn_in=(scale1, shift1))
    scale2, shift2 = _bn_scale_shift(s2, ss2, cnt, g2, b2)

    # ---- Stage 3: BN2-apply + ReLU (lane-dense tiles) ----
    rows = z2.shape[1]
    a2 = _bn_relu_apply(z2.reshape(n * rows, cp2), scale2, shift2,
                        jnp.float32, row_tile=rt)
    a2 = a2.reshape(n, rows, cp2)[:, :hwp, :].reshape(n, h, wp, cp2)
    out = a2[:, :, :w, :cout2]                     # drop padded cols / channels
    return jnp.transpose(out, (0, 3, 1, 2))        # NHWC -> NCHW


# ----------------------------- pure-JAX reference -----------------------------
def _ref_block(x_nchw, w, b, g, be):
    z = jax.lax.conv_general_dilated(
        x_nchw, w, window_strides=(1, 1), padding=((1, 1), (1, 1)),
        dimension_numbers=("NCHW", "OIHW", "NCHW"),
        precision=jax.lax.Precision.HIGHEST,
    ) + b.reshape(1, -1, 1, 1)
    mean = jnp.mean(z, axis=(0, 2, 3), keepdims=True)
    var = jnp.mean((z - mean) ** 2, axis=(0, 2, 3), keepdims=True)
    y = (z - mean) / jnp.sqrt(var + BN_EPS) * g.reshape(1, -1, 1, 1) + be.reshape(1, -1, 1, 1)
    return jnp.maximum(y, 0.0)


def double_conv_ref(x_nchw, p):
    x = _ref_block(x_nchw, p["w1"], p["b1"], p["g1"], p["be1"])
    x = _ref_block(x, p["w2"], p["b2"], p["g2"], p["be2"])
    return x


if __name__ == "__main__":
    in_ch, out_ch = 4, 8
    N, H, W = 2, 16, 16

    key = jax.random.PRNGKey(0)
    ks = jax.random.split(key, 9)
    params = {
        "w1": 0.2 * jax.random.normal(ks[0], (out_ch, in_ch, 3, 3), jnp.float32),
        "b1": 0.1 * jax.random.normal(ks[1], (out_ch,), jnp.float32),
        "g1": 1.0 + 0.1 * jax.random.normal(ks[2], (out_ch,), jnp.float32),
        "be1": 0.1 * jax.random.normal(ks[3], (out_ch,), jnp.float32),
        "w2": 0.2 * jax.random.normal(ks[4], (out_ch, out_ch, 3, 3), jnp.float32),
        "b2": 0.1 * jax.random.normal(ks[5], (out_ch,), jnp.float32),
        "g2": 1.0 + 0.1 * jax.random.normal(ks[6], (out_ch,), jnp.float32),
        "be2": 0.1 * jax.random.normal(ks[7], (out_ch,), jnp.float32),
    }
    x = jax.random.normal(ks[8], (N, in_ch, H, W), jnp.float32)

    y = jax.block_until_ready(jax.jit(double_conv_pallas)(x, params))
    y_ref = jax.block_until_ready(double_conv_ref(x, params))

    assert y.shape == (N, out_ch, H, W), y.shape
    max_err = float(jnp.max(jnp.abs(y - y_ref)))
    assert jnp.allclose(y, y_ref, rtol=2.5e-2, atol=2.5e-2), max_err
    print("KERNEL_OK")
</pallas_src>

<mosaic_0001>
module attributes {stable_mosaic.version = 11 : i64} {
  func.func @kernel(%arg0: i32, %arg1: i32, %arg2: memref<1x1x326x4xbf16, #tpu.memory_space<vmem>>, %arg3: memref<9x4x128xbf16, #tpu.memory_space<vmem>>, %arg4: memref<1x1x288x128xbf16, #tpu.memory_space<vmem>>, %arg5: memref<1x1x2x128xf32, #tpu.memory_space<vmem>>) attributes {dimension_semantics = [#tpu.dimension_semantics<parallel>, #tpu.dimension_semantics<parallel>], iteration_bounds = array<i64: 2, 1>, scalar_prefetch = 0 : i64, scratch_operands = 0 : i64, tpu.core_type = #tpu.core_type<tc>, window_params = [{transform_indices = @transform_0, window_bounds = array<i64: 1, 1, 326, 4>}, {pipeline_mode = #tpu.pipeline_mode<synchronous>, transform_indices = @transform_1, window_bounds = array<i64: 9, 4, 128>}, {transform_indices = @transform_2, window_bounds = array<i64: 1, 1, 288, 128>}, {transform_indices = @transform_3, window_bounds = array<i64: 1, 1, 2, 128>}]} {
    %c0 = arith.constant 0 : index
    %c0_0 = arith.constant 0 : index
    %c0_1 = arith.constant 0 : index
    %c0_2 = arith.constant 0 : index
    %0 = vector.load %arg2[%c0, %c0_0, %c0_1, %c0_2] : memref<1x1x326x4xbf16, #tpu.memory_space<vmem>>, vector<1x1x326x4xbf16>
    %1 = vector.shape_cast %0 : vector<1x1x326x4xbf16> to vector<326x4xbf16>
    %2 = arith.extf %1 : vector<326x4xbf16> to vector<326x4xf32>
    %3 = vector.extract_strided_slice %2 {offsets = [0, 0], sizes = [288, 4], strides = [1, 1]} : vector<326x4xf32> to vector<288x4xf32>
    %4 = arith.truncf %3 : vector<288x4xf32> to vector<288x4xbf16>
    %c0_3 = arith.constant 0 : index
    %c0_4 = arith.constant 0 : index
    %c0_5 = arith.constant 0 : index
    %5 = vector.load %arg3[%c0_3, %c0_4, %c0_5] : memref<9x4x128xbf16, #tpu.memory_space<vmem>>, vector<1x4x128xbf16>
    %6 = vector.shape_cast %5 : vector<1x4x128xbf16> to vector<4x128xbf16>
    %cst = arith.constant dense<0.000000e+00> : vector<288x128xf32>
    %7 = tpu.matmul %4, %6, %cst {dimension_numbers = #tpu.dot_dimension_numbers<[1], [0], [0], [1], [0, 0, 1, 1], [], []>} : vector<288x4xbf16>, vector<4x128xbf16>, vector<288x128xf32> -> vector<288x128xf32>
    %8 = vector.extract_strided_slice %2 {offsets = [1, 0], sizes = [288, 4], strides = [1, 1]} : vector<326x4xf32> to vector<288x4xf32>
    %9 = arith.truncf %8 : vector<288x4xf32> to vector<288x4xbf16>
    %c1 = arith.constant 1 : index
    %c0_6 = arith.constant 0 : index
    %c0_7 = arith.constant 0 : index
    %10 = vector.load %arg3[%c1, %c0_6, %c0_7] : memref<9x4x128xbf16, #tpu.memory_space<vmem>>, vector<1x4x128xbf16>
    %11 = vector.shape_cast %10 : vector<1x4x128xbf16> to vector<4x128xbf16>
    %cst_8 = arith.constant dense<0.000000e+00> : vector<288x128xf32>
    %12 = tpu.matmul %9, %11, %cst_8 {dimension_numbers = #tpu.dot_dimension_numbers<[1], [0], [0], [1], [0, 0, 1, 1], [], []>} : vector<288x4xbf16>, vector<4x128xbf16>, vector<288x128xf32> -> vector<288x128xf32>
    %13 = arith.addf %7, %12 : vector<288x128xf32>
    %14 = vector.extract_strided_slice %2 {offsets = [2, 0], sizes = [288, 4], strides = [1, 1]} : vector<326x4xf32> to vector<288x4xf32>
    %15 = arith.truncf %14 : vector<288x4xf32> to vector<288x4xbf16>
    %c2 = arith.constant 2 : index
    %c0_9 = arith.constant 0 : index
    %c0_10 = arith.constant 0 : index
    %16 = vector.load %arg3[%c2, %c0_9, %c0_10] : memref<9x4x128xbf16, #tpu.memory_space<vmem>>, vector<1x4x128xbf16>
    %17 = vector.shape_cast %16 : vector<1x4x128xbf16> to vector<4x128xbf16>
    %cst_11 = arith.constant dense<0.000000e+00> : vector<288x128xf32>
    %18 = tpu.matmul %15, %17, %cst_11 {dimension_numbers = #tpu.dot_dimension_numbers<[1], [0], [0], [1], [0, 0, 1, 1], [], []>} : vector<288x4xbf16>, vector<4x128xbf16>, vector<288x128xf32> -> vector<288x128xf32>
    %19 = arith.addf %13, %18 : vector<288x128xf32>
    %20 = vector.extract_strided_slice %2 {offsets = [18, 0], sizes = [288, 4], strides = [1, 1]} : vector<326x4xf32> to vector<288x4xf32>
    %21 = arith.truncf %20 : vector<288x4xf32> to vector<288x4xbf16>
    %c3 = arith.constant 3 : index
    %c0_12 = arith.constant 0 : index
    %c0_13 = arith.constant 0 : index
    %22 = vector.load %arg3[%c3, %c0_12, %c0_13] : memref<9x4x128xbf16, #tpu.memory_space<vmem>>, vector<1x4x128xbf16>
    %23 = vector.shape_cast %22 : vector<1x4x128xbf16> to vector<4x128xbf16>
    %cst_14 = arith.constant dense<0.000000e+00> : vector<288x128xf32>
    %24 = tpu.matmul %21, %23, %cst_14 {dimension_numbers = #tpu.dot_dimension_numbers<[1], [0], [0], [1], [0, 0, 1, 1], [], []>} : vector<288x4xbf16>, vector<4x128xbf16>, vector<288x128xf32> -> vector<288x128xf32>
    %25 = arith.addf %19, %24 : vector<288x128xf32>
    %26 = vector.extract_strided_slice %2 {offsets = [19, 0], sizes = [288, 4], strides = [1, 1]} : vector<326x4xf32> to vector<288x4xf32>
    %27 = arith.truncf %26 : vector<288x4xf32> to vector<288x4xbf16>
    %c4 = arith.constant 4 : index
    %c0_15 = arith.constant 0 : index
    %c0_16 = arith.constant 0 : index
    %28 = vector.load %arg3[%c4, %c0_15, %c0_16] : memref<9x4x128xbf16, #tpu.memory_space<vmem>>, vector<1x4x128xbf16>
    %29 = vector.shape_cast %28 : vector<1x4x128xbf16> to vector<4x128xbf16>
    %cst_17 = arith.constant dense<0.000000e+00> : vector<288x128xf32>
    %30 = tpu.matmul %27, %29, %cst_17 {dimension_numbers = #tpu.dot_dimension_numbers<[1], [0], [0], [1], [0, 0, 1, 1], [], []>} : vector<288x4xbf16>, vector<4x128xbf16>, vector<288x128xf32> -> vector<288x128xf32>
    %31 = arith.addf %25, %30 : vector<288x128xf32>
    %32 = vector.extract_strided_slice %2 {offsets = [20, 0], sizes = [288, 4], strides = [1, 1]} : vector<326x4xf32> to vector<288x4xf32>
    %33 = arith.truncf %32 : vector<288x4xf32> to vector<288x4xbf16>
    %c5 = arith.constant 5 : index
    %c0_18 = arith.constant 0 : index
    %c0_19 = arith.constant 0 : index
    %34 = vector.load %arg3[%c5, %c0_18, %c0_19] : memref<9x4x128xbf16, #tpu.memory_space<vmem>>, vector<1x4x128xbf16>
    %35 = vector.shape_cast %34 : vector<1x4x128xbf16> to vector<4x128xbf16>
    %cst_20 = arith.constant dense<0.000000e+00> : vector<288x128xf32>
    %36 = tpu.matmul %33, %35, %cst_20 {dimension_numbers = #tpu.dot_dimension_numbers<[1], [0], [0], [1], [0, 0, 1, 1], [], []>} : vector<288x4xbf16>, vector<4x128xbf16>, vector<288x128xf32> -> vector<288x128xf32>
    %37 = arith.addf %31, %36 : vector<288x128xf32>
    %38 = vector.extract_strided_slice %2 {offsets = [36, 0], sizes = [288, 4], strides = [1, 1]} : vector<326x4xf32> to vector<288x4xf32>
    %39 = arith.truncf %38 : vector<288x4xf32> to vector<288x4xbf16>
    %c6 = arith.constant 6 : index
    %c0_21 = arith.constant 0 : index
    %c0_22 = arith.constant 0 : index
    %40 = vector.load %arg3[%c6, %c0_21, %c0_22] : memref<9x4x128xbf16, #tpu.memory_space<vmem>>, vector<1x4x128xbf16>
    %41 = vector.shape_cast %40 : vector<1x4x128xbf16> to vector<4x128xbf16>
    %cst_23 = arith.constant dense<0.000000e+00> : vector<288x128xf32>
    %42 = tpu.matmul %39, %41, %cst_23 {dimension_numbers = #tpu.dot_dimension_numbers<[1], [0], [0], [1], [0, 0, 1, 1], [], []>} : vector<288x4xbf16>, vector<4x128xbf16>, vector<288x128xf32> -> vector<288x128xf32>
    %43 = arith.addf %37, %42 : vector<288x128xf32>
    %44 = vector.extract_strided_slice %2 {offsets = [37, 0], sizes = [288, 4], strides = [1, 1]} : vector<326x4xf32> to vector<288x4xf32>
    %45 = arith.truncf %44 : vector<288x4xf32> to vector<288x4xbf16>
    %c7 = arith.constant 7 : index
    %c0_24 = arith.constant 0 : index
    %c0_25 = arith.constant 0 : index
    %46 = vector.load %arg3[%c7, %c0_24, %c0_25] : memref<9x4x128xbf16, #tpu.memory_space<vmem>>, vector<1x4x128xbf16>
    %47 = vector.shape_cast %46 : vector<1x4x128xbf16> to vector<4x128xbf16>
    %cst_26 = arith.constant dense<0.000000e+00> : vector<288x128xf32>
    %48 = tpu.matmul %45, %47, %cst_26 {dimension_numbers = #tpu.dot_dimension_numbers<[1], [0], [0], [1], [0, 0, 1, 1], [], []>} : vector<288x4xbf16>, vector<4x128xbf16>, vector<288x128xf32> -> vector<288x128xf32>
    %49 = arith.addf %43, %48 : vector<288x128xf32>
    %50 = vector.extract_strided_slice %2 {offsets = [38, 0], sizes = [288, 4], strides = [1, 1]} : vector<326x4xf32> to vector<288x4xf32>
    %51 = arith.truncf %50 : vector<288x4xf32> to vector<288x4xbf16>
    %c8 = arith.constant 8 : index
    %c0_27 = arith.constant 0 : index
    %c0_28 = arith.constant 0 : index
    %52 = vector.load %arg3[%c8, %c0_27, %c0_28] : memref<9x4x128xbf16, #tpu.memory_space<vmem>>, vector<1x4x128xbf16>
    %53 = vector.shape_cast %52 : vector<1x4x128xbf16> to vector<4x128xbf16>
    %cst_29 = arith.constant dense<0.000000e+00> : vector<288x128xf32>
    %54 = tpu.matmul %51, %53, %cst_29 {dimension_numbers = #tpu.dot_dimension_numbers<[1], [0], [0], [1], [0, 0, 1, 1], [], []>} : vector<288x4xbf16>, vector<4x128xbf16>, vector<288x128xf32> -> vector<288x128xf32>
    %55 = arith.addf %49, %54 : vector<288x128xf32>
    %56 = arith.truncf %55 : vector<288x128xf32> to vector<288x128xbf16>
    %c0_30 = arith.constant 0 : index
    %c0_31 = arith.constant 0 : index
    %c0_32 = arith.constant 0 : index
    %c0_33 = arith.constant 0 : index
    %57 = vector.load %arg4[%c0_30, %c0_31, %c0_32, %c0_33] : memref<1x1x288x128xbf16, #tpu.memory_space<vmem>>, vector<1x1x288x128xbf16>
    %58 = vector.shape_cast %57 : vector<1x1x288x128xbf16> to vector<288x128xbf16>
    %59 = vector.shape_cast %56 : vector<288x128xbf16> to vector<1x1x288x128xbf16>
    tpu.vector_store %arg4[%c0_30, %c0_31, %c0_32, %c0_33], %59 {strides = array<i32>} : memref<1x1x288x128xbf16, #tpu.memory_space<vmem>>, vector<1x1x288x128xbf16>,
    %c288_i32 = arith.constant 288 : i32
    %60 = arith.muli %arg1, %c288_i32 : i32
    %61 = tpu.iota {dimensions = array<i32: 0>} : vector<288x1xi32>
    %62 = vector.broadcast %60 : i32 to vector<288x1xi32>
    %63 = arith.addi %62, %61 : vector<288x1xi32>
    %c18_i32 = arith.constant 18 : i32
    %c0_i32 = arith.constant 0 : i32
    %64 = arith.cmpi eq, %c18_i32, %c0_i32 : i32
    %c1_i32 = arith.constant 1 : i32
    %65 = arith.select %64, %c1_i32, %c18_i32 : i32
    %66 = vector.broadcast %65 : i32 to vector<288x1xi32>
    %67 = arith.remsi %63, %66 : vector<288x1xi32>
    %c0_i32_34 = arith.constant 0 : i32
    %68 = vector.broadcast %c0_i32_34 : i32 to vector<288x1xi32>
    %69 = arith.cmpi ne, %67, %68 : vector<288x1xi32>
    %c0_i32_35 = arith.constant 0 : i32
    %70 = vector.broadcast %c0_i32_35 : i32 to vector<288x1xi32>
    %71 = arith.cmpi slt, %67, %70 : vector<288x1xi32>
    %c0_i32_36 = arith.constant 0 : i32
    %72 = arith.cmpi slt, %65, %c0_i32_36 : i32
    %73 = vector.broadcast %72 : i1 to vector<288x1xi1>
    %74 = vector.broadcast %73 : vector<288x1xi1> to vector<288x1xi1>
    %75 = arith.xori %71, %74 : vector<288x1xi1>
    %76 = arith.andi %75, %69 : vector<288x1xi1>
    %77 = vector.broadcast %65 : i32 to vector<288x1xi32>
    %78 = arith.addi %67, %77 : vector<288x1xi32>
    %79 = arith.select %76, %78, %67 : vector<288x1xi1>, vector<288x1xi32>
    %c16_i32 = arith.constant 16 : i32
    %80 = vector.broadcast %c16_i32 : i32 to vector<288x1xi32>
    %81 = arith.cmpi slt, %79, %80 : vector<288x1xi32>
    %c288_i32_37 = arith.constant 288 : i32
    %82 = vector.broadcast %c288_i32_37 : i32 to vector<288x1xi32>
    %83 = arith.cmpi slt, %63, %82 : vector<288x1xi32>
    %84 = arith.andi %81, %83 : vector<288x1xi1>
    %cst_38 = arith.constant 0.000000e+00 : f32
    %85 = vector.shape_cast %84 : vector<288x1xi1> to vector<288x1xi1>
    %86 = vector.broadcast %85 : vector<288x1xi1> to vector<288x128xi1>
    %87 = vector.broadcast %cst_38 : f32 to vector<288x128xf32>
    %88 = arith.select %86, %55, %87 : vector<288x128xi1>, vector<288x128xf32>
    %cst_39 = arith.constant dense<0.000000e+00> : vector<128xf32>
    %89 = vector.multi_reduction <add>, %88, %cst_39 [0] : vector<288x128xf32> to vector<128xf32>
    %90 = vector.shape_cast %89 : vector<128xf32> to vector<1x128xf32>
    %91 = arith.mulf %88, %88 : vector<288x128xf32>
    %cst_40 = arith.constant dense<0.000000e+00> : vector<128xf32>
    %92 = vector.multi_reduction <add>, %91, %cst_40 [0] : vector<288x128xf32> to vector<128xf32>
    %93 = vector.shape_cast %92 : vector<128xf32> to vector<1x128xf32>
    %94 = tpu.concatenate %90, %93 in 0 : vector<1x128xf32>, vector<1x128xf32> -> vector<2x128xf32>
    %c0_41 = arith.constant 0 : index
    %c0_42 = arith.constant 0 : index
    %c0_43 = arith.constant 0 : index
    %c0_44 = arith.constant 0 : index
    %95 = vector.load %arg5[%c0_41, %c0_42, %c0_43, %c0_44] : memref<1x1x2x128xf32, #tpu.memory_space<vmem>>, vector<1x1x2x128xf32>
    %96 = vector.shape_cast %95 : vector<1x1x2x128xf32> to vector<2x128xf32>
    %97 = vector.shape_cast %94 : vector<2x128xf32> to vector<1x1x2x128xf32>
    tpu.vector_store %arg5[%c0_41, %c0_42, %c0_43, %c0_44], %97 {strides = array<i32>} : memref<1x1x2x128xf32, #tpu.memory_space<vmem>>, vector<1x1x2x128xf32>,
    return
  }
  func.func @transform_0(%arg0: i32, %arg1: i32) -> (i32, i32, i32, i32) {
    %c0_i32 = arith.constant 0 : i32
    %c0_i32_0 = arith.constant 0 : i32
    %c0_i32_1 = arith.constant 0 : i32
    return %arg0, %arg1, %c0_i32, %c0_i32_0 : i32, i32, i32, i32
  }
  func.func @transform_1(%arg0: i32, %arg1: i32) -> (i32, i32, i32) {
    %c0_i32 = arith.constant 0 : i32
    %c0_i32_0 = arith.constant 0 : i32
    %c0_i32_1 = arith.constant 0 : i32
    %c0_i32_2 = arith.constant 0 : i32
    return %c0_i32, %c0_i32_0, %c0_i32_1 : i32, i32, i32
  }
  func.func @transform_2(%arg0: i32, %arg1: i32) -> (i32, i32, i32, i32) {
    %c0_i32 = arith.constant 0 : i32
    %c0_i32_0 = arith.constant 0 : i32
    %c0_i32_1 = arith.constant 0 : i32
    return %arg0, %arg1, %c0_i32, %c0_i32_0 : i32, i32, i32, i32
  }
  func.func @transform_3(%arg0: i32, %arg1: i32) -> (i32, i32, i32, i32) {
    %c0_i32 = arith.constant 0 : i32
    %c0_i32_0 = arith.constant 0 : i32
    %c0_i32_1 = arith.constant 0 : i32
    return %arg0, %arg1, %c0_i32, %c0_i32_0 : i32, i32, i32, i32
  }
}

module attributes {stable_mosaic.version = 11 : i64} {
  func.func @_bn_relu_kernel(%arg0: i32, %arg1: memref<288x128xbf16, #tpu.memory_space<vmem>>, %arg2: memref<1x128xf32, #tpu.memory_space<vmem>>, %arg3: memref<1x128xf32, #tpu.memory_space<vmem>>, %arg4: memref<288x128xf32, #tpu.memory_space<vmem>>) attributes {dimension_semantics = [#tpu.dimension_semantics<parallel>], iteration_bounds = array<i64: 2>, scalar_prefetch = 0 : i64, scratch_operands = 0 : i64, tpu.core_type = #tpu.core_type<tc>, window_params = [{transform_indices = @transform_0, window_bounds = array<i64: 288, 128>}, {pipeline_mode = #tpu.pipeline_mode<synchronous>, transform_indices = @transform_1, window_bounds = array<i64: 1, 128>}, {pipeline_mode = #tpu.pipeline_mode<synchronous>, transform_indices = @transform_2, window_bounds = array<i64: 1, 128>}, {transform_indices = @transform_3, window_bounds = array<i64: 288, 128>}]} {
    %c0 = arith.constant 0 : index
    %c0_0 = arith.constant 0 : index
    %0 = vector.load %arg1[%c0, %c0_0] : memref<288x128xbf16, #tpu.memory_space<vmem>>, vector<288x128xbf16>
    %1 = arith.extf %0 : vector<288x128xbf16> to vector<288x128xf32>
    %c0_1 = arith.constant 0 : index
    %c0_2 = arith.constant 0 : index
    %2 = vector.load %arg2[%c0_1, %c0_2] : memref<1x128xf32, #tpu.memory_space<vmem>>, vector<1x128xf32>
    %3 = vector.broadcast %2 : vector<1x128xf32> to vector<288x128xf32>
    %4 = arith.mulf %1, %3 : vector<288x128xf32>
    %c0_3 = arith.constant 0 : index
    %c0_4 = arith.constant 0 : index
    %5 = vector.load %arg3[%c0_3, %c0_4] : memref<1x128xf32, #tpu.memory_space<vmem>>, vector<1x128xf32>
    %6 = vector.broadcast %5 : vector<1x128xf32> to vector<288x128xf32>
    %7 = arith.addf %4, %6 : vector<288x128xf32>
    %cst = arith.constant 0.000000e+00 : f32
    %8 = vector.broadcast %cst : f32 to vector<288x128xf32>
    %9 = arith.maximumf %7, %8 : vector<288x128xf32>
    %c0_5 = arith.constant 0 : index
    %c0_6 = arith.constant 0 : index
    %10 = vector.load %arg4[%c0_5, %c0_6] : memref<288x128xf32, #tpu.memory_space<vmem>>, vector<288x128xf32>
    tpu.vector_store %arg4[%c0_5, %c0_6], %9 {strides = array<i32>} : memref<288x128xf32, #tpu.memory_space<vmem>>, vector<288x128xf32>,
    return
  }
  func.func @transform_0(%arg0: i32) -> (i32, i32) {
    %c0_i32 = arith.constant 0 : i32
    %c0_i32_0 = arith.constant 0 : i32
    return %arg0, %c0_i32 : i32, i32
  }
  func.func @transform_1(%arg0: i32) -> (i32, i32) {
    %c0_i32 = arith.constant 0 : i32
    %c0_i32_0 = arith.constant 0 : i32
    %c0_i32_1 = arith.constant 0 : i32
    return %c0_i32, %c0_i32_0 : i32, i32
  }
  func.func @transform_2(%arg0: i32) -> (i32, i32) {
    %c0_i32 = arith.constant 0 : i32
    %c0_i32_0 = arith.constant 0 : i32
    %c0_i32_1 = arith.constant 0 : i32
    return %c0_i32, %c0_i32_0 : i32, i32
  }
  func.func @transform_3(%arg0: i32) -> (i32, i32) {
    %c0_i32 = arith.constant 0 : i32
    %c0_i32_0 = arith.constant 0 : i32
    return %arg0, %c0_i32 : i32, i32
  }
}

module attributes {stable_mosaic.version = 11 : i64} {
  func.func @kernel(%arg0: i32, %arg1: i32, %arg2: memref<1x1x326x128xbf16, #tpu.memory_space<vmem>>, %arg3: memref<9x128x128xbf16, #tpu.memory_space<vmem>>, %arg4: memref<1x128xf32, #tpu.memory_space<vmem>>, %arg5: memref<1x128xf32, #tpu.memory_space<vmem>>, %arg6: memref<1x1x288x128xbf16, #tpu.memory_space<vmem>>, %arg7: memref<1x1x2x128xf32, #tpu.memory_space<vmem>>) attributes {dimension_semantics = [#tpu.dimension_semantics<parallel>, #tpu.dimension_semantics<parallel>], iteration_bounds = array<i64: 2, 1>, scalar_prefetch = 0 : i64, scratch_operands = 0 : i64, tpu.core_type = #tpu.core_type<tc>, window_params = [{transform_indices = @transform_0, window_bounds = array<i64: 1, 1, 326, 128>}, {pipeline_mode = #tpu.pipeline_mode<synchronous>, transform_indices = @transform_1, window_bounds = array<i64: 9, 128, 128>}, {pipeline_mode = #tpu.pipeline_mode<synchronous>, transform_indices = @transform_2, window_bounds = array<i64: 1, 128>}, {pipeline_mode = #tpu.pipeline_mode<synchronous>, transform_indices = @transform_3, window_bounds = array<i64: 1, 128>}, {transform_indices = @transform_4, window_bounds = array<i64: 1, 1, 288, 128>}, {transform_indices = @transform_5, window_bounds = array<i64: 1, 1, 2, 128>}]} {
    %c0 = arith.constant 0 : index
    %c0_0 = arith.constant 0 : index
    %c0_1 = arith.constant 0 : index
    %c0_2 = arith.constant 0 : index
    %0 = vector.load %arg2[%c0, %c0_0, %c0_1, %c0_2] : memref<1x1x326x128xbf16, #tpu.memory_space<vmem>>, vector<1x1x326x128xbf16>
    %1 = vector.shape_cast %0 : vector<1x1x326x128xbf16> to vector<326x128xbf16>
    %c288_i32 = arith.constant 288 : i32
    %2 = arith.muli %arg1, %c288_i32 : i32
    %3 = tpu.iota {dimensions = array<i32: 0>} : vector<326x1xi32>
    %4 = vector.broadcast %2 : i32 to vector<326x1xi32>
    %5 = arith.addi %4, %3 : vector<326x1xi32>
    %c18_i32 = arith.constant 18 : i32
    %c0_i32 = arith.constant 0 : i32
    %6 = arith.cmpi eq, %c18_i32, %c0_i32 : i32
    %c1_i32 = arith.constant 1 : i32
    %7 = arith.select %6, %c1_i32, %c18_i32 : i32
    %8 = vector.broadcast %7 : i32 to vector<326x1xi32>
    %9 = arith.remsi %5, %8 : vector<326x1xi32>
    %c0_i32_3 = arith.constant 0 : i32
    %10 = vector.broadcast %c0_i32_3 : i32 to vector<326x1xi32>
    %11 = arith.cmpi ne, %9, %10 : vector<326x1xi32>
    %c0_i32_4 = arith.constant 0 : i32
    %12 = vector.broadcast %c0_i32_4 : i32 to vector<326x1xi32>
    %13 = arith.cmpi slt, %9, %12 : vector<326x1xi32>
    %c0_i32_5 = arith.constant 0 : i32
    %14 = arith.cmpi slt, %7, %c0_i32_5 : i32
    %15 = vector.broadcast %14 : i1 to vector<326x1xi1>
    %16 = vector.broadcast %15 : vector<326x1xi1> to vector<326x1xi1>
    %17 = arith.xori %13, %16 : vector<326x1xi1>
    %18 = arith.andi %17, %11 : vector<326x1xi1>
    %19 = vector.broadcast %7 : i32 to vector<326x1xi32>
    %20 = arith.addi %9, %19 : vector<326x1xi32>
    %21 = arith.select %18, %20, %9 : vector<326x1xi1>, vector<326x1xi32>
    %c18_i32_6 = arith.constant 18 : i32
    %22 = vector.broadcast %c18_i32_6 : i32 to vector<326x1xi32>
    %23 = arith.cmpi sge, %5, %22 : vector<326x1xi32>
    %c306_i32 = arith.constant 306 : i32
    %24 = vector.broadcast %c306_i32 : i32 to vector<326x1xi32>
    %25 = arith.cmpi slt, %5, %24 : vector<326x1xi32>
    %26 = arith.andi %23, %25 : vector<326x1xi1>
    %c1_i32_7 = arith.constant 1 : i32
    %27 = vector.broadcast %c1_i32_7 : i32 to vector<326x1xi32>
    %28 = arith.cmpi sge, %21, %27 : vector<326x1xi32>
    %29 = arith.andi %26, %28 : vector<326x1xi1>
    %c16_i32 = arith.constant 16 : i32
    %30 = vector.broadcast %c16_i32 : i32 to vector<326x1xi32>
    %31 = arith.cmpi sle, %21, %30 : vector<326x1xi32>
    %32 = arith.andi %29, %31 : vector<326x1xi1>
    %33 = arith.extf %1 : vector<326x128xbf16> to vector<326x128xf32>
    %c0_8 = arith.constant 0 : index
    %c0_9 = arith.constant 0 : index
    %34 = vector.load %arg4[%c0_8, %c0_9] : memref<1x128xf32, #tpu.memory_space<vmem>>, vector<1x128xf32>
    %35 = vector.broadcast %34 : vector<1x128xf32> to vector<326x128xf32>
    %36 = arith.mulf %33, %35 : vector<326x128xf32>
    %c0_10 = arith.constant 0 : index
    %c0_11 = arith.constant 0 : index
    %37 = vector.load %arg5[%c0_10, %c0_11] : memref<1x128xf32, #tpu.memory_space<vmem>>, vector<1x128xf32>
    %38 = vector.broadcast %37 : vector<1x128xf32> to vector<326x128xf32>
    %39 = arith.addf %36, %38 : vector<326x128xf32>
    %cst = arith.constant 0.000000e+00 : f32
    %40 = vector.broadcast %cst : f32 to vector<326x128xf32>
    %41 = arith.maximumf %39, %40 : vector<326x128xf32>
    %cst_12 = arith.constant 0.000000e+00 : f32
    %42 = vector.shape_cast %32 : vector<326x1xi1> to vector<326x1xi1>
    %43 = vector.broadcast %42 : vector<326x1xi1> to vector<326x128xi1>
    %44 = vector.broadcast %cst_12 : f32 to vector<326x128xf32>
    %45 = arith.select %43, %41, %44 : vector<326x128xi1>, vector<326x128xf32>
    %46 = vector.extract_strided_slice %45 {offsets = [0, 0], sizes = [288, 128], strides = [1, 1]} : vector<326x128xf32> to vector<288x128xf32>
    %47 = arith.truncf %46 : vector<288x128xf32> to vector<288x128xbf16>
    %c0_13 = arith.constant 0 : index
    %c0_14 = arith.constant 0 : index
    %c0_15 = arith.constant 0 : index
    %48 = vector.load %arg3[%c0_13, %c0_14, %c0_15] : memref<9x128x128xbf16, #tpu.memory_space<vmem>>, vector<1x128x128xbf16>
    %49 = vector.shape_cast %48 : vector<1x128x128xbf16> to vector<128x128xbf16>
    %cst_16 = arith.constant dense<0.000000e+00> : vector<288x128xf32>
    %50 = tpu.matmul %47, %49, %cst_16 {dimension_numbers = #tpu.dot_dimension_numbers<[1], [0], [0], [1], [0, 0, 1, 1], [], []>} : vector<288x128xbf16>, vector<128x128xbf16>, vector<288x128xf32> -> vector<288x128xf32>
    %51 = vector.extract_strided_slice %45 {offsets = [1, 0], sizes = [288, 128], strides = [1, 1]} : vector<326x128xf32> to vector<288x128xf32>
    %52 = arith.truncf %51 : vector<288x128xf32> to vector<288x128xbf16>
    %c1 = arith.constant 1 : index
    %c0_17 = arith.constant 0 : index
    %c0_18 = arith.constant 0 : index
    %53 = vector.load %arg3[%c1, %c0_17, %c0_18] : memref<9x128x128xbf16, #tpu.memory_space<vmem>>, vector<1x128x128xbf16>
    %54 = vector.shape_cast %53 : vector<1x128x128xbf16> to vector<128x128xbf16>
    %cst_19 = arith.constant dense<0.000000e+00> : vector<288x128xf32>
    %55 = tpu.matmul %52, %54, %cst_19 {dimension_numbers = #tpu.dot_dimension_numbers<[1], [0], [0], [1], [0, 0, 1, 1], [], []>} : vector<288x128xbf16>, vector<128x128xbf16>, vector<288x128xf32> -> vector<288x128xf32>
    %56 = arith.addf %50, %55 : vector<288x128xf32>
    %57 = vector.extract_strided_slice %45 {offsets = [2, 0], sizes = [288, 128], strides = [1, 1]} : vector<326x128xf32> to vector<288x128xf32>
    %58 = arith.truncf %57 : vector<288x128xf32> to vector<288x128xbf16>
    %c2 = arith.constant 2 : index
    %c0_20 = arith.constant 0 : index
    %c0_21 = arith.constant 0 : index
    %59 = vector.load %arg3[%c2, %c0_20, %c0_21] : memref<9x128x128xbf16, #tpu.memory_space<vmem>>, vector<1x128x128xbf16>
    %60 = vector.shape_cast %59 : vector<1x128x128xbf16> to vector<128x128xbf16>
    %cst_22 = arith.constant dense<0.000000e+00> : vector<288x128xf32>
    %61 = tpu.matmul %58, %60, %cst_22 {dimension_numbers = #tpu.dot_dimension_numbers<[1], [0], [0], [1], [0, 0, 1, 1], [], []>} : vector<288x128xbf16>, vector<128x128xbf16>, vector<288x128xf32> -> vector<288x128xf32>
    %62 = arith.addf %56, %61 : vector<288x128xf32>
    %63 = vector.extract_strided_slice %45 {offsets = [18, 0], sizes = [288, 128], strides = [1, 1]} : vector<326x128xf32> to vector<288x128xf32>
    %64 = arith.truncf %63 : vector<288x128xf32> to vector<288x128xbf16>
    %c3 = arith.constant 3 : index
    %c0_23 = arith.constant 0 : index
    %c0_24 = arith.constant 0 : index
    %65 = vector.load %arg3[%c3, %c0_23, %c0_24] : memref<9x128x128xbf16, #tpu.memory_space<vmem>>, vector<1x128x128xbf16>
    %66 = vector.shape_cast %65 : vector<1x128x128xbf16> to vector<128x128xbf16>
    %cst_25 = arith.constant dense<0.000000e+00> : vector<288x128xf32>
    %67 = tpu.matmul %64, %66, %cst_25 {dimension_numbers = #tpu.dot_dimension_numbers<[1], [0], [0], [1], [0, 0, 1, 1], [], []>} : vector<288x128xbf16>, vector<128x128xbf16>, vector<288x128xf32> -> vector<288x128xf32>
    %68 = arith.addf %62, %67 : vector<288x128xf32>
    %69 = vector.extract_strided_slice %45 {offsets = [19, 0], sizes = [288, 128], strides = [1, 1]} : vector<326x128xf32> to vector<288x128xf32>
    %70 = arith.truncf %69 : vector<288x128xf32> to vector<288x128xbf16>
    %c4 = arith.constant 4 : index
    %c0_26 = arith.constant 0 : index
    %c0_27 = arith.constant 0 : index
    %71 = vector.load %arg3[%c4, %c0_26, %c0_27] : memref<9x128x128xbf16, #tpu.memory_space<vmem>>, vector<1x128x128xbf16>
    %72 = vector.shape_cast %71 : vector<1x128x128xbf16> to vector<128x128xbf16>
    %cst_28 = arith.constant dense<0.000000e+00> : vector<288x128xf32>
    %73 = tpu.matmul %70, %72, %cst_28 {dimension_numbers = #tpu.dot_dimension_numbers<[1], [0], [0], [1], [0, 0, 1, 1], [], []>} : vector<288x128xbf16>, vector<128x128xbf16>, vector<288x128xf32> -> vector<288x128xf32>
    %74 = arith.addf %68, %73 : vector<288x128xf32>
    %75 = vector.extract_strided_slice %45 {offsets = [20, 0], sizes = [288, 128], strides = [1, 1]} : vector<326x128xf32> to vector<288x128xf32>
    %76 = arith.truncf %75 : vector<288x128xf32> to vector<288x128xbf16>
    %c5 = arith.constant 5 : index
    %c0_29 = arith.constant 0 : index
    %c0_30 = arith.constant 0 : index
    %77 = vector.load %arg3[%c5, %c0_29, %c0_30] : memref<9x128x128xbf16, #tpu.memory_space<vmem>>, vector<1x128x128xbf16>
    %78 = vector.shape_cast %77 : vector<1x128x128xbf16> to vector<128x128xbf16>
    %cst_31 = arith.constant dense<0.000000e+00> : vector<288x128xf32>
    %79 = tpu.matmul %76, %78, %cst_31 {dimension_numbers = #tpu.dot_dimension_numbers<[1], [0], [0], [1], [0, 0, 1, 1], [], []>} : vector<288x128xbf16>, vector<128x128xbf16>, vector<288x128xf32> -> vector<288x128xf32>
    %80 = arith.addf %74, %79 : vector<288x128xf32>
    %81 = vector.extract_strided_slice %45 {offsets = [36, 0], sizes = [288, 128], strides = [1, 1]} : vector<326x128xf32> to vector<288x128xf32>
    %82 = arith.truncf %81 : vector<288x128xf32> to vector<288x128xbf16>
    %c6 = arith.constant 6 : index
    %c0_32 = arith.constant 0 : index
    %c0_33 = arith.constant 0 : index
    %83 = vector.load %arg3[%c6, %c0_32, %c0_33] : memref<9x128x128xbf16, #tpu.memory_space<vmem>>, vector<1x128x128xbf16>
    %84 = vector.shape_cast %83 : vector<1x128x128xbf16> to vector<128x128xbf16>
    %cst_34 = arith.constant dense<0.000000e+00> : vector<288x128xf32>
    %85 = tpu.matmul %82, %84, %cst_34 {dimension_numbers = #tpu.dot_dimension_numbers<[1], [0], [0], [1], [0, 0, 1, 1], [], []>} : vector<288x128xbf16>, vector<128x128xbf16>, vector<288x128xf32> -> vector<288x128xf32>
    %86 = arith.addf %80, %85 : vector<288x128xf32>
    %87 = vector.extract_strided_slice %45 {offsets = [37, 0], sizes = [288, 128], strides = [1, 1]} : vector<326x128xf32> to vector<288x128xf32>
    %88 = arith.truncf %87 : vector<288x128xf32> to vector<288x128xbf16>
    %c7 = arith.constant 7 : index
    %c0_35 = arith.constant 0 : index
    %c0_36 = arith.constant 0 : index
    %89 = vector.load %arg3[%c7, %c0_35, %c0_36] : memref<9x128x128xbf16, #tpu.memory_space<vmem>>, vector<1x128x128xbf16>
    %90 = vector.shape_cast %89 : vector<1x128x128xbf16> to vector<128x128xbf16>
    %cst_37 = arith.constant dense<0.000000e+00> : vector<288x128xf32>
    %91 = tpu.matmul %88, %90, %cst_37 {dimension_numbers = #tpu.dot_dimension_numbers<[1], [0], [0], [1], [0, 0, 1, 1], [], []>} : vector<288x128xbf16>, vector<128x128xbf16>, vector<288x128xf32> -> vector<288x128xf32>
    %92 = arith.addf %86, %91 : vector<288x128xf32>
    %93 = vector.extract_strided_slice %45 {offsets = [38, 0], sizes = [288, 128], strides = [1, 1]} : vector<326x128xf32> to vector<288x128xf32>
    %94 = arith.truncf %93 : vector<288x128xf32> to vector<288x128xbf16>
    %c8 = arith.constant 8 : index
    %c0_38 = arith.constant 0 : index
    %c0_39 = arith.constant 0 : index
    %95 = vector.load %arg3[%c8, %c0_38, %c0_39] : memref<9x128x128xbf16, #tpu.memory_space<vmem>>, vector<1x128x128xbf16>
    %96 = vector.shape_cast %95 : vector<1x128x128xbf16> to vector<128x128xbf16>
    %cst_40 = arith.constant dense<0.000000e+00> : vector<288x128xf32>
    %97 = tpu.matmul %94, %96, %cst_40 {dimension_numbers = #tpu.dot_dimension_numbers<[1], [0], [0], [1], [0, 0, 1, 1], [], []>} : vector<288x128xbf16>, vector<128x128xbf16>, vector<288x128xf32> -> vector<288x128xf32>
    %98 = arith.addf %92, %97 : vector<288x128xf32>
    %99 = arith.truncf %98 : vector<288x128xf32> to vector<288x128xbf16>
    %c0_41 = arith.constant 0 : index
    %c0_42 = arith.constant 0 : index
    %c0_43 = arith.constant 0 : index
    %c0_44 = arith.constant 0 : index
    %100 = vector.load %arg6[%c0_41, %c0_42, %c0_43, %c0_44] : memref<1x1x288x128xbf16, #tpu.memory_space<vmem>>, vector<1x1x288x128xbf16>
    %101 = vector.shape_cast %100 : vector<1x1x288x128xbf16> to vector<288x128xbf16>
    %102 = vector.shape_cast %99 : vector<288x128xbf16> to vector<1x1x288x128xbf16>
    tpu.vector_store %arg6[%c0_41, %c0_42, %c0_43, %c0_44], %102 {strides = array<i32>} : memref<1x1x288x128xbf16, #tpu.memory_space<vmem>>, vector<1x1x288x128xbf16>,
    %c288_i32_45 = arith.constant 288 : i32
    %103 = arith.muli %arg1, %c288_i32_45 : i32
    %104 = tpu.iota {dimensions = array<i32: 0>} : vector<288x1xi32>
    %105 = vector.broadcast %103 : i32 to vector<288x1xi32>
    %106 = arith.addi %105, %104 : vector<288x1xi32>
    %c18_i32_46 = arith.constant 18 : i32
    %c0_i32_47 = arith.constant 0 : i32
    %107 = arith.cmpi eq, %c18_i32_46, %c0_i32_47 : i32
    %c1_i32_48 = arith.constant 1 : i32
    %108 = arith.select %107, %c1_i32_48, %c18_i32_46 : i32
    %109 = vector.broadcast %108 : i32 to vector<288x1xi32>
    %110 = arith.remsi %106, %109 : vector<288x1xi32>
    %c0_i32_49 = arith.constant 0 : i32
    %111 = vector.broadcast %c0_i32_49 : i32 to vector<288x1xi32>
    %112 = arith.cmpi ne, %110, %111 : vector<288x1xi32>
    %c0_i32_50 = arith.constant 0 : i32
    %113 = vector.broadcast %c0_i32_50 : i32 to vector<288x1xi32>
    %114 = arith.cmpi slt, %110, %113 : vector<288x1xi32>
    %c0_i32_51 = arith.constant 0 : i32
    %115 = arith.cmpi slt, %108, %c0_i32_51 : i32
    %116 = vector.broadcast %115 : i1 to vector<288x1xi1>
    %117 = vector.broadcast %116 : vector<288x1xi1> to vector<288x1xi1>
    %118 = arith.xori %114, %117 : vector<288x1xi1>
    %119 = arith.andi %118, %112 : vector<288x1xi1>
    %120 = vector.broadcast %108 : i32 to vector<288x1xi32>
    %121 = arith.addi %110, %120 : vector<288x1xi32>
    %122 = arith.select %119, %121, %110 : vector<288x1xi1>, vector<288x1xi32>
    %c16_i32_52 = arith.constant 16 : i32
    %123 = vector.broadcast %c16_i32_52 : i32 to vector<288x1xi32>
    %124 = arith.cmpi slt, %122, %123 : vector<288x1xi32>
    %c288_i32_53 = arith.constant 288 : i32
    %125 = vector.broadcast %c288_i32_53 : i32 to vector<288x1xi32>
    %126 = arith.cmpi slt, %106, %125 : vector<288x1xi32>
    %127 = arith.andi %124, %126 : vector<288x1xi1>
    %cst_54 = arith.constant 0.000000e+00 : f32
    %128 = vector.shape_cast %127 : vector<288x1xi1> to vector<288x1xi1>
    %129 = vector.broadcast %128 : vector<288x1xi1> to vector<288x128xi1>
    %130 = vector.broadcast %cst_54 : f32 to vector<288x128xf32>
    %131 = arith.select %129, %98, %130 : vector<288x128xi1>, vector<288x128xf32>
    %cst_55 = arith.constant dense<0.000000e+00> : vector<128xf32>
    %132 = vector.multi_reduction <add>, %131, %cst_55 [0] : vector<288x128xf32> to vector<128xf32>
    %133 = vector.shape_cast %132 : vector<128xf32> to vector<1x128xf32>
    %134 = arith.mulf %131, %131 : vector<288x128xf32>
    %cst_56 = arith.constant dense<0.000000e+00> : vector<128xf32>
    %135 = vector.multi_reduction <add>, %134, %cst_56 [0] : vector<288x128xf32> to vector<128xf32>
    %136 = vector.shape_cast %135 : vector<128xf32> to vector<1x128xf32>
    %137 = tpu.concatenate %133, %136 in 0 : vector<1x128xf32>, vector<1x128xf32> -> vector<2x128xf32>
    %c0_57 = arith.constant 0 : index
    %c0_58 = arith.constant 0 : index
    %c0_59 = arith.constant 0 : index
    %c0_60 = arith.constant 0 : index
    %138 = vector.load %arg7[%c0_57, %c0_58, %c0_59, %c0_60] : memref<1x1x2x128xf32, #tpu.memory_space<vmem>>, vector<1x1x2x128xf32>
    %139 = vector.shape_cast %138 : vector<1x1x2x128xf32> to vector<2x128xf32>
    %140 = vector.shape_cast %137 : vector<2x128xf32> to vector<1x1x2x128xf32>
    tpu.vector_store %arg7[%c0_57, %c0_58, %c0_59, %c0_60], %140 {strides = array<i32>} : memref<1x1x2x128xf32, #tpu.memory_space<vmem>>, vector<1x1x2x128xf32>,
    return
  }
  func.func @transform_0(%arg0: i32, %arg1: i32) -> (i32, i32, i32, i32) {
    %c0_i32 = arith.constant 0 : i32
    %c0_i32_0 = arith.constant 0 : i32
    %c0_i32_1 = arith.constant 0 : i32
    return %arg0, %arg1, %c0_i32, %c0_i32_0 : i32, i32, i32, i32
  }
  func.func @transform_1(%arg0: i32, %arg1: i32) -> (i32, i32, i32) {
    %c0_i32 = arith.constant 0 : i32
    %c0_i32_0 = arith.constant 0 : i32
    %c0_i32_1 = arith.constant 0 : i32
    %c0_i32_2 = arith.constant 0 : i32
    return %c0_i32, %c0_i32_0, %c0_i32_1 : i32, i32, i32
  }
  func.func @transform_2(%arg0: i32, %arg1: i32) -> (i32, i32) {
    %c0_i32 = arith.constant 0 : i32
    %c0_i32_0 = arith.constant 0 : i32
    %c0_i32_1 = arith.constant 0 : i32
    return %c0_i32, %c0_i32_0 : i32, i32
  }
  func.func @transform_3(%arg0: i32, %arg1: i32) -> (i32, i32) {
    %c0_i32 = arith.constant 0 : i32
    %c0_i32_0 = arith.constant 0 : i32
    %c0_i32_1 = arith.constant 0 : i32
    return %c0_i32, %c0_i32_0 : i32, i32
  }
  func.func @transform_4(%arg0: i32, %arg1: i32) -> (i32, i32, i32, i32) {
    %c0_i32 = arith.constant 0 : i32
    %c0_i32_0 = arith.constant 0 : i32
    %c0_i32_1 = arith.constant 0 : i32
    return %arg0, %arg1, %c0_i32, %c0_i32_0 : i32, i32, i32, i32
  }
  func.func @transform_5(%arg0: i32, %arg1: i32) -> (i32, i32, i32, i32) {
    %c0_i32 = arith.constant 0 : i32
    %c0_i32_0 = arith.constant 0 : i32
    %c0_i32_1 = arith.constant 0 : i32
    return %arg0, %arg1, %c0_i32, %c0_i32_0 : i32, i32, i32, i32
  }
}

</mosaic_0001>

<bundles_post_ra>
// kernel: double_conv_pallas.5
= control target key start
LH: loop header
LB: loop body
LE: loop exit
PB: predicated region body
PF: predicated region fallthrough
CT: control target
= control target key end

     0   :  { %8 = vsyncpa [#allocation3], 0  ;;  %s1287_s0 = inlined_call_operand.hbm [shape: bf16[576,128], index: 0, kind: input, shape index: {}]   ;;  %s1288_s1 = inlined_call_operand.hbm [shape: f32[1,128], index: 1, kind: input, shape index: {}]   ;;  %s1289_s2 = inlined_call_operand.hbm [shape: f32[1,128], index: 2, kind: input, shape index: {}]   ;;  %s1290_s3 = inlined_call_operand.hbm [shape: f32[576,128], index: 3, kind: output, shape index: {}]  }
   0x1   :  { %10 = vsyncpa [#allocation3 + $0x1], 0 }
   0x2   :  { %11 = vsyncpa [#allocation6], 0 }
   0x3   :  { %12 = vsyncpa [#allocation4], 0 }
   0x4   :  { %14 = vsyncpa [#allocation4 + $0x1], 0  ;;  %s917_s12 = smov 0   ;;  %s919_s13 = smov 0  }
   0x5   :  { %s921_s14 = smov 0   ;;  %s923_s15 = smov 0  }
   0x6 LB: > { %s938_s16 = sadd.s32 4294967295, %s887_s15   ;;  %s552_s17 = sadd.s32 4294967294, %s887_s15   ;;  %s887_s15 = sphi %s923_s15, %s1315_s15   ;;  %s883_s14 = sphi %s921_s14, %s1314_s14   ;;  %s879_s13 = sphi %s919_s13, %s1313_s13   ;;  %s875_s12 = sphi %s917_s12, %s1312_s12  }
   0x7   : > { %s942_s18 = sadd.s32 1, %s887_s15   ;;  %s27_s19 = sadd.s32 1, %s883_s14 }
   0x8   : > { %s24_s20 = ssub.s32 %s887_s15, %s942_s18  ;;  %p34_p0 = scmp.ne.s32.totalorder %s883_s14, %s879_s13 }
   0x9   : > { %p25_p1 = scmp.eq.s32.totalorder %s24_s20, 0  ;;  %p35_p2 = scmp.eq.s32.totalorder %s887_s15, 0 }
   0xa   : > { %p40_p3 = scmp.ne.s32.totalorder %s879_s13, %s875_s12  ;;  %p1291_p4 = scmp.eq.s32.totalorder %s938_s16, 0 }
   0xb   : > { %s954_s21 = scalar_select %p25_p1, %s883_s14, %s27_s19  }
   0xc   : > { %p956_p5 = por %p35_p2, %p34_p0  ;;  %p962_p6 = por %p1291_p4, %p40_p3 }
   0xd   : > { %p106_p7 = scmp.eq.s32.totalorder %s938_s16, 1  ;;  %p112_p8 = scmp.eq.s32.totalorder %s552_s17, 1 }
   0xe   : > { %s1297_s23 = scalar_select %p962_p6, 1, 0 }
   0xf   : > { %p553_p9 = scmp.ge.s32.totalorder %s887_s15, 1  ;;  %p119_p10 = scmp.lt.s32.totalorder %s887_s15, 3 }
  0x10   : > { %p969_p11 = por %p106_p7, %p34_p0  ;;  %p973_p12 = por %p112_p8, %p40_p3 }
  0x11   : > { %p977_p13 = pnand %p553_p9, %p119_p10  ;;  %s889_s27 = smov [#allocation5]  }
  0x12   : > { %s1298_s24 = scalar_select %p969_p11, 1, 0 }
  0x13   : > { %s1299_s25 = scalar_select %p973_p12, 1, 0 }
  0x14   : > { %s1300_s26 = scalar_select %p977_p13, 1, 0 }
  0x15   : > { %p672_p2 = pneg %p977_p13  ;;  %s132_s28 = sshll.u32 %s889_s27, 4  ;;  %s133_s28 = int_to_ptr.vmem [resolvable:$true] %s132_s28 }
  0x16   : > { %p689_p4 = scmp.lt.s32.totalorder %s887_s15, 2  ;;  %p1301_p0 = scmp.eq.s32.totalorder %s938_s16, 0 }
  0x17   : > { %s890_s4 = smov [#allocation7]   ;;  %s731_s8 = scalar_lea.hbm %s1288_s1, 16 }
  0x18   : > { %p987_p7 = pnand %p672_p2, %p1301_p0  ;;  %p993_p3 = pnand %p689_p4, %p956_p5 }
  0x19   : > { %s143_s5 = sshll.u32 %s890_s4, 4  ;;  %p732_p8 = scmp.ne.s32.totalorder %s1288_s1, %s731_s8  ;;  %s997_s5 = int_to_ptr.vmem [resolvable:$true] %s143_s5 }
  0x1a   : > { %s1303_s30 = scalar_select %p993_p3, 1, 0 }
  0x1b   : > { %p733_p9 = pneg %p987_p7  ;;  %p738_p10 = scmp.lt.u32.totalorder %s731_s8, %s1288_s1 }
  0x1d   : > { %p734_p4 = pnand %p733_p9, %p732_p8 }
  0x1f   : > { %p735_p5 = pneg %p734_p4 }
  0x21   : > { %p740_p2 = pnand %p738_p10, %p735_p5 }
  0x23   : > { %743 = shalt.err (!%p740_p2)
}
  0x24   : > { %s744_s19 = scalar_lea.vmem %s133_s28, 16  ;;  %s751_s20 = scalar_lea.vmem %s133_s28, 32 }
  0x25   : > { %p745_p0 = scmp.ne.s32.totalorder %s133_s28, %s744_s19  ;;  %p752_p11 = scmp.lt.s32.totalorder %s133_s28, %s133_s28 }
  0x26   : > { %p753_p6 = scmp.lt.s32.totalorder %s751_s20, %s744_s19 }
  0x27   : > { %p747_p1 = pnand %p745_p0, %p733_p9 }
  0x28   : > { %p754_p13 = por %p753_p6, %p752_p11 }
  0x29   : > { %p748_p12 = pneg %p747_p1 }
  0x2b   : > { %p755_p3 = pnand %p754_p13, %p748_p12 }
  0x2d   : > { %758 = shalt.err (!%p755_p3)
}
  0x2e   : > { %675 = dma.hbm_to_vmem [thread:$0]  (!%p987_p7), %s1288_s1, 16, %s133_s28, [#allocation6]  }
  0x2f   : > { %s154_s4 = sand.u32 1, %s883_s14   ;;  %s759_s8 = scalar_lea.hbm %s1289_s2, 16 }
  0x30   : > { %p760_p1 = scmp.ne.s32.totalorder %s1289_s2, %s759_s8  ;;  %p766_p12 = scmp.lt.u32.totalorder %s759_s8, %s1289_s2 }
  0x32   : > { %p762_p6 = pnand %p760_p1, %p733_p9 }
  0x34   : > { %p763_p11 = pneg %p762_p6 }
  0x36   : > { %p768_p13 = pnand %p766_p12, %p763_p11 }
  0x38   : > { %771 = shalt.err (!%p768_p13)
}
  0x39   : > { %s772_s28 = scalar_lea.vmem %s997_s5, 16  ;;  %s779_s19 = scalar_lea.vmem %s997_s5, 32 }
  0x3a   : > { %p773_p3 = scmp.ne.s32.totalorder %s997_s5, %s772_s28  ;;  %p780_p5 = scmp.lt.s32.totalorder %s997_s5, %s997_s5 }
  0x3b   : > { %p781_p10 = scmp.lt.s32.totalorder %s779_s19, %s772_s28 }
  0x3c   : > { %p775_p8 = pnand %p773_p3, %p733_p9 }
  0x3d   : > { %p782_p2 = por %p781_p10, %p780_p5 }
  0x3e   : > { %p776_p4 = pneg %p775_p8 }
  0x40   : > { %p783_p0 = pnand %p782_p2, %p776_p4 }
  0x42   : > { %786 = shalt.err (!%p783_p0)
}
  0x43   : > { %678 = dma.hbm_to_vmem [thread:$0]  (!%p987_p7), %s1289_s2, 16, %s997_s5, [#allocation6]  }
  0x44   : > { %s657_s27 = smul.u32 144, %s154_s4  ;;  %s1056_s11 = scalar_lea.sflag [#allocation3], %s154_s4 }
  0x45   : > { %s566_s6 = smul.u32 2304, %s887_s15  ;;  %p1304_p7 = scmp.ne.s32.totalorder %s1303_s30, 0 }
  0x46   : > { %s158_s29 = scalar_lea.vmem [#allocation2], %s657_s27  ;;  %s792_s19 = scalar_lea.hbm %s1287_s0, 4608 }
  0x47   : > { %s1052_s9 = scalar_lea.hbm %s1287_s0, %s566_s6  ;;  %s165_s10 = sshll.u32 %s158_s29, 4  ;;  %s1054_s10 = int_to_ptr.vmem [resolvable:$true] %s165_s10 }
  0x48   : > { %s787_s17 = scalar_lea.hbm %s1052_s9, 2304  ;;  %p789_p1 = pneg %p1304_p7 }
  0x49   : > { %p788_p9 = scmp.ne.s32.totalorder %s1052_s9, %s787_s17  ;;  %p793_p12 = scmp.lt.u32.totalorder %s1052_s9, %s1287_s0 }
  0x4a   : > { %p794_p13 = scmp.lt.u32.totalorder %s792_s19, %s787_s17  ;;  %p796_p8 = scmp.lt.u32.totalorder %s787_s17, %s1052_s9 }
  0x4b   : > { %p790_p6 = pnand %p789_p1, %p788_p9 }
  0x4c   : > { %p795_p3 = por %p794_p13, %p793_p12 }
  0x4d   : > { %p791_p11 = pneg %p790_p6 }
  0x4e   : > { %p797_p4 = por %p796_p8, %p795_p3 }
  0x50   : > { %p798_p5 = pnand %p797_p4, %p791_p11 }
  0x52   : > { %801 = shalt.err (!%p798_p5)
}
  0x53   : > { %s802_s4 = scalar_lea.vmem %s1054_s10, 2304  ;;  %s891_s27 = smov [#allocation2]  }
  0x54   : > { %p803_p10 = scmp.ne.s32.totalorder %s1054_s10, %s802_s4  ;;  %s807_s6 = sshll.u32 %s891_s27, 4  ;;  %s808_s6 = int_to_ptr.vmem [resolvable:$false] %s807_s6 }
  0x55   : > { %s809_s7 = scalar_lea.vmem %s808_s6, 4608  ;;  %p810_p9 = scmp.lt.s32.totalorder %s1054_s10, %s808_s6 }
  0x56   : > { %p805_p2 = pnand %p803_p10, %p789_p1  ;;  %p811_p6 = scmp.lt.s32.totalorder %s809_s7, %s802_s4 }
  0x58   : > { %p806_p0 = pneg %p805_p2  ;;  %p812_p12 = por %p811_p6, %p810_p9 }
  0x5a   : > { %p813_p13 = pnand %p812_p12, %p806_p0 }
  0x5c   : > { %816 = shalt.err (!%p813_p13)
}
  0x5d   : > { %s892_s8 = smov 64   ;;  %s893_s29 = smov 4  }
  0x5e   : > { %682 = dma.hbm_to_vmem [thread:$0]  (!%p1304_p7), %s1052_s9, 2304, %s1054_s10, %s1056_s11, %s892_s8, %s892_s8, %s893_s29  }
  0x5f   : > { %p1305_p1 = scmp.ne.s32.totalorder %s1300_s26, 0 }
  0x60   : > { %s1087_s17 = sand.u32 (!%p1305_p1), 1, %s879_s13   ;;  %p1306_p11 = scmp.ne.s32.totalorder (!%p1305_p1), %s1297_s23, 0 }
  0x61   : > { %177 = sbr.rel (%p1305_p1) target bundleno = 164 (0xa4), region = 32  ;;  %s180_s28 = scalar_lea.sflag (!%p1305_p1), [#allocation3], %s1087_s17 }
  0x62   : > { %s658_s5 = smul.u32 (!%p1305_p1), 144, %s1087_s17 }
  0x64   : > { %s1091_s19 = scalar_lea.vmem (!%p1305_p1), [#allocation2], %s658_s5 }
  0x68   : > { %862 = dma.done.wait (%p1306_p11), %s180_s28, 2304  }
  0x69   : > { %864 = vsyncadd (%p1306_p11), %s180_s28, 4294964992  ;;  %p1307_p7 = scmp.eq.s32.totalorder %s938_s16, 0 }
  0x6b   : > { %866 = dma.done.wait (%p1307_p7), [#allocation6], 32   ;;  %p1308_p3 = pmov %p1307_p7 }
  0x6c   : > { %v569_v0 = vld [vmem:[%s1091_s19] sm:$0xff]   ;;  %v640_v4 = vld [vmem:[%s1091_s19 + $0x8] sm:$0xff]   ;;  %v641_v5 = vld [vmem:[%s1091_s19 + $0x10] sm:$0xff]   ;;  %s659_s23 = smul.u32 288, %s1087_s17  ;;  %p1309_p4 = scmp.ne.s32.totalorder %s1298_s24, 0 }
  0x6d   : > { %868 = vsyncadd (%p1308_p3), [#allocation6], 4294967264  ;;  %v1102_v1 = vld [vmem:[#allocation5] ss:$0 sm:$0xff]  ;;  %v570_v2 = vunpack.c.l.bf16 %v569_v0  ;;  %v571_v3 = vunpack.c.h.bf16 %v569_v0  ;;  %v642_v6 = vld [vmem:[%s1091_s19 + $0x18] sm:$0xff]   ;;  %v574_v8 = vunpack.c.l.bf16 %v640_v4  ;;  %v575_v9 = vunpack.c.h.bf16 %v640_v4  ;;  %s567_s30 = smul.u32 4608, %s938_s16 }
  0x6e   : > { %v1108_v7 = vld [vmem:[#allocation7] ss:$0 sm:$0xff]  ;;  %v578_v10 = vunpack.c.l.bf16 %v641_v5  ;;  %v579_v11 = vunpack.c.h.bf16 %v641_v5  ;;  %v582_v14 = vunpack.c.l.bf16 %v642_v6  ;;  %v583_v15 = vunpack.c.h.bf16 %v642_v6  ;;  %v644_v33 = vld [vmem:[%s1091_s19 + $0x28] sm:$0xff]   ;;  %v646_v39 = vld [vmem:[%s1091_s19 + $0x38] sm:$0xff]   ;;  %s1132_s26 = scalar_lea.vmem [#allocation8], %s659_s23  ;;  %s447_s16 = scalar_lea.sflag [#allocation4], %s1087_s17 }
  0x6f   : > { %v295_v12 = vmul.f32 %v570_v2, %v1102_v1  ;;  %v296_v13 = vmul.f32 %v571_v3, %v1102_v1  ;;  %v297_v16 = vmul.f32 %v574_v8, %v1102_v1  ;;  %v298_v17 = vmul.f32 %v575_v9, %v1102_v1  ;;  %v643_v28 = vld [vmem:[%s1091_s19 + $0x20] sm:$0xff]   ;;  %v645_v34 = vld [vmem:[%s1091_s19 + $0x30] sm:$0xff]   ;;  %v648_v6 = vld [vmem:[%s1091_s19 + $0x48] sm:$0xff]   ;;  %s460_s9 = sshll.u32 %s1132_s26, 4  ;;  %s1237_s20 = scalar_lea.hbm %s1290_s3, %s567_s30  ;;  %s1239_s9 = int_to_ptr.vmem [resolvable:$true] %s460_s9 }
  0x70   : > { %v299_v18 = vmul.f32 %v578_v10, %v1102_v1  ;;  %v300_v19 = vmul.f32 %v579_v11, %v1102_v1  ;;  %v301_v22 = vmul.f32 %v582_v14, %v1102_v1  ;;  %v302_v23 = vmul.f32 %v583_v15, %v1102_v1  ;;  %v647_v0 = vld [vmem:[%s1091_s19 + $0x40] sm:$0xff]   ;;  %v649_v8 = vld [vmem:[%s1091_s19 + $0x50] sm:$0xff]   ;;  %s817_s22 = scalar_lea.vmem %s1239_s9, 4608  ;;  %s894_s4 = smov [#allocation8]  }
  0x71   : > { %v338_v20 = vadd.f32 %v1108_v7, %v295_v12  ;;  %v339_v21 = vadd.f32 %v1108_v7, %v296_v13  ;;  %v340_v24 = vadd.f32 %v1108_v7, %v297_v16  ;;  %v341_v25 = vadd.f32 %v1108_v7, %v298_v17  ;;  %v650_v13 = vld [vmem:[%s1091_s19 + $0x58] sm:$0xff]   ;;  %p818_p8 = scmp.ne.s32.totalorder %s1239_s9, %s817_s22  ;;  %s821_s27 = sshll.u32 %s894_s4, 4  ;;  %s822_s27 = int_to_ptr.vmem [resolvable:$false] %s821_s27 }
  0x72   : > { %v342_v26 = vadd.f32 %v1108_v7, %v299_v18  ;;  %v343_v27 = vadd.f32 %v1108_v7, %v300_v19  ;;  %v344_v31 = vadd.f32 %v1108_v7, %v301_v22  ;;  %v345_v32 = vadd.f32 %v1108_v7, %v302_v23  ;;  %s823_s6 = scalar_lea.vmem %s822_s27, 9216  ;;  %p824_p2 = scmp.lt.s32.totalorder %s1239_s9, %s822_s27 }
  0x73   : > { %v374_v29 = vmax.f32 %v338_v20, 0.0  ;;  %v375_v30 = vmax.f32 %v339_v21, 0.0  ;;  %v376_v35 = vmax.f32 %v340_v24, 0.0  ;;  %v377_v36 = vmax.f32 %v341_v25, 0.0  ;;  %p819_p5 = pnand %p818_p8, %p1309_p4  ;;  %p825_p0 = scmp.lt.s32.totalorder %s823_s6, %s817_s22 }
  0x74   : > { %v378_v37 = vmax.f32 %v342_v26, 0.0  ;;  %v379_v38 = vmax.f32 %v343_v27, 0.0  ;;  %v380_v40 = vmax.f32 %v344_v31, 0.0  ;;  %v381_v41 = vmax.f32 %v345_v32, 0.0 }
  0x75   : > { %410 = vst [vmem:[%s1132_s26] sm:$0xff] %v374_v29  ;;  %411 = vst [vmem:[%s1132_s26 + $0x8] sm:$0xff] %v375_v30  ;;  %v586_v42 = vunpack.c.l.bf16 %v643_v28  ;;  %v587_v43 = vunpack.c.h.bf16 %v643_v28  ;;  %v590_v44 = vunpack.c.l.bf16 %v644_v33  ;;  %v591_v45 = vunpack.c.h.bf16 %v644_v33  ;;  %p820_p10 = pneg %p819_p5  ;;  %p826_p9 = por %p825_p0, %p824_p2 }
  0x76   : > { %412 = vst [vmem:[%s1132_s26 + $0x10] sm:$0xff] %v376_v35  ;;  %413 = vst [vmem:[%s1132_s26 + $0x18] sm:$0xff] %v377_v36  ;;  %v594_v46 = vunpack.c.l.bf16 %v645_v34  ;;  %v595_v47 = vunpack.c.h.bf16 %v645_v34  ;;  %v598_v50 = vunpack.c.l.bf16 %v646_v39  ;;  %v599_v51 = vunpack.c.h.bf16 %v646_v39 }
  0x77   : > { %414 = vst [vmem:[%s1132_s26 + $0x20] sm:$0xff] %v378_v37  ;;  %415 = vst [vmem:[%s1132_s26 + $0x28] sm:$0xff] %v379_v38  ;;  %v303_v48 = vmul.f32 %v586_v42, %v1102_v1  ;;  %v304_v49 = vmul.f32 %v587_v43, %v1102_v1  ;;  %v305_v52 = vmul.f32 %v590_v44, %v1102_v1  ;;  %v602_v16 = vunpack.c.l.bf16 %v647_v0  ;;  %v651_v38 = vld [vmem:[%s1091_s19 + $0x60] sm:$0xff]   ;;  %v652_v43 = vld [vmem:[%s1091_s19 + $0x68] sm:$0xff]   ;;  %p827_p6 = pnand %p826_p9, %p820_p10 }
  0x78   : > { %416 = vst [vmem:[%s1132_s26 + $0x30] sm:$0xff] %v380_v40  ;;  %417 = vst [vmem:[%s1132_s26 + $0x38] sm:$0xff] %v381_v41  ;;  %v306_v53 = vmul.f32 %v591_v45, %v1102_v1  ;;  %v307_v54 = vmul.f32 %v594_v46, %v1102_v1  ;;  %v308_v55 = vmul.f32 %v595_v47, %v1102_v1  ;;  %v603_v17 = vunpack.c.h.bf16 %v647_v0  ;;  %v653_v44 = vld [vmem:[%s1091_s19 + $0x70] sm:$0xff]  }
  0x79   : > { %v346_v56 = vadd.f32 %v1108_v7, %v303_v48  ;;  %v347_v57 = vadd.f32 %v1108_v7, %v304_v49  ;;  %v309_v58 = vmul.f32 %v598_v50, %v1102_v1  ;;  %v310_v59 = vmul.f32 %v599_v51, %v1102_v1  ;;  %v654_v49 = vld [vmem:[%s1091_s19 + $0x78] sm:$0xff]  }
  0x7a   : > { %v348_v60 = vadd.f32 %v1108_v7, %v305_v52  ;;  %v349_v61 = vadd.f32 %v1108_v7, %v306_v53  ;;  %v350_v62 = vadd.f32 %v1108_v7, %v307_v54  ;;  %v351_v63 = vadd.f32 %v1108_v7, %v308_v55 }
  0x7b   : > { %v382_v2 = vmax.f32 %v346_v56, 0.0  ;;  %v383_v3 = vmax.f32 %v347_v57, 0.0  ;;  %v352_v4 = vadd.f32 %v1108_v7, %v309_v58  ;;  %v353_v5 = vadd.f32 %v1108_v7, %v310_v59 }
  0x7c   : > { %v384_v9 = vmax.f32 %v348_v60, 0.0  ;;  %v385_v10 = vmax.f32 %v349_v61, 0.0  ;;  %v386_v11 = vmax.f32 %v350_v62, 0.0  ;;  %v387_v12 = vmax.f32 %v351_v63, 0.0 }
  0x7d   : > { %418 = vst [vmem:[%s1132_s26 + $0x40] sm:$0xff] %v382_v2  ;;  %419 = vst [vmem:[%s1132_s26 + $0x48] sm:$0xff] %v383_v3  ;;  %v388_v14 = vmax.f32 %v352_v4, 0.0  ;;  %v389_v15 = vmax.f32 %v353_v5, 0.0  ;;  %v606_v18 = vunpack.c.l.bf16 %v648_v6  ;;  %v607_v19 = vunpack.c.h.bf16 %v648_v6 }
  0x7e   : > { %420 = vst [vmem:[%s1132_s26 + $0x50] sm:$0xff] %v384_v9  ;;  %421 = vst [vmem:[%s1132_s26 + $0x58] sm:$0xff] %v385_v10  ;;  %v610_v20 = vunpack.c.l.bf16 %v649_v8  ;;  %v611_v21 = vunpack.c.h.bf16 %v649_v8  ;;  %v311_v22 = vmul.f32 %v602_v16, %v1102_v1  ;;  %v312_v23 = vmul.f32 %v603_v17, %v1102_v1  ;;  %v656_v17 = vld [vmem:[%s1091_s19 + $0x88] sm:$0xff]  }
  0x7f   : > { %422 = vst [vmem:[%s1132_s26 + $0x60] sm:$0xff] %v386_v11  ;;  %423 = vst [vmem:[%s1132_s26 + $0x68] sm:$0xff] %v387_v12  ;;  %v614_v24 = vunpack.c.l.bf16 %v650_v13  ;;  %v615_v25 = vunpack.c.h.bf16 %v650_v13  ;;  %v313_v26 = vmul.f32 %v606_v18, %v1102_v1  ;;  %v314_v27 = vmul.f32 %v607_v19, %v1102_v1  ;;  %v655_v12 = vld [vmem:[%s1091_s19 + $0x80] sm:$0xff]  }
  0x80   : > { %424 = vst [vmem:[%s1132_s26 + $0x70] sm:$0xff] %v388_v14  ;;  %425 = vst [vmem:[%s1132_s26 + $0x78] sm:$0xff] %v389_v15  ;;  %v315_v28 = vmul.f32 %v610_v20, %v1102_v1  ;;  %v316_v29 = vmul.f32 %v611_v21, %v1102_v1  ;;  %v354_v30 = vadd.f32 %v1108_v7, %v311_v22  ;;  %v618_v52 = vunpack.c.l.bf16 %v651_v38 }
  0x81   : > { %v355_v31 = vadd.f32 %v1108_v7, %v312_v23  ;;  %v317_v32 = vmul.f32 %v614_v24, %v1102_v1  ;;  %v318_v33 = vmul.f32 %v615_v25, %v1102_v1  ;;  %v356_v34 = vadd.f32 %v1108_v7, %v313_v26 }
  0x82   : > { %v357_v35 = vadd.f32 %v1108_v7, %v314_v27  ;;  %v358_v36 = vadd.f32 %v1108_v7, %v315_v28  ;;  %v359_v37 = vadd.f32 %v1108_v7, %v316_v29  ;;  %v390_v39 = vmax.f32 %v354_v30, 0.0 }
  0x83   : > { %v391_v40 = vmax.f32 %v355_v31, 0.0  ;;  %v360_v41 = vadd.f32 %v1108_v7, %v317_v32  ;;  %v361_v42 = vadd.f32 %v1108_v7, %v318_v33  ;;  %v392_v45 = vmax.f32 %v356_v34, 0.0 }
  0x84   : > { %v393_v46 = vmax.f32 %v357_v35, 0.0  ;;  %v394_v47 = vmax.f32 %v358_v36, 0.0  ;;  %v395_v48 = vmax.f32 %v359_v37, 0.0  ;;  %426 = vst [vmem:[%s1132_s26 + $0x80] sm:$0xff] %v390_v39  ;;  %v619_v53 = vunpack.c.h.bf16 %v651_v38 }
  0x85   : > { %427 = vst [vmem:[%s1132_s26 + $0x88] sm:$0xff] %v391_v40  ;;  %v396_v50 = vmax.f32 %v360_v41, 0.0  ;;  %v397_v51 = vmax.f32 %v361_v42, 0.0  ;;  %428 = vst [vmem:[%s1132_s26 + $0x90] sm:$0xff] %v392_v45  ;;  %v622_v54 = vunpack.c.l.bf16 %v652_v43  ;;  %v623_v55 = vunpack.c.h.bf16 %v652_v43 }
  0x86   : > { %429 = vst [vmem:[%s1132_s26 + $0x98] sm:$0xff] %v393_v46  ;;  %430 = vst [vmem:[%s1132_s26 + $0xa0] sm:$0xff] %v394_v47  ;;  %v626_v56 = vunpack.c.l.bf16 %v653_v44  ;;  %v627_v57 = vunpack.c.h.bf16 %v653_v44  ;;  %v319_v58 = vmul.f32 %v618_v52, %v1102_v1  ;;  %v320_v59 = vmul.f32 %v619_v53, %v1102_v1 }
  0x87   : > { %431 = vst [vmem:[%s1132_s26 + $0xa8] sm:$0xff] %v395_v48  ;;  %432 = vst [vmem:[%s1132_s26 + $0xb0] sm:$0xff] %v396_v50  ;;  %v630_v60 = vunpack.c.l.bf16 %v654_v49  ;;  %v631_v61 = vunpack.c.h.bf16 %v654_v49  ;;  %v321_v62 = vmul.f32 %v622_v54, %v1102_v1  ;;  %v322_v63 = vmul.f32 %v623_v55, %v1102_v1 }
  0x88   : > { %433 = vst [vmem:[%s1132_s26 + $0xb8] sm:$0xff] %v397_v51  ;;  %v323_v0 = vmul.f32 %v626_v56, %v1102_v1  ;;  %v324_v2 = vmul.f32 %v627_v57, %v1102_v1  ;;  %v362_v3 = vadd.f32 %v1108_v7, %v319_v58  ;;  %v363_v4 = vadd.f32 %v1108_v7, %v320_v59 }
  0x89   : > { %v325_v5 = vmul.f32 %v630_v60, %v1102_v1  ;;  %v326_v6 = vmul.f32 %v631_v61, %v1102_v1  ;;  %v364_v8 = vadd.f32 %v1108_v7, %v321_v62  ;;  %v365_v9 = vadd.f32 %v1108_v7, %v322_v63 }
  0x8a   : > { %v366_v10 = vadd.f32 %v1108_v7, %v323_v0  ;;  %v367_v11 = vadd.f32 %v1108_v7, %v324_v2  ;;  %v398_v13 = vmax.f32 %v362_v3, 0.0  ;;  %v399_v14 = vmax.f32 %v363_v4, 0.0 }
  0x8b   : > { %v368_v15 = vadd.f32 %v1108_v7, %v325_v5  ;;  %v369_v16 = vadd.f32 %v1108_v7, %v326_v6  ;;  %v400_v18 = vmax.f32 %v364_v8, 0.0  ;;  %v401_v19 = vmax.f32 %v365_v9, 0.0 }
  0x8c   : > { %v402_v20 = vmax.f32 %v366_v10, 0.0  ;;  %v403_v21 = vmax.f32 %v367_v11, 0.0  ;;  %434 = vst [vmem:[%s1132_s26 + $0xc0] sm:$0xff] %v398_v13  ;;  %435 = vst [vmem:[%s1132_s26 + $0xc8] sm:$0xff] %v399_v14  ;;  %v634_v24 = vunpack.c.l.bf16 %v655_v12  ;;  %v635_v25 = vunpack.c.h.bf16 %v655_v12 }
  0x8d   : > { %v404_v22 = vmax.f32 %v368_v15, 0.0  ;;  %v405_v23 = vmax.f32 %v369_v16, 0.0  ;;  %436 = vst [vmem:[%s1132_s26 + $0xd0] sm:$0xff] %v400_v18  ;;  %437 = vst [vmem:[%s1132_s26 + $0xd8] sm:$0xff] %v401_v19  ;;  %v638_v26 = vunpack.c.l.bf16 %v656_v17  ;;  %v639_v27 = vunpack.c.h.bf16 %v656_v17 }
  0x8e   : > { %438 = vst [vmem:[%s1132_s26 + $0xe0] sm:$0xff] %v402_v20  ;;  %439 = vst [vmem:[%s1132_s26 + $0xe8] sm:$0xff] %v403_v21  ;;  %v327_v28 = vmul.f32 %v634_v24, %v1102_v1  ;;  %v328_v29 = vmul.f32 %v635_v25, %v1102_v1 }
  0x8f   : > { %440 = vst [vmem:[%s1132_s26 + $0xf0] sm:$0xff] %v404_v22  ;;  %441 = vst [vmem:[%s1132_s26 + $0xf8] sm:$0xff] %v405_v23  ;;  %v329_v30 = vmul.f32 %v638_v26, %v1102_v1  ;;  %v330_v31 = vmul.f32 %v639_v27, %v1102_v1 }
  0x90   : > { %v370_v32 = vadd.f32 %v1108_v7, %v327_v28  ;;  %v371_v33 = vadd.f32 %v1108_v7, %v328_v29 }
  0x91   : > { %v372_v34 = vadd.f32 %v1108_v7, %v329_v30  ;;  %v373_v35 = vadd.f32 %v1108_v7, %v330_v31 }
  0x92   : > { %v406_v36 = vmax.f32 %v370_v32, 0.0  ;;  %v407_v37 = vmax.f32 %v371_v33, 0.0 }
  0x93   : > { %v408_v38 = vmax.f32 %v372_v34, 0.0  ;;  %v409_v39 = vmax.f32 %v373_v35, 0.0 }
  0x94   : > { %442 = vst [vmem:[%s1132_s26 + $0x100] sm:$0xff] %v406_v36  ;;  %443 = vst [vmem:[%s1132_s26 + $0x108] sm:$0xff] %v407_v37 }
  0x95   : > { %444 = vst [vmem:[%s1132_s26 + $0x110] sm:$0xff] %v408_v38  ;;  %445 = vst [vmem:[%s1132_s26 + $0x118] sm:$0xff] %v409_v39 }
  0x96   : > { %830 = shalt.err (!%p827_p6)
}
  0x97   : > { %s831_s7 = scalar_lea.hbm %s1237_s20, 4608  ;;  %s835_s5 = scalar_lea.hbm %s1290_s3, 9216 }
  0x98   : > { %p832_p12 = scmp.ne.s32.totalorder %s1237_s20, %s831_s7  ;;  %p836_p11 = scmp.lt.u32.totalorder %s1237_s20, %s1290_s3 }
  0x99   : > { %p837_p7 = scmp.lt.u32.totalorder %s835_s5, %s831_s7  ;;  %p839_p8 = scmp.lt.u32.totalorder %s831_s7, %s1237_s20 }
  0x9a   : > { %p833_p13 = pnand %p832_p12, %p1309_p4 }
  0x9b   : > { %p838_p3 = por %p837_p7, %p836_p11 }
  0x9c   : > { %p834_p1 = pneg %p833_p13 }
  0x9d   : > { %p840_p5 = por %p839_p8, %p838_p3 }
  0x9f   : > { %p841_p10 = pnand %p840_p5, %p834_p1 }
  0xa1   : > { %844 = shalt.err (!%p841_p10)
}
  0xa2   : > { %s895_s23 = smov 128   ;;  %s896_s26 = smov 8  }
  0xa3   : > { %670 = dma.vmem_to_hbm [thread:$0]  (%p1309_p4), %s1239_s9, 4608, %s1237_s20, %s447_s16, %s895_s23, %s895_s23, %s896_s26  }
  0xa4 PF: > { %s475_s30 = sand.u32 1, %s875_s12   ;;  %p1310_p2 = scmp.ne.s32.totalorder %s1299_s25, 0 }
  0xa5   : > { %p1311_p0 = scmp.ge.s32.totalorder %s887_s15, 2  ;;  %s476_s10 = scalar_lea.sflag [#allocation4], %s475_s30 }
  0xa7   : > { %p684_p9 = pnand %p1311_p0, %p1310_p2 }
  0xa9   : > { %870 = dma.done.wait (!%p684_p9), %s476_s10, 4608  }
  0xaa   : > { %872 = vsyncadd (!%p684_p9), %s476_s10, 4294962688  ;;  %p17_p6 = scmp.ge.s32.totalorder %s942_s18, 4   ;;  %s1312_s12 = smov %s879_s13 }
  0xab   : > { %s1313_s13 = smov %s883_s14  ;;  %s1314_s14 = smov %s954_s21 }
  0xac   : > { %s1315_s15 = smov %s942_s18  ;;  %19 = sbr.rel (!%p17_p6) target bundleno = 6 (0x6), region = 85 }
  0xb3   :  { %481 = vsyncpa [#allocation3], 1 }
  0xb4   :  { %483 = vsyncpa [#allocation3 + $0x1], 1 }
  0xb5   :  { %484 = vsyncpa [#allocation6], 1 }
  0xb6   :  { %485 = vsyncpa [#allocation4], 1 }
  0xb7   :  { %487 = vsyncpa [#allocation4 + $0x1], 1 }

// kernel: double_conv_pallas.3
= control target key start
LH: loop header
LB: loop body
LE: loop exit
PB: predicated region body
PF: predicated region fallthrough
CT: control target
= control target key end

     0   :  { %9 = vsyncpa [#allocation3], 0  ;;  %s8540_s0 = inlined_call_operand.hbm [shape: bf16[2,1,326,4], index: 0, kind: input, shape index: {}]   ;;  %s8541_s1 = inlined_call_operand.hbm [shape: bf16[9,4,128], index: 1, kind: input, shape index: {}]   ;;  %s8542_s2 = inlined_call_operand.hbm [shape: bf16[2,1,288,128], index: 2, kind: output, shape index: {0}]   ;;  %s8543_s3 = inlined_call_operand.hbm [shape: f32[2,1,2,128], index: 3, kind: output, shape index: {1}]  }
   0x1   :  { %11 = vsyncpa [#allocation3 + $0x1], 0 }
   0x2   :  { %12 = vsyncpa [#allocation6], 0 }
   0x3   :  { %13 = vsyncpa [#allocation4], 0 }
   0x4   :  { %15 = vsyncpa [#allocation4 + $0x1], 0 }
   0x5   :  { %16 = vsyncpa [#allocation9], 0 }
   0x6   :  { %18 = vsyncpa [#allocation9 + $0x1], 0  ;;  %s5986_s12 = smov 0   ;;  %s5988_s13 = smov 0  }
   0x7   :  { %s5990_s14 = smov 0   ;;  %s5992_s15 = smov 0  }
   0x8   :  { %s5994_s16 = smov 0   ;;  %s5996_s17 = smov 0  }
   0x9 LB: > { %s4403_s18 = sadd.s32 4294967295, %s5954_s17   ;;  %s4404_s19 = sadd.s32 4294967294, %s5954_s17   ;;  %s5954_s17 = sphi %s5996_s17, %s24_s17   ;;  %s5950_s16 = sphi %s5994_s16, %s9012_s16   ;;  %s5946_s15 = sphi %s5992_s15, %s9011_s15   ;;  %s5942_s14 = sphi %s5990_s14, %s9010_s14   ;;  %s5938_s13 = sphi %s5988_s13, %s9009_s13   ;;  %s5934_s12 = sphi %s5986_s12, %s9008_s12  }
   0xa   : > { %p58_p0 = scmp.ne.s32.totalorder %s5938_s13, %s5934_s12  ;;  %p6020_p1 = scmp.eq.s32.totalorder %s4403_s18, 0 }
   0xb   : > { %p6024_p2 = scmp.eq.s32.totalorder %s4403_s18, 1  ;;  %p111_p3 = scmp.eq.s32.totalorder %s4404_s19, 1 }
   0xc   : > { %s8635_s20 = scalar_select %p6020_p1, 1, 0 }
   0xd   : > { %s8636_s21 = scalar_select %p6024_p2, 1, 0 }
   0xe   : > { %p6030_p4 = por %p6020_p1, %p58_p0  ;;  %p4405_p5 = scmp.ge.s32.totalorder %s5954_s17, 1 }
   0xf   : > { %p6035_p6 = por %p111_p3, %p58_p0  ;;  %p146_p7 = scmp.lt.s32.totalorder %s5954_s17, 3 }
  0x10   : > { %s8637_s22 = scalar_select %p6030_p4, 1, 0 }
  0x11   : > { %s8638_s23 = scalar_select %p6035_p6, 1, 0 }
  0x12   : > { %p6040_p8 = pnand %p4405_p5, %p146_p7  ;;  %s5956_s25 = smov [#allocation5]  }
  0x13   : > { %s158_s26 = sshll.u32 %s5956_s25, 4  ;;  %s36_s28 = sadd.s32 1, %s5950_s16  ;;  %s159_s26 = int_to_ptr.vmem [resolvable:$true] %s158_s26 }
  0x14   : > { %s8639_s24 = scalar_select %p6040_p8, 1, 0 }
  0x15   : > { %p5681_p9 = pneg %p6040_p8  ;;  %s5778_s4 = scalar_lea.hbm %s8541_s1, 288 }
  0x16   : > { %p5779_p12 = scmp.ne.s32.totalorder %s8541_s1, %s5778_s4  ;;  %p5785_p5 = scmp.lt.u32.totalorder %s5778_s4, %s8541_s1 }
  0x17   : > { %p6049_p11 = pnand %p5681_p9, %p6020_p1 }
  0x19   : > { %p5780_p13 = pneg %p6049_p11 }
  0x1b   : > { %p5781_p0 = pnand %p5780_p13, %p5779_p12 }
  0x1d   : > { %p5782_p3 = pneg %p5781_p0 }
  0x1f   : > { %p5787_p7 = pnand %p5785_p5, %p5782_p3 }
  0x21   : > { %5790 = shalt.err (!%p5787_p7)
}
  0x22   : > { %s5791_s9 = scalar_lea.vmem %s159_s26, 288  ;;  %p5799_p1 = scmp.lt.s32.totalorder %s159_s26, %s159_s26 }
  0x23   : > { %p5792_p9 = scmp.ne.s32.totalorder %s159_s26, %s5791_s9  ;;  %p5800_p4 = scmp.lt.s32.totalorder %s5791_s9, %s5791_s9 }
  0x25   : > { %p5794_p10 = pnand %p5792_p9, %p5780_p13  ;;  %p5801_p8 = por %p5800_p4, %p5799_p1 }
  0x27   : > { %p5795_p6 = pneg %p5794_p10 }
  0x29   : > { %p5802_p2 = pnand %p5801_p8, %p5795_p6 }
  0x2b   : > { %5805 = shalt.err (!%p5802_p2)
}
  0x2c   : > { %s5957_s10 = smov 32   ;;  %s5958_s11 = smov 2  }
  0x2d   : > { %5684 = dma.hbm_to_vmem [thread:$0]  (!%p6049_p11), %s8541_s1, 288, %s159_s26, [#allocation6], %s5957_s10, %s5957_s10, %s5958_s11  }
  0x2e   : > { %p38_p1 = scmp.ge.s32.totalorder %s36_s28, 2  ;;  %s45_s25 = sadd.s32 1, %s5942_s14 }
  0x2f   : > { %p52_p2 = scmp.ne.s32.totalorder %s5942_s14, %s5938_s13  ;;  %p53_p4 = scmp.eq.s32.totalorder %s5954_s17, 0 }
  0x30   : > { %s9014_s28 = smov (%p38_p1, %s36_s28), 0  ;;  %p8641_p8 = scmp.ne.s32.totalorder %s8636_s21, 0 }
  0x31   : > { %p54_p6 = por %p53_p4, %p52_p2  ;;  %s40_s30 = ssub.s32 %s5950_s16, %s9014_s28 }
  0x32   : > { %p6078_p10 = por %p8641_p8, %p52_p2  ;;  %p5697_p12 = scmp.lt.s32.totalorder %s5954_s17, 2 }
  0x33   : > { %p43_p13 = scmp.eq.s32.totalorder %s40_s30, 0  ;;  %s172_s27 = sand.u32 1, %s5942_s14  }
  0x34   : > { %s5594_s4 = smul.u32 164, %s172_s27  ;;  %p6090_p11 = pnand %p5697_p12, %p54_p6 }
  0x35   : > { %s6087_s5 = scalar_select %p43_p13, %s5942_s14, %s45_s25  }
  0x36   : > { %s5595_s26 = smul.u32 2624, %s5950_s16  ;;  %s176_s6 = scalar_lea.vmem [#allocation2], %s5594_s4 }
  0x37   : > { %s185_s7 = sshll.u32 %s176_s6, 4  ;;  %s6101_s11 = scalar_lea.sflag [#allocation3], %s172_s27  ;;  %s6099_s7 = int_to_ptr.vmem [resolvable:$true] %s185_s7 }
  0x38   : > { %s6097_s10 = scalar_lea.hbm %s8540_s0, %s5595_s26  ;;  %p5808_p3 = pneg %p6090_p11 }
  0x39   : > { %s5806_s18 = scalar_lea.hbm %s6097_s10, 2624  ;;  %s5811_s30 = scalar_lea.hbm %s8540_s0, 5248 }
  0x3a   : > { %p5807_p0 = scmp.ne.s32.totalorder %s6097_s10, %s5806_s18  ;;  %p5812_p9 = scmp.lt.u32.totalorder %s6097_s10, %s8540_s0 }
  0x3b   : > { %p5813_p1 = scmp.lt.u32.totalorder %s5811_s30, %s5806_s18  ;;  %p5815_p4 = scmp.lt.u32.totalorder %s5806_s18, %s6097_s10 }
  0x3c   : > { %p5809_p5 = pnand %p5808_p3, %p5807_p0 }
  0x3d   : > { %p5814_p2 = por %p5813_p1, %p5812_p9 }
  0x3e   : > { %p5810_p7 = pneg %p5809_p5 }
  0x3f   : > { %p5816_p6 = por %p5815_p4, %p5814_p2 }
  0x41   : > { %p5817_p8 = pnand %p5816_p6, %p5810_p7 }
  0x43   : > { %5820 = shalt.err (!%p5817_p8)
}
  0x44   : > { %s5821_s27 = scalar_lea.vmem %s6099_s7, 2624  ;;  %s5959_s6 = smov [#allocation2]  }
  0x45   : > { %p5822_p12 = scmp.ne.s32.totalorder %s6099_s7, %s5821_s27  ;;  %s5826_s9 = sshll.u32 %s5959_s6, 4  ;;  %s5827_s9 = int_to_ptr.vmem [resolvable:$false] %s5826_s9 }
  0x46   : > { %s5828_s21 = scalar_lea.vmem %s5827_s9, 5248  ;;  %p5829_p5 = scmp.lt.s32.totalorder %s6099_s7, %s5827_s9 }
  0x47   : > { %p5824_p13 = pnand %p5822_p12, %p5808_p3  ;;  %p5830_p9 = scmp.lt.s32.totalorder %s5828_s21, %s5821_s27 }
  0x49   : > { %p5825_p0 = pneg %p5824_p13  ;;  %p5831_p1 = por %p5830_p9, %p5829_p5 }
  0x4b   : > { %p5832_p2 = pnand %p5831_p1, %p5825_p0 }
  0x4d   : > { %5835 = shalt.err (!%p5832_p2)
}
  0x4e   : > { %s5960_s18 = smov 64   ;;  %s5961_s19 = smov 4  }
  0x4f   : > { %5688 = dma.hbm_to_vmem [thread:$0]  (!%p6090_p11), %s6097_s10, 2624, %s6099_s7, %s6101_s11, %s5960_s18, %s5960_s18, %s5961_s19  }
  0x50   : > { %p8644_p3 = scmp.ne.s32.totalorder %s8639_s24, 0 }
  0x52   : > { %197 = sbr.rel (%p8644_p3) target bundleno = 711 (0x2c7), region = 28 }
  0x59   : > { %s6132_s25 = sand.u32 1, %s5938_s13   ;;  %p8645_p7 = scmp.ne.s32.totalorder %s8637_s22, 0 }
  0x5a   : > { %s5596_s30 = smul.u32 164, %s6132_s25  ;;  %s200_s4 = scalar_lea.sflag [#allocation3], %s6132_s25 }
  0x5c   : > { %s6136_s26 = scalar_lea.vmem [#allocation2], %s5596_s30 }
  0x5d   : > { %5917 = dma.done.wait (%p8645_p7), %s200_s4, 2624  }
  0x5e   : > { %5919 = vsyncadd (%p8645_p7), %s200_s4, 4294964672  ;;  %p8646_p11 = scmp.ne.s32.totalorder %s8635_s20, 0 }
  0x60   : > { %5921 = dma.done.wait (%p8646_p11), [#allocation6], 288  }
  0x61   : > { %5923 = vsyncadd (%p8646_p11), [#allocation6], 4294967008  ;;  %vm544_vm0 = vcmask 1041408   ;;  %vm340_vm1 = vsmask.f32 7424  ;;  %v6158_v4 = vld [vmem:[%s6136_s26] sm:$0xff]  }
  0x62   : > { %v6146_v0 = vld [vmem:[#allocation5 + $0x8] sm:$0x3]  ;;  %v339_v1 = vld [vmem:[#allocation5 + $0x2] sm:$0x3]  ;;  %vm1504_vm2 = vsmask.f32 6400 }
  0x63   : > { %5588 = vmatprep.subr.msk.bf16.mxu0 %vm544_vm0, %v6146_v0  ;;  %5584 = vmatprep.subr.msk.bf16.mxu1 %vm544_vm0, %v339_v1  ;;  %v6153_v2 = vsel %vm544_vm0, %v6146_v0, 0  ;;  %v546_v3 = vsel %vm544_vm0, %v339_v1, 0  ;;  %v6161_v5 = vld [vmem:[%s6136_s26 + $0x8] sm:$0xff]   ;;  %vm489_vm3 = vcmask 31744   ;;  %v6164_v6 = vld [vmem:[%s6136_s26 + $0x10] sm:$0xff]   ;;  %v342_v7 = vshrl.u32 %v6158_v4, 16 }
  0x64   : > { %8647 = vst [vmem:[#allocation14_spill] sm:$0xff] %v6153_v2  ;;  %5105 = vmatpush3.bf16.msra.mxu0 %v6153_v2  ;;  %4953 = vmatpush3.bf16.msra.mxu1 %v546_v3  ;;  %v344_v8 = vshll.u32 %v6158_v4, 16  ;;  %v349_v9 = vshll.u32 %v6161_v5, 16  ;;  %v353_v10 = vshrl.u32 %v6161_v5, 16  ;;  %v1861_v11 = vld [vmem:[#allocation5 + $0xa] sm:$0x3] }
  0x65   : > { %v6171_v12 = vshll.u32 %v6164_v6, 16  ;;  %v6174_v13 = vshrl.u32 %v6164_v6, 16  ;;  %5590 = vmatprep.subr.msk.bf16.mxu0 %vm544_vm0, %v1861_v11  ;;  %v6178_v18 = vld [vmem:[%s6136_s26 + $0x18] sm:$0xff]   ;;  %v6181_v19 = vld [vmem:[%s6136_s26 + $0x20] sm:$0xff]   ;;  %v1955_v23 = vsel %vm544_vm0, %v1861_v11, 0  ;;  %v6192_v29 = vld [vmem:[%s6136_s26 + $0x28] sm:$0xff]  }
  0x66   : > { %v346_v14 = vrot.slane %v344_v8, 1  ;;  %v351_v15 = vrot.slane %v349_v9, 1  ;;  %v1505_v16 = vrot.slane %v353_v10, 1  ;;  %v1506_v17 = vrot.slane %v349_v9, 2  ;;  %v336_v24 = vld [vmem:[#allocation5] sm:$0x3] }
  0x67   : > { %v1508_v20 = vrot.slane %v6174_v13, 1  ;;  %v1509_v21 = vrot.slane %v6171_v12, 2  ;;  %v359_v22 = vrot.slane %v6171_v12, 1  ;;  %v6188_v28 = vshll.u32 %v6178_v18, 16  ;;  %5585 = vmatprep.subr.msk.bf16.mxu1 %vm544_vm0, %v336_v24  ;;  %v6213_v42 = vld [vmem:[%s6136_s26 + $0x30] sm:$0xff]   ;;  %v6230_v51 = vld [vmem:[%s6136_s26 + $0x38] sm:$0xff]  }
  0x68   : > { %v347_v25 = vor.u32 %v346_v14, %v342_v7  ;;  %v355_v26 = vor.u32 %v353_v10, %v351_v15  ;;  %v1507_v27 = vor.u32 %v1506_v17, %v1505_v16  ;;  %v6195_v31 = vshrl.u32 %v6178_v18, 16  ;;  %v6248_v63 = vld [vmem:[%s6136_s26 + $0x40] sm:$0xff]   ;;  %v6259_v11 = vld [vmem:[#allocation5 + $0xc] sm:$0x3]  ;;  %s5597_s20 = smul.u32 144, %s6132_s25  ;;  %s4239_s27 = scalar_lea.sflag [#allocation4], %s6132_s25 }
  0x69   : > { %v1510_v30 = vor.u32 %v1509_v21, %v1508_v20  ;;  %v363_v32 = vor.u32 %v6174_v13, %v359_v22  ;;  %v6199_v33 = vshll.u32 %v6181_v19, 16  ;;  %v1513_v36 = vrot.slane %v6188_v28, 2  ;;  %s5670_s24 = smul.u32 2304, %s5946_s15  ;;  %s5962_s9 = smov [#allocation7]  }
  0x6a   : > { %v352_v34 = vsel %vm340_vm1, %v347_v25, %v351_v15  ;;  %v360_v35 = vsel %vm340_vm1, %v355_v26, %v359_v22  ;;  %v367_v37 = vrot.slane %v6188_v28, 1  ;;  %v1512_v39 = vrot.slane %v6195_v31, 1  ;;  %v6263_v15 = vld [vmem:[%s6136_s26 + $0x48] sm:$0xff]   ;;  %s7880_s22 = scalar_lea.vmem [#allocation7], %s5597_s20  ;;  %s5840_s21 = sshll.u32 %s5962_s9, 4  ;;  %s5841_s21 = int_to_ptr.vmem [resolvable:$false] %s5840_s21 }
  0x6b   : > { %4954 = vmatprep.mubr.msk.bf16.mxu1 %vm489_vm3, %v352_v34  ;;  %v1511_v38 = vsel %vm1504_vm2, %v1507_v27, %v1510_v30  ;;  %v6209_v40 = vshrl.u32 %v6181_v19, 16  ;;  %v1517_v41 = vrot.slane %v6199_v33, 2  ;;  %v375_v45 = vrot.slane %v6199_v33, 1  ;;  %s4259_s7 = sshll.u32 %s7880_s22, 4  ;;  %s8452_s11 = scalar_lea.hbm %s8542_s2, %s5670_s24  ;;  %s8458_s7 = int_to_ptr.vmem [resolvable:$true] %s4259_s7 }
  0x6c   : > { %5106 = vmatprep.mubr.msk.bf16.mxu0 %vm489_vm3, %v1511_v38  ;;  %4955 = vmatmul.mubr.msk.bf16.vlgmr.msra.gmra.mrb[0].mxu1 %vm489_vm3, %v360_v35  ;;  %v368_v43 = vsel %vm340_vm1, %v363_v32, %v367_v37  ;;  %v371_v44 = vor.u32 %v6195_v31, %v367_v37  ;;  %v762_v46 = vsel %vm544_vm0, %v336_v24, 0  ;;  %v1514_v47 = vor.u32 %v1513_v36, %v1512_v39  ;;  %v6285_v32 = vld [vmem:[%s6136_s26 + $0x50] sm:$0xff]   ;;  %s5836_s6 = scalar_lea.vmem %s8458_s7, 2304  ;;  %s5842_s18 = scalar_lea.vmem %s5841_s21, 4608 }
  0x6d   : > { %4958 = vmatprep.mubr.msk.bf16.mxu1 %vm489_vm3, %v368_v43  ;;  %v1516_v48 = vrot.slane %v6209_v40, 1  ;;  %4991 = vmatpush3.bf16.msra.mxu1 %v762_v46  ;;  %v6224_v49 = vshll.u32 %v6192_v29, 16  ;;  %v6227_v50 = vshrl.u32 %v6192_v29, 16  ;;  %v379_v52 = vor.u32 %v6209_v40, %v375_v45  ;;  %v6306_v46 = vld [vmem:[#allocation5 + $0x4] sm:$0x3]  ;;  %p5837_p4 = scmp.ne.s32.totalorder %s8458_s7, %s5836_s6  ;;  %p5843_p12 = scmp.lt.s32.totalorder %s8458_s7, %s5841_s21 }
  0x6e   : > { %v6234_v53 = vshll.u32 %v6213_v42, 16  ;;  %v6237_v54 = vshrl.u32 %v6213_v42, 16  ;;  %v1515_v55 = vsel %vm1504_vm2, %v1510_v30, %v1514_v47  ;;  %v376_v59 = vsel %vm340_vm1, %v371_v44, %v375_v45  ;;  %5586 = vmatprep.subr.msk.bf16.mxu1 %vm544_vm0, %v6306_v46  ;;  %p5844_p13 = scmp.lt.s32.totalorder %s5842_s18, %s5836_s6 }
  0x6f   : > { %v1518_v56 = vor.u32 %v1517_v41, %v1516_v48  ;;  %v1520_v57 = vrot.slane %v6227_v50, 1  ;;  %v1521_v58 = vrot.slane %v6224_v49, 2  ;;  %5107 = vmatmul.mubr.msk.bf16.vlgmr.msra.gmra.mrb[0].mxu0 %vm489_vm3, %v1515_v55  ;;  %v383_v60 = vrot.slane %v6224_v49, 1  ;;  %p5838_p6 = pnand %p5837_p4, %p6078_p10 }
  0x70   : > { %v1524_v61 = vrot.slane %v6237_v54, 1  ;;  %v1525_v62 = vrot.slane %v6234_v53, 2  ;;  %5143 = vmatpush3.bf16.msra.mxu0 %v1955_v23  ;;  %v6252_v7 = vshll.u32 %v6230_v51, 16  ;;  %v6255_v8 = vshrl.u32 %v6230_v51, 16  ;;  %p5845_p0 = por %p5844_p13, %p5843_p12 }
  0x71   : > { %v1519_v1 = vsel %vm1504_vm2, %v1514_v47, %v1518_v56  ;;  %v1522_v3 = vor.u32 %v1521_v58, %v1520_v57  ;;  %v384_v9 = vsel %vm340_vm1, %v379_v52, %v383_v60  ;;  %v391_v14 = vrot.slane %v6234_v53, 1  ;;  %5591 = vmatprep.subr.msk.bf16.mxu0 %vm544_vm0, %v6259_v11  ;;  %p5839_p8 = pneg %p5838_p6 }
  0x72   : > { %5110 = vmatprep.mubr.msk.bf16.mxu0 %vm489_vm3, %v1519_v1  ;;  %v1526_v10 = vor.u32 %v1525_v62, %v1524_v61  ;;  %v387_v16 = vor.u32 %v6227_v50, %v383_v60  ;;  %v6270_v17 = vshll.u32 %v6248_v63, 16  ;;  %v6273_v20 = vshrl.u32 %v6248_v63, 16 }
  0x73   : > { %v1523_v21 = vsel %vm1504_vm2, %v1518_v56, %v1522_v3  ;;  %v1528_v22 = vrot.slane %v6255_v8, 1  ;;  %v1529_v23 = vrot.slane %v6252_v7, 2  ;;  %v395_v24 = vor.u32 %v6237_v54, %v391_v14  ;;  %v6314_v56 = vld [vmem:[%s6136_s26 + $0x58] sm:$0xff]   ;;  %p5846_p5 = pnand %p5845_p0, %p5839_p8 }
  0x74   : > { %4959 = vmatmul.mubr.msk.bf16.gmra.mrb[4].mxu1 %vm489_vm3, %v376_v59  ;;  %v1527_v25 = vsel %vm1504_vm2, %v1522_v3, %v1526_v10  ;;  %v399_v26 = vrot.slane %v6252_v7, 1  ;;  %v1532_v27 = vrot.slane %v6273_v20, 1  ;;  %v1533_v30 = vrot.slane %v6270_v17, 2 }
  0x75   : > { %4962 = vmatprep.mubr.msk.bf16.mxu1 %vm489_vm3, %v384_v9  ;;  %v392_v34 = vsel %vm340_vm1, %v387_v16, %v391_v14  ;;  %v1530_v35 = vor.u32 %v1529_v23, %v1528_v22  ;;  %v6291_v36 = vshll.u32 %v6263_v15, 16  ;;  %v6294_v37 = vshrl.u32 %v6263_v15, 16  ;;  %v6335_v16 = vld [vmem:[%s6136_s26 + $0x60] sm:$0xff]  }
  0x76   : > { %v400_v38 = vsel %vm340_vm1, %v395_v24, %v399_v26  ;;  %v1534_v39 = vor.u32 %v1533_v30, %v1532_v27  ;;  %v6298_v41 = vshll.u32 %v6285_v32, 16  ;;  %v6301_v43 = vshrl.u32 %v6285_v32, 16  ;;  %v6346_v30 = vld [vmem:[%s6136_s26 + $0x68] sm:$0xff]  }
  0x77   : > { %5111 = vmatmul.mubr.msk.bf16.gmra.mrb[4].mxu0 %vm489_vm3, %v1523_v21  ;;  %v403_v44 = vor.u32 %v6255_v8, %v399_v26  ;;  %v407_v45 = vrot.slane %v6270_v17, 1  ;;  %v1531_v47 = vsel %vm1504_vm2, %v1526_v10, %v1530_v35  ;;  %v1536_v48 = vrot.slane %v6294_v37, 1 }
  0x78   : > { %5114 = vmatprep.mubr.msk.bf16.mxu0 %vm489_vm3, %v1527_v25  ;;  %v1537_v52 = vrot.slane %v6291_v36, 2  ;;  %v415_v55 = vrot.slane %v6291_v36, 1  ;;  %v1535_v57 = vsel %vm1504_vm2, %v1530_v35, %v1534_v39  ;;  %v1540_v59 = vrot.slane %v6301_v43, 1 }
  0x79   : > { %v411_v58 = vor.u32 %v6273_v20, %v407_v45  ;;  %v1541_v60 = vrot.slane %v6298_v41, 2  ;;  %v408_v61 = vsel %vm340_vm1, %v403_v44, %v407_v45  ;;  %v6326_v1 = vshll.u32 %v6314_v56, 16 }
  0x7a   : > { %v1538_v62 = vor.u32 %v1537_v52, %v1536_v48  ;;  %v6329_v3 = vshrl.u32 %v6314_v56, 16  ;;  %v423_v14 = vrot.slane %v6298_v41, 1  ;;  %v419_v22 = vor.u32 %v6294_v37, %v415_v55 }
  0x7b   : > { %8648 = vst [vmem:[#allocation15_spill] sm:$0xff] %v6326_v1  ;;  %v416_v9 = vsel %vm340_vm1, %v411_v58, %v415_v55  ;;  %v1542_v10 = vor.u32 %v1541_v60, %v1540_v59  ;;  %v1545_v24 = vrot.slane %v6326_v1, 2  ;;  %v431_v27 = vrot.slane %v6326_v1, 1  ;;  %v6368_v55 = vld [vmem:[%s6136_s26 + $0x70] sm:$0xff]  }
  0x7c   : > { %4963 = vmatmul.mubr.msk.bf16.gmra.mrb[8].mxu1 %vm489_vm3, %v392_v34  ;;  %8649 = vst [vmem:[#allocation16_spill] sm:$0xff] %v6329_v3  ;;  %v1539_v21 = vsel %vm1504_vm2, %v1534_v39, %v1538_v62  ;;  %v1544_v23 = vrot.slane %v6329_v3, 1  ;;  %v427_v26 = vor.u32 %v6301_v43, %v423_v14  ;;  %v6350_v34 = vshll.u32 %v6335_v16, 16 }
  0x7d   : > { %4966 = vmatprep.mubr.msk.bf16.mxu1 %vm489_vm3, %v400_v38  ;;  %v1543_v25 = vsel %vm1504_vm2, %v1538_v62, %v1542_v10  ;;  %v424_v35 = vsel %vm340_vm1, %v419_v22, %v423_v14  ;;  %v1863_v39 = vrot.slane %v6161_v5, 2  ;;  %v1864_v45 = vrot.slane %v6164_v6, 2  ;;  %v6378_v62 = vld [vmem:[%s6136_s26 + $0x78] sm:$0xff]  }
  0x7e   : > { %8650 = vst [vmem:[#allocation17_spill] sm:$0xff] %v6350_v34  ;;  %v6354_v38 = vor.u32 %v1545_v24, %v1544_v23  ;;  %v432_v44 = vsel %vm340_vm1, %v427_v26, %v431_v27  ;;  %v6363_v48 = vshll.u32 %v6346_v30, 16  ;;  %vm1862_vm4 = vcmask 1045504  }
  0x7f   : > { %5115 = vmatmul.mubr.msk.bf16.gmra.mrb[8].mxu0 %vm489_vm3, %v1531_v47  ;;  %v6360_v47 = vshrl.u32 %v6335_v16, 16  ;;  %v439_v52 = vrot.slane %v6350_v34, 1  ;;  %v435_v58 = vor.u32 %v6329_v3, %v431_v27  ;;  %v1865_v59 = vsel %vm1862_vm4, %v1863_v39, %v1864_v45  ;;  %v6401_v27 = vld [vmem:[%s6136_s26 + $0x80] sm:$0xff]  }
  0x80   : > { %5118 = vmatprep.mubr.msk.bf16.mxu0 %vm489_vm3, %v1535_v57  ;;  %8651 = vst [vmem:[#allocation18_spill] sm:$0xff] %v6354_v38  ;;  %8653 = vst [vmem:[#allocation20_spill] sm:$0xff] %v6363_v48  ;;  %v1547_v57 = vsel %vm1504_vm2, %v1542_v10, %v6354_v38  ;;  %v1866_v14 = vrot.slane %v6178_v18, 2  ;;  %v1868_v23 = vrot.slane %v6181_v19, 2  ;;  %v6393_v24 = vshrl.u32 %v6368_v55, 16 }
  0x81   : > { %8652 = vst [vmem:[#allocation19_spill] sm:$0xff] %v6360_v47  ;;  %v443_v60 = vor.u32 %v6360_v47, %v439_v52  ;;  %v440_v10 = vsel %vm340_vm1, %v435_v58, %v439_v52  ;;  %v2187_v52 = vsel %vm544_vm0, %v6259_v11, 0  ;;  %v6430_v11 = vld [vmem:[%s6136_s26 + $0x98] sm:$0xf]  ;;  %v1872_v2 = vrot.slane %v6213_v42, 2 }
  0x82   : > { %8656 = vst [vmem:[#allocation23_spill] sm:$0xff] %v6393_v24  ;;  %v6405_v39 = vsel %vm1862_vm4, %v1864_v45, %v1866_v14  ;;  %v6422_v45 = vld [vmem:[#allocation5 + $0xe] sm:$0x3]  ;;  %v1876_v1 = vrot.slane %v6248_v63, 2  ;;  %vm2404_vm5 = vsmask.f32 5376 }
  0x83   : > { %vm962_vm6 = vcmask 1046528   ;;  %vm2762_vm7 = vcmask 1044480  }
  0x84   : > { %4967 = vmatmul.mubr.msk.bf16.gmra.mrb[12].mxu1 %vm489_vm3, %v408_v61  ;;  %v447_v61 = vrot.slane %v6363_v48, 1  ;;  %v6446_v48 = vshrl.u32 %v6401_v27, 16 }
  0x85   : > { %4970 = vmatprep.mubr.msk.bf16.mxu1 %vm489_vm3, %v416_v9  ;;  %v6382_v9 = vshll.u32 %v6368_v55, 16 }
  0x86   : > { %v448_v22 = vsel %vm340_vm1, %v443_v60, %v447_v61  ;;  %v6417_v60 = vld [vmem:[%s6136_s26 + $0x88] sm:$0xff]   ;;  %8662 = vst [vmem:[#allocation29_spill] sm:$0xff] %v6446_v48 }
  0x87   : > { %5119 = vmatmul.mubr.msk.bf16.gmra.mrb[12].mxu0 %vm489_vm3, %v1539_v21  ;;  %8654 = vst [vmem:[#allocation21_spill] sm:$0xff] %v6382_v9  ;;  %v6388_v21 = vshrl.u32 %v6346_v30, 16  ;;  %v455_v26 = vrot.slane %v6382_v9, 1 }
  0x88   : > { %5122 = vmatprep.mubr.msk.bf16.mxu0 %vm489_vm3, %v1543_v25  ;;  %v6396_v25 = vshll.u32 %v6378_v62, 16 }
  0x89   : > { %8655 = vst [vmem:[#allocation22_spill] sm:$0xff] %v6388_v21  ;;  %v459_v58 = vor.u32 %v6393_v24, %v455_v26 }
  0x8a   : > { %8657 = vst [vmem:[#allocation24_spill] sm:$0xff] %v6396_v25 }
  0x8c   : > { %4971 = vmatmul.mubr.msk.bf16.gmra.mrb[16].mxu1 %vm489_vm3, %v424_v35  ;;  %v273_v35 = vld [vmem:[%s6136_s26 + $0x94] sm:$0xf] }
  0x8d   : > { %4974 = vmatprep.mubr.msk.bf16.mxu1 %vm489_vm3, %v432_v44  ;;  %v451_v44 = vor.u32 %v6388_v21, %v447_v61  ;;  %v6427_v61 = vshll.u32 %v6401_v27, 16 }
  0x8f   : > { %5123 = vmatmul.mubr.msk.bf16.gmra.mrb[16].mxu0 %vm489_vm3, %v1547_v57  ;;  %v6412_v57 = vsel %vm1862_vm4, %v1866_v14, %v1868_v23  ;;  %8659 = vst [vmem:[#allocation26_spill] sm:$0xff] %v6427_v61  ;;  %v275_v14 = vld [vmem:[%s6136_s26 + $0x9c] sm:$0xf] }
  0x90   : > { %5144 = vmatprep.mubr.msk.bf16.mxu0 %vm489_vm3, %v1865_v59  ;;  %v463_v59 = vrot.slane %v6396_v25, 1  ;;  %v6438_v25 = vshrl.u32 %v6378_v62, 16  ;;  %v6441_v9 = vcombine.low %v6430_v11, %v275_v14 }
  0x92   : > { %8660 = vst [vmem:[#allocation27_spill] sm:$0xff] %v6438_v25  ;;  %8661 = vst [vmem:[#allocation28_spill] sm:$0xff] %v6441_v9  ;;  %v464_v24 = vsel %vm340_vm1, %v459_v58, %v463_v59  ;;  %v471_v58 = vrot.slane %v6427_v61, 1  ;;  %v467_v21 = vor.u32 %v6438_v25, %v463_v59  ;;  %v6481_v59 = vshrl.u32 %v6417_v60, 16 }
  0x94   : > { %4975 = vmatmul.mubr.msk.bf16.gmra.mrb[20].mxu1 %vm489_vm3, %v440_v10  ;;  %v272_v10 = vld [vmem:[%s6136_s26 + $0x90] sm:$0xf] }
  0x95   : > { %4978 = vmatprep.mubr.msk.bf16.mxu1 %vm489_vm3, %v448_v22  ;;  %v6420_v38 = vcombine.low %v272_v10, %v273_v35  ;;  %v456_v22 = vsel %vm340_vm1, %v451_v44, %v455_v26  ;;  %v1870_v35 = vrot.slane %v6192_v29, 2  ;;  %v8566_v44 = vrot.slane %v6441_v9, 2 }
  0x96   : > { %v6464_v34 = vcombine.low %v272_v10, %v272_v10  ;;  %v2405_v10 = vrot.slane %v6174_v13, 2  ;;  %v2413_v9 = vrot.slane %v6199_v33, 3  ;;  %v1878_v33 = vrot.slane %v6263_v15, 2 }
  0x97   : > { %8658 = vst [vmem:[#allocation25_spill] sm:$0xff] %v6420_v38  ;;  %5145 = vmatmul.mubr.msk.bf16.vlgmr.msra.gmra.mrb[0].mxu0 %vm489_vm3, %v6405_v39  ;;  %v6454_v26 = vrot.slane %v6420_v38, 2  ;;  %v6460_v14 = vsel %vm1862_vm4, %v1868_v23, %v1870_v35  ;;  %v6473_v47 = vsel %vm1862_vm4, %v1870_v35, %v1872_v2  ;;  %v472_v35 = vsel %vm340_vm1, %v467_v21, %v471_v58 }
  0x98   : > { %5181 = vmatpush3.bf16.msra.mxu0 %v2187_v52  ;;  %5148 = vmatprep.mubr.msk.bf16.mxu0 %vm489_vm3, %v6412_v57  ;;  %v6449_v52 = vshll.u32 %v6417_v60, 16  ;;  %v485_v61 = vshll.u32 %v6464_v34, 16 }
  0x99   : > { %5592 = vmatprep.subr.msk.bf16.mxu0 %vm544_vm0, %v6422_v45  ;;  %v6470_v38 = vsel %vm1862_vm4, %v6454_v26, %v8566_v44  ;;  %v2406_v44 = vrot.slane %v6171_v12, 3  ;;  %v2412_v12 = vrot.slane %v6209_v40, 2 }
  0x9a   : > { %8663 = vst [vmem:[#allocation30_spill] sm:$0xff] %v6449_v52  ;;  %v479_v23 = vrot.slane %v6449_v52, 1  ;;  %v2408_v52 = vrot.slane %v6195_v31, 2  ;;  %v487_v31 = vrot.slane %v485_v61, 1 }
  0x9b   : > { %v2407_v3 = vor.u32 %v2406_v44, %v2405_v10  ;;  %v2421_v44 = vrot.slane %v6234_v53, 3  ;;  %v2424_v53 = vrot.slane %v6255_v8, 2  ;;  %v1882_v10 = vrot.slane %v6314_v56, 2 }
  0x9c   : > { %4979 = vmatmul.mubr.msk.bf16.gmra.mrb[24].mxu1 %vm489_vm3, %v456_v22  ;;  %v475_v22 = vor.u32 %v6446_v48, %v471_v58  ;;  %v2409_v48 = vrot.slane %v6188_v28, 3  ;;  %v483_v28 = vor.u32 %v6481_v59, %v479_v23 }
  0x9d   : > { %4982 = vmatprep.mubr.msk.bf16.mxu1 %vm489_vm3, %v464_v24  ;;  %v1874_v24 = vrot.slane %v6230_v51, 2 }
  0x9e   : > { %v480_v25 = vsel %vm340_vm1, %v475_v22, %v479_v23  ;;  %v2410_v13 = vor.u32 %v2409_v48, %v2408_v52  ;;  %v2414_v22 = vor.u32 %v2413_v9, %v2412_v12  ;;  %v2417_v9 = vrot.slane %v6224_v49, 3 }
  0x9f   : > { %5149 = vmatmul.mubr.msk.bf16.gmra.mrb[4].mxu0 %vm489_vm3, %v6460_v14  ;;  %v6497_v21 = vsel %vm1862_vm4, %v1872_v2, %v1874_v24  ;;  %v6505_v48 = vsel %vm1862_vm4, %v1874_v24, %v1876_v1  ;;  %v488_v2 = vsel %vm340_vm1, %v483_v28, %v487_v31  ;;  %v2420_v52 = vrot.slane %v6237_v54, 2  ;;  %v6546_v28 = vld [vmem:[#allocation5 + $0x6] sm:$0x3] }
  0xa0   : > { %5152 = vmatprep.mubr.msk.bf16.mxu0 %vm489_vm3, %v6473_v47  ;;  %v6502_v58 = vsel %vm2404_vm5, %v2407_v3, %v2410_v13  ;;  %v6508_v40 = vsel %vm2404_vm5, %v2410_v13, %v2414_v22  ;;  %v2416_v3 = vrot.slane %v6227_v50, 2  ;;  %v6523_v23 = vsel %vm1862_vm4, %v1876_v1, %v1878_v33 }
  0xa1   : > { %v2422_v50 = vor.u32 %v2421_v44, %v2420_v52  ;;  %v2425_v1 = vrot.slane %v6252_v7, 3  ;;  %v1055_v13 = vsel %vm544_vm0, %v6306_v46, 0  ;;  %v2428_v31 = vrot.slane %v6273_v20, 2 }
  0xa2   : > { %v2418_v61 = vor.u32 %v2417_v9, %v2416_v3  ;;  %v2432_v20 = vrot.slane %v6294_v37, 2  ;;  %v1886_v3 = vrot.slane %v6346_v30, 2  ;;  %v1888_v9 = vrot.slane %v6368_v55, 2 }
  0xa3   : > { %v2426_v12 = vor.u32 %v2425_v1, %v2424_v53  ;;  %v2437_v52 = vrot.slane %v6298_v41, 3  ;;  %v1892_v53 = vrot.slane %v6401_v27, 2 }
  0xa4   : > { %4983 = vmatmul.mubr.msk.bf16.gmra.mrb[28].mxu1 %vm489_vm3, %v472_v35  ;;  %v6528_v24 = vsel %vm2404_vm5, %v2414_v22, %v2418_v61  ;;  %v6536_v54 = vsel %vm2404_vm5, %v2418_v61, %v2422_v50  ;;  %v1884_v35 = vrot.slane %v6335_v16, 2  ;;  %v2429_v22 = vrot.slane %v6270_v17, 3 }
  0xa5   : > { %4986 = vmatprep.mubr.msk.bf16.mxu1 %vm489_vm3, %v480_v25  ;;  %v1880_v25 = vrot.slane %v6285_v32, 2  ;;  %v6553_v7 = vsel %vm2404_vm5, %v2422_v50, %v2426_v12  ;;  %v2436_v61 = vrot.slane %v6301_v43, 2  ;;  %v6591_v50 = vsel %vm1862_vm4, %v1886_v3, %v1888_v9 }
  0xa6   : > { %v2430_v46 = vor.u32 %v2429_v22, %v2428_v31  ;;  %v1890_v43 = vrot.slane %v6378_v62, 2 }
  0xa7   : > { %5153 = vmatmul.mubr.msk.bf16.gmra.mrb[8].mxu0 %vm489_vm3, %v6497_v21  ;;  %v6531_v49 = vsel %vm1862_vm4, %v1878_v33, %v1880_v25  ;;  %v6556_v8 = vsel %vm1862_vm4, %v1880_v25, %v1882_v10  ;;  %v2433_v33 = vrot.slane %v6291_v36, 3  ;;  %v6584_v36 = vsel %vm1862_vm4, %v1884_v35, %v1886_v3 }
  0xa8   : > { %5156 = vmatprep.mubr.msk.bf16.mxu0 %vm489_vm3, %v6505_v48  ;;  %v6566_v17 = vsel %vm2404_vm5, %v2426_v12, %v2430_v46  ;;  %v6588_v37 = vor.u32 %v2437_v52, %v2436_v61  ;;  %v6606_v1 = vsel %vm1862_vm4, %v1888_v9, %v1890_v43  ;;  %v6627_v12 = vcombine.low %v6430_v11, %v6430_v11  ;;  %v6753_v52 = vld [vmem:[%s6136_s26 + $0xa0] ss:$0 sps:$4 sm:$0x77]  }
  0xa9   : > { %v2434_v25 = vor.u32 %v2433_v33, %v2432_v20  ;;  %v2545_v11 = vsel %vm544_vm0, %v6422_v45, 0  ;;  %v6653_v20 = vld [vmem:[#allocation5 + $0x10] sm:$0x3]  ;;  %v966_v45 = vrot.slane %v6164_v6, 1  ;;  %v978_v33 = vrot.slane %v6248_v63, 1 }
  0xaa   : > { %v1898_v22 = vrot.slane %v6627_v12, 2  ;;  %v980_v3 = vrot.slane %v6263_v15, 1  ;;  %v982_v61 = vrot.slane %v6285_v32, 1 }
  0xab   : > { %v6581_v44 = vsel %vm2404_vm5, %v2430_v46, %v2434_v25  ;;  %v6595_v41 = vsel %vm2404_vm5, %v2434_v25, %v6588_v37 }
  0xac   : > { %4987 = vmatmul.mubr.msk.bf16.gmra.mrb[32].mxu1 %vm489_vm3, %v488_v2  ;;  %v6561_v2 = vsel %vm1862_vm4, %v1882_v10, %v1884_v35  ;;  %v6611_v10 = vsel %vm1862_vm4, %v1890_v43, %v1892_v53  ;;  %v1894_v35 = vrot.slane %v6417_v60, 2  ;;  %v1899_v46 = vsel %vm1862_vm4, %v6454_v26, %v1898_v22 }
  0xad   : > { %4992 = vmatprep.mubr.msk.bf16.mxu1 %vm489_vm3, %v6158_v4  ;;  %v6745_v25 = vsel %vm962_vm6, %v978_v33, %v980_v3  ;;  %v2178_v43 = vrot.slane %v6753_v52, 2 }
  0xae   : > { %v6631_v31 = vsel %vm1862_vm4, %v1894_v35, %v6454_v26 }
  0xaf   : > { %5157 = vmatmul.mubr.msk.bf16.gmra.mrb[12].mxu0 %vm489_vm3, %v6523_v23 }
  0xb0   : > { %5160 = vmatprep.mubr.msk.bf16.mxu0 %vm489_vm3, %v6531_v49 }
  0xb4   : > { %4993 = vmatmul.mubr.msk.bf16.vlgmr.msra.gmra.mrb[0].mxu1 %vm489_vm3, %v6161_v5 }
  0xb5   : > { %4996 = vmatprep.mubr.msk.bf16.mxu1 %vm489_vm3, %v6164_v6  ;;  %5029 = vmatpush3.bf16.msra.mxu1 %v1055_v13  ;;  %v6621_v13 = vsel %vm1862_vm4, %v1892_v53, %v1894_v35 }
  0xb6   : > { %5587 = vmatprep.subr.msk.bf16.mxu1 %vm544_vm0, %v6546_v28 }
  0xb7   : > { %5161 = vmatmul.mubr.msk.bf16.gmra.mrb[16].mxu0 %vm489_vm3, %v6556_v8 }
  0xb8   : > { %5164 = vmatprep.mubr.msk.bf16.mxu0 %vm489_vm3, %v6561_v2 }
  0xbc   : > { %4997 = vmatmul.mubr.msk.bf16.gmra.mrb[4].mxu1 %vm489_vm3, %v6178_v18 }
  0xbd   : > { %5000 = vmatprep.mubr.msk.bf16.mxu1 %vm489_vm3, %v6181_v19 }
  0xbf   : > { %5165 = vmatmul.mubr.msk.bf16.gmra.mrb[20].mxu0 %vm489_vm3, %v6584_v36 }
  0xc0   : > { %5168 = vmatprep.mubr.msk.bf16.mxu0 %vm489_vm3, %v6591_v50 }
  0xc4   : > { %5001 = vmatmul.mubr.msk.bf16.gmra.mrb[8].mxu1 %vm489_vm3, %v6192_v29 }
  0xc5   : > { %5004 = vmatprep.mubr.msk.bf16.mxu1 %vm489_vm3, %v6213_v42 }
  0xc7   : > { %5169 = vmatmul.mubr.msk.bf16.gmra.mrb[24].mxu0 %vm489_vm3, %v6606_v1 }
  0xc8   : > { %5172 = vmatprep.mubr.msk.bf16.mxu0 %vm489_vm3, %v6611_v10 }
  0xcc   : > { %5005 = vmatmul.mubr.msk.bf16.gmra.mrb[12].mxu1 %vm489_vm3, %v6230_v51 }
  0xcd   : > { %5008 = vmatprep.mubr.msk.bf16.mxu1 %vm489_vm3, %v6248_v63 }
  0xcf   : > { %5173 = vmatmul.mubr.msk.bf16.gmra.mrb[28].mxu0 %vm489_vm3, %v6621_v13 }
  0xd0   : > { %5176 = vmatprep.mubr.msk.bf16.mxu0 %vm489_vm3, %v6631_v31 }
  0xd4   : > { %5009 = vmatmul.mubr.msk.bf16.gmra.mrb[16].mxu1 %vm489_vm3, %v6263_v15 }
  0xd5   : > { %5012 = vmatprep.mubr.msk.bf16.mxu1 %vm489_vm3, %v6285_v32 }
  0xd7   : > { %5177 = vmatmul.mubr.msk.bf16.gmra.mrb[32].mxu0 %vm489_vm3, %v1899_v46  ;;  %v990_v46 = vrot.slane %v6368_v55, 1 }
  0xd8   : > { %5182 = vmatprep.mubr.msk.bf16.mxu0 %vm489_vm3, %v6405_v39  ;;  %v963_v39 = vrot.slane %v6158_v4, 1  ;;  %v968_v4 = vrot.slane %v6178_v18, 1 }
  0xda   : > { %v6693_v26 = vsel %vm962_vm6, %v966_v45, %v968_v4 }
  0xdc   : > { %5013 = vmatmul.mubr.msk.bf16.gmra.mrb[20].mxu1 %vm489_vm3, %v6314_v56 }
  0xdd   : > { %5016 = vmatprep.mubr.msk.bf16.mxu1 %vm489_vm3, %v6335_v16 }
  0xdf   : > { %5183 = vmatmul.mubr.msk.bf16.vlgmr.msra.gmra.mrb[0].mxu0 %vm489_vm3, %v6412_v57  ;;  %v964_v57 = vrot.slane %v6161_v5, 1 }
  0xe0   : > { %5219 = vmatpush3.bf16.msra.mxu0 %v2545_v11  ;;  %5186 = vmatprep.mubr.msk.bf16.mxu0 %vm489_vm3, %v6460_v14  ;;  %v1287_v14 = vsel %vm544_vm0, %v6546_v28, 0  ;;  %v976_v28 = vrot.slane %v6230_v51, 1  ;;  %v2855_v11 = vsel %vm544_vm0, %v6653_v20, 0 }
  0xe1   : > { %5593 = vmatprep.subr.msk.bf16.mxu0 %vm544_vm0, %v6653_v20  ;;  %v6690_v5 = vsel %vm962_vm6, %v964_v57, %v966_v45  ;;  %v994_v20 = vrot.slane %v6401_v27, 1  ;;  %v998_v45 = vrot.slane %v6464_v34, 1  ;;  %v8668_v34 = vld [vmem:[#allocation19_spill] sm:$0xff] }
  0xe2   : > { %v6742_v9 = vsel %vm962_vm6, %v976_v28, %v978_v33 }
  0xe4   : > { %5017 = vmatmul.mubr.msk.bf16.gmra.mrb[24].mxu1 %vm489_vm3, %v6346_v30 }
  0xe5   : > { %5020 = vmatprep.mubr.msk.bf16.mxu1 %vm489_vm3, %v6368_v55 }
  0xe7   : > { %5187 = vmatmul.mubr.msk.bf16.gmra.mrb[4].mxu0 %vm489_vm3, %v6473_v47  ;;  %v965_v47 = vsel %vm962_vm6, %v963_v39, %v964_v57  ;;  %v992_v39 = vrot.slane %v6378_v62, 1 }
  0xe8   : > { %5190 = vmatprep.mubr.msk.bf16.mxu0 %vm489_vm3, %v6497_v21  ;;  %v970_v21 = vrot.slane %v6181_v19, 1 }
  0xe9   : > { %v6801_v57 = vsel %vm962_vm6, %v990_v46, %v992_v39 }
  0xec   : > { %5021 = vmatmul.mubr.msk.bf16.gmra.mrb[28].mxu1 %vm489_vm3, %v6378_v62 }
  0xed   : > { %5024 = vmatprep.mubr.msk.bf16.mxu1 %vm489_vm3, %v6401_v27 }
  0xef   : > { %5191 = vmatmul.mubr.msk.bf16.gmra.mrb[8].mxu0 %vm489_vm3, %v6505_v48  ;;  %v972_v48 = vrot.slane %v6192_v29, 1 }
  0xf0   : > { %5194 = vmatprep.mubr.msk.bf16.mxu0 %vm489_vm3, %v6523_v23  ;;  %v6710_v23 = vsel %vm962_vm6, %v968_v4, %v970_v21  ;;  %v8666_v4 = vld [vmem:[#allocation16_spill] sm:$0xff] }
  0xf4   : > { %5025 = vmatmul.mubr.msk.bf16.gmra.mrb[32].mxu1 %vm489_vm3, %v6417_v60 }
  0xf5   : > { %5030 = vmatprep.mubr.msk.bf16.mxu1 %vm489_vm3, %v965_v47 }
  0xf7   : > { %5195 = vmatmul.mubr.msk.bf16.gmra.mrb[12].mxu0 %vm489_vm3, %v6531_v49  ;;  %v6713_v49 = vsel %vm962_vm6, %v970_v21, %v972_v48 }
  0xf8   : > { %5198 = vmatprep.mubr.msk.bf16.mxu0 %vm489_vm3, %v6556_v8 }
  0xfc   : > { %5031 = vmatmul.mubr.msk.bf16.vlgmr.msra.gmra.mrb[0].mxu1 %vm489_vm3, %v6690_v5 }
  0xfd   : > { %5034 = vmatprep.mubr.msk.bf16.mxu1 %vm489_vm3, %v6693_v26  ;;  %5067 = vmatpush3.bf16.msra.mxu1 %v1287_v14  ;;  %v8667_v14 = vld [vmem:[#allocation15_spill] sm:$0xff] }
  0xfe   : > { %5589 = vmatprep.subr.msk.bf16.mxu1 %vm544_vm0, %v6146_v0  ;;  %v974_v0 = vrot.slane %v6213_v42, 1  ;;  %v2441_v21 = vrot.slane %v8667_v14, 3 }
  0xff   : > { %5199 = vmatmul.mubr.msk.bf16.gmra.mrb[16].mxu0 %vm489_vm3, %v6561_v2 }
 0x100   : > { %5202 = vmatprep.mubr.msk.bf16.mxu0 %vm489_vm3, %v6584_v36  ;;  %v6726_v8 = vsel %vm962_vm6, %v972_v48, %v974_v0  ;;  %v6729_v2 = vsel %vm962_vm6, %v974_v0, %v976_v28  ;;  %v984_v36 = vrot.slane %v6314_v56, 1  ;;  %v2444_v0 = vrot.slane %v8668_v34, 2  ;;  %v8669_v28 = vld [vmem:[#allocation17_spill] sm:$0xff] }
 0x101   : > { %v2445_v33 = vrot.slane %v8669_v28, 3 }
 0x102   : > { %v6765_v53 = vsel %vm962_vm6, %v982_v61, %v984_v36 }
 0x104   : > { %5035 = vmatmul.mubr.msk.bf16.gmra.mrb[4].mxu1 %vm489_vm3, %v6710_v23 }
 0x105   : > { %5038 = vmatprep.mubr.msk.bf16.mxu1 %vm489_vm3, %v6713_v49 }
 0x107   : > { %5203 = vmatmul.mubr.msk.bf16.gmra.mrb[20].mxu0 %vm489_vm3, %v6591_v50  ;;  %v6761_v50 = vsel %vm962_vm6, %v980_v3, %v982_v61 }
 0x108   : > { %5206 = vmatprep.mubr.msk.bf16.mxu0 %vm489_vm3, %v6606_v1  ;;  %v8664_v1 = vld [vmem:[#allocation28_spill] sm:$0xff] }
 0x10c   : > { %5039 = vmatmul.mubr.msk.bf16.gmra.mrb[8].mxu1 %vm489_vm3, %v6726_v8 }
 0x10d   : > { %5042 = vmatprep.mubr.msk.bf16.mxu1 %vm489_vm3, %v6729_v2 }
 0x10f   : > { %5207 = vmatmul.mubr.msk.bf16.gmra.mrb[24].mxu0 %vm489_vm3, %v6611_v10  ;;  %v8665_v10 = vrot.slane %v8664_v1, 2 }
 0x110   : > { %5210 = vmatprep.mubr.msk.bf16.mxu0 %vm489_vm3, %v6621_v13  ;;  %v988_v13 = vrot.slane %v6346_v30, 1 }
 0x111   : > { %v2179_v35 = vsel %vm1862_vm4, %v8665_v10, %v2178_v43  ;;  %v2446_v43 = vor.u32 %v2445_v33, %v2444_v0  ;;  %v2464_v0 = vrot.slane %v6481_v59, 2  ;;  %v8679_v33 = vld [vmem:[#allocation30_spill] sm:$0xff] }
 0x114   : > { %5043 = vmatmul.mubr.msk.bf16.gmra.mrb[12].mxu1 %vm489_vm3, %v6742_v9 }
 0x115   : > { %5046 = vmatprep.mubr.msk.bf16.mxu1 %vm489_vm3, %v6745_v25 }
 0x117   : > { %5211 = vmatmul.mubr.msk.bf16.gmra.mrb[28].mxu0 %vm489_vm3, %v6631_v31 }
 0x118   : > { %5214 = vmatprep.mubr.msk.bf16.mxu0 %vm489_vm3, %v6470_v38  ;;  %v986_v38 = vrot.slane %v6335_v16, 1 }
 0x11a   : > { %v6780_v31 = vsel %vm962_vm6, %v984_v36, %v986_v38  ;;  %v6783_v22 = vsel %vm962_vm6, %v986_v38, %v988_v13  ;;  %v8671_v36 = vld [vmem:[#allocation20_spill] sm:$0xff] }
 0x11c   : > { %5047 = vmatmul.mubr.msk.bf16.gmra.mrb[16].mxu1 %vm489_vm3, %v6761_v50 }
 0x11d   : > { %5050 = vmatprep.mubr.msk.bf16.mxu1 %vm489_vm3, %v6765_v53 }
 0x11f   : > { %5215 = vmatmul.mubr.msk.bf16.gmra.mrb[32].mxu0 %vm489_vm3, %v2179_v35  ;;  %v8673_v35 = vld [vmem:[#allocation23_spill] sm:$0xff] }
 0x120   : > { %5220 = vmatprep.mubr.msk.bf16.mxu0 %vm489_vm3, %v6502_v58  ;;  %v6798_v58 = vsel %vm962_vm6, %v988_v13, %v990_v46  ;;  %v2452_v38 = vrot.slane %v8673_v35, 2  ;;  %v8674_v13 = vld [vmem:[#allocation21_spill] sm:$0xff] }
 0x121   : > { %v2453_v46 = vrot.slane %v8674_v13, 3 }
 0x124   : > { %5051 = vmatmul.mubr.msk.bf16.gmra.mrb[20].mxu1 %vm489_vm3, %v6780_v31 }
 0x125   : > { %5054 = vmatprep.mubr.msk.bf16.mxu1 %vm489_vm3, %v6783_v22 }
 0x127   : > { %5221 = vmatmul.mubr.msk.bf16.vlgmr.msra.gmra.mrb[0].mxu0 %vm489_vm3, %v6508_v40  ;;  %v6809_v40 = vrot.slane %v6417_v60, 1 }
 0x128   : > { %5257 = vmatpush3.bf16.msra.mxu0 %v2855_v11  ;;  %5224 = vmatprep.mubr.msk.bf16.mxu0 %vm489_vm3, %v6528_v24  ;;  %v6816_v24 = vsel %vm962_vm6, %v992_v39, %v994_v20  ;;  %v8675_v11 = vld [vmem:[#allocation27_spill] sm:$0xff] }
 0x129   : > { %v6820_v47 = vsel %vm962_vm6, %v994_v20, %v6809_v40  ;;  %v2456_v39 = vrot.slane %v8675_v11, 2  ;;  %v8676_v20 = vld [vmem:[#allocation24_spill] sm:$0xff] }
 0x12c   : > { %5055 = vmatmul.mubr.msk.bf16.gmra.mrb[24].mxu1 %vm489_vm3, %v6798_v58 }
 0x12d   : > { %5058 = vmatprep.mubr.msk.bf16.mxu1 %vm489_vm3, %v6801_v57 }
 0x12f   : > { %5225 = vmatmul.mubr.msk.bf16.gmra.mrb[4].mxu0 %vm489_vm3, %v6536_v54  ;;  %v2440_v54 = vrot.slane %v8666_v4, 2 }
 0x130   : > { %5228 = vmatprep.mubr.msk.bf16.mxu0 %vm489_vm3, %v6553_v7  ;;  %v999_v7 = vsel %vm962_vm6, %v6809_v40, %v998_v45  ;;  %v2457_v45 = vrot.slane %v8676_v20, 3 }
 0x131   : > { %v2442_v48 = vor.u32 %v2441_v21, %v2440_v54  ;;  %v8677_v54 = vld [vmem:[#allocation29_spill] sm:$0xff]  ;;  %v8678_v21 = vld [vmem:[#allocation26_spill] sm:$0xff] }
 0x132   : > { %v2458_v4 = vor.u32 %v2457_v45, %v2456_v39  ;;  %v2460_v14 = vrot.slane %v8677_v54, 2 }
 0x133   : > { %v2443_v3 = vsel %vm2404_vm5, %v6588_v37, %v2442_v48  ;;  %v8672_v37 = vld [vmem:[#allocation14_spill] sm:$0xff] }
 0x134   : > { %5059 = vmatmul.mubr.msk.bf16.gmra.mrb[28].mxu1 %vm489_vm3, %v6816_v24 }
 0x135   : > { %5062 = vmatprep.mubr.msk.bf16.mxu1 %vm489_vm3, %v6820_v47 }
 0x137   : > { %5229 = vmatmul.mubr.msk.bf16.gmra.mrb[8].mxu0 %vm489_vm3, %v6566_v17  ;;  %v8670_v17 = vld [vmem:[#allocation22_spill] sm:$0xff] }
 0x138   : > { %5232 = vmatprep.mubr.msk.bf16.mxu0 %vm489_vm3, %v6581_v44  ;;  %v2448_v61 = vrot.slane %v8670_v17, 2  ;;  %v2449_v44 = vrot.slane %v8671_v36, 3 }
 0x13a   : > { %v2450_v10 = vor.u32 %v2449_v44, %v2448_v61  ;;  %v8680_v61 = vld [vmem:[#allocation25_spill] sm:$0xff] }
 0x13b   : > { %v1573_v44 = vshrl.u32 %v8680_v61, 16 }
 0x13c   : > { %5063 = vmatmul.mubr.msk.bf16.gmra.mrb[32].mxu1 %vm489_vm3, %v999_v7  ;;  %v2461_v7 = vrot.slane %v8678_v21, 3 }
 0x13d   : > { %5068 = vmatprep.mubr.msk.bf16.mxu1 %vm489_vm3, %v6690_v5  ;;  %v2447_v5 = vsel %vm2404_vm5, %v2442_v48, %v2446_v43 }
 0x13f   : > { %5233 = vmatmul.mubr.msk.bf16.gmra.mrb[12].mxu0 %vm489_vm3, %v6595_v41  ;;  %v2451_v41 = vsel %vm2404_vm5, %v2446_v43, %v2450_v10  ;;  %v1576_v43 = vshll.u32 %v8680_v61, 16 }
 0x140   : > { %5236 = vmatprep.mubr.msk.bf16.mxu0 %vm489_vm3, %v2443_v3  ;;  %v2465_v3 = vrot.slane %v8679_v33, 3 }
 0x144   : > { %5069 = vmatmul.mubr.msk.bf16.vlgmr.msra.gmra.mrb[0].mxu1 %vm489_vm3, %v6693_v26  ;;  %v2454_v26 = vor.u32 %v2453_v46, %v2452_v38  ;;  %v2468_v38 = vrot.slane %v1573_v44, 2  ;;  %v2469_v46 = vrot.slane %v1576_v43, 3 }
 0x145   : > { %5072 = vmatprep.mubr.msk.bf16.mxu1 %vm489_vm3, %v6710_v23  ;;  %5295 = vmatpush3.bf16.msra.mxu1 %v8672_v37 }
 0x146   : > { %v2455_v23 = vsel %vm2404_vm5, %v2450_v10, %v2454_v26  ;;  %v2459_v48 = vsel %vm2404_vm5, %v2454_v26, %v2458_v4  ;;  %v2473_v10 = vshrl.u32 %v8664_v1, 16  ;;  %v2482_v26 = vshrl.u32 %v6753_v52, 16 }
 0x147   : > { %5237 = vmatmul.mubr.msk.bf16.gmra.mrb[16].mxu0 %vm489_vm3, %v2447_v5  ;;  %v2476_v5 = vshll.u32 %v8664_v1, 16 }
 0x148   : > { %5240 = vmatprep.mubr.msk.bf16.mxu0 %vm489_vm3, %v2451_v41  ;;  %v2475_v39 = vrot.slane %v2473_v10, 2  ;;  %v1548_v10 = vrot.slane %v8668_v34, 1  ;;  %v1552_v34 = vrot.slane %v8670_v17, 1 }
 0x149   : > { %v2478_v45 = vrot.slane %v2476_v5, 3  ;;  %v1549_v5 = vrot.slane %v8669_v28, 2  ;;  %v8681_v28 = vld [vmem:[#allocation18_spill] sm:$0xff] }
 0x14c   : > { %5073 = vmatmul.mubr.msk.bf16.gmra.mrb[4].mxu1 %vm489_vm3, %v6713_v49  ;;  %v2462_v49 = vor.u32 %v2461_v7, %v2460_v14  ;;  %v2484_v14 = vrot.slane %v2482_v26, 2 }
 0x14d   : > { %5076 = vmatprep.mubr.msk.bf16.mxu1 %vm489_vm3, %v6726_v8  ;;  %v2466_v8 = vor.u32 %v2465_v3, %v2464_v0  ;;  %v2763_v3 = vrot.slane %v6164_v6, 3  ;;  %v2768_v6 = vrot.slane %v6192_v29, 3 }
 0x14e   : > { %v2463_v37 = vsel %vm2404_vm5, %v2458_v4, %v2462_v49  ;;  %v2485_v4 = vshll.u32 %v6753_v52, 16 }
 0x14f   : > { %5241 = vmatmul.mubr.msk.bf16.gmra.mrb[20].mxu0 %vm489_vm3, %v2455_v23  ;;  %v2467_v41 = vsel %vm2404_vm5, %v2462_v49, %v2466_v8  ;;  %v2764_v49 = vrot.slane %v6178_v18, 3 }
 0x150   : > { %5244 = vmatprep.mubr.msk.bf16.mxu0 %vm489_vm3, %v2459_v48  ;;  %v2487_v7 = vrot.slane %v2485_v4, 3 }
 0x152   : > { %v2488_v0 = vor.u32 %v2487_v7, %v2484_v14  ;;  %v1565_v14 = vrot.slane %v8678_v21, 2  ;;  %v1569_v21 = vrot.slane %v8679_v33, 2  ;;  %v1585_v33 = vshll.u32 %v6627_v12, 16 }
 0x154   : > { %5077 = vmatmul.mubr.msk.bf16.gmra.mrb[8].mxu1 %vm489_vm3, %v6729_v2  ;;  %v2470_v2 = vor.u32 %v2469_v46, %v2468_v38  ;;  %v1550_v38 = vor.u32 %v1549_v5, %v1548_v10  ;;  %v3251_v10 = vlaneseq }
 0x155   : > { %5080 = vmatprep.mubr.msk.bf16.mxu1 %vm489_vm3, %v6742_v9  ;;  %v2479_v9 = vor.u32 %v2478_v45, %v2475_v39  ;;  %v1556_v39 = vrot.slane %v8673_v35, 1  ;;  %v1557_v45 = vrot.slane %v8674_v13, 2  ;;  %v1560_v35 = vrot.slane %v8675_v11, 1 }
 0x156   : > { %v2471_v23 = vsel %vm2404_vm5, %v2466_v8, %v2470_v2  ;;  %v2766_v8 = vrot.slane %v6181_v19, 3  ;;  %v2772_v19 = vrot.slane %v6230_v51, 3  ;;  %v1551_v46 = vsel %vm1504_vm2, %v8681_v28, %v1550_v38 }
 0x157   : > { %5245 = vmatmul.mubr.msk.bf16.gmra.mrb[24].mxu0 %vm489_vm3, %v2463_v37  ;;  %v2480_v48 = vsel %vm2404_vm5, %v2470_v2, %v2479_v9  ;;  %v1278_v37 = vrot.slane %v6627_v12, 1  ;;  %v1558_v26 = vor.u32 %v1557_v45, %v1556_v39  ;;  %v1561_v13 = vrot.slane %v8676_v20, 2 }
 0x158   : > { %5248 = vmatprep.mubr.msk.bf16.mxu0 %vm489_vm3, %v2467_v41  ;;  %v2767_v18 = vsel %vm2762_vm7, %v2764_v49, %v2766_v8  ;;  %v2780_v41 = vrot.slane %v6314_v56, 3  ;;  %v2786_v20 = vrot.slane %v6368_v55, 3 }
 0x15c   : > { %5081 = vmatmul.mubr.msk.bf16.gmra.mrb[12].mxu1 %vm489_vm3, %v6745_v25  ;;  %v2489_v25 = vsel %vm2404_vm5, %v2479_v9, %v2488_v0  ;;  %v2784_v9 = vrot.slane %v6346_v30, 3 }
 0x15d   : > { %5084 = vmatprep.mubr.msk.bf16.mxu1 %vm489_vm3, %v6761_v50  ;;  %v2765_v50 = vsel %vm2762_vm7, %v2763_v3, %v2764_v49  ;;  %v2788_v3 = vrot.slane %v6378_v62, 3  ;;  %v1575_v49 = vrot.slane %v1573_v44, 1 }
 0x15f   : > { %5249 = vmatmul.mubr.msk.bf16.gmra.mrb[28].mxu0 %vm489_vm3, %v2471_v23  ;;  %v1564_v23 = vrot.slane %v8677_v54, 1  ;;  %v1568_v54 = vrot.slane %v6481_v59, 1  ;;  %v1582_v59 = vshrl.u32 %v6627_v12, 16 }
 0x160   : > { %5252 = vmatprep.mubr.msk.bf16.mxu0 %vm489_vm3, %v2480_v48  ;;  %v1562_v48 = vor.u32 %v1561_v13, %v1560_v35 }
 0x161   : > { %v1566_v11 = vor.u32 %v1565_v14, %v1564_v23  ;;  %v1570_v55 = vor.u32 %v1569_v21, %v1568_v54 }
 0x162   : > { %v1563_v30 = vsel %vm1504_vm2, %v1558_v26, %v1562_v48 }
 0x163   : > { %v1567_v0 = vsel %vm1504_vm2, %v1562_v48, %v1566_v11  ;;  %v1571_v44 = vsel %vm1504_vm2, %v1566_v11, %v1570_v55 }
 0x164   : > { %5085 = vmatmul.mubr.msk.bf16.gmra.mrb[16].mxu1 %vm489_vm3, %v6765_v53  ;;  %v2769_v53 = vsel %vm2762_vm7, %v2766_v8, %v2768_v6  ;;  %v2789_v8 = vsel %vm2762_vm7, %v2786_v20, %v2788_v3 }
 0x165   : > { %5088 = vmatprep.mubr.msk.bf16.mxu1 %vm489_vm3, %v6780_v31  ;;  %v2770_v31 = vrot.slane %v6213_v42, 3  ;;  %v2774_v42 = vrot.slane %v6248_v63, 3 }
 0x167   : > { %5253 = vmatmul.mubr.msk.bf16.gmra.mrb[32].mxu0 %vm489_vm3, %v2489_v25  ;;  %v2771_v29 = vsel %vm2762_vm7, %v2768_v6, %v2770_v31  ;;  %v1578_v25 = vrot.slane %v1576_v43, 2  ;;  %v2790_v43 = vrot.slane %v6401_v27, 3  ;;  %v1584_v6 = vrot.slane %v1582_v59, 1 }
 0x168   : > { %5258 = vmatprep.mubr.msk.bf16.mxu0 %vm489_vm3, %v2765_v50  ;;  %v2787_v50 = vsel %vm2762_vm7, %v2784_v9, %v2786_v20 }
 0x169   : > { %v1579_v62 = vor.u32 %v1578_v25, %v1575_v49  ;;  %v2791_v12 = vsel %vm2762_vm7, %v2788_v3, %v2790_v43 }
 0x16c   : > { %5089 = vmatmul.mubr.msk.bf16.gmra.mrb[20].mxu1 %vm489_vm3, %v6783_v22  ;;  %v2773_v22 = vsel %vm2762_vm7, %v2770_v31, %v2772_v19  ;;  %v2792_v31 = vrot.slane %v6417_v60, 3 }
 0x16d   : > { %5092 = vmatprep.mubr.msk.bf16.mxu1 %vm489_vm3, %v6798_v58  ;;  %v1276_v58 = vrot.slane %v8680_v61, 1 }
 0x16f   : > { %5259 = vmatmul.mubr.msk.bf16.vlgmr.msra.gmra.mrb[0].mxu0 %vm489_vm3, %v2767_v18  ;;  %v1277_v51 = vsel %vm962_vm6, %v6809_v40, %v1276_v58  ;;  %v2778_v40 = vrot.slane %v6285_v32, 3  ;;  %v1587_v18 = vrot.slane %v1585_v33, 2 }
 0x170   : > { %5262 = vmatprep.mubr.msk.bf16.mxu0 %vm489_vm3, %v2769_v53  ;;  %v1580_v53 = vsel %vm1504_vm2, %v1570_v55, %v1579_v62 }
 0x171   : > { %v2781_v17 = vsel %vm2762_vm7, %v2778_v40, %v2780_v41 }
 0x174   : > { %5093 = vmatmul.mubr.msk.bf16.gmra.mrb[24].mxu1 %vm489_vm3, %v6801_v57  ;;  %v2776_v57 = vrot.slane %v6263_v15, 3  ;;  %v1279_v15 = vsel %vm962_vm6, %v1276_v58, %v1278_v37  ;;  %v2796_v58 = vrot.slane %v8664_v1, 3 }
 0x175   : > { %5096 = vmatprep.mubr.msk.bf16.mxu1 %vm489_vm3, %v6816_v24  ;;  %v2775_v24 = vsel %vm2762_vm7, %v2772_v19, %v2774_v42  ;;  %v1588_v19 = vor.u32 %v1587_v18, %v1584_v6 }
 0x176   : > { %v2777_v63 = vsel %vm2762_vm7, %v2774_v42, %v2776_v57  ;;  %v2779_v2 = vsel %vm2762_vm7, %v2776_v57, %v2778_v40 }
 0x177   : > { %5263 = vmatmul.mubr.msk.bf16.gmra.mrb[4].mxu0 %vm489_vm3, %v2771_v29  ;;  %v2793_v29 = vsel %vm2762_vm7, %v2790_v43, %v2792_v31  ;;  %v1589_v27 = vsel %vm1504_vm2, %v1579_v62, %v1588_v19 }
 0x178   : > { %5266 = vmatprep.mubr.msk.bf16.mxu0 %vm489_vm3, %v2773_v22  ;;  %v2794_v22 = vrot.slane %v8680_v61, 3  ;;  %v7011_v61 = vshrl.u32 %v3251_v10, 7 }
 0x17a   : > { %v2795_v60 = vsel %vm2762_vm7, %v2792_v31, %v2794_v22  ;;  %v2797_v42 = vsel %vm2762_vm7, %v2794_v22, %v2796_v58  ;;  %v3254_v1 = vadd.s32 16, %v7011_v61  ;;  %v3255_v37 = vadd.s32 24, %v7011_v61 }
 0x17b   : > { %v7068_v55 = vadd.s32 88, %v7011_v61 }
 0x17c   : > { %5097 = vmatmul.mubr.msk.bf16.gmra.mrb[28].mxu1 %vm489_vm3, %v6820_v47  ;;  %v1553_v47 = vrot.slane %v8671_v36, 2  ;;  %v2782_v36 = vrot.slane %v6335_v16, 3 }
 0x17d   : > { %5100 = vmatprep.mubr.msk.bf16.mxu1 %vm489_vm3, %v1277_v51  ;;  %v2798_v51 = vrot.slane %v6753_v52, 3  ;;  %v3253_v52 = vadd.s32 8, %v7011_v61 }
 0x17e   : > { %v1554_v32 = vor.u32 %v1553_v47, %v1552_v34  ;;  %v2783_v7 = vsel %vm2762_vm7, %v2780_v41, %v2782_v36  ;;  %v2785_v16 = vsel %vm2762_vm7, %v2782_v36, %v2784_v9  ;;  %v3258_v34 = vadd.s32 48, %v7011_v61 }
 0x17f   : > { %5267 = vmatmul.mubr.msk.bf16.gmra.mrb[8].mxu0 %vm489_vm3, %v2775_v24  ;;  %v2799_v57 = vsel %vm2762_vm7, %v2796_v58, %v2798_v51  ;;  %v7014_v5 = vmul.u32.u64.low 3817748708, %v3254_v1  ;;  %v7015_v24 = vmul.u32.u64.high 3817748708, %v3254_v1, %v7014_v5  ;;  %v3256_v41 = vadd.s32 32, %v7011_v61 }
 0x180   : > { %5270 = vmatprep.mubr.msk.bf16.mxu0 %vm489_vm3, %v2777_v63  ;;  %v1555_v56 = vsel %vm1504_vm2, %v1550_v38, %v1554_v32  ;;  %v1559_v4 = vsel %vm1504_vm2, %v1554_v32, %v1558_v26  ;;  %v7019_v63 = vmul.u32.u64.low 3817748708, %v7011_v61  ;;  %v7020_v38 = vmul.u32.u64.high 3817748708, %v7011_v61, %v7019_v63 }
 0x181   : > { %v7027_v47 = vmul.u32.u64.low 3817748708, %v3253_v52  ;;  %v7028_v28 = vmul.u32.u64.high 3817748708, %v3253_v52, %v7027_v47  ;;  %v7032_v39 = vmul.u32.u64.low 3817748708, %v3258_v34  ;;  %v7033_v45 = vmul.u32.u64.high 3817748708, %v3258_v34, %v7032_v39 }
 0x182   : > { %v3257_v32 = vadd.s32 40, %v7011_v61  ;;  %v3262_v26 = vadd.s32 80, %v7011_v61  ;;  %v7039_v36 = vmul.u32.u64.low 3817748708, %v3256_v41  ;;  %v7040_v35 = vmul.u32.u64.high 3817748708, %v3256_v41, %v7039_v36 }
 0x183   : > { %v3397_v21 = vshrl.u32 %v7033_v45, 4 }
 0x184   : > { %5101 = vmatmul.mubr.msk.bf16.gmra.mrb[32].mxu1 %vm489_vm3, %v1279_v15  ;;  %v7023_v15 = vmul.u32.u64.low 3817748708, %v3255_v37  ;;  %v7024_v40 = vmul.u32.u64.high 3817748708, %v3255_v37, %v7023_v15 }
 0x185   : > { %5126 = vmatprep.mubr.msk.bf16.mxu1 %vm489_vm3, %v1551_v46  ;;  %v3353_v46 = vshrl.u32 %v7015_v24, 4  ;;  %v3398_v33 = vmul.u32 18, %v3397_v21  ;;  %v8699_v21 = vmov 0 }
 0x186   : > { %v3364_v13 = vshrl.u32 %v7024_v40, 4 }
 0x187   : > { %5271 = vmatmul.mubr.msk.bf16.gmra.mrb[12].mxu0 %vm489_vm3, %v2779_v2  ;;  %v3259_v2 = vadd.s32 56, %v7011_v61 }
 0x188   : > { %5274 = vmatprep.mubr.msk.bf16.mxu0 %vm489_vm3, %v2781_v17  ;;  %v3331_v17 = vshrl.u32 %v7020_v38, 4  ;;  %v3365_v54 = vmul.u32 18, %v3364_v13 }
 0x189   : > { %v7046_v9 = vmul.u32.u64.low 3817748708, %v3259_v2  ;;  %v7047_v23 = vmul.u32.u64.high 3817748708, %v3259_v2, %v7046_v9 }
 0x18a   : > { %v3332_v48 = vmul.u32 18, %v3331_v17  ;;  %v7071_v59 = vsub.s32 %v3255_v37, %v3365_v54 }
 0x18b   : > { %v3408_v62 = vshrl.u32 %v7047_v23, 4 }
 0x18c   : > { %5127 = vmatmul.mubr.msk.bf16.vlgmr.msra.gmra.mrb[20].mxu1 %vm489_vm3, %v1555_v56  ;;  %v3354_v56 = vmul.u32 18, %v3353_v46  ;;  %v7064_v49 = vsub.s32 %v7011_v61, %v3332_v48  ;;  %vm3724_vm12 = vcmp.ne.s32.totalorder %v7071_v59, 0  ;;  %vm3760_vm13 = vcmp.lt.s32.totalorder %v7071_v59, 0 }
 0x18d   : > { %5130 = vmatprep.mubr.msk.bf16.mxu1 %vm489_vm3, %v1559_v4  ;;  %v7044_v4 = vadd.s32 64, %v7011_v61  ;;  %v3409_v22 = vmul.u32 18, %v3408_v62  ;;  %v7144_v46 = vadd.s32 120, %v7011_v61  ;;  %vm7166_vm5 = vmand %vm3760_vm13, %vm3724_vm12 }
 0x18e   : > { %v7056_v20 = vsub.s32 %v3254_v1, %v3354_v56  ;;  %vm3721_vm10 = vcmp.ne.s32.totalorder %v7064_v49, 0  ;;  %vm3757_vm11 = vcmp.lt.s32.totalorder %v7064_v49, 0  ;;  %v7092_v19 = vadd.s32 18, %v7064_v49 }
 0x18f   : > { %5275 = vmatmul.mubr.msk.bf16.gmra.mrb[16].mxu0 %vm489_vm3, %v2783_v7  ;;  %v7049_v14 = vmul.u32.u64.low 3817748708, %v3257_v32  ;;  %v7050_v7 = vmul.u32.u64.high 3817748708, %v3257_v32, %v7049_v14  ;;  %v7121_v63 = vsub.s32 %v3259_v2, %v3409_v22  ;;  %v7160_v2 = vadd.s32 104, %v7011_v61 }
 0x190   : > { %5278 = vmatprep.mubr.msk.bf16.mxu0 %vm489_vm3, %v2785_v16  ;;  %v3342_v16 = vshrl.u32 %v7028_v28, 4  ;;  %vm3723_vm8 = vcmp.ne.s32.totalorder %v7056_v20, 0  ;;  %vm3759_vm9 = vcmp.lt.s32.totalorder %v7056_v20, 0  ;;  %v7178_v56 = vadd.s32 144, %v7011_v61 }
 0x191   : > { %8682 = vst [vmem:[#allocation28_spill] sm:$0xff] %v7121_v63  ;;  %vm7133_vm2 = vmand %vm3759_vm9, %vm3723_vm8  ;;  %vm3728_vm8 = vcmp.ne.s32.totalorder %v7121_v63, 0  ;;  %vm3764_vm9 = vcmp.lt.s32.totalorder %v7121_v63, 0  ;;  %v7207_v9 = vmul.u32.u64.low 3817748708, %v7144_v46  ;;  %v7208_v23 = vmul.u32.u64.high 3817748708, %v7144_v46, %v7207_v9 }
 0x192   : > { %v3343_v25 = vmul.u32 18, %v3342_v16  ;;  %v7349_v22 = vadd.s32 176, %v7011_v61 }
 0x194   : > { %5131 = vmatmul.mubr.msk.bf16.gmra.mrb[24].mxu1 %vm489_vm3, %v1563_v30  ;;  %v7053_v11 = vmul.u32.u64.low 3817748708, %v3262_v26  ;;  %v7054_v30 = vmul.u32.u64.high 3817748708, %v3262_v26, %v7053_v11  ;;  %v7081_v43 = vsub.s32 %v3253_v52, %v3343_v25  ;;  %v7242_v25 = vadd.s32 18, %v7121_v63 }
 0x195   : > { %5134 = vmatprep.mubr.msk.bf16.mxu1 %vm489_vm3, %v1567_v0  ;;  %v7060_v0 = vmul.u32.u64.low 3817748708, %v7044_v4  ;;  %v7061_v3 = vmul.u32.u64.high 3817748708, %v7044_v4, %v7060_v0 }
 0x196   : > { %v3441_v6 = vshrl.u32 %v7054_v30, 4  ;;  %vm3722_vm14 = vcmp.ne.s32.totalorder %v7081_v43, 0  ;;  %vm3758_vm15 = vcmp.lt.s32.totalorder %v7081_v43, 0  ;;  %v7117_v24 = vadd.s32 18, %v7081_v43  ;;  %8702 = vst [vmem:[#allocation20_spill] sm:$0xff] %v7242_v25 }
 0x197   : > { %5279 = vmatmul.mubr.msk.bf16.gmra.mrb[20].mxu0 %vm489_vm3, %v2787_v50  ;;  %v3375_v50 = vshrl.u32 %v7040_v35, 4  ;;  %vm7186_vm7 = vmand %vm3758_vm15, %vm3722_vm14  ;;  %v7222_v11 = vmul.u32.u64.low 3817748708, %v7160_v2  ;;  %v7223_v30 = vmul.u32.u64.high 3817748708, %v7160_v2, %v7222_v11  ;;  %v8799_v35 = vmov 0 }
 0x198   : > { %5282 = vmatprep.mubr.msk.bf16.mxu0 %vm489_vm3, %v2789_v8  ;;  %v7075_v8 = vadd.s32 18, %v7056_v20  ;;  %v3442_v51 = vmul.u32 18, %v3441_v6 }
 0x199   : > { %v3376_v18 = vmul.u32 18, %v3375_v50  ;;  %v8703_v50 = vmov 0 }
 0x19b   : > { %v7110_v10 = vsub.s32 %v3256_v41, %v3376_v18  ;;  %v8707_v18 = vmov 0 }
 0x19c   : > { %5135 = vmatmul.mubr.msk.bf16.gmra.mrb[28].mxu1 %vm489_vm3, %v1571_v44  ;;  %v3386_v44 = vshrl.u32 %v7050_v7, 4 }
 0x19d   : > { %5138 = vmatprep.mubr.msk.bf16.mxu1 %vm489_vm3, %v1580_v53  ;;  %v7085_v53 = vmul.u32.u64.low 3817748708, %v7068_v55  ;;  %v7086_v31 = vmul.u32.u64.high 3817748708, %v7068_v55, %v7085_v53  ;;  %vm3725_vm4 = vcmp.ne.s32.totalorder %v7110_v10, 0  ;;  %vm3761_vm6 = vcmp.lt.s32.totalorder %v7110_v10, 0 }
 0x19e   : > { %v3387_v58 = vmul.u32 18, %v3386_v44  ;;  %v7172_v17 = vadd.s32 18, %v7110_v10  ;;  %vm7216_vm15 = vmand %vm3761_vm6, %vm3725_vm4 }
 0x19f   : > { %5283 = vmatmul.mubr.msk.bf16.gmra.mrb[24].mxu0 %vm489_vm3, %v2791_v12  ;;  %v7089_v12 = vadd.s32 72, %v7011_v61  ;;  %v3452_v45 = vshrl.u32 %v7086_v31, 4 }
 0x1a0   : > { %5286 = vmatprep.mubr.msk.bf16.mxu0 %vm489_vm3, %v2793_v29  ;;  %v7095_v29 = vsub.s32 %v3258_v34, %v3398_v33  ;;  %v7123_v38 = vsub.s32 %v3257_v32, %v3387_v58  ;;  %v7137_v34 = vsub.s32 %v3262_v26, %v3442_v51  ;;  %v8711_v58 = vmov 0 }
 0x1a1   : > { %v7113_v1 = vmul.u32.u64.low 3817748708, %v7089_v12  ;;  %v7114_v5 = vmul.u32.u64.high 3817748708, %v7089_v12, %v7113_v1  ;;  %v3453_v48 = vmul.u32 18, %v3452_v45 }
 0x1a2   : > { %vm3727_vm0 = vcmp.ne.s32.totalorder %v7095_v29, 0  ;;  %vm3763_vm1 = vcmp.lt.s32.totalorder %v7095_v29, 0  ;;  %8683 = vst [vmem:[#allocation16_spill] sm:$0xff] %v7123_v38  ;;  %8686 = vst [vmem:[#allocation15_spill] sm:$0xff] %v7137_v34  ;;  %v7155_v39 = vadd.s32 18, %v7095_v29  ;;  %vm3731_vm13 = vcmp.ne.s32.totalorder %v7137_v34, 0 }
 0x1a3   : > { %vm7200_vm12 = vmand %vm3763_vm1, %vm3727_vm0  ;;  %vm3767_vm14 = vcmp.lt.s32.totalorder %v7137_v34, 0  ;;  %v3430_v16 = vshrl.u32 %v7114_v5, 4  ;;  %v7253_v33 = vadd.s32 18, %v7123_v38  ;;  %v7256_v62 = vadd.s32 18, %v7137_v34 }
 0x1a4   : > { %5139 = vmatmul.mubr.msk.bf16.gmra.mrb[32].mxu1 %vm489_vm3, %v1589_v27  ;;  %v3419_v27 = vshrl.u32 %v7061_v3, 4  ;;  %vm7231_vm0 = vmand %vm3764_vm9, %vm3728_vm8  ;;  %v7238_v0 = vmul.u32.u64.low 3817748708, %v7178_v56  ;;  %v7239_v3 = vmul.u32.u64.high 3817748708, %v7178_v56, %v7238_v0  ;;  %v7290_v51 = vsub.s32 %v7068_v55, %v3453_v48 }
 0x1a5   : > { %v8700_v21 = vsel %vm7231_vm0, 4294967295, %v8699_v21  ;;  %8705 = vst [vmem:[#allocation14_spill] sm:$0xff] %v7253_v33  ;;  %8706 = vst [vmem:[#allocation23_spill] sm:$0xff] %v7256_v62  ;;  %v3431_v1 = vmul.u32 18, %v3430_v16  ;;  %v3496_v0 = vshrl.u32 %v7208_v23, 4 }
 0x1a6   : > { %v3420_v37 = vmul.u32 18, %v3419_v27  ;;  %8701 = vst [vmem:[#allocation22_spill] sm:$0xff] %v8700_v21  ;;  %vm7267_vm8 = vmand %vm3767_vm14, %vm3731_vm13  ;;  %v8745_v21 = vmov 0 }
 0x1a7   : > { %5287 = vmatmul.mubr.msk.bf16.gmra.mrb[28].mxu0 %vm489_vm3, %v2795_v60  ;;  %v7100_v60 = vadd.s32 112, %v7011_v61  ;;  %v8708_v18 = vsel %vm7267_vm8, 4294967295, %v8707_v18  ;;  %8714 = vst [vmem:[#allocation29_spill] sm:$0xff] %v7290_v51  ;;  %v7335_v45 = vsub.s32 %v7089_v12, %v3431_v1  ;;  %v7359_v1 = vadd.s32 184, %v7011_v61 }
 0x1a8   : > { %5290 = vmatprep.mubr.msk.bf16.mxu0 %vm489_vm3, %v2797_v42  ;;  %v7103_v42 = vadd.s32 18, %v7071_v59  ;;  %v7175_v26 = vsub.s32 %v7044_v4, %v3420_v37  ;;  %8709 = vst [vmem:[#allocation21_spill] sm:$0xff] %v8708_v18  ;;  %v7339_v37 = vadd.s32 136, %v7011_v61  ;;  %v3497_v5 = vmul.u32 18, %v3496_v0  ;;  %v8837_v4 = vld [vmem:[#allocation28_spill] sm:$0xff] }
 0x1a9   : > { %v7126_v52 = vmul.u32.u64.low 3817748708, %v7100_v60  ;;  %v7127_v15 = vmul.u32.u64.high 3817748708, %v7100_v60, %v7126_v52  ;;  %8718 = vst [vmem:[#allocation18_spill] sm:$0xff] %v7335_v45  ;;  %v7376_v62 = vmul.u32.u64.low 3817748708, %v7349_v22  ;;  %v7377_v18 = vmul.u32.u64.high 3817748708, %v7349_v22, %v7376_v62 }
 0x1aa   : > { %8691 = vst [vmem:[#allocation19_spill] sm:$0xff] %v7175_v26  ;;  %vm3729_vm1 = vcmp.ne.s32.totalorder %v7175_v26, 0  ;;  %vm3765_vm4 = vcmp.lt.s32.totalorder %v7175_v26, 0  ;;  %v7272_v53 = vadd.s32 18, %v7175_v26  ;;  %vm3730_vm13 = vcmp.ne.s32.totalorder %v7335_v45, 0 }
 0x1ab   : > { %v3485_v44 = vshrl.u32 %v7127_v15, 4  ;;  %vm7285_vm9 = vmand %vm3765_vm4, %vm3729_vm1  ;;  %v7305_v15 = vadd.s32 128, %v7011_v61  ;;  %v7400_v62 = vadd.s32 192, %v7011_v61  ;;  %vm8729_vm14 = vcmp.lt.s32.totalorder %v7335_v45, 0 }
 0x1ac   : > { %8710 = vst [vmem:[#allocation27_spill] sm:$0xff] %v7272_v53  ;;  %v8712_v58 = vsel %vm7285_vm9, 4294967295, %v8711_v58  ;;  %vm7448_vm8 = vmand %vm8729_vm14, %vm3730_vm13 }
 0x1ad   : > { %8713 = vst [vmem:[#allocation24_spill] sm:$0xff] %v8712_v58  ;;  %v3486_v9 = vmul.u32 18, %v3485_v44  ;;  %v3474_v44 = vshrl.u32 %v7223_v30, 4  ;;  %v7345_v23 = vmul.u32.u64.low 3817748708, %v7305_v15  ;;  %v7346_v16 = vmul.u32.u64.high 3817748708, %v7305_v15, %v7345_v23 }
 0x1ae   : > { %v7356_v30 = vadd.s32 160, %v7011_v61 }
 0x1af   : > { %5291 = vmatmul.mubr.msk.bf16.gmra.mrb[32].mxu0 %vm489_vm3, %v2799_v57  ;;  %v7107_v57 = vadd.s32 96, %v7011_v61  ;;  %vm7150_vm3 = vmand %vm3757_vm11, %vm3721_vm10  ;;  %vm3726_vm10 = vcmp.ne.s32.totalorder %v7123_v38, 0  ;;  %vm3762_vm11 = vcmp.lt.s32.totalorder %v7123_v38, 0  ;;  %v7353_v12 = vsub.s32 %v7100_v60, %v3486_v9 }
 0x1b0   : > { %vm7248_vm6 = vmand %vm3762_vm11, %vm3726_vm10  ;;  %vm3732_vm10 = vcmp.ne.s32.totalorder %v7290_v51, 0  ;;  %vm3768_vm11 = vcmp.lt.s32.totalorder %v7290_v51, 0  ;;  %v3475_v27 = vmul.u32 18, %v3474_v44  ;;  %v7373_v60 = vadd.s32 168, %v7011_v61 }
 0x1b1   : > { %v7140_v47 = vmul.u32.u64.low 3817748708, %v7107_v57  ;;  %v7141_v28 = vmul.u32.u64.high 3817748708, %v7107_v57, %v7140_v47  ;;  %v8704_v50 = vsel %vm7248_vm6, 4294967295, %v8703_v50  ;;  %vm7434_vm1 = vmand %vm3768_vm11, %vm3732_vm10  ;;  %vm8733_vm4 = vcmp.ne.s32.totalorder %v7353_v12, 0  ;;  %v8847_v40 = vld [vmem:[#allocation19_spill] sm:$0xff] }
 0x1b2   : > { %v7329_v47 = vadd.s32 152, %v7011_v61  ;;  %v7385_v0 = vmul.u32.u64.low 3817748708, %v7356_v30  ;;  %v7386_v44 = vmul.u32.u64.high 3817748708, %v7356_v30, %v7385_v0  ;;  %v7419_v53 = vsub.s32 %v7160_v2, %v3475_v27 }
 0x1b3   : > { %v3463_v31 = vshrl.u32 %v7141_v28, 4  ;;  %v7405_v0 = vadd.s32 18, %v7335_v45  ;;  %vm8734_vm9 = vcmp.lt.s32.totalorder %v7353_v12, 0  ;;  %v8753_v38 = vmov 0 }
 0x1b4   : > { %v7365_v23 = vmul.u32.u64.low 3817748708, %v7329_v47  ;;  %v7366_v6 = vmul.u32.u64.high 3817748708, %v7329_v47, %v7365_v23  ;;  %vm7462_vm0 = vmand %vm8734_vm9, %vm8733_vm4  ;;  %vm3734_vm13 = vcmp.ne.s32.totalorder %v7419_v53, 0  ;;  %vm3770_vm14 = vcmp.lt.s32.totalorder %v7419_v53, 0 }
 0x1b5   : > { %v3464_v11 = vmul.u32 18, %v3463_v31  ;;  %v3529_v31 = vshrl.u32 %v7239_v3, 4  ;;  %8724 = vst [vmem:[#allocation36_spill] sm:$0xff] %v7405_v0  ;;  %v3551_v63 = vshrl.u32 %v7386_v44, 4  ;;  %vm7509_vm4 = vmand %vm3770_vm14, %vm3734_vm13 }
 0x1b6   : > { %v3540_v2 = vshrl.u32 %v7366_v6, 4 }
 0x1b7   : > { %v7362_v3 = vsub.s32 %v7107_v57, %v3464_v11  ;;  %v3530_v9 = vmul.u32 18, %v3529_v31  ;;  %v7380_v57 = vadd.s32 208, %v7011_v61  ;;  %v7395_v31 = vadd.s32 18, %v7290_v51 }
 0x1b8   : > { %v7514_v51 = vadd.s32 18, %v7419_v53 }
 0x1b9   : > { %8722 = vst [vmem:[#allocation34_spill] sm:$0xff] %v7395_v31  ;;  %vm8738_vm11 = vcmp.ne.s32.totalorder %v7362_v3, 0  ;;  %vm8739_vm10 = vcmp.lt.s32.totalorder %v7362_v3, 0 }
 0x1ba   : > { %vm7475_vm6 = vmand %vm8739_vm10, %vm8738_vm11 }
 0x217   : > { %v7180_v36 = vpop.f32.mrb[0].mxu1 }
 0x218   : > { %v7194_v13 = vpop.f32.mrb[1].mxu1 }
 0x219   : > { %v7210_v14 = vpop.f32.mrb[2].mxu1 }
 0x21a   : > { %v7225_v54 = vpop.f32.mrb[3].mxu1 }
 0x21b   : > { %8698 = vst [vmem:[#allocation17_spill] sm:$0xff] %v7225_v54 }
 0x21f   : > { %v7307_v55 = vpop.f32.mrb[4].mxu1 }
 0x220   : > { %8715 = vst [vmem:[#allocation26_spill] sm:$0xff] %v7307_v55  ;;  %v7321_v48 = vpop.f32.mrb[5].mxu1 }
 0x221   : > { %8716 = vst [vmem:[#allocation30_spill] sm:$0xff] %v7321_v48  ;;  %v7331_v28 = vpop.f32.mrb[6].mxu1  ;;  %v7408_v48 = vsub.s32 %v7144_v46, %v3497_v5  ;;  %v7424_v46 = vsub.s32 %v7178_v56, %v3530_v9  ;;  %v7427_v5 = vmul.u32.u64.low 3817748708, %v7380_v57  ;;  %v7428_v58 = vmul.u32.u64.high 3817748708, %v7380_v57, %v7427_v5 }
 0x222   : > { %8717 = vst [vmem:[#allocation25_spill] sm:$0xff] %v7331_v28  ;;  %v7341_v52 = vpop.f32.mrb[7].mxu1  ;;  %v7441_v27 = vmul.u32.u64.low 3817748708, %v7400_v62  ;;  %v7442_v56 = vmul.u32.u64.high 3817748708, %v7400_v62, %v7441_v27  ;;  %v7453_v9 = vadd.s32 18, %v7353_v12  ;;  %v8735_v5 = vmov 0 }
 0x223   : > { %8719 = vst [vmem:[#allocation31_spill] sm:$0xff] %v7341_v52  ;;  %v7369_v52 = vmul.u32.u64.low 3817748708, %v7339_v37  ;;  %v7370_v34 = vmul.u32.u64.high 3817748708, %v7339_v37, %v7369_v52  ;;  %v8736_v5 = vsel %vm7462_vm0, 4294967295, %v8735_v5  ;;  %vm8743_vm10 = vcmp.ne.s32.totalorder %v7408_v48, 0 }
 0x224   : > { %v7389_v23 = vmul.u32.u64.low 3817748708, %v7359_v1  ;;  %v7390_v52 = vmul.u32.u64.high 3817748708, %v7359_v1, %v7389_v23  ;;  %vm8744_vm11 = vcmp.lt.s32.totalorder %v7408_v48, 0  ;;  %v7501_v44 = vadd.s32 18, %v7408_v48 }
 0x225   : > { %v3518_v6 = vshrl.u32 %v7370_v34, 4  ;;  %v8740_v34 = vmov 0  ;;  %vm7496_vm9 = vmand %vm8744_vm11, %vm8743_vm10  ;;  %v7517_v31 = vadd.s32 18, %v7424_v46  ;;  %vm8751_vm13 = vcmp.ne.s32.totalorder %v7424_v46, 0 }
 0x226   : > { %v8741_v34 = vsel %vm7475_vm6, 4294967295, %v8740_v34  ;;  %v8746_v21 = vsel %vm7496_vm9, 4294967295, %v8745_v21  ;;  %vm8752_vm14 = vcmp.lt.s32.totalorder %v7424_v46, 0  ;;  %v3617_v0 = vshrl.u32 %v7428_v58, 4 }
 0x227   : > { %v7382_v11 = vpop.f32.mrb[8].mxu1  ;;  %vm7530_vm10 = vmand %vm8752_vm14, %vm8751_vm13 }
 0x228   : > { %8720 = vst [vmem:[#allocation32_spill] sm:$0xff] %v7382_v11  ;;  %v7392_v28 = vpop.f32.mrb[9].mxu1  ;;  %v8754_v38 = vsel %vm7530_vm10, 4294967295, %v8753_v38 }
 0x229   : > { %8721 = vst [vmem:[#allocation33_spill] sm:$0xff] %v7392_v28  ;;  %v7402_v11 = vpop.f32.mrb[10].mxu1  ;;  %v7411_v23 = vmul.u32.u64.low 3817748708, %v7373_v60  ;;  %v7412_v28 = vmul.u32.u64.high 3817748708, %v7373_v60, %v7411_v23 }
 0x22a   : > { %8723 = vst [vmem:[#allocation35_spill] sm:$0xff] %v7402_v11  ;;  %v7414_v26 = vpop.f32.mrb[11].mxu1  ;;  %v3507_v11 = vshrl.u32 %v7346_v16, 4  ;;  %v8726_v23 = vmov 0  ;;  %v8730_v16 = vmov 0 }
 0x22b   : > { %8725 = vst [vmem:[#allocation37_spill] sm:$0xff] %v7414_v26  ;;  %v8727_v23 = vsel %vm7434_vm1, 4294967295, %v8726_v23  ;;  %v8731_v16 = vsel %vm7448_vm8, 4294967295, %v8730_v16  ;;  %v3573_v26 = vshrl.u32 %v7377_v18, 4  ;;  %v8748_v18 = vmov 0 }
 0x22c   : > { %8728 = vst [vmem:[#allocation38_spill] sm:$0xff] %v8727_v23  ;;  %8732 = vst [vmem:[#allocation39_spill] sm:$0xff] %v8731_v16  ;;  %v3508_v27 = vmul.u32 18, %v3507_v11  ;;  %v3584_v11 = vshrl.u32 %v7390_v52, 4  ;;  %v3541_v52 = vmul.u32 18, %v3540_v2  ;;  %v8749_v18 = vsel %vm7509_vm4, 4294967295, %v8748_v18 }
 0x22d   : > { %v3519_v23 = vmul.u32 18, %v3518_v6  ;;  %v3562_v54 = vshrl.u32 %v7412_v28, 4  ;;  %v3574_v6 = vmul.u32 18, %v3573_v26  ;;  %v7538_v28 = vadd.s32 216, %v7011_v61 }
 0x22e   : > { %v7535_v33 = vsub.s32 %v7305_v15, %v3508_v27  ;;  %v3585_v45 = vmul.u32 18, %v3584_v11  ;;  %v7554_v15 = vsub.s32 %v7329_v47, %v3541_v52  ;;  %v3595_v27 = vshrl.u32 %v7442_v56, 4 }
 0x22f   : > { %v7469_v55 = vpop.f32.mrb[12].mxu1  ;;  %v7566_v11 = vsub.s32 %v7339_v37, %v3519_v23  ;;  %v7570_v47 = vsub.s32 %v7349_v22, %v3574_v6  ;;  %v7573_v56 = vmul.u32.u64.low 3817748708, %v7538_v28  ;;  %v7574_v52 = vmul.u32.u64.high 3817748708, %v7538_v28, %v7573_v56 }
 0x230   : > { %8737 = vst [vmem:[#allocation40_spill] sm:$0xff] %v7469_v55  ;;  %v7483_v25 = vpop.f32.mrb[13].mxu1  ;;  %v7490_v55 = vadd.s32 18, %v7362_v3  ;;  %8755 = vst [vmem:[#allocation44_spill] sm:$0xff] %v7554_v15  ;;  %v7583_v37 = vsub.s32 %v7359_v1, %v3585_v45  ;;  %v3596_v22 = vmul.u32 18, %v3595_v27  ;;  %v7590_v6 = vadd.s32 200, %v7011_v61 }
 0x231   : > { %8742 = vst [vmem:[#allocation41_spill] sm:$0xff] %v7483_v25  ;;  %v7503_v25 = vpop.f32.mrb[14].mxu1  ;;  %8756 = vst [vmem:[#allocation45_spill] sm:$0xff] %v7566_v11  ;;  %v7595_v58 = vadd.s32 18, %v7535_v33  ;;  %vm8765_vm11 = vcmp.ne.s32.totalorder %v7535_v33, 0  ;;  %vm8766_vm14 = vcmp.lt.s32.totalorder %v7535_v33, 0  ;;  %v8776_v27 = vsel %vm7150_vm3, %v7092_v19, %v7064_v49 }
 0x232   : > { %8747 = vst [vmem:[#allocation42_spill] sm:$0xff] %v7503_v25  ;;  %v7520_v2 = vpop.f32.mrb[15].mxu1  ;;  %v3563_v25 = vmul.u32 18, %v3562_v54  ;;  %8757 = vst [vmem:[#allocation46_spill] sm:$0xff] %v7570_v47  ;;  %v3618_v54 = vmul.u32 18, %v3617_v0  ;;  %v8767_v1 = vmov 0 }
 0x233   : > { %8750 = vst [vmem:[#allocation43_spill] sm:$0xff] %v7520_v2  ;;  %v3552_v2 = vmul.u32 18, %v3551_v63  ;;  %8760 = vst [vmem:[#allocation49_spill] sm:$0xff] %v7583_v37  ;;  %v7613_v0 = vadd.s32 18, %v7554_v15  ;;  %vm3743_vm10 = vcmp.ne.s32.totalorder %v7570_v47, 0  ;;  %vm3779_vm13 = vcmp.lt.s32.totalorder %v7570_v47, 0 }
 0x234   : > { %v7600_v45 = vsub.s32 %v7373_v60, %v3563_v25  ;;  %vm7608_vm9 = vmand %vm8766_vm14, %vm8765_vm11  ;;  %vm8770_vm4 = vcmp.ne.s32.totalorder %v7554_v15, 0  ;;  %vm8771_vm0 = vcmp.lt.s32.totalorder %v7554_v15, 0  ;;  %v8772_v25 = vmov 0 }
 0x235   : > { %v7580_v63 = vsub.s32 %v7356_v30, %v3552_v2  ;;  %v8768_v1 = vsel %vm7608_vm9, 4294967295, %v8767_v1  ;;  %8769 = vst [vmem:[#allocation54_spill] sm:$0xff] %v7613_v0  ;;  %v7616_v2 = vadd.s32 18, %v7566_v11  ;;  %vm7624_vm6 = vmand %vm8771_vm0, %vm8770_vm4  ;;  %v7632_v60 = vsub.s32 %v7380_v57, %v3618_v54 }
 0x236   : > { %8763 = vst [vmem:[#allocation52_spill] sm:$0xff] %v7600_v45  ;;  %v8773_v25 = vsel %vm7624_vm6, 4294967295, %v8772_v25  ;;  %vm7639_vm8 = vcmp.lt.s32.totalorder %v8776_v27, 16  ;;  %vm8779_vm0 = vcmp.ne.s32.totalorder %v7566_v11, 0  ;;  %vm8780_vm4 = vcmp.lt.s32.totalorder %v7566_v11, 0  ;;  %vm7663_vm3 = vmand %vm3779_vm13, %vm3743_vm10 }
 0x237   : > { %v7576_v26 = vpop.f32.mrb[16].mxu1  ;;  %8759 = vst [vmem:[#allocation48_spill] sm:$0xff] %v7580_v63  ;;  %8774 = vst [vmem:[#allocation55_spill] sm:$0xff] %v8773_v25  ;;  %vm3777_vm14 = vcmp.lt.s32.totalorder %v7580_v63, 0  ;;  %v7653_v57 = vsub.s32 %v7400_v62, %v3596_v22  ;;  %v7656_v41 = vmul.u32.u64.low 3817748708, %v7590_v6  ;;  %v7657_v49 = vmul.u32.u64.high 3817748708, %v7590_v6, %v7656_v41 }
 0x238   : > { %8758 = vst [vmem:[#allocation47_spill] sm:$0xff] %v7576_v26  ;;  %v7585_v23 = vpop.f32.mrb[17].mxu1  ;;  %8775 = vst [vmem:[#allocation56_spill] sm:$0xff] %v7632_v60  ;;  %v8784_v54 = vmov 0  ;;  %v7670_v62 = vadd.s32 240, %v7011_v61  ;;  %v8787_v22 = vsel %vm7133_vm2, %v7075_v8, %v7056_v20  ;;  %v8790_v41 = vsel %vm7186_vm7, %v7117_v24, %v7081_v43 }
 0x239   : > { %8761 = vst [vmem:[#allocation50_spill] sm:$0xff] %v7585_v23  ;;  %v7592_v56 = vpop.f32.mrb[18].mxu1  ;;  %vm7647_vm11 = vmand %vm8780_vm4, %vm8779_vm0  ;;  %v8785_v54 = vsel %vm7663_vm3, 4294967295, %v8784_v54  ;;  %vm7677_vm1 = vcmp.lt.s32.totalorder %v8787_v22, 16  ;;  %vm7686_vm10 = vcmp.lt.s32.totalorder %v8790_v41, 16  ;;  %v8791_v19 = vmov 0 }
 0x23a   : > { %8762 = vst [vmem:[#allocation51_spill] sm:$0xff] %v7592_v56  ;;  %v7602_v30 = vpop.f32.mrb[19].mxu1  ;;  %8783 = vst [vmem:[#allocation57_spill] sm:$0xff] %v7653_v57  ;;  %v8792_v19 = vsel %vm7686_vm10, 4294967295, %v8791_v19  ;;  %v7695_v20 = vadd.s32 18, %v7570_v47  ;;  %vm8794_vm2 = vcmp.ne.s32.totalorder %v7580_v63, 0  ;;  %v8821_v15 = vsel %vm7216_vm15, %v7172_v17, %v7110_v10 }
 0x23b   : > { %8764 = vst [vmem:[#allocation53_spill] sm:$0xff] %v7602_v30  ;;  %8786 = vst [vmem:[#allocation58_spill] sm:$0xff] %v8785_v54  ;;  %v7706_v43 = vadd.s32 18, %v7580_v63  ;;  %v3628_v24 = vshrl.u32 %v7574_v52, 4  ;;  %vm8797_vm7 = vcmp.ne.s32.totalorder %v7583_v37, 0  ;;  %vm8798_vm4 = vcmp.lt.s32.totalorder %v7583_v37, 0 }
 0x23c   : > { %8793 = vst [vmem:[#allocation59_spill] sm:$0xff] %v7695_v20  ;;  %vm7701_vm13 = vmand %vm3777_vm14, %vm8794_vm2  ;;  %v7718_v22 = vadd.s32 18, %v7583_v37  ;;  %v7721_v41 = vadd.s32 18, %v7600_v45  ;;  %vm3747_vm14 = vcmp.ne.s32.totalorder %v7632_v60, 0  ;;  %vm3783_vm2 = vcmp.lt.s32.totalorder %v7632_v60, 0 }
 0x23d   : > { %vm7713_vm0 = vmand %vm8798_vm4, %vm8797_vm7  ;;  %v8804_v52 = vsel %vm7166_vm5, %v7103_v42, %v7071_v59  ;;  %vm8807_vm7 = vcmp.ne.s32.totalorder %v7600_v45, 0  ;;  %vm8808_vm6 = vcmp.lt.s32.totalorder %v7600_v45, 0  ;;  %v8809_v23 = vmov 0 }
 0x23e   : > { %v8800_v35 = vsel %vm7713_vm0, 4294967295, %v8799_v35  ;;  %8802 = vst [vmem:[#allocation61_spill] sm:$0xff] %v7718_v22  ;;  %8803 = vst [vmem:[#allocation62_spill] sm:$0xff] %v7721_v41  ;;  %vm7730_vm4 = vcmp.lt.s32.totalorder %v8804_v52, 16  ;;  %vm3745_vm5 = vcmp.ne.s32.totalorder %v7653_v57, 0  ;;  %vm3781_vm10 = vcmp.lt.s32.totalorder %v7653_v57, 0 }
 0x23f   : > { %8801 = vst [vmem:[#allocation60_spill] sm:$0xff] %v8800_v35  ;;  %vm7742_vm9 = vmand %vm8808_vm6, %vm8807_vm7  ;;  %v7749_v59 = vadd.s32 224, %v7011_v61  ;;  %v7752_v42 = vadd.s32 18, %v7632_v60  ;;  %v7755_v32 = vmul.u32.u64.low 3817748708, %v7670_v62  ;;  %v7756_v52 = vmul.u32.u64.high 3817748708, %v7670_v62, %v7755_v32 }
 0x240   : > { %v8810_v23 = vsel %vm7742_vm9, 4294967295, %v8809_v23  ;;  %v7759_v56 = vadd.s32 248, %v7011_v61  ;;  %vm7769_vm6 = vmand %vm3783_vm2, %vm3747_vm14  ;;  %v8813_v0 = vmov 0  ;;  %v7774_v25 = vadd.s32 18, %v7653_v57 }
 0x241   : > { %8811 = vst [vmem:[#allocation63_spill] sm:$0xff] %v8810_v23  ;;  %8812 = vst [vmem:[#allocation64_spill] sm:$0xff] %v7752_v42  ;;  %v8814_v0 = vsel %vm7769_vm6, 4294967295, %v8813_v0  ;;  %v3629_v32 = vmul.u32 18, %v3628_v24  ;;  %v8817_v47 = vmov 0  ;;  %v7794_v24 = vadd.s32 232, %v7011_v61 }
 0x242   : > { %8815 = vst [vmem:[#allocation65_spill] sm:$0xff] %v8814_v0  ;;  %8816 = vst [vmem:[#allocation66_spill] sm:$0xff] %v7774_v25  ;;  %v5260_v11 = vpop.f32.mrb[0].mxu0  ;;  %v7797_v20 = vadd.s32 272, %v7011_v61  ;;  %vm7805_vm2 = vcmp.lt.s32.totalorder %v8821_v15, 16  ;;  %v3606_v35 = vshrl.u32 %v7657_v49, 4 }
 0x243   : > { %vm7789_vm14 = vmand %vm3781_vm10, %vm3745_vm5  ;;  %v5296_v26 = vadd.f32 %v5260_v11, %v7180_v36  ;;  %v2891_v37 = vpop.f32.mrb[1].mxu0  ;;  %v7811_v45 = vmul.u32.u64.low 3817748708, %v7749_v59  ;;  %v7812_v41 = vmul.u32.u64.high 3817748708, %v7749_v59, %v7811_v45  ;;  %v8824_v11 = vsel %vm7200_vm12, %v7155_v39, %v7095_v29  ;;  %v8846_v0 = vld [vmem:[#allocation27_spill] sm:$0xff] }
 0x244   : > { %v8818_v47 = vsel %vm7789_vm14, 4294967295, %v8817_v47  ;;  %8820 = vst [vmem:[#allocation68_spill] sm:$0xff] %v7797_v20  ;;  %v5297_v23 = vadd.f32 %v2891_v37, %v7194_v13  ;;  %v5261_v54 = vpop.f32.mrb[2].mxu0  ;;  %v7820_v10 = vmul.u32.u64.low 3817748708, %v7759_v56  ;;  %v7821_v17 = vmul.u32.u64.high 3817748708, %v7759_v56, %v7820_v10  ;;  %v8828_v37 = vld [vmem:[#allocation14_spill] sm:$0xff] }
 0x245   : > { %8819 = vst [vmem:[#allocation67_spill] sm:$0xff] %v8818_v47  ;;  %v5298_v7 = vadd.f32 %v5261_v54, %v7210_v14  ;;  %v2894_v15 = vpop.f32.mrb[3].mxu0  ;;  %vm7829_vm15 = vcmp.lt.s32.totalorder %v8824_v11, 16  ;;  %vm8827_vm10 = vnez %v8704_v50  ;;  %v8829_v45 = vld [vmem:[#allocation16_spill] sm:$0xff]  ;;  %v7847_v29 = vsub.s32 %v7538_v28, %v3629_v32  ;;  %v8833_v50 = vld [vmem:[#allocation17_spill] sm:$0xff]  ;;  %v8939_v8 = vld [vmem:[#allocation51_spill] sm:$0xff] }
 0x246   : > { %v8830_v49 = vsel %vm8827_vm10, %v8828_v37, %v8829_v45  ;;  %v7850_v39 = vadd.s32 256, %v7011_v61  ;;  %v4081_v14 = vsel %vm7639_vm8, %v5297_v23, 0.0  ;;  %v5299_v54 = vadd.f32 %v2894_v15, %v8833_v50  ;;  %v8834_v45 = vld [vmem:[#allocation22_spill] sm:$0xff] }
 0x247   : > { %vm7838_vm7 = vcmp.lt.s32.totalorder %v8830_v49, 16  ;;  %v7856_v10 = vmul.u32.u64.low 3817748708, %v7794_v24  ;;  %v7857_v11 = vmul.u32.u64.high 3817748708, %v7794_v24, %v7856_v10  ;;  %v4682_v37 = vpack.c.bf16 %v5298_v7, %v5296_v26  ;;  %v8836_v49 = vld [vmem:[#allocation20_spill] sm:$0xff] }
 0x248   : > { %vm8835_vm12 = vnez %v8834_v45  ;;  %v3607_v32 = vmul.u32 18, %v3606_v35  ;;  %v7869_v16 = vmul.u32.u64.low 3817748708, %v7797_v20  ;;  %v7870_v42 = vmul.u32.u64.high 3817748708, %v7797_v20, %v7869_v16  ;;  %v8851_v20 = vld [vmem:[#allocation30_spill] sm:$0xff] }
 0x249   : > { %v8838_v60 = vsel %vm8835_vm12, %v8836_v49, %v8837_v4  ;;  %v4083_v15 = vsel %vm7677_vm1, %v5296_v26, 0.0  ;;  %v4677_v50 = vpack.c.bf16 %v5299_v54, %v5297_v23  ;;  %vm8841_vm8 = vnez %v8792_v19  ;;  %4764 = vst [vmem:[%s7880_s22 + $0x8] sm:$0xff] %v4682_v37  }
 0x24a   : > { %vm7864_vm5 = vcmp.lt.s32.totalorder %v8838_v60, 16  ;;  %v4082_v10 = vsel %vm8841_vm8, %v5299_v54, 0.0  ;;  %v3661_v45 = vshrl.u32 %v7756_v52, 4  ;;  %v4158_v4 = vmul.f32 %v4081_v14, %v4081_v14  ;;  %v5264_v23 = vpop.f32.mrb[4].mxu0 }
 0x24b   : > { %v4117_v60 = vadd.f32 %v4082_v10, %v4081_v14  ;;  %v4159_v35 = vmul.f32 %v4082_v10, %v4082_v10  ;;  %v7884_v49 = vadd.s32 280, %v7011_v61  ;;  %v4084_v26 = vsel %vm7730_vm4, %v5298_v7, 0.0  ;;  %4678 = vst [vmem:[%s7880_s22] sm:$0xff] %v4677_v50   ;;  %v8843_v14 = vld [vmem:[#allocation26_spill] sm:$0xff]  ;;  %v2907_v16 = vpop.f32.mrb[5].mxu0  ;;  %v8844_v10 = vld [vmem:[#allocation24_spill] sm:$0xff] }
 0x24c   : > { %v7892_v19 = vadd.s32 18, %v7847_v29  ;;  %v4160_v27 = vmul.f32 %v4083_v15, %v4083_v15  ;;  %v5300_v37 = vadd.f32 %v5264_v23, %v8843_v14  ;;  %vm8845_vm12 = vnez %v8844_v10  ;;  %v5265_v25 = vpop.f32.mrb[6].mxu0  ;;  %v8852_v14 = vld [vmem:[#allocation25_spill] sm:$0xff] }
 0x24d   : > { %8842 = vst [vmem:[#allocation14_spill] sm:$0xff] %v7884_v49  ;;  %v4118_v52 = vadd.f32 %v4117_v60, %v4083_v15  ;;  %v4194_v54 = vadd.f32 %v4159_v35, %v4158_v4  ;;  %v8848_v7 = vsel %vm8845_vm12, %v8846_v0, %v8847_v40  ;;  %v5301_v57 = vadd.f32 %v2907_v16, %v8851_v20  ;;  %v2910_v49 = vpop.f32.mrb[7].mxu0  ;;  %v8853_v0 = vld [vmem:[#allocation21_spill] sm:$0xff]  ;;  %v8855_v40 = vld [vmem:[#allocation23_spill] sm:$0xff] }
 0x24e   : > { %vm7900_vm4 = vcmp.lt.s32.totalorder %v8848_v7, 16  ;;  %v7906_v47 = vsub.s32 %v7590_v6, %v3607_v32  ;;  %v3662_v15 = vmul.u32 18, %v3661_v45  ;;  %v3639_v4 = vshrl.u32 %v7812_v41, 4  ;;  %v8856_v7 = vld [vmem:[#allocation15_spill] sm:$0xff]  ;;  %v8862_v32 = vld [vmem:[#allocation36_spill] sm:$0xff]  ;;  %v8863_v45 = vld [vmem:[#allocation18_spill] sm:$0xff] }
 0x24f   : > { %v4161_v60 = vmul.f32 %v4084_v26, %v4084_v26  ;;  %v4195_v35 = vadd.f32 %v4194_v54, %v4160_v27  ;;  %v4119_v23 = vadd.f32 %v4118_v52, %v4084_v26  ;;  %v5302_v10 = vadd.f32 %v5265_v25, %v8852_v14  ;;  %v8860_v6 = vld [vmem:[#allocation39_spill] sm:$0xff] }
 0x250   : > { %vm8854_vm8 = vnez %v8853_v0  ;;  %vm8861_vm10 = vnez %v8860_v6  ;;  %v4085_v25 = vsel %vm7805_vm2, %v5301_v57, 0.0  ;;  %v8867_v26 = vld [vmem:[#allocation31_spill] sm:$0xff]  ;;  %vm8869_vm6 = vcmp.lt.s32.totalorder %v7847_v29, 0  ;;  %v8875_v6 = vld [vmem:[#allocation29_spill] sm:$0xff] }
 0x251   : > { %v8857_v63 = vsel %vm8854_vm8, %v8855_v40, %v8856_v7  ;;  %v8864_v41 = vsel %vm8861_vm10, %v8862_v32, %v8863_v45  ;;  %v5303_v52 = vadd.f32 %v2910_v49, %v8867_v26  ;;  %vm8868_vm8 = vcmp.ne.s32.totalorder %v7847_v29, 0  ;;  %v8872_v7 = vld [vmem:[#allocation38_spill] sm:$0xff] }
 0x252   : > { %vm7915_vm12 = vcmp.lt.s32.totalorder %v8857_v63, 16  ;;  %vm7924_vm1 = vcmp.lt.s32.totalorder %v8864_v41, 16  ;;  %vm7935_vm14 = vmand %vm8869_vm6, %vm8868_vm8  ;;  %v3672_v54 = vshrl.u32 %v7821_v17, 4  ;;  %v7941_v16 = vadd.s32 264, %v7011_v61  ;;  %v8874_v49 = vld [vmem:[#allocation34_spill] sm:$0xff]  ;;  %v5268_v13 = vpop.f32.mrb[8].mxu0 }
 0x253   : > { %v4120_v14 = vadd.f32 %v4119_v23, %v4085_v25  ;;  %v4162_v22 = vmul.f32 %v4085_v25, %v4085_v25  ;;  %v4196_v0 = vadd.f32 %v4195_v35, %v4161_v60  ;;  %v4692_v40 = vpack.c.bf16 %v5302_v10, %v5300_v37 }
 0x254   : > { %vm8873_vm2 = vnez %v8872_v7  ;;  %v4087_v17 = vsel %vm7829_vm15, %v5300_v37, 0.0  ;;  %v4687_v41 = vpack.c.bf16 %v5303_v52, %v5301_v57  ;;  %v4086_v61 = vsel %vm7838_vm7, %v5303_v52, 0.0  ;;  %v8879_v52 = vld [vmem:[#allocation32_spill] sm:$0xff] }
 0x255   : > { %v8876_v32 = vsel %vm8873_vm2, %v8874_v49, %v8875_v6  ;;  %v3640_v23 = vmul.u32 18, %v3639_v4  ;;  %v4197_v25 = vadd.f32 %v4196_v0, %v4162_v22  ;;  %4766 = vst [vmem:[%s7880_s22 + $0x18] sm:$0xff] %v4692_v40   ;;  %v4121_v60 = vadd.f32 %v4120_v14, %v4086_v61  ;;  %v2923_v22 = vpop.f32.mrb[9].mxu0  ;;  %v8884_v0 = vld [vmem:[#allocation33_spill] sm:$0xff] }
 0x256   : > { %vm7948_vm10 = vcmp.lt.s32.totalorder %v8876_v32, 16  ;;  %v4163_v35 = vmul.f32 %v4086_v61, %v4086_v61  ;;  %v3892_v26 = vsel %vm7935_vm14, %v7892_v19, %v7847_v29  ;;  %v4088_v7 = vsel %vm7864_vm5, %v5302_v10, 0.0  ;;  %4765 = vst [vmem:[%s7880_s22 + $0x10] sm:$0xff] %v4687_v41   ;;  %v5269_v49 = vpop.f32.mrb[10].mxu0 }
 0x257   : > { %vm3746_vm6 = vcmp.ne.s32.totalorder %v7906_v47, 0  ;;  %v3650_v57 = vshrl.u32 %v7857_v11, 4  ;;  %v4164_v36 = vmul.f32 %v4087_v17, %v4087_v17  ;;  %v4122_v37 = vadd.f32 %v4121_v60, %v4087_v17  ;;  %v2926_v61 = vpop.f32.mrb[11].mxu0 }
 0x258   : > { %v4198_v4 = vadd.f32 %v4197_v25, %v4163_v35  ;;  %v5304_v14 = vadd.f32 %v5268_v13, %v8879_v52  ;;  %vm8880_vm7 = vnez %v8741_v34  ;;  %v5305_v40 = vadd.f32 %v2923_v22, %v8884_v0 }
 0x259   : > { %v8881_v28 = vsel %vm8880_vm7, %v7490_v55, %v7362_v3  ;;  %v7979_v11 = vadd.s32 18, %v7906_v47  ;;  %v7982_v6 = vsub.s32 %v7670_v62, %v3662_v15  ;;  %v7985_v32 = vsub.s32 %v7749_v59, %v3640_v23  ;;  %v8885_v55 = vld [vmem:[#allocation35_spill] sm:$0xff]  ;;  %v8894_v15 = vld [vmem:[#allocation37_spill] sm:$0xff] }
 0x25a   : > { %vm7973_vm5 = vcmp.lt.s32.totalorder %v8881_v28, 16  ;;  %v4165_v34 = vmul.f32 %v4088_v7, %v4088_v7  ;;  %v4199_v17 = vadd.f32 %v4198_v4, %v4164_v36  ;;  %v4123_v41 = vadd.f32 %v4122_v37, %v4088_v7  ;;  %v5272_v0 = vpop.f32.mrb[12].mxu0 }
 0x25b   : > { %v5306_v3 = vadd.f32 %v5269_v49, %v8885_v55  ;;  %vm8886_vm8 = vnez %v8736_v5  ;;  %vm8890_vm7 = vnez %v8749_v18  ;;  %v4089_v5 = vsel %vm7900_vm4, %v5305_v40, 0.0 }
 0x25c   : > { %v8887_v25 = vsel %vm8886_vm8, %v7453_v9, %v7353_v12  ;;  %v8891_v62 = vsel %vm8890_vm7, %v7514_v51, %v7419_v53  ;;  %v5307_v23 = vadd.f32 %v2926_v61, %v8894_v15  ;;  %v4124_v35 = vadd.f32 %v4123_v41, %v4089_v5  ;;  %v8933_v51 = vld [vmem:[#allocation48_spill] sm:$0xff] }
 0x25d   : > { %vm7993_vm2 = vcmp.lt.s32.totalorder %v8887_v25, 16  ;;  %vm8002_vm15 = vcmp.lt.s32.totalorder %v8891_v62, 16  ;;  %v8010_v12 = vmul.u32.u64.low 3817748708, %v7850_v39  ;;  %v8011_v9 = vmul.u32.u64.high 3817748708, %v7850_v39, %v8010_v12  ;;  %v8908_v62 = vld [vmem:[#allocation42_spill] sm:$0xff] }
 0x25e   : > { %v4166_v18 = vmul.f32 %v4089_v5, %v4089_v5  ;;  %v4200_v7 = vadd.f32 %v4199_v17, %v4165_v34  ;;  %v4702_v13 = vpack.c.bf16 %v5306_v3, %v5304_v14  ;;  %vm8895_vm8 = vnez %v8746_v21  ;;  %v8907_v17 = vld [vmem:[#allocation41_spill] sm:$0xff] }
 0x25f   : > { %v8896_v53 = vsel %vm8895_vm8, %v7501_v44, %v7408_v48  ;;  %vm8899_vm4 = vcmp.lt.s32.totalorder %v7906_v47, 0  ;;  %v4091_v36 = vsel %vm7915_vm12, %v5304_v14, 0.0  ;;  %v4697_v37 = vpack.c.bf16 %v5307_v23, %v5305_v40  ;;  %v8902_v40 = vld [vmem:[#allocation40_spill] sm:$0xff]  ;;  %v8954_v34 = vld [vmem:[#allocation61_spill] sm:$0xff] }
 0x260   : > { %vm8018_vm7 = vcmp.lt.s32.totalorder %v8896_v53, 16  ;;  %vm8026_vm14 = vmand %vm8899_vm4, %vm3746_vm6  ;;  %v4090_v21 = vsel %vm7924_vm1, %v5307_v23, 0.0  ;;  %v3673_v48 = vmul.u32 18, %v3672_v54  ;;  %v4201_v44 = vadd.f32 %v4200_v7, %v4166_v18  ;;  %4768 = vst [vmem:[%s7880_s22 + $0x28] sm:$0xff] %v4702_v13   ;;  %v8913_v23 = vld [vmem:[#allocation45_spill] sm:$0xff]  ;;  %v8082_v13 = vpop.f32.mrb[20].mxu1 }
 0x261   : > { %v4125_v4 = vadd.f32 %v4124_v35, %v4090_v21  ;;  %v4167_v52 = vmul.f32 %v4090_v21, %v4090_v21  ;;  %v3651_v22 = vmul.u32 18, %v3650_v57  ;;  %v4092_v28 = vsel %vm7948_vm10, %v5306_v3, 0.0  ;;  %4767 = vst [vmem:[%s7880_s22 + $0x20] sm:$0xff] %v4697_v37   ;;  %v2939_v57 = vpop.f32.mrb[13].mxu0  ;;  %v8096_v37 = vpop.f32.mrb[21].mxu1  ;;  %v8921_v21 = vld [vmem:[#allocation55_spill] sm:$0xff] }
 0x262   : > { %v3890_v20 = vsel %vm8026_vm14, %v7979_v11, %v7906_v47  ;;  %vm3751_vm12 = vcmp.ne.s32.totalorder %v7982_v6, 0  ;;  %v4168_v27 = vmul.f32 %v4091_v36, %v4091_v36  ;;  %v5308_v49 = vadd.f32 %v5272_v0, %v8902_v40  ;;  %v5273_v55 = vpop.f32.mrb[14].mxu0 }
 0x263   : > { %v4126_v54 = vadd.f32 %v4125_v4, %v4091_v36  ;;  %v4202_v14 = vadd.f32 %v4201_v44, %v4167_v52  ;;  %vm8903_vm6 = vnez %v8768_v1  ;;  %v5309_v41 = vadd.f32 %v2939_v57, %v8907_v17  ;;  %v8923_v44 = vld [vmem:[#allocation54_spill] sm:$0xff]  ;;  %v8924_v4 = vld [vmem:[#allocation44_spill] sm:$0xff] }
 0x264   : > { %v8904_v45 = vsel %vm8903_vm6, %v7595_v58, %v7535_v33  ;;  %v8056_v3 = vadd.s32 18, %v7982_v6  ;;  %v4169_v61 = vmul.f32 %v4092_v28, %v4092_v28  ;;  %v5310_v5 = vadd.f32 %v5273_v55, %v8908_v62  ;;  %v2942_v33 = vpop.f32.mrb[15].mxu0  ;;  %v8932_v62 = vld [vmem:[#allocation47_spill] sm:$0xff] }
 0x265   : > { %vm8050_vm10 = vcmp.lt.s32.totalorder %v8904_v45, 16  ;;  %v4203_v25 = vadd.f32 %v4202_v14, %v4168_v27  ;;  %v4127_v1 = vadd.f32 %v4126_v54, %v4092_v28  ;;  %vm8909_vm6 = vnez %v8754_v38  ;;  %v8917_v38 = vld [vmem:[#allocation43_spill] sm:$0xff]  ;;  %v8119_v14 = vpop.f32.mrb[22].mxu1 }
 0x266   : > { %v8910_v58 = vsel %vm8909_vm6, %v7517_v31, %v7424_v46  ;;  %v8914_v12 = vsel %vm7647_vm11, %v7616_v2, %v8913_v23  ;;  %v4093_v18 = vsel %vm7973_vm5, %v5309_v41, 0.0  ;;  %v5311_v7 = vadd.f32 %v2942_v33, %v8917_v38  ;;  %v8125_v55 = vpop.f32.mrb[23].mxu1  ;;  %v8938_v38 = vld [vmem:[#allocation14_spill] sm:$0xff] }
 0x267   : > { %vm8066_vm1 = vcmp.lt.s32.totalorder %v8910_v58, 16  ;;  %vm8075_vm4 = vcmp.lt.s32.totalorder %v8914_v12, 16  ;;  %vm8918_vm6 = vcmp.lt.s32.totalorder %v7982_v6, 0  ;;  %v8093_v46 = vadd.s32 18, %v7985_v32  ;;  %v8937_v12 = vld [vmem:[#allocation50_spill] sm:$0xff] }
 0x268   : > { %vm8088_vm8 = vmand %vm8918_vm6, %vm3751_vm12  ;;  %v3705_v30 = vshrl.u32 %v7870_v42, 4  ;;  %v4128_v2 = vadd.f32 %v4127_v1, %v4093_v18  ;;  %v4170_v10 = vmul.f32 %v4093_v18, %v4093_v18  ;;  %v4204_v53 = vadd.f32 %v4203_v25, %v4169_v61 }
 0x269   : > { %v4712_v36 = vpack.c.bf16 %v5310_v5, %v5308_v49  ;;  %vm8922_vm11 = vnez %v8921_v21  ;;  %vm8928_vm12 = vcmp.ne.s32.totalorder %v7985_v32, 0  ;;  %vm8929_vm6 = vcmp.lt.s32.totalorder %v7985_v32, 0 }
 0x26a   : > { %v8925_v52 = vsel %vm8922_vm11, %v8923_v44, %v8924_v4  ;;  %vm8111_vm14 = vmand %vm8929_vm6, %vm8928_vm12  ;;  %v4095_v0 = vsel %vm7993_vm2, %v5308_v49, 0.0  ;;  %v4707_v27 = vpack.c.bf16 %v5311_v7, %v5309_v41  ;;  %v4094_v54 = vsel %vm8002_vm15, %v5311_v7, 0.0  ;;  %v5276_v49 = vpop.f32.mrb[16].mxu0  ;;  %v8941_v44 = vld [vmem:[#allocation59_spill] sm:$0xff]  ;;  %v8942_v4 = vld [vmem:[#allocation46_spill] sm:$0xff] }
 0x26b   : > { %vm8103_vm5 = vcmp.lt.s32.totalorder %v8925_v52, 16  ;;  %v8122_v40 = vsub.s32 %v7759_v56, %v3673_v48  ;;  %v4205_v57 = vadd.f32 %v4204_v53, %v4170_v10  ;;  %4770 = vst [vmem:[%s7880_s22 + $0x38] sm:$0xff] %v4712_v36   ;;  %v4129_v45 = vadd.f32 %v4128_v2, %v4094_v54  ;;  %v2955_v58 = vpop.f32.mrb[17].mxu0 }
 0x26c   : > { %v4171_v17 = vmul.f32 %v4094_v54, %v4094_v54  ;;  %v3895_v60 = vsel %vm8088_vm8, %v8056_v3, %v7982_v6  ;;  %v4096_v59 = vsel %vm8018_vm7, %v5310_v5, 0.0  ;;  %4769 = vst [vmem:[%s7880_s22 + $0x30] sm:$0xff] %v4707_v27   ;;  %v3893_v56 = vsel %vm8111_vm14, %v8093_v46, %v7985_v32  ;;  %v8947_v27 = vld [vmem:[#allocation62_spill] sm:$0xff]  ;;  %v8948_v54 = vld [vmem:[#allocation52_spill] sm:$0xff] }
 0x26d   : > { %v8139_v48 = vsub.s32 %v7794_v24, %v3651_v22  ;;  %v3706_v41 = vmul.u32 18, %v3705_v30  ;;  %v4172_v61 = vmul.f32 %v4095_v0, %v4095_v0  ;;  %v4130_v25 = vadd.f32 %v4129_v45, %v4095_v0  ;;  %v5277_v24 = vpop.f32.mrb[18].mxu0 }
 0x26e   : > { %v4206_v1 = vadd.f32 %v4205_v57, %v4171_v17  ;;  %v5312_v33 = vadd.f32 %v5276_v49, %v8932_v62  ;;  %v8934_v5 = vsel %vm7701_vm13, %v7706_v43, %v8933_v51  ;;  %v5313_v18 = vadd.f32 %v2955_v58, %v8937_v12  ;;  %v2958_v21 = vpop.f32.mrb[19].mxu0 }
 0x26f   : > { %vm8147_vm15 = vcmp.lt.s32.totalorder %v8934_v5, 16  ;;  %v3683_v22 = vshrl.u32 %v8011_v9, 4  ;;  %v8154_v7 = vmul.u32.u64.low 3817748708, %v8938_v38  ;;  %v8155_v30 = vmul.u32.u64.high 3817748708, %v8938_v38, %v8154_v7 }
 0x270   : > { %v4173_v2 = vmul.f32 %v4096_v59, %v4096_v59  ;;  %v4207_v10 = vadd.f32 %v4206_v1, %v4172_v61  ;;  %v4131_v53 = vadd.f32 %v4130_v25, %v4096_v59  ;;  %v5314_v36 = vadd.f32 %v5277_v24, %v8939_v8  ;;  %v8952_v59 = vld [vmem:[#allocation53_spill] sm:$0xff]  ;;  %v8179_v61 = vpop.f32.mrb[24].mxu1 }
 0x271   : > { %v8943_v52 = vsel %vm7663_vm3, %v8941_v44, %v8942_v4  ;;  %v8949_v57 = vsel %vm7742_vm9, %v8947_v27, %v8948_v54  ;;  %v4097_v17 = vsel %vm8050_vm10, %v5313_v18, 0.0  ;;  %v5315_v49 = vadd.f32 %v2958_v21, %v8952_v59  ;;  %v8185_v12 = vpop.f32.mrb[25].mxu1  ;;  %v8955_v7 = vld [vmem:[#allocation49_spill] sm:$0xff] }
 0x272   : > { %vm8163_vm13 = vcmp.lt.s32.totalorder %v8943_v52, 16  ;;  %vm8172_vm2 = vcmp.lt.s32.totalorder %v8949_v57, 16  ;;  %v8182_v25 = vmul.u32.u64.low 3817748708, %v7941_v16  ;;  %v8183_v1 = vmul.u32.u64.high 3817748708, %v7941_v16, %v8182_v25 }
 0x273   : > { %v4132_v62 = vadd.f32 %v4131_v53, %v4097_v17  ;;  %v4174_v58 = vmul.f32 %v4097_v17, %v4097_v17  ;;  %v4208_v51 = vadd.f32 %v4207_v10, %v4173_v2  ;;  %v4722_v5 = vpack.c.bf16 %v5314_v36, %v5312_v33  ;;  %v8200_v10 = vpop.f32.mrb[26].mxu1  ;;  %v8961_v25 = vld [vmem:[#allocation66_spill] sm:$0xff] }
 0x274   : > { %v8956_v8 = vsel %vm7713_vm0, %v8954_v34, %v8955_v7  ;;  %v4099_v43 = vsel %vm8066_vm1, %v5312_v33, 0.0  ;;  %v4717_v44 = vpack.c.bf16 %v5315_v49, %v5313_v18  ;;  %v4098_v2 = vsel %vm8075_vm4, %v5315_v49, 0.0  ;;  %v8204_v9 = vpop.f32.mrb[27].mxu1  ;;  %v5280_v33 = vpop.f32.mrb[20].mxu0  ;;  %v8959_v49 = vld [vmem:[#allocation67_spill] sm:$0xff] }
 0x275   : > { %vm8192_vm9 = vcmp.lt.s32.totalorder %v8956_v8, 16  ;;  %vm3752_vm3 = vcmp.ne.s32.totalorder %v8122_v40, 0  ;;  %v4209_v53 = vadd.f32 %v4208_v51, %v4174_v58  ;;  %4772 = vst [vmem:[%s7880_s22 + $0x48] sm:$0xff] %v4722_v5   ;;  %v4133_v4 = vadd.f32 %v4132_v62, %v4098_v2  ;;  %v2971_v59 = vpop.f32.mrb[21].mxu0  ;;  %v8962_v62 = vld [vmem:[#allocation57_spill] sm:$0xff]  ;;  %v8966_v5 = vld [vmem:[#allocation68_spill] sm:$0xff] }
 0x276   : > { %v4175_v52 = vmul.f32 %v4098_v2, %v4098_v2  ;;  %vm3788_vm0 = vcmp.lt.s32.totalorder %v8122_v40, 0  ;;  %v4100_v15 = vsel %vm8103_vm5, %v5314_v36, 0.0  ;;  %4771 = vst [vmem:[%s7880_s22 + $0x40] sm:$0xff] %v4717_v44   ;;  %v8211_v35 = vadd.s32 18, %v8122_v40  ;;  %v5281_v51 = vpop.f32.mrb[22].mxu0  ;;  %v8967_v44 = vld [vmem:[#allocation65_spill] sm:$0xff] }
 0x277   : > { %vm3750_vm7 = vcmp.ne.s32.totalorder %v8139_v48, 0  ;;  %v3684_v18 = vmul.u32 18, %v3683_v22  ;;  %v4176_v27 = vmul.f32 %v4099_v43, %v4099_v43  ;;  %v4134_v54 = vadd.f32 %v4133_v4, %v4099_v43  ;;  %v2974_v43 = vpop.f32.mrb[23].mxu0  ;;  %v8969_v2 = vld [vmem:[#allocation64_spill] sm:$0xff] }
 0x278   : > { %v4210_v57 = vadd.f32 %v4209_v53, %v4175_v52  ;;  %v5316_v17 = vadd.f32 %v5280_v33, %v8082_v13  ;;  %vm8960_vm1 = vnez %v8959_v49  ;;  %v5317_v58 = vadd.f32 %v2971_v59, %v8096_v37  ;;  %v8970_v53 = vld [vmem:[#allocation56_spill] sm:$0xff]  ;;  %v5284_v45 = vpop.f32.mrb[24].mxu0 }
 0x279   : > { %v8963_v28 = vsel %vm8960_vm1, %v8961_v25, %v8962_v62  ;;  %vm3786_vm4 = vcmp.lt.s32.totalorder %v8139_v48, 0  ;;  %v3858_v22 = vadd.s32 18, %v8139_v48  ;;  %v8228_v24 = vsub.s32 %v8966_v5, %v3706_v41  ;;  %vm8258_vm1 = vmand %vm3788_vm0, %vm3752_vm3  ;;  %v2987_v5 = vpop.f32.mrb[25].mxu0 }
 0x27a   : > { %vm8220_vm10 = vcmp.lt.s32.totalorder %v8963_v28, 16  ;;  %v4177_v13 = vmul.f32 %v4100_v15, %v4100_v15  ;;  %v4211_v34 = vadd.f32 %v4210_v57, %v4176_v27  ;;  %v4135_v7 = vadd.f32 %v4134_v54, %v4100_v15  ;;  %v8252_v15 = vpop.f32.mrb[28].mxu1  ;;  %vm8281_vm0 = vmand %vm3786_vm4, %vm3750_vm7  ;;  %v5285_v21 = vpop.f32.mrb[26].mxu0 }
 0x27b   : > { %v5318_v8 = vadd.f32 %v5281_v51, %v8119_v14  ;;  %vm8968_vm11 = vnez %v8967_v44  ;;  %vm8245_vm6 = vcmp.lt.s32.totalorder %v3890_v20, 16  ;;  %v4101_v14 = vsel %vm8147_vm15, %v5317_v58, 0.0  ;;  %v8266_v27 = vpop.f32.mrb[29].mxu1 }
 0x27c   : > { %v8971_v4 = vsel %vm8968_vm11, %v8969_v2, %v8970_v53  ;;  %v5319_v52 = vadd.f32 %v2974_v43, %v8125_v55  ;;  %v8263_v47 = vsub.s32 %v7850_v39, %v3684_v18  ;;  %v3694_v11 = vshrl.u32 %v8183_v1, 4  ;;  %v8289_v29 = vpop.f32.mrb[30].mxu1 }
 0x27d   : > { %vm8236_vm5 = vcmp.lt.s32.totalorder %v8971_v4, 16  ;;  %v4136_v20 = vadd.f32 %v4135_v7, %v4101_v14  ;;  %v4178_v23 = vmul.f32 %v4101_v14, %v4101_v14  ;;  %v4212_v33 = vadd.f32 %v4211_v34, %v4177_v13  ;;  %v8293_v49 = vpop.f32.mrb[31].mxu1  ;;  %v2990_v34 = vpop.f32.mrb[27].mxu0 }
 0x27e   : > { %v4732_v55 = vpack.c.bf16 %v5318_v8, %v5316_v17  ;;  %vm8273_vm3 = vcmp.lt.s32.totalorder %v3892_v26, 16  ;;  %v4103_v1 = vsel %vm8163_vm13, %v5316_v17, 0.0  ;;  %v4727_v18 = vpack.c.bf16 %v5319_v52, %v5317_v58 }
 0x27f   : > { %v4102_v63 = vsel %vm8172_vm2, %v5319_v52, 0.0  ;;  %v3716_v19 = vshrl.u32 %v8155_v30, 4  ;;  %v4213_v26 = vadd.f32 %v4212_v33, %v4178_v23  ;;  %v3896_v0 = vsel %vm8258_vm1, %v8211_v35, %v8122_v40 }
 0x280   : > { %4774 = vst [vmem:[%s7880_s22 + $0x58] sm:$0xff] %v4732_v55   ;;  %v4137_v57 = vadd.f32 %v4136_v20, %v4102_v63  ;;  %v4179_v59 = vmul.f32 %v4102_v63, %v4102_v63  ;;  %v4104_v17 = vsel %vm8192_vm9, %v5318_v8, 0.0  ;;  %4773 = vst [vmem:[%s7880_s22 + $0x50] sm:$0xff] %v4727_v18   ;;  %v3894_v30 = vsel %vm8281_vm0, %v3858_v22, %v8139_v48 }
 0x281   : > { %vm3755_vm13 = vcmp.ne.s32.totalorder %v8228_v24, 0  ;;  %v3695_v25 = vmul.u32 18, %v3694_v11  ;;  %v4180_v62 = vmul.f32 %v4103_v1, %v4103_v1  ;;  %v5320_v51 = vadd.f32 %v5284_v45, %v8179_v61  ;;  %v5288_v11 = vpop.f32.mrb[28].mxu0 }
 0x282   : > { %v4138_v28 = vadd.f32 %v4137_v57, %v4103_v1  ;;  %v4214_v58 = vadd.f32 %v4213_v26, %v4179_v59  ;;  %vm8312_vm2 = vcmp.lt.s32.totalorder %v3893_v56, 16  ;;  %v5321_v48 = vadd.f32 %v2987_v5, %v8185_v12  ;;  %v3003_v55 = vpop.f32.mrb[29].mxu0 }
 0x283   : > { %vm3791_vm9 = vcmp.lt.s32.totalorder %v8228_v24, 0  ;;  %vm3753_vm7 = vcmp.ne.s32.totalorder %v8263_v47, 0  ;;  %v3717_v35 = vmul.u32 18, %v3716_v19  ;;  %v4181_v22 = vmul.f32 %v4104_v17, %v4104_v17  ;;  %v5289_v1 = vpop.f32.mrb[30].mxu0 }
 0x284   : > { %v4215_v61 = vadd.f32 %v4214_v58, %v4180_v62  ;;  %v4139_v13 = vadd.f32 %v4138_v28, %v4104_v17  ;;  %v5322_v42 = vadd.f32 %v5285_v21, %v8200_v10  ;;  %vm8325_vm14 = vcmp.lt.s32.totalorder %v3895_v60, 16  ;;  %v8336_v10 = vpop.f32.mrb[32].mxu1  ;;  %v3006_v57 = vpop.f32.mrb[31].mxu0  ;;  %vm8385_vm15 = vmand %vm3791_vm9, %vm3755_vm13 }
 0x285   : > { %vm8329_vm4 = vcmp.lt.s32.totalorder %v3894_v30, 16  ;;  %v4105_v56 = vsel %vm8220_vm10, %v5321_v48, 0.0  ;;  %v5323_v12 = vadd.f32 %v2990_v34, %v8204_v9  ;;  %vm3789_vm11 = vcmp.lt.s32.totalorder %v8263_v47, 0  ;;  %v8342_v8 = vpop.f32.mrb[33].mxu1 }
 0x286   : > { %v8340_v6 = vsub.s32 %v7941_v16, %v3695_v25  ;;  %v4140_v3 = vadd.f32 %v4139_v13, %v4105_v56  ;;  %v4182_v31 = vmul.f32 %v4105_v56, %v4105_v56  ;;  %v4216_v60 = vadd.f32 %v4215_v61, %v4181_v22  ;;  %v8352_v16 = vpop.f32.mrb[34].mxu1  ;;  %vm8372_vm12 = vmand %vm3789_vm11, %vm3753_vm7  ;;  %v5292_v61 = vpop.f32.mrb[32].mxu0 }
 0x287   : > { %v4742_v7 = vpack.c.bf16 %v5322_v42, %v5320_v51  ;;  %vm8344_vm8 = vcmp.lt.s32.totalorder %v3896_v0, 16  ;;  %v4107_v9 = vsel %vm8236_vm5, %v5320_v51, 0.0  ;;  %v4737_v43 = vpack.c.bf16 %v5323_v12, %v5321_v48  ;;  %v8358_v52 = vpop.f32.mrb[35].mxu1  ;;  %v3019_v56 = vpop.f32.mrb[33].mxu0 }
 0x288   : > { %v4106_v44 = vsel %vm8245_vm6, %v5323_v12, 0.0  ;;  %v8355_v2 = vsub.s32 %v8938_v38, %v3717_v35  ;;  %v4217_v53 = vadd.f32 %v4216_v60, %v4182_v31  ;;  %v3863_v50 = vadd.s32 18, %v8228_v24 }
 0x289   : > { %4776 = vst [vmem:[%s7880_s22 + $0x68] sm:$0xff] %v4742_v7   ;;  %v4141_v4 = vadd.f32 %v4140_v3, %v4106_v44  ;;  %v4183_v14 = vmul.f32 %v4106_v44, %v4106_v44  ;;  %v4108_v37 = vsel %vm8273_vm3, %v5322_v42, 0.0  ;;  %4775 = vst [vmem:[%s7880_s22 + $0x60] sm:$0xff] %v4737_v43   ;;  %v3861_v41 = vadd.s32 18, %v8263_v47  ;;  %v5293_v3 = vpop.f32.mrb[34].mxu0 }
 0x28a   : > { %vm3754_vm10 = vcmp.ne.s32.totalorder %v8340_v6, 0  ;;  %vm3790_vm5 = vcmp.lt.s32.totalorder %v8340_v6, 0  ;;  %v4184_v38 = vmul.f32 %v4107_v9, %v4107_v9  ;;  %v5324_v33 = vadd.f32 %v5288_v11, %v8252_v15 }
 0x28b   : > { %v4142_v20 = vadd.f32 %v4141_v4, %v4107_v9  ;;  %v4218_v23 = vadd.f32 %v4217_v53, %v4183_v14  ;;  %v5325_v39 = vadd.f32 %v3003_v55, %v8266_v27  ;;  %vm3756_vm6 = vcmp.ne.s32.totalorder %v8355_v2, 0  ;;  %vm8400_vm3 = vmand %vm3790_vm5, %vm3754_vm10 }
 0x28c   : > { %vm3792_vm1 = vcmp.lt.s32.totalorder %v8355_v2, 0  ;;  %v3862_v18 = vadd.s32 18, %v8340_v6  ;;  %v4185_v63 = vmul.f32 %v4108_v37, %v4108_v37  ;;  %v5326_v26 = vadd.f32 %v5289_v1, %v8289_v29 }
 0x28d   : > { %v4219_v15 = vadd.f32 %v4218_v23, %v4184_v38  ;;  %v4143_v19 = vadd.f32 %v4142_v20, %v4108_v37  ;;  %v4109_v27 = vsel %vm8312_vm2, %v5325_v39, 0.0  ;;  %v5327_v0 = vadd.f32 %v3006_v57, %v8293_v49  ;;  %vm8408_vm0 = vmand %vm3792_vm1, %vm3756_vm6 }
 0x28e   : > { %v3897_v17 = vsel %vm8372_vm12, %v3861_v41, %v8263_v47  ;;  %v3864_v29 = vadd.s32 18, %v8355_v2  ;;  %v4186_v25 = vmul.f32 %v4109_v27, %v4109_v27  ;;  %v4752_v28 = vpack.c.bf16 %v5326_v26, %v5324_v33 }
 0x28f   : > { %v4144_v30 = vadd.f32 %v4143_v19, %v4109_v27  ;;  %v4220_v62 = vadd.f32 %v4219_v15, %v4185_v63  ;;  %v4111_v49 = vsel %vm8325_vm14, %v5324_v33, 0.0  ;;  %v4747_v58 = vpack.c.bf16 %v5327_v0, %v5325_v39 }
 0x290   : > { %v4110_v51 = vsel %vm8329_vm4, %v5327_v0, 0.0  ;;  %v3899_v5 = vsel %vm8385_vm15, %v3863_v50, %v8228_v24  ;;  %4778 = vst [vmem:[%s7880_s22 + $0x78] sm:$0xff] %v4752_v28   ;;  %v3898_v35 = vsel %vm8400_vm3, %v3862_v18, %v8340_v6  ;;  %v4112_v22 = vsel %vm8344_vm8, %v5326_v26, 0.0 }
 0x291   : > { %v4221_v40 = vadd.f32 %v4220_v62, %v4186_v25  ;;  %v4145_v48 = vadd.f32 %v4144_v30, %v4110_v51  ;;  %v4187_v21 = vmul.f32 %v4110_v51, %v4110_v51  ;;  %4777 = vst [vmem:[%s7880_s22 + $0x70] sm:$0xff] %v4747_v58   ;;  %vm8426_vm13 = vcmp.lt.s32.totalorder %v3897_v17, 16 }
 0x292   : > { %v3900_v24 = vsel %vm8408_vm0, %v3864_v29, %v8355_v2  ;;  %v4188_v42 = vmul.f32 %v4111_v49, %v4111_v49  ;;  %v5328_v46 = vadd.f32 %v5292_v61, %v8336_v10  ;;  %vm8435_vm2 = vcmp.lt.s32.totalorder %v3899_v5, 16  ;;  %v3022_v10 = vpop.f32.mrb[35].mxu0 }
 0x293   : > { %v4146_v34 = vadd.f32 %v4145_v48, %v4111_v49  ;;  %v4222_v32 = vadd.f32 %v4221_v40, %v4187_v21  ;;  %v5329_v6 = vadd.f32 %v3019_v56, %v8342_v8  ;;  %vm8440_vm9 = vcmp.lt.s32.totalorder %v3898_v35, 16 }
 0x294   : > { %v4189_v60 = vmul.f32 %v4112_v22, %v4112_v22  ;;  %v5330_v9 = vadd.f32 %v5293_v3, %v8352_v16  ;;  %vm3936_vm7 = vcmp.lt.s32.totalorder %v3900_v24, 16  ;;  %v5331_v8 = vadd.f32 %v3022_v10, %v8358_v52 }
 0x295   : > { %v4223_v7 = vadd.f32 %v4222_v32, %v4188_v42  ;;  %v4147_v36 = vadd.f32 %v4146_v34, %v4112_v22  ;;  %v4113_v43 = vsel %vm8426_vm13, %v5329_v6, 0.0  ;;  %v4115_v16 = vsel %vm8435_vm2, %v5328_v46, 0.0 }
 0x296   : > { %v4190_v2 = vmul.f32 %v4113_v43, %v4113_v43  ;;  %v4762_v4 = vpack.c.bf16 %v5330_v9, %v5328_v46  ;;  %v4757_v14 = vpack.c.bf16 %v5331_v8, %v5329_v6  ;;  %v4114_v50 = vsel %vm8440_vm9, %v5331_v8, 0.0 }
 0x297   : > { %v4148_v44 = vadd.f32 %v4147_v36, %v4113_v43  ;;  %v4224_v53 = vadd.f32 %v4223_v7, %v4189_v60  ;;  %v4191_v11 = vmul.f32 %v4114_v50, %v4114_v50  ;;  %v4116_v41 = vsel %vm3936_vm7, %v5330_v9, 0.0 }
 0x298   : > { %4780 = vst [vmem:[%s7880_s22 + $0x88] sm:$0xff] %v4762_v4   ;;  %4779 = vst [vmem:[%s7880_s22 + $0x80] sm:$0xff] %v4757_v14   ;;  %v4192_v38 = vmul.f32 %v4115_v16, %v4115_v16 }
 0x299   : > { %v4225_v52 = vadd.f32 %v4224_v53, %v4190_v2  ;;  %v4149_v37 = vadd.f32 %v4148_v44, %v4114_v50 }
 0x29b   : > { %v4150_v20 = vadd.f32 %v4149_v37, %v4115_v16  ;;  %v4226_v23 = vadd.f32 %v4225_v52, %v4191_v11 }
 0x29c   : > { %5849 = shalt.err (!%p5846_p5)
}
 0x29d   : > { %s5850_s19 = scalar_lea.hbm %s8452_s11, 2304  ;;  %s5854_s26 = scalar_lea.hbm %s8542_s2, 4608 }
 0x29e   : > { %p5851_p9 = scmp.ne.s32.totalorder %s8452_s11, %s5850_s19  ;;  %p5855_p3 = scmp.lt.u32.totalorder %s8452_s11, %s8542_s2 }
 0x29f   : > { %p5856_p7 = scmp.lt.u32.totalorder %s5854_s26, %s5850_s19  ;;  %p5858_p4 = scmp.lt.u32.totalorder %s5850_s19, %s8452_s11 }
 0x2a0   : > { %p5852_p1 = pnand %p5851_p9, %p6078_p10 }
 0x2a1   : > { %p5857_p11 = por %p5856_p7, %p5855_p3 }
 0x2a2   : > { %p5853_p2 = pneg %p5852_p1 }
 0x2a3   : > { %p5859_p6 = por %p5858_p4, %p5857_p11 }
 0x2a5   : > { %p5860_p8 = pnand %p5859_p6, %p5853_p2 }
 0x2a7   : > { %5863 = shalt.err (!%p5860_p8)
}
 0x2a8   : > { %s5963_s24 = smov 64   ;;  %s5964_s8 = smov 4   ;;  %v4193_v33 = vmul.f32 %v4116_v41, %v4116_v41  ;;  %v4151_v55 = vadd.f32 %v4150_v20, %v4116_v41  ;;  %v4227_v54 = vadd.f32 %v4226_v23, %v4192_v38  ;;  %vm4235_vm14 = vcmask 1040384  }
 0x2a9   : > { %5677 = dma.vmem_to_hbm [thread:$0]  (%p6078_p10), %s8458_s7, 2304, %s8452_s11, %s4239_s27, %s5963_s24, %s5963_s24, %s5964_s8  }
 0x2aa   : > { %v4152_v39 = vrot.slane %v4151_v55, 4  ;;  %v4228_v1 = vadd.f32 %v4227_v54, %v4193_v33  ;;  %s4411_s10 = sshll.u32 %s6132_s25, 1  ;;  %s4635_s6 = sshll.u32 %s5946_s15, 5 }
 0x2ab   : > { %s234_s7 = scalar_lea.vmem [#allocation8], %s4411_s10  ;;  %s8491_s21 = scalar_lea.hbm %s8543_s3, %s4635_s6 }
 0x2ac   : > { %v4153_v18 = vadd.f32 %v4152_v39, %v4151_v55  ;;  %v4229_v63 = vrot.slane %v4228_v1, 4  ;;  %s4276_s11 = sshll.u32 %s234_s7, 4  ;;  %s4244_s18 = scalar_lea.sflag [#allocation9], %s6132_s25  ;;  %s8493_s11 = int_to_ptr.vmem [resolvable:$true] %s4276_s11 }
 0x2ad   : > { %s5864_s19 = scalar_lea.vmem %s8493_s11, 32  ;;  %s5965_s15 = smov [#allocation8]  }
 0x2ae   : > { %v4154_v15 = vrot.slane %v4153_v18, 2  ;;  %v4230_v19 = vadd.f32 %v4229_v63, %v4228_v1  ;;  %p5865_p12 = scmp.ne.s32.totalorder %s8493_s11, %s5864_s19  ;;  %s5868_s30 = sshll.u32 %s5965_s15, 4  ;;  %s5869_s30 = int_to_ptr.vmem [resolvable:$false] %s5868_s30 }
 0x2af   : > { %s5870_s4 = scalar_lea.vmem %s5869_s30, 64  ;;  %p5871_p5 = scmp.lt.s32.totalorder %s8493_s11, %s5869_s30 }
 0x2b0   : > { %v4155_v26 = vadd.f32 %v4154_v15, %v4153_v18  ;;  %v4231_v57 = vrot.slane %v4230_v19, 2  ;;  %p5866_p13 = pnand %p5865_p12, %p6078_p10  ;;  %p5872_p9 = scmp.lt.s32.totalorder %s5870_s4, %s5864_s19 }
 0x2b2   : > { %v4156_v59 = vrot.slane %v4155_v26, 1  ;;  %v4232_v27 = vadd.f32 %v4231_v57, %v4230_v19  ;;  %p5867_p0 = pneg %p5866_p13  ;;  %p5873_p1 = por %p5872_p9, %p5871_p5 }
 0x2b4   : > { %v4233_v0 = vrot.slane %v4232_v27, 1  ;;  %v4157_v17 = vadd.f32 %v4156_v59, %v4155_v26  ;;  %p5874_p2 = pnand %p5873_p1, %p5867_p0 }
 0x2b6   : > { %v4234_v29 = vadd.f32 %v4233_v0, %v4232_v27 }
 0x2b8   : > { %v4236_v45 = vsel %vm4235_vm14, %v4157_v17, %v4234_v29 }
 0x2b9   : > { %4237 = vst [vmem:[%s234_s7] sm:$0x3] %v4236_v45 }
 0x2ba   : > { %5877 = shalt.err (!%p5874_p2)
}
 0x2bb   : > { %s5878_s25 = scalar_lea.hbm %s8491_s21, 32  ;;  %s5882_s22 = scalar_lea.hbm %s8543_s3, 64 }
 0x2bc   : > { %p5879_p3 = scmp.ne.s32.totalorder %s8491_s21, %s5878_s25  ;;  %p5883_p4 = scmp.lt.u32.totalorder %s8491_s21, %s8543_s3 }
 0x2bd   : > { %p5884_p6 = scmp.lt.u32.totalorder %s5882_s22, %s5878_s25  ;;  %p5886_p12 = scmp.lt.u32.totalorder %s5878_s25, %s8491_s21 }
 0x2be   : > { %p5880_p7 = pnand %p5879_p3, %p6078_p10 }
 0x2bf   : > { %p5885_p8 = por %p5884_p6, %p5883_p4 }
 0x2c0   : > { %p5881_p11 = pneg %p5880_p7 }
 0x2c1   : > { %p5887_p13 = por %p5886_p12, %p5885_p8 }
 0x2c3   : > { %p5888_p0 = pnand %p5887_p13, %p5881_p11 }
 0x2c5   : > { %5891 = shalt.err (!%p5888_p0)
}
 0x2c6   : > { %5678 = dma.vmem_to_hbm [thread:$0]  (%p6078_p10), %s8493_s11, 32, %s8491_s21, %s4244_s18  }
 0x2c7 PF: > { %s4288_s10 = sand.u32 1, %s5934_s12   ;;  %p9006_p5 = scmp.ne.s32.totalorder %s8638_s23, 0 }
 0x2c8   : > { %p9007_p9 = scmp.ge.s32.totalorder %s5954_s17, 2  ;;  %s4289_s6 = scalar_lea.sflag [#allocation4], %s4288_s10 }
 0x2ca   : > { %p5690_p1 = pnand %p9007_p9, %p9006_p5 }
 0x2cc   : > { %5925 = dma.done.wait (!%p5690_p1), %s4289_s6, 2304  }
 0x2cd   : > { %5927 = vsyncadd (!%p5690_p1), %s4289_s6, 4294964992  ;;  %s4298_s7 = scalar_lea.sflag [#allocation9], %s4288_s10 }
 0x2ce   : > { %5929 = dma.done.wait (!%p5690_p1), %s4298_s7, 32  }
 0x2cf   : > { %5931 = vsyncadd (!%p5690_p1), %s4298_s7, 4294967264  ;;  %s24_s17 = sadd.s32 1, %s5954_s17   ;;  %s9008_s12 = smov %s5938_s13 }
 0x2d0   : > { %p21_p2 = scmp.ge.s32.totalorder %s24_s17, 4   ;;  %s9009_s13 = smov %s5942_s14 }
 0x2d1   : > { %s9010_s14 = smov %s6087_s5  ;;  %s9011_s15 = smov %s5950_s16 }
 0x2d2   : > { %s9012_s16 = smov %s9014_s28  ;;  %23 = sbr.rel (!%p21_p2) target bundleno = 9 (0x9), region = 102 }
 0x2d9   :  { %4303 = vsyncpa [#allocation3], 1 }
 0x2da   :  { %4305 = vsyncpa [#allocation3 + $0x1], 1 }
 0x2db   :  { %4306 = vsyncpa [#allocation6], 1 }
 0x2dc   :  { %4307 = vsyncpa [#allocation4], 1 }
 0x2dd   :  { %4309 = vsyncpa [#allocation4 + $0x1], 1 }
 0x2de   :  { %4310 = vsyncpa [#allocation9], 1 }
 0x2df   :  { %4312 = vsyncpa [#allocation9 + $0x1], 1 }

// kernel: double_conv_pallas.4
= control target key start
LH: loop header
LB: loop body
LE: loop exit
PB: predicated region body
PF: predicated region fallthrough
CT: control target
= control target key end

     0   :  { %11 = vsyncpa [#allocation3], 0  ;;  %s9690_s0 = inlined_call_operand.hbm [shape: bf16[2,1,326,128], index: 0, kind: input, shape index: {}]   ;;  %s9691_s1 = inlined_call_operand.hbm [shape: bf16[9,128,128], index: 1, kind: input, shape index: {}]   ;;  %s9692_s2 = inlined_call_operand.hbm [shape: f32[1,128], index: 2, kind: input, shape index: {}]   ;;  %s9693_s3 = inlined_call_operand.hbm [shape: f32[1,128], index: 3, kind: input, shape index: {}]   ;;  %s9694_s4 = inlined_call_operand.hbm [shape: bf16[2,1,288,128], index: 4, kind: output, shape index: {0}]   ;;  %s9695_s5 = inlined_call_operand.hbm [shape: f32[2,1,2,128], index: 5, kind: output, shape index: {1}]  }
   0x1   :  { %13 = vsyncpa [#allocation3 + $0x1], 0 }
   0x2   :  { %14 = vsyncpa [#allocation6], 0 }
   0x3   :  { %15 = vsyncpa [#allocation9], 0 }
   0x4   :  { %16 = vsyncpa [#allocation4], 0 }
   0x5   :  { %18 = vsyncpa [#allocation4 + $0x1], 0 }
   0x6   :  { %19 = vsyncpa [#allocation12], 0 }
   0x7   :  { %21 = vsyncpa [#allocation12 + $0x1], 0  ;;  %s7388_s18 = smov 0   ;;  %s7390_s19 = smov 0  }
   0x8   :  { %s7392_s20 = smov 0   ;;  %s7394_s21 = smov 0  }
   0x9   :  { %s7396_s22 = smov 0   ;;  %s7398_s23 = smov 0  }
   0xa LB: > { %9930 = sst [smem:[#allocation18_spill]] %s7323_s18  ;;  %s5416_s24 = sadd.s32 4294967295, %s7343_s23   ;;  %s7343_s23 = sphi %s7398_s23, %s27_s23   ;;  %s7339_s22 = sphi %s7396_s22, %s10453_s22   ;;  %s7335_s21 = sphi %s7394_s21, %s10452_s21   ;;  %s7331_s20 = sphi %s7392_s20, %s10451_s20   ;;  %s7327_s19 = sphi %s7390_s19, %s10450_s19   ;;  %s7323_s18 = sphi %s7388_s18, %s10449_s18  }
   0xb   : > { %s5417_s25 = sadd.s32 4294967294, %s7343_s23   ;;  %p61_p0 = scmp.ne.s32.totalorder %s7327_s19, %s7323_s18 }
   0xc   : > { %p7422_p1 = scmp.eq.s32.totalorder %s5416_s24, 0  ;;  %p7426_p2 = scmp.eq.s32.totalorder %s5416_s24, 1 }
   0xd   : > { %p156_p3 = scmp.eq.s32.totalorder %s5417_s25, 1  ;;  %p5418_p5 = scmp.ge.s32.totalorder %s7343_s23, 1 }
   0xe   : > { %s9931_s26 = scalar_select %p7422_p1, 1, 0 }
   0xf   : > { %s9932_s27 = scalar_select %p7426_p2, 1, 0 }
  0x10   : > { %p7432_p4 = por %p7422_p1, %p61_p0  ;;  %p7437_p6 = por %p156_p3, %p61_p0 }
  0x11   : > { %p191_p7 = scmp.lt.s32.totalorder %s7343_s23, 3  ;;  %s7345_s6 = smov [#allocation5]  }
  0x12   : > { %s9933_s28 = scalar_select %p7432_p4, 1, 0 }
  0x13   : > { %s9934_s29 = scalar_select %p7437_p6, 1, 0 }
  0x14   : > { %p7442_p8 = pnand %p5418_p5, %p191_p7  ;;  %s203_s7 = sshll.u32 %s7345_s6, 4  ;;  %s7446_s7 = int_to_ptr.vmem [resolvable:$true] %s203_s7 }
  0x15   : > { %9935 = sst [smem:[#allocation19_spill]] %s9934_s29  ;;  %s7346_s9 = smov [#allocation7]  }
  0x16   : > { %s9936_s30 = scalar_select %p7442_p8, 1, 0 }
  0x17   : > { %p6935_p9 = pneg %p7442_p8  ;;  %s217_s10 = sshll.u32 %s7346_s9, 4  ;;  %s7457_s10 = int_to_ptr.vmem [resolvable:$true] %s217_s10 }
  0x18   : > { %s7347_s11 = smov [#allocation8]   ;;  %s7107_s15 = scalar_lea.hbm %s9691_s1, 9216 }
  0x19   : > { %p7453_p11 = pnand %p6935_p9, %p7422_p1  ;;  %s7459_s12 = sshll.u32 %s7347_s11, 4  ;;  %s229_s12 = int_to_ptr.vmem [resolvable:$true] %s7459_s12 }
  0x1a   : > { %p7108_p12 = scmp.ne.s32.totalorder %s9691_s1, %s7107_s15  ;;  %p7114_p5 = scmp.lt.u32.totalorder %s7107_s15, %s9691_s1 }
  0x1b   : > { %p7469_p13 = pneg %p7453_p11 }
  0x1d   : > { %p7110_p0 = pnand %p7469_p13, %p7108_p12 }
  0x1f   : > { %p7111_p3 = pneg %p7110_p0 }
  0x21   : > { %p7116_p7 = pnand %p7114_p5, %p7111_p3 }
  0x23   : > { %7119 = shalt.err (!%p7116_p7)
}
  0x24   : > { %s7120_s9 = scalar_lea.vmem %s7446_s7, 9216  ;;  %p7128_p1 = scmp.lt.s32.totalorder %s7446_s7, %s7446_s7 }
  0x25   : > { %p7121_p9 = scmp.ne.s32.totalorder %s7446_s7, %s7120_s9  ;;  %p7129_p4 = scmp.lt.s32.totalorder %s7120_s9, %s7120_s9 }
  0x27   : > { %p7123_p10 = pnand %p7121_p9, %p7469_p13  ;;  %p7130_p12 = por %p7129_p4, %p7128_p1 }
  0x29   : > { %p7124_p6 = pneg %p7123_p10 }
  0x2b   : > { %p7131_p0 = pnand %p7130_p12, %p7124_p6 }
  0x2d   : > { %7134 = shalt.err (!%p7131_p0)
}
  0x2e   : > { %s9702_s11 = smov 64   ;;  %s7349_s13 = smov 4  }
  0x2f   : > { %6938 = dma.hbm_to_vmem [thread:$0]  (!%p7453_p11), %s9691_s1, 9216, %s7446_s7, [#allocation6], %s9702_s11, %s9702_s11, %s7349_s13  }
  0x30   : > { %s7135_s25 = scalar_lea.hbm %s9692_s2, 16 }
  0x31   : > { %p7136_p1 = scmp.ne.s32.totalorder %s9692_s2, %s7135_s25  ;;  %p7142_p10 = scmp.lt.u32.totalorder %s7135_s25, %s9692_s2 }
  0x33   : > { %p7138_p4 = pnand %p7136_p1, %p7469_p13 }
  0x35   : > { %p7139_p6 = pneg %p7138_p4 }
  0x37   : > { %p7144_p3 = pnand %p7142_p10, %p7139_p6 }
  0x39   : > { %7147 = shalt.err (!%p7144_p3)
}
  0x3a   : > { %s7148_s7 = scalar_lea.vmem %s7457_s10, 16  ;;  %s7155_s14 = scalar_lea.vmem %s7457_s10, 32 }
  0x3b   : > { %p7149_p5 = scmp.ne.s32.totalorder %s7457_s10, %s7148_s7  ;;  %p7156_p12 = scmp.lt.s32.totalorder %s7457_s10, %s7457_s10 }
  0x3c   : > { %p7157_p0 = scmp.lt.s32.totalorder %s7155_s14, %s7148_s7 }
  0x3d   : > { %p7151_p7 = pnand %p7149_p5, %p7469_p13 }
  0x3e   : > { %p7158_p1 = por %p7157_p0, %p7156_p12 }
  0x3f   : > { %p7152_p9 = pneg %p7151_p7 }
  0x41   : > { %p7159_p4 = pnand %p7158_p1, %p7152_p9 }
  0x43   : > { %7162 = shalt.err (!%p7159_p4)
}
  0x44   : > { %6941 = dma.hbm_to_vmem [thread:$0]  (!%p7453_p11), %s9692_s2, 16, %s7457_s10, [#allocation6]  }
  0x45   : > { %s7163_s17 = scalar_lea.hbm %s9693_s3, 16 }
  0x46   : > { %p7164_p6 = scmp.ne.s32.totalorder %s9693_s3, %s7163_s17  ;;  %p7170_p5 = scmp.lt.u32.totalorder %s7163_s17, %s9693_s3 }
  0x48   : > { %p7166_p10 = pnand %p7164_p6, %p7469_p13 }
  0x4a   : > { %p7167_p3 = pneg %p7166_p10 }
  0x4c   : > { %p7172_p7 = pnand %p7170_p5, %p7167_p3 }
  0x4e   : > { %7175 = shalt.err (!%p7172_p7)
}
  0x4f   : > { %s7176_s14 = scalar_lea.vmem %s229_s12, 16  ;;  %s7183_s10 = scalar_lea.vmem %s229_s12, 32 }
  0x50   : > { %p7177_p9 = scmp.ne.s32.totalorder %s229_s12, %s7176_s14  ;;  %p7184_p1 = scmp.lt.s32.totalorder %s229_s12, %s229_s12 }
  0x51   : > { %p7185_p4 = scmp.lt.s32.totalorder %s7183_s10, %s7176_s14 }
  0x52   : > { %p7179_p12 = pnand %p7177_p9, %p7469_p13 }
  0x53   : > { %p7186_p8 = por %p7185_p4, %p7184_p1 }
  0x54   : > { %p7180_p0 = pneg %p7179_p12 }
  0x56   : > { %p7187_p2 = pnand %p7186_p8, %p7180_p0 }
  0x58   : > { %7190 = shalt.err (!%p7187_p2)
}
  0x59   : > { %6944 = dma.hbm_to_vmem [thread:$0]  (!%p7453_p11), %s9693_s3, 16, %s229_s12, [#allocation9]  }
  0x5a   : > { %s48_s24 = sadd.s32 1, %s7331_s20  ;;  %s39_s15 = sadd.s32 1, %s7339_s22 }
  0x5b   : > { %p55_p2 = scmp.ne.s32.totalorder %s7331_s20, %s7327_s19  ;;  %p41_p8 = scmp.ge.s32.totalorder %s39_s15, 2 }
  0x5c   : > { %p56_p13 = scmp.eq.s32.totalorder %s7343_s23, 0  ;;  %p9939_p6 = scmp.ne.s32.totalorder %s9932_s27, 0 }
  0x5d   : > { %p6959_p3 = scmp.lt.s32.totalorder %s7343_s23, 2  ;;  %s10455_s15 = smov (%p41_p8, %s39_s15), 0 }
  0x5e   : > { %p7543_p10 = por %p9939_p6, %p55_p2  ;;  %p57_p5 = por %p56_p13, %p55_p2 }
  0x5f   : > { %s239_s16 = sand.u32 1, %s7331_s20   ;;  %s43_s17 = ssub.s32 %s7339_s22, %s10455_s15 }
  0x60   : > { %p46_p7 = scmp.eq.s32.totalorder %s43_s17, 0  ;;  %s6834_s12 = smul.u32 164, %s239_s16 }
  0x61   : > { %s6835_s25 = smul.u32 2624, %s7339_s22  ;;  %p7554_p11 = pnand %p6959_p3, %p57_p5 }
  0x62   : > { %s7559_s27 = scalar_select %p46_p7, %s7331_s20, %s48_s24  }
  0x63   : > { %s7564_s14 = scalar_lea.hbm %s9690_s0, %s6835_s25  ;;  %s243_s10 = scalar_lea.vmem [#allocation2], %s6834_s12 }
  0x64   : > { %s252_s18 = sshll.u32 %s243_s10, 4  ;;  %s7568_s29 = scalar_lea.sflag [#allocation3], %s239_s16  ;;  %s7566_s18 = int_to_ptr.vmem [resolvable:$true] %s252_s18 }
  0x65   : > { %s7191_s17 = scalar_lea.hbm %s7564_s14, 2624  ;;  %p7193_p12 = pneg %p7554_p11 }
  0x66   : > { %p7192_p9 = scmp.ne.s32.totalorder %s7564_s14, %s7191_s17  ;;  %s7196_s9 = scalar_lea.hbm %s9690_s0, 5248 }
  0x67   : > { %p7197_p4 = scmp.lt.u32.totalorder %s7564_s14, %s9690_s0  ;;  %p7198_p2 = scmp.lt.u32.totalorder %s7196_s9, %s7191_s17 }
  0x68   : > { %p7194_p0 = pnand %p7193_p12, %p7192_p9  ;;  %p7200_p13 = scmp.lt.u32.totalorder %s7191_s17, %s7564_s14 }
  0x69   : > { %p7199_p8 = por %p7198_p2, %p7197_p4 }
  0x6a   : > { %p7195_p1 = pneg %p7194_p0 }
  0x6b   : > { %p7201_p6 = por %p7200_p13, %p7199_p8 }
  0x6d   : > { %p7202_p3 = pnand %p7201_p6, %p7195_p1 }
  0x6f   : > { %7205 = shalt.err (!%p7202_p3)
}
  0x70   : > { %s7206_s16 = scalar_lea.vmem %s7566_s18, 2624  ;;  %s7350_s12 = smov [#allocation2]  }
  0x71   : > { %p7207_p5 = scmp.ne.s32.totalorder %s7566_s18, %s7206_s16  ;;  %s7211_s10 = sshll.u32 %s7350_s12, 4  ;;  %s7212_s10 = int_to_ptr.vmem [resolvable:$false] %s7211_s10 }
  0x72   : > { %s7213_s11 = scalar_lea.vmem %s7212_s10, 5248  ;;  %p7214_p0 = scmp.lt.s32.totalorder %s7566_s18, %s7212_s10 }
  0x73   : > { %p7209_p7 = pnand %p7207_p5, %p7193_p12  ;;  %p7215_p4 = scmp.lt.s32.totalorder %s7213_s11, %s7206_s16 }
  0x75   : > { %p7210_p9 = pneg %p7209_p7  ;;  %p7216_p2 = por %p7215_p4, %p7214_p0 }
  0x77   : > { %p7217_p8 = pnand %p7216_p2, %p7210_p9 }
  0x79   : > { %7220 = shalt.err (!%p7217_p8)
}
  0x7a   : > { %s9942_s17 = smov 64   ;;  %p9943_p12 = scmp.ne.s32.totalorder %s9936_s30, 0 }
  0x7b   : > { %6948 = dma.hbm_to_vmem [thread:$0]  (!%p7554_p11), %s7564_s14, 2624, %s7566_s18, %s7568_s29, %s9942_s17, %s9942_s17, %s7349_s13  }
  0x7c   : > { %264 = sbr.rel (%p9943_p12) target bundleno = 893 (0x37d), region = 36 }
  0x83   : > { %s7602_s24 = sand.u32 1, %s7327_s19   ;;  %p9944_p1 = scmp.ne.s32.totalorder %s9933_s28, 0 }
  0x84   : > { %s6836_s25 = smul.u32 164, %s7602_s24  ;;  %s267_s9 = scalar_lea.sflag [#allocation3], %s7602_s24 }
  0x86   : > { %s7606_s7 = scalar_lea.vmem [#allocation2], %s6836_s25 }
  0x87   : > { %7302 = dma.done.wait (%p9944_p1), %s267_s9, 2624  }
  0x88   : > { %7304 = vsyncadd (%p9944_p1), %s267_s9, 4294964672  ;;  %p9945_p11 = scmp.ne.s32.totalorder %s9931_s26, 0 }
  0x8a   : > { %7306 = dma.done.wait (%p9945_p11), [#allocation6], 9232  }
  0x8b   : > { %7308 = vsyncadd (%p9945_p11), [#allocation6], 4294958064 }
  0x8c   : > { %7310 = dma.done.wait (%p9945_p11), [#allocation9], 16  }
  0x8d   : > { %7312 = vsyncadd (%p9945_p11), [#allocation9], 4294967280  ;;  %v357_v0 = vlaneseq  ;;  %v9703_v4 = vmov 0   ;;  %v7022_v10 = vld [vmem:[#allocation5 + $0x40] sm:$0xff]   ;;  %v7024_v14 = vld [vmem:[#allocation5 + $0x48] sm:$0xff]   ;;  %s6837_s26 = smul.u32 144, %s7602_s24 }
  0x8e   : > { %v7627_v5 = vrot.slane %v9703_v4, 1  ;;  %v7023_v12 = vld [vmem:[#allocation5 + $0x100] sm:$0xff]   ;;  %6062 = vmatprep.subr.bf16.mxu1 %v7022_v10  ;;  %v7025_v16 = vld [vmem:[#allocation5 + $0x108] sm:$0xff]   ;;  %v7026_v18 = vld [vmem:[#allocation5 + $0x50] sm:$0xff]   ;;  %vm9721_vm13 = vsmask.f32 7424 }
  0x8f   : > { %v7620_v1 = vshrl.u32 %v357_v0, 7  ;;  %6270 = vmatprep.subr.bf16.mxu0 %v7023_v12  ;;  %6063 = vmatpush3.bf16.msra.mxu1 %v7022_v10  ;;  %v7027_v20 = vld [vmem:[#allocation5 + $0x110] sm:$0xff]   ;;  %v7028_v26 = vld [vmem:[#allocation5 + $0x58] sm:$0xff]   ;;  %v7030_v32 = vld [vmem:[#allocation5 + $0x60] sm:$0xff]   ;;  %s9479_s28 = scalar_lea.vmem [#allocation10], %s6837_s26  ;;  %s6916_s30 = smul.u32 2304, %s7335_s21 }
  0x90   : > { %6271 = vmatpush3.bf16.msra.mxu0 %v7023_v12  ;;  %6064 = vmatprep.subr.bf16.mxu1 %v7024_v14  ;;  %v7029_v30 = vld [vmem:[#allocation5 + $0x118] sm:$0xff]   ;;  %v7031_v34 = vld [vmem:[#allocation5 + $0x120] sm:$0xff]   ;;  %v7032_v37 = vld [vmem:[#allocation5 + $0x68] sm:$0xff]   ;;  %s5253_s13 = sshll.u32 %s9479_s28, 4  ;;  %s5233_s29 = scalar_lea.sflag [#allocation4], %s7602_s24  ;;  %s9608_s13 = int_to_ptr.vmem [resolvable:$true] %s5253_s13 }
  0x91   : > { %9946 = vst [vmem:[#allocation20_spill] sm:$0xff] %v7620_v1  ;;  %v7623_v2 = vadd.s32 16, %v7620_v1  ;;  %v361_v3 = vadd.s32 24, %v7620_v1  ;;  %v7637_v11 = vadd.s32 32, %v7620_v1  ;;  %v7640_v13 = vadd.s32 40, %v7620_v1  ;;  %6272 = vmatprep.subr.bf16.mxu0 %v7025_v16  ;;  %v7033_v39 = vld [vmem:[#allocation5 + $0x128] sm:$0xff]   ;;  %s9602_s18 = scalar_lea.hbm %s9694_s4, %s6916_s30 }
  0x92   : > { %v7643_v15 = vadd.s32 48, %v7620_v1  ;;  %v7648_v23 = vadd.s32 56, %v7620_v1  ;;  %v7651_v24 = vadd.s32 64, %v7620_v1  ;;  %v7654_v25 = vadd.s32 72, %v7620_v1  ;;  %v5793_v41 = vld [vmem:[%s7606_s7 + $0x8] sm:$0xff]   ;;  %v5794_v50 = vld [vmem:[%s7606_s7 + $0x10] sm:$0xff]  }
  0x93   : > { %v7630_v6 = vmul.u32.u64.low 3817748708, %v7623_v2  ;;  %v7631_v7 = vmul.u32.u64.high 3817748708, %v7623_v2, %v7630_v6  ;;  %v7633_v8 = vmul.u32.u64.low 3817748708, %v361_v3  ;;  %v7634_v9 = vmul.u32.u64.high 3817748708, %v361_v3, %v7633_v8  ;;  %6065 = vmatpush3.bf16.msra.mxu1 %v7024_v14  ;;  %v7674_v42 = vld [vmem:[#allocation7] ss:$0 sm:$0xff] }
  0x94   : > { %6273 = vmatpush3.bf16.msra.mxu0 %v7025_v16  ;;  %6066 = vmatprep.subr.bf16.mxu1 %v7026_v18  ;;  %vm1099_vm0 = vcmp.ge.s32.totalorder %v7623_v2, 18  ;;  %v7659_v29 = vadd.s32 80, %v7620_v1  ;;  %v7662_v31 = vadd.s32 88, %v7620_v1  ;;  %v7665_v33 = vadd.s32 96, %v7620_v1  ;;  %v7687_v49 = vld [vmem:[#allocation8] ss:$0 sm:$0xff] }
  0x95   : > { %v469_v17 = vshrl.u32 %v7631_v7, 4  ;;  %v480_v19 = vshrl.u32 %v7634_v9, 4  ;;  %6274 = vmatprep.subr.bf16.mxu0 %v7027_v20  ;;  %v7668_v35 = vadd.s32 104, %v7620_v1  ;;  %v7671_v40 = vadd.s32 112, %v7620_v1  ;;  %v7034_v54 = vld [vmem:[#allocation5 + $0x70] sm:$0xff]   ;;  %s7221_s16 = scalar_lea.vmem %s9608_s13, 2304 }
  0x96   : > { %v7677_v43 = vmul.u32.u64.low 3817748708, %v7637_v11  ;;  %v7678_v44 = vmul.u32.u64.high 3817748708, %v7637_v11, %v7677_v43  ;;  %v7681_v45 = vadd.s32 120, %v7620_v1  ;;  %v5633_v46 = vunpack.c.l.bf16 %v5793_v41  ;;  %v5795_v57 = vld [vmem:[%s7606_s7 + $0x18] sm:$0xff]   ;;  %p7222_p13 = scmp.ne.s32.totalorder %s9608_s13, %s7221_s16  ;;  %s7354_s12 = smov [#allocation10]  }
  0x97   : > { %v470_v21 = vmul.u32 18, %v469_v17  ;;  %v481_v22 = vmul.u32 18, %v480_v19  ;;  %6067 = vmatpush3.bf16.msra.mxu1 %v7026_v18  ;;  %v5634_v47 = vunpack.c.h.bf16 %v5793_v41  ;;  %v7691_v51 = vadd.s32 128, %v7620_v1  ;;  %v7035_v58 = vld [vmem:[#allocation5 + $0x130] sm:$0xff]   ;;  %v7036_v19 = vld [vmem:[#allocation5 + $0x78] sm:$0xff]   ;;  %s7225_s10 = sshll.u32 %s7354_s12, 4  ;;  %s7226_s10 = int_to_ptr.vmem [resolvable:$false] %s7225_s10 }
  0x98   : > { %6275 = vmatpush3.bf16.msra.mxu0 %v7027_v20  ;;  %6068 = vmatprep.subr.bf16.mxu1 %v7028_v26  ;;  %v5637_v53 = vunpack.c.l.bf16 %v5794_v50  ;;  %v1434_v55 = vmul.f32 %v5633_v46, %v7674_v42  ;;  %v5638_v59 = vunpack.c.h.bf16 %v5794_v50  ;;  %v491_v60 = vshrl.u32 %v7678_v44, 4  ;;  %p7223_p6 = pnand %p7222_p13, %p7543_p10  ;;  %s7227_s11 = scalar_lea.vmem %s7226_s10, 4608 }
  0x99   : > { %v471_v27 = vsub.s32 %v7623_v2, %v470_v21  ;;  %v482_v28 = vsub.s32 %v361_v3, %v481_v22  ;;  %6276 = vmatprep.subr.bf16.mxu0 %v7029_v30  ;;  %v1435_v56 = vmul.f32 %v5634_v47, %v7674_v42  ;;  %v5641_v6 = vunpack.c.l.bf16 %v5795_v57  ;;  %v7768_v47 = vld [vmem:[#allocation5] sm:$0xff]   ;;  %p7228_p5 = scmp.lt.s32.totalorder %s9608_s13, %s7226_s10  ;;  %p7229_p7 = scmp.lt.s32.totalorder %s7227_s11, %s7221_s16 }
  0x9a   : > { %v7706_v61 = vmul.u32.u64.low 3817748708, %v7640_v13  ;;  %v7707_v62 = vmul.u32.u64.high 3817748708, %v7640_v13, %v7706_v61  ;;  %v7716_v0 = vadd.f32 %v7687_v49, %v1434_v55  ;;  %v1436_v3 = vmul.f32 %v5637_v53, %v7674_v42  ;;  %v7773_v53 = vld [vmem:[#allocation5 + $0x140] sm:$0xff]   ;;  %p7224_p3 = pneg %p7223_p6 }
  0x9b   : > { %vm894_vm1 = vcmp.ne.s32.totalorder %v471_v27, 0  ;;  %vm895_vm2 = vcmp.ne.s32.totalorder %v482_v28, 0  ;;  %vm935_vm3 = vcmp.lt.s32.totalorder %v471_v27, 0  ;;  %v1017_v36 = vadd.s32 18, %v471_v27  ;;  %6069 = vmatpush3.bf16.msra.mxu1 %v7028_v26  ;;  %p7230_p9 = por %p7229_p7, %p7228_p5 }
  0x9c   : > { %vm936_vm4 = vcmp.lt.s32.totalorder %v482_v28, 0  ;;  %v1018_v38 = vadd.s32 18, %v482_v28  ;;  %6277 = vmatpush3.bf16.msra.mxu0 %v7029_v30  ;;  %6070 = vmatprep.subr.bf16.mxu1 %v7030_v32  ;;  %vm976_vm5 = vmand %vm935_vm3, %vm894_vm1  ;;  %v7719_v2 = vadd.f32 %v7687_v49, %v1435_v56  ;;  %v492_v8 = vmul.u32 18, %v491_v60 }
  0x9d   : > { %6278 = vmatprep.subr.bf16.mxu0 %v7031_v34  ;;  %vm977_vm6 = vmand %vm936_vm4, %vm895_vm2  ;;  %v7685_v48 = vsel %vm976_vm5, %v1017_v36, %v471_v27  ;;  %v1437_v9 = vmul.f32 %v5638_v59, %v7674_v42  ;;  %v5642_v10 = vunpack.c.h.bf16 %v5795_v57  ;;  %v7732_v12 = vadd.s32 136, %v7620_v1  ;;  %v7037_v27 = vld [vmem:[#allocation5 + $0x138] sm:$0xff]   ;;  %p7231_p0 = pnand %p7230_p9, %p7224_p3 }
  0x9e   : > { %9947 = vst [vmem:[#allocation21_spill] sm:$0xff] %v7685_v48  ;;  %v7693_v52 = vsel %vm977_vm6, %v1018_v38, %v482_v28  ;;  %vm1222_vm7 = vcmp.ge.s32.totalorder %v7685_v48, 1  ;;  %vm1304_vm8 = vcmp.le.s32.totalorder %v7685_v48, 16  ;;  %v9711_v14 = vmax.f32 %v7716_v0, 0.0 }
  0x9f   : > { %9948 = vst [vmem:[#allocation22_spill] sm:$0xff] %v7693_v52  ;;  %6071 = vmatpush3.bf16.msra.mxu1 %v7030_v32  ;;  %vm1223_vm9 = vcmp.ge.s32.totalorder %v7693_v52, 1  ;;  %vm1263_vm10 = vmand %vm1099_vm0, %vm1222_vm7  ;;  %vm1305_vm11 = vcmp.le.s32.totalorder %v7693_v52, 16  ;;  %v9710_v16 = vmax.f32 %v7719_v2, 0.0  ;;  %v7737_v17 = vadd.f32 %v7687_v49, %v1436_v3 }
  0xa0   : > { %6279 = vmatpush3.bf16.msra.mxu0 %v7031_v34  ;;  %6072 = vmatprep.subr.bf16.mxu1 %v7032_v37  ;;  %vm7711_vm12 = vmand %vm1263_vm10, %vm1304_vm8  ;;  %v1438_v18 = vmul.f32 %v5641_v6, %v7674_v42  ;;  %v493_v20 = vsub.s32 %v7637_v11, %v492_v8  ;;  %v502_v21 = vshrl.u32 %v7707_v62, 4  ;;  %v7743_v22 = vadd.f32 %v7687_v49, %v1437_v9 }
  0xa1   : > { %6280 = vmatprep.subr.bf16.mxu0 %v7033_v39  ;;  %vm7726_vm14 = vmand %vm1223_vm9, %vm1305_vm11  ;;  %v1439_v26 = vmul.f32 %v5642_v10, %v7674_v42  ;;  %v1646_v28 = vsel %vm7711_vm12, %v9711_v14, 0.0  ;;  %v9708_v11 = vmax.f32 %v7737_v17, 0.0  ;;  %v9956_v6 = vmov 0 }
  0xa2   : > { %v1647_v30 = vsel %vm7726_vm14, %v9710_v16, 0.0  ;;  %v7756_v32 = vadd.f32 %v7687_v49, %v1438_v18  ;;  %v503_v36 = vmul.u32 18, %v502_v21  ;;  %vm896_vm15 = vcmp.ne.s32.totalorder %v493_v20, 0 }
  0xa3   : > { %6073 = vmatpush3.bf16.msra.mxu1 %v7032_v37  ;;  %v7758_v34 = vpack.c.bf16 %v1647_v30, %v1646_v28  ;;  %vm937_vm0 = vcmp.lt.s32.totalorder %v493_v20, 0  ;;  %v1019_v37 = vadd.s32 18, %v493_v20  ;;  %v9707_v38 = vmax.f32 %v7743_v22, 0.0 }
  0xa4   : > { %6281 = vmatpush3.bf16.msra.mxu0 %v7033_v39  ;;  %6074 = vmatprep.subr.bf16.mxu1 %v7034_v54  ;;  %vm978_vm1 = vmand %vm937_vm0, %vm896_vm15  ;;  %v7762_v39 = vmul.u32.u64.low 3817748708, %v7643_v15  ;;  %v7763_v41 = vmul.u32.u64.high 3817748708, %v7643_v15, %v7762_v39  ;;  %v504_v44 = vsub.s32 %v7640_v13, %v503_v36  ;;  %v7771_v50 = vadd.f32 %v7687_v49, %v1439_v26 }
  0xa5   : > { %6282 = vmatprep.subr.bf16.mxu0 %v7035_v58  ;;  %9953 = vst [vmem:[#allocation23_spill] sm:$0xff] %v7758_v34  ;;  %v1746_v43 = vshll.u32 %v7758_v34, 16  ;;  %v1750_v46 = vshrl.u32 %v7758_v34, 16  ;;  %v7778_v55 = vmul.u32.u64.low 3817748708, %v7648_v23  ;;  %v7779_v56 = vmul.u32.u64.high 3817748708, %v7648_v23, %v7778_v55 }
  0xa6   : > { %v9706_v57 = vmax.f32 %v7756_v32, 0.0  ;;  %vm897_vm2 = vcmp.ne.s32.totalorder %v504_v44, 0  ;;  %vm938_vm3 = vcmp.lt.s32.totalorder %v504_v44, 0  ;;  %v1020_v59 = vadd.s32 18, %v504_v44 }
  0xa7   : > { %6075 = vmatpush3.bf16.msra.mxu1 %v7034_v54  ;;  %v7775_v54 = vsel %vm978_vm1, %v1019_v37, %v493_v20  ;;  %v1748_v13 = vrot.slane %v1746_v43, 1  ;;  %vm979_vm4 = vmand %vm938_vm3, %vm897_vm2  ;;  %v7785_v60 = vrot.slane %v1750_v46, 1  ;;  %v7787_v61 = vrot.slane %v1746_v43, 2 }
  0xa8   : > { %6283 = vmatpush3.bf16.msra.mxu0 %v7035_v58  ;;  %6076 = vmatprep.subr.bf16.mxu1 %v7036_v19  ;;  %9954 = vst [vmem:[#allocation24_spill] sm:$0xff] %v7775_v54  ;;  %v5796_v58 = vld [vmem:[%s7606_s7 + $0x20] sm:$0xff]   ;;  %vm1224_vm5 = vcmp.ge.s32.totalorder %v7775_v54, 1  ;;  %vm1306_vm6 = vcmp.le.s32.totalorder %v7775_v54, 16  ;;  %v7791_v3 = vsel %vm979_vm4, %v1020_v59, %v504_v44  ;;  %v513_v9 = vshrl.u32 %v7763_v41, 4 }
  0xa9   : > { %6284 = vmatprep.subr.bf16.mxu0 %v7037_v27  ;;  %v1749_v62 = vsel %vm9721_vm13, %v7627_v5, %v1748_v13  ;;  %9955 = vst [vmem:[#allocation25_spill] sm:$0xff] %v7791_v3  ;;  %vm7793_vm7 = vmand %vm1224_vm5, %vm1306_vm6  ;;  %v1752_v8 = vor.u32 %v1750_v46, %v1748_v13  ;;  %vm1225_vm8 = vcmp.ge.s32.totalorder %v7791_v3, 1  ;;  %vm1307_vm9 = vcmp.le.s32.totalorder %v7791_v3, 16 }
  0xaa   : > { %v9957_v6 = vsel %vm7793_vm7, 4294967295, %v9956_v6  ;;  %6078 = vmatprep.mubr.bf16.mxu1 %v1749_v62  ;;  %v1648_v5 = vsel %vm7793_vm7, %v9708_v11, 0.0  ;;  %vm9738_vm10 = vsmask.f32 6400  ;;  %v3015_v10 = vor.u32 %v7787_v61, %v7785_v60  ;;  %vm7808_vm11 = vmand %vm1225_vm8, %vm1307_vm9 }
  0xab   : > { %6077 = vmatpush3.bf16.msra.mxu1 %v7036_v19  ;;  %v9958_v18 = vmov 0  ;;  %v514_v19 = vmul.u32 18, %v513_v9  ;;  %v524_v20 = vshrl.u32 %v7779_v56, 4  ;;  %v9705_v21 = vmax.f32 %v7771_v50, 0.0 }
  0xac   : > { %6285 = vmatpush3.bf16.msra.mxu0 %v7037_v27  ;;  %6114 = vmatprep.subr.bf16.mxu1 %v7768_v47  ;;  %v9959_v18 = vsel %vm7808_vm11, 4294967295, %v9958_v18  ;;  %v5645_v26 = vunpack.c.l.bf16 %v5796_v58  ;;  %v7815_v27 = vld [vmem:[%s7606_s7 + $0x28] sm:$0xff]   ;;  %v1649_v28 = vsel %vm7808_vm11, %v9707_v38, 0.0  ;;  %v5646_v30 = vunpack.c.h.bf16 %v5796_v58 }
  0xad   : > { %6322 = vmatprep.subr.bf16.mxu0 %v7773_v53  ;;  %v7822_v36 = vmul.u32.u64.low 3817748708, %v7651_v24  ;;  %v7823_v37 = vmul.u32.u64.high 3817748708, %v7651_v24, %v7822_v36  ;;  %v7825_v39 = vpack.c.bf16 %v1649_v28, %v1648_v5  ;;  %v515_v41 = vsub.s32 %v7643_v15, %v514_v19  ;;  %v7042_v28 = vld [vmem:[#allocation5 + $0x8] sm:$0xff]   ;;  %v7050_v38 = vld [vmem:[#allocation5 + $0x20] sm:$0xff]  }
  0xae   : > { %v525_v43 = vmul.u32 18, %v524_v20  ;;  %v1440_v44 = vmul.f32 %v5645_v26, %v7674_v42  ;;  %v7830_v46 = vmul.u32.u64.low 3817748708, %v7654_v25  ;;  %v7831_v55 = vmul.u32.u64.high 3817748708, %v7654_v25, %v7830_v46 }
  0xaf   : > { %9960 = vst [vmem:[#allocation26_spill] sm:$0xff] %v7825_v39  ;;  %v1441_v56 = vmul.f32 %v5646_v30, %v7674_v42  ;;  %v5649_v13 = vunpack.c.l.bf16 %v7815_v27  ;;  %v7836_v58 = vshll.u32 %v7825_v39, 16  ;;  %v7839_v59 = vshrl.u32 %v7825_v39, 16 }
  0xb0   : > { %v526_v60 = vsub.s32 %v7648_v23, %v525_v43  ;;  %vm898_vm15 = vcmp.ne.s32.totalorder %v515_v41, 0  ;;  %vm939_vm0 = vcmp.lt.s32.totalorder %v515_v41, 0  ;;  %v1021_v15 = vadd.s32 18, %v515_v41 }
  0xb1   : > { %9961 = vst [vmem:[#allocation27_spill] sm:$0xff] %v7836_v58  ;;  %9962 = vst [vmem:[#allocation28_spill] sm:$0xff] %v7839_v59  ;;  %v535_v61 = vshrl.u32 %v7823_v37, 4  ;;  %v7844_v62 = vadd.f32 %v7687_v49, %v1440_v44  ;;  %v3016_v9 = vrot.slane %v7839_v59, 1  ;;  %v3017_v5 = vrot.slane %v7836_v58, 2 }
  0xb2   : > { %v1756_v19 = vrot.slane %v7836_v58, 1  ;;  %vm899_vm1 = vcmp.ne.s32.totalorder %v526_v60, 0  ;;  %vm980_vm2 = vmand %vm939_vm0, %vm898_vm15  ;;  %vm940_vm3 = vcmp.lt.s32.totalorder %v526_v60, 0  ;;  %v1022_v20 = vadd.s32 18, %v526_v60  ;;  %v5802_v58 = vld [vmem:[%s7606_s7 + $0x50] sm:$0xff]  }
  0xb3   : > { %v7849_v26 = vsel %vm980_vm2, %v1021_v15, %v515_v41  ;;  %v536_v23 = vmul.u32 18, %v535_v61  ;;  %v7851_v30 = vor.u32 %v3017_v5, %v3016_v9  ;;  %vm981_vm4 = vmand %vm940_vm3, %vm899_vm1  ;;  %v9965_v43 = vmov 0  ;;  %v7045_v15 = vld [vmem:[#allocation5 + $0x10] sm:$0xff]  }
  0xb4   : > { %9963 = vst [vmem:[#allocation29_spill] sm:$0xff] %v7849_v26  ;;  %v1757_v36 = vsel %vm9721_vm13, %v1752_v8, %v1756_v19  ;;  %vm1226_vm5 = vcmp.ge.s32.totalorder %v7849_v26, 1  ;;  %vm1308_vm6 = vcmp.le.s32.totalorder %v7849_v26, 16  ;;  %v7856_v37 = vsel %vm981_vm4, %v1022_v20, %v526_v60 }
  0xb5   : > { %6079 = vmatmul.mubr.bf16.vlgmr.msra.gmra.mrb[0].mxu1 %v1757_v36  ;;  %9964 = vst [vmem:[#allocation30_spill] sm:$0xff] %v7856_v37  ;;  %vm7858_vm8 = vmand %vm1226_vm5, %vm1308_vm6  ;;  %v1760_v41 = vor.u32 %v7839_v59, %v1756_v19  ;;  %v537_v44 = vsub.s32 %v7651_v24, %v536_v23  ;;  %v546_v46 = vshrl.u32 %v7831_v55, 4  ;;  %v3019_v8 = vsel %vm9738_vm10, %v3015_v10, %v7851_v30 }
  0xb6   : > { %v9966_v43 = vsel %vm7858_vm8, 4294967295, %v9965_v43  ;;  %vm1227_vm9 = vcmp.ge.s32.totalorder %v7856_v37, 1  ;;  %vm1309_vm15 = vcmp.le.s32.totalorder %v7856_v37, 16  ;;  %v1650_v60 = vsel %vm7858_vm8, %v9706_v57, 0.0  ;;  %6115 = vmatpush3.bf16.msra.mxu1 %v7768_v47  ;;  %6286 = vmatprep.mubr.bf16.mxu0 %v3019_v8  ;;  %v7048_v8 = vld [vmem:[#allocation5 + $0x18] sm:$0xff]  }
  0xb7   : > { %vm7874_vm0 = vmand %vm1227_vm9, %vm1309_vm15  ;;  %v9967_v24 = vmov 0  ;;  %v547_v55 = vmul.u32 18, %v546_v46  ;;  %vm900_vm1 = vcmp.ne.s32.totalorder %v537_v44, 0  ;;  %vm941_vm2 = vcmp.lt.s32.totalorder %v537_v44, 0  ;;  %6116 = vmatprep.subr.bf16.mxu1 %v7042_v28  ;;  %v7923_v57 = vld [vmem:[%s7606_s7 + $0x38] sm:$0xff]  }
  0xb8   : > { %v9968_v24 = vsel %vm7874_vm0, 4294967295, %v9967_v24  ;;  %v1023_v10 = vadd.s32 18, %v537_v44  ;;  %v1651_v61 = vsel %vm7874_vm0, %v9705_v21, 0.0  ;;  %vm982_vm3 = vmand %vm941_vm2, %vm900_vm1  ;;  %v7883_v9 = vadd.f32 %v7687_v49, %v1441_v56 }
  0xb9   : > { %v9709_v47 = vmax.f32 %v7844_v62, 0.0  ;;  %v5650_v5 = vunpack.c.h.bf16 %v7815_v27  ;;  %v7887_v19 = vpack.c.bf16 %v1651_v61, %v1650_v60  ;;  %v548_v20 = vsub.s32 %v7654_v25, %v547_v55 }
  0xba   : > { %v7890_v23 = vsel %vm982_vm3, %v1023_v10, %v537_v44  ;;  %v1442_v36 = vmul.f32 %v5649_v13, %v7674_v42  ;;  %6117 = vmatpush3.bf16.msra.mxu1 %v7042_v28  ;;  %v9973_v13 = vmov 0  ;;  %v5798_v10 = vld [vmem:[%s7606_s7 + $0x30] sm:$0xff]   ;;  %v10002_v48 = vmov 0 }
  0xbb   : > { %9969 = vst [vmem:[#allocation31_spill] sm:$0xff] %v7887_v19  ;;  %9970 = vst [vmem:[#allocation32_spill] sm:$0xff] %v7890_v23  ;;  %vm1228_vm4 = vcmp.ge.s32.totalorder %v7890_v23, 1  ;;  %vm1310_vm5 = vcmp.le.s32.totalorder %v7890_v23, 16  ;;  %v1443_v46 = vmul.f32 %v5650_v5, %v7674_v42  ;;  %v7898_v27 = vshll.u32 %v7887_v19, 16  ;;  %6118 = vmatprep.subr.bf16.mxu1 %v7045_v15  ;;  %v7052_v23 = vld [vmem:[#allocation5 + $0x28] sm:$0xff]  }
  0xbc   : > { %v7901_v25 = vshrl.u32 %v7887_v19, 16  ;;  %vm901_vm6 = vcmp.ne.s32.totalorder %v548_v20, 0  ;;  %vm942_vm9 = vcmp.lt.s32.totalorder %v548_v20, 0  ;;  %vm7903_vm15 = vmand %vm1228_vm4, %vm1310_vm5  ;;  %v1024_v44 = vadd.s32 18, %v548_v20 }
  0xbd   : > { %9971 = vst [vmem:[#allocation33_spill] sm:$0xff] %v7898_v27  ;;  %v9974_v13 = vsel %vm7903_vm15, 4294967295, %v9973_v13  ;;  %vm983_vm1 = vmand %vm942_vm9, %vm901_vm6  ;;  %v1652_v28 = vsel %vm7903_vm15, %v9709_v47, 0.0  ;;  %v7912_v60 = vmul.u32.u64.low 3817748708, %v7659_v29  ;;  %v7913_v55 = vmul.u32.u64.high 3817748708, %v7659_v29, %v7912_v60 }
  0xbe   : > { %9972 = vst [vmem:[#allocation34_spill] sm:$0xff] %v7901_v25  ;;  %v3020_v61 = vrot.slane %v7901_v25, 1  ;;  %v3021_v5 = vrot.slane %v7898_v27, 2  ;;  %v1764_v4 = vrot.slane %v7898_v27, 1  ;;  %v7920_v21 = vadd.f32 %v7687_v49, %v1442_v36  ;;  %6119 = vmatpush3.bf16.msra.mxu1 %v7045_v15  ;;  %v7040_v36 = vld [vmem:[#allocation5 + $0x148] sm:$0xff]  }
  0xbf   : > { %v7925_v11 = vsel %vm983_vm1, %v1024_v44, %v548_v20  ;;  %v7928_v47 = vmul.u32.u64.low 3817748708, %v7662_v31  ;;  %v7929_v16 = vmul.u32.u64.high 3817748708, %v7662_v31, %v7928_v47  ;;  %v7932_v60 = vadd.f32 %v7687_v49, %v1443_v46  ;;  %6120 = vmatprep.subr.bf16.mxu1 %v7048_v8 }
  0xc0   : > { %9975 = vst [vmem:[#allocation35_spill] sm:$0xff] %v7925_v11  ;;  %v7934_v14 = vor.u32 %v3021_v5, %v3020_v61  ;;  %v1765_v56 = vsel %vm9721_vm13, %v1760_v41, %v1764_v4  ;;  %vm1229_vm2 = vcmp.ge.s32.totalorder %v7925_v11, 1  ;;  %vm1311_vm3 = vcmp.le.s32.totalorder %v7925_v11, 16 }
  0xc1   : > { %6082 = vmatprep.mubr.bf16.mxu1 %v1765_v56  ;;  %vm7939_vm4 = vmand %vm1229_vm2, %vm1311_vm3  ;;  %v9976_v20 = vmov 0  ;;  %v1768_v47 = vor.u32 %v7901_v25, %v1764_v4  ;;  %v557_v46 = vshrl.u32 %v7913_v55, 4  ;;  %v9978_v61 = vmax.f32 %v7883_v9, 0.0 }
  0xc2   : > { %v9977_v20 = vsel %vm7939_vm4, 4294967295, %v9976_v20  ;;  %v3023_v41 = vsel %vm9738_vm10, %v7851_v30, %v7934_v14  ;;  %v5653_v5 = vunpack.c.l.bf16 %v5798_v10  ;;  %v5654_v11 = vunpack.c.h.bf16 %v5798_v10  ;;  %6121 = vmatpush3.bf16.msra.mxu1 %v7048_v8 }
  0xc3   : > { %v1653_v56 = vsel %vm7939_vm4, %v9978_v61, 0.0  ;;  %6287 = vmatmul.mubr.bf16.vlgmr.msra.gmra.mrb[0].mxu0 %v3023_v41  ;;  %v558_v55 = vmul.u32 18, %v557_v46  ;;  %v568_v15 = vshrl.u32 %v7929_v16, 4  ;;  %v5657_v44 = vunpack.c.l.bf16 %v7923_v57  ;;  %6122 = vmatprep.subr.bf16.mxu1 %v7050_v38 }
  0xc4   : > { %v7954_v4 = vpack.c.bf16 %v1653_v56, %v1652_v28  ;;  %6323 = vmatpush3.bf16.msra.mxu0 %v7773_v53  ;;  %v7960_v30 = vmul.u32.u64.low 3817748708, %v7665_v33  ;;  %v7961_v37 = vmul.u32.u64.high 3817748708, %v7665_v33, %v7960_v30  ;;  %v7041_v53 = vld [vmem:[#allocation5 + $0x150] sm:$0xff]   ;;  %v1444_v46 = vmul.f32 %v5653_v5, %v7674_v42  ;;  %v7984_v5 = vld [vmem:[%s7606_s7 + $0x40] sm:$0xff]  }
  0xc5   : > { %v7964_v61 = vmul.u32.u64.low 3817748708, %v7668_v35  ;;  %v7965_v3 = vmul.u32.u64.high 3817748708, %v7668_v35, %v7964_v61  ;;  %6324 = vmatprep.subr.bf16.mxu0 %v7040_v36  ;;  %v559_v8 = vsub.s32 %v7659_v29, %v558_v55  ;;  %v569_v10 = vmul.u32 18, %v568_v15  ;;  %v7043_v15 = vld [vmem:[#allocation5 + $0x158] sm:$0xff]  }
  0xc6   : > { %9979 = vst [vmem:[#allocation36_spill] sm:$0xff] %v7954_v4  ;;  %v7968_v28 = vshll.u32 %v7954_v4, 16  ;;  %v7971_v16 = vshrl.u32 %v7954_v4, 16  ;;  %v1445_v41 = vmul.f32 %v5654_v11, %v7674_v42  ;;  %v5658_v56 = vunpack.c.h.bf16 %v7923_v57  ;;  %6123 = vmatpush3.bf16.msra.mxu1 %v7050_v38 }
  0xc7   : > { %v1446_v30 = vmul.f32 %v5657_v44, %v7674_v42  ;;  %v570_v52 = vsub.s32 %v7662_v31, %v569_v10  ;;  %vm902_vm5 = vcmp.ne.s32.totalorder %v559_v8, 0  ;;  %vm943_vm6 = vcmp.lt.s32.totalorder %v559_v8, 0  ;;  %6124 = vmatprep.subr.bf16.mxu1 %v7052_v23  ;;  %v7054_v31 = vld [vmem:[#allocation5 + $0x30] sm:$0xff]   ;;  %v7044_v10 = vld [vmem:[#allocation5 + $0x160] sm:$0xff]  }
  0xc8   : > { %9980 = vst [vmem:[#allocation37_spill] sm:$0xff] %v7968_v28  ;;  %9981 = vst [vmem:[#allocation38_spill] sm:$0xff] %v7971_v16  ;;  %v3024_v61 = vrot.slane %v7971_v16, 1  ;;  %v3025_v26 = vrot.slane %v7968_v28, 2  ;;  %v1772_v54 = vrot.slane %v7968_v28, 1  ;;  %6325 = vmatpush3.bf16.msra.mxu0 %v7040_v36  ;;  %v1025_v29 = vadd.s32 18, %v559_v8 }
  0xc9   : > { %v579_v11 = vshrl.u32 %v7961_v37, 4  ;;  %vm903_vm9 = vcmp.ne.s32.totalorder %v570_v52, 0  ;;  %vm944_vm1 = vcmp.lt.s32.totalorder %v570_v52, 0  ;;  %vm984_vm2 = vmand %vm943_vm6, %vm902_vm5  ;;  %6326 = vmatprep.subr.bf16.mxu0 %v7041_v53  ;;  %v1026_v38 = vadd.s32 18, %v570_v52  ;;  %v7049_v28 = vld [vmem:[#allocation5 + $0x178] sm:$0xff]  }
  0xca   : > { %v7986_v57 = vor.u32 %v3025_v26, %v3024_v61  ;;  %v1773_v44 = vsel %vm9721_vm13, %v1768_v47, %v1772_v54  ;;  %vm985_vm3 = vmand %vm944_vm1, %vm903_vm9  ;;  %v7989_v36 = vsel %vm984_vm2, %v1025_v29, %v559_v8  ;;  %v7992_v55 = vor.u32 %v7971_v16, %v1772_v54  ;;  %6125 = vmatpush3.bf16.msra.mxu1 %v7052_v23  ;;  %v7056_v16 = vld [vmem:[#allocation5 + $0x38] sm:$0xff]  }
  0xcb   : > { %6083 = vmatmul.mubr.bf16.gmra.mrb[4].mxu1 %v1773_v44  ;;  %9982 = vst [vmem:[#allocation39_spill] sm:$0xff] %v7989_v36  ;;  %v580_v37 = vmul.u32 18, %v579_v11  ;;  %vm1230_vm13 = vcmp.ge.s32.totalorder %v7989_v36, 1  ;;  %vm1312_vm4 = vcmp.le.s32.totalorder %v7989_v36, 16  ;;  %v590_v47 = vshrl.u32 %v7965_v3, 4  ;;  %6126 = vmatprep.subr.bf16.mxu1 %v7054_v31  ;;  %v7046_v36 = vld [vmem:[#allocation5 + $0x168] sm:$0xff]  }
  0xcc   : > { %v3027_v26 = vsel %vm9738_vm10, %v7934_v14, %v7986_v57  ;;  %v8000_v61 = vsel %vm985_vm3, %v1026_v38, %v570_v52  ;;  %vm8002_vm5 = vmand %vm1230_vm13, %vm1312_vm4  ;;  %v9984_v8 = vmov 0  ;;  %6327 = vmatpush3.bf16.msra.mxu0 %v7041_v53  ;;  %v8008_v14 = vadd.f32 %v7687_v49, %v1444_v46 }
  0xcd   : > { %6290 = vmatprep.mubr.bf16.mxu0 %v3027_v26  ;;  %9983 = vst [vmem:[#allocation40_spill] sm:$0xff] %v8000_v61  ;;  %v9985_v8 = vsel %vm8002_vm5, 4294967295, %v9984_v8  ;;  %v581_v54 = vsub.s32 %v7665_v33, %v580_v37  ;;  %v5661_v29 = vunpack.c.l.bf16 %v7984_v5  ;;  %vm1231_vm6 = vcmp.ge.s32.totalorder %v8000_v61, 1  ;;  %6328 = vmatprep.subr.bf16.mxu0 %v7043_v15 }
  0xce   : > { %9986 = vst [vmem:[#allocation41_spill] sm:$0xff] %v9985_v8  ;;  %vm1313_vm9 = vcmp.le.s32.totalorder %v8000_v61, 16  ;;  %v9987_v3 = vmax.f32 %v7920_v21, 0.0  ;;  %v591_v23 = vmul.u32 18, %v590_v47  ;;  %v9988_v53 = vmov 0  ;;  %6127 = vmatpush3.bf16.msra.mxu1 %v7054_v31 }
  0xcf   : > { %vm8017_vm13 = vmand %vm1231_vm6, %vm1313_vm9  ;;  %vm904_vm4 = vcmp.ne.s32.totalorder %v581_v54, 0  ;;  %vm945_vm1 = vcmp.lt.s32.totalorder %v581_v54, 0  ;;  %v1027_v33 = vadd.s32 18, %v581_v54  ;;  %v8022_v46 = vadd.f32 %v7687_v49, %v1445_v41  ;;  %6128 = vmatprep.subr.bf16.mxu1 %v7056_v16 }
  0xd0   : > { %v1654_v52 = vsel %vm8002_vm5, %v9987_v3, 0.0  ;;  %v9989_v53 = vsel %vm8017_vm13, 4294967295, %v9988_v53  ;;  %v9990_v11 = vmax.f32 %v7932_v60, 0.0  ;;  %v592_v38 = vsub.s32 %v7668_v35, %v591_v23  ;;  %vm986_vm2 = vmand %vm945_vm1, %vm904_vm4  ;;  %6329 = vmatpush3.bf16.msra.mxu0 %v7043_v15 }
  0xd1   : > { %v9731_v37 = vmax.f32 %v8008_v14, 0.0  ;;  %v1447_v26 = vmul.f32 %v5658_v56, %v7674_v42  ;;  %v8033_v3 = vsel %vm986_vm2, %v1027_v33, %v581_v54  ;;  %v8037_v61 = vadd.f32 %v7687_v49, %v1446_v30  ;;  %6330 = vmatprep.subr.bf16.mxu0 %v7044_v10 }
  0xd2   : > { %v1655_v44 = vsel %vm8017_vm13, %v9990_v11, 0.0  ;;  %9992 = vst [vmem:[#allocation43_spill] sm:$0xff] %v8033_v3  ;;  %vm905_vm3 = vcmp.ne.s32.totalorder %v592_v38, 0  ;;  %vm946_vm6 = vcmp.lt.s32.totalorder %v592_v38, 0  ;;  %v1028_v35 = vadd.s32 18, %v592_v38  ;;  %v7047_v11 = vld [vmem:[#allocation5 + $0x170] sm:$0xff]   ;;  %6129 = vmatpush3.bf16.msra.mxu1 %v7056_v16 }
  0xd3   : > { %v8031_v47 = vpack.c.bf16 %v1655_v44, %v1654_v52  ;;  %9993 = vst [vmem:[#allocation44_spill] sm:$0xff] %v8037_v61  ;;  %vm1232_vm9 = vcmp.ge.s32.totalorder %v8033_v3, 1  ;;  %vm987_vm4 = vmand %vm946_vm6, %vm905_vm3  ;;  %vm1314_vm1 = vcmp.le.s32.totalorder %v8033_v3, 16  ;;  %v8048_v15 = vadd.f32 %v7687_v49, %v1447_v26 }
  0xd4   : > { %v8050_v30 = vsel %vm987_vm4, %v1028_v35, %v592_v38  ;;  %vm8052_vm2 = vmand %vm1232_vm9, %vm1314_vm1  ;;  %v9998_v54 = vmov 0  ;;  %v8057_v52 = vmul.u32.u64.low 3817748708, %v7671_v40  ;;  %v8058_v23 = vmul.u32.u64.high 3817748708, %v7671_v40, %v8057_v52  ;;  %6331 = vmatpush3.bf16.msra.mxu0 %v7044_v10 }
  0xd5   : > { %9991 = vst [vmem:[#allocation42_spill] sm:$0xff] %v8031_v47  ;;  %v8041_v56 = vshll.u32 %v8031_v47, 16  ;;  %v8044_v31 = vshrl.u32 %v8031_v47, 16  ;;  %9996 = vst [vmem:[#allocation47_spill] sm:$0xff] %v8048_v15  ;;  %v9999_v54 = vsel %vm8052_vm2, 4294967295, %v9998_v54  ;;  %vm1233_vm3 = vcmp.ge.s32.totalorder %v8050_v30, 1  ;;  %6332 = vmatprep.subr.bf16.mxu0 %v7046_v36 }
  0xd6   : > { %9997 = vst [vmem:[#allocation48_spill] sm:$0xff] %v8050_v30  ;;  %10000 = vst [vmem:[#allocation49_spill] sm:$0xff] %v9999_v54  ;;  %vm1315_vm6 = vcmp.le.s32.totalorder %v8050_v30, 16  ;;  %v1656_v38 = vsel %vm8052_vm2, %v9731_v37, 0.0  ;;  %v8071_v35 = vmul.u32.u64.low 3817748708, %v7681_v45  ;;  %v8072_v52 = vmul.u32.u64.high 3817748708, %v7681_v45, %v8071_v35 }
  0xd7   : > { %9994 = vst [vmem:[#allocation45_spill] sm:$0xff] %v8041_v56  ;;  %9995 = vst [vmem:[#allocation46_spill] sm:$0xff] %v8044_v31  ;;  %v3028_v44 = vrot.slane %v8044_v31, 1  ;;  %v3029_v41 = vrot.slane %v8041_v56, 2  ;;  %v1780_v26 = vrot.slane %v8041_v56, 1  ;;  %v8083_v56 = vld [vmem:[%s7606_s7 + $0x48] sm:$0xff]  }
  0xd8   : > { %vm10001_vm9 = vsmask.f32 7424  ;;  %vm8076_vm4 = vmand %vm1233_vm3, %vm1315_vm6  ;;  %v10005_v37 = vmax.f32 %v8022_v46, 0.0  ;;  %6333 = vmatpush3.bf16.msra.mxu0 %v7046_v36  ;;  %vm10012_vm2 = vsmask.f32 6400  ;;  %v10232_v63 = vmax.f32 %v7756_v32, 0.0 }
  0xd9   : > { %v3030_v33 = vor.u32 %v3029_v41, %v3028_v44  ;;  %v1781_v3 = vsel %vm10001_vm9, %v7992_v55, %v1780_v26  ;;  %v10003_v48 = vsel %vm8076_vm4, 4294967295, %v10002_v48  ;;  %v1784_v10 = vor.u32 %v8044_v31, %v1780_v26  ;;  %6334 = vmatprep.subr.bf16.mxu0 %v7047_v11  ;;  %vm10010_vm6 = vmmov %vm10001_vm9 }
  0xda   : > { %10004 = vst [vmem:[#allocation50_spill] sm:$0xff] %v10003_v48  ;;  %6086 = vmatprep.mubr.bf16.mxu1 %v1781_v3  ;;  %v1657_v35 = vsel %vm8076_vm4, %v10005_v37, 0.0  ;;  %v601_v41 = vshrl.u32 %v8058_v23, 4  ;;  %v5662_v55 = vunpack.c.h.bf16 %v7984_v5  ;;  %v1448_v44 = vmul.f32 %v5661_v29, %v7674_v42 }
  0xdb   : > { %v3031_v26 = vsel %vm9738_vm10, %v7986_v57, %v3030_v33  ;;  %v8094_v30 = vpack.c.bf16 %v1657_v35, %v1656_v38  ;;  %v8097_v3 = vmul.u32.u64.low 3817748708, %v7691_v51  ;;  %v8098_v31 = vmul.u32.u64.high 3817748708, %v7691_v51, %v8097_v3 }
  0xdc   : > { %6291 = vmatmul.mubr.bf16.gmra.mrb[4].mxu0 %v3031_v26  ;;  %v602_v37 = vmul.u32 18, %v601_v41  ;;  %v612_v23 = vshrl.u32 %v8072_v52, 4  ;;  %v8102_v5 = vmul.u32.u64.low 3817748708, %v7732_v12  ;;  %v8103_v27 = vmul.u32.u64.high 3817748708, %v7732_v12, %v8102_v5 }
  0xdd   : > { %10006 = vst [vmem:[#allocation51_spill] sm:$0xff] %v8094_v30  ;;  %v8106_v29 = vshll.u32 %v8094_v30, 16  ;;  %v8109_v57 = vshrl.u32 %v8094_v30, 16  ;;  %v1449_v36 = vmul.f32 %v5662_v55, %v7674_v42  ;;  %v8113_v38 = vadd.f32 %v7687_v49, %v1448_v44  ;;  %6335 = vmatpush3.bf16.msra.mxu0 %v7047_v11 }
  0xde   : > { %v603_v35 = vsub.s32 %v7671_v40, %v602_v37  ;;  %v613_v52 = vmul.u32 18, %v612_v23  ;;  %v5665_v41 = vunpack.c.l.bf16 %v8083_v56  ;;  %v5666_v26 = vunpack.c.h.bf16 %v8083_v56  ;;  %6336 = vmatprep.subr.bf16.mxu0 %v7049_v28  ;;  %v8123_v37 = vld [vmem:[#allocation5 + $0x180] sm:$0xff]  }
  0xdf   : > { %10007 = vst [vmem:[#allocation52_spill] sm:$0xff] %v8106_v29  ;;  %10008 = vst [vmem:[#allocation53_spill] sm:$0xff] %v8109_v57  ;;  %v3032_v3 = vrot.slane %v8109_v57, 1  ;;  %v3033_v5 = vrot.slane %v8106_v29, 2  ;;  %v1788_v25 = vrot.slane %v8106_v29, 1  ;;  %v623_v55 = vshrl.u32 %v8098_v31, 4 }
  0xe0   : > { %10009 = vst [vmem:[#allocation54_spill] sm:$0xff] %v8113_v38  ;;  %v614_v44 = vsub.s32 %v7681_v45, %v613_v52  ;;  %vm906_vm1 = vcmp.ne.s32.totalorder %v603_v35, 0  ;;  %vm947_vm3 = vcmp.lt.s32.totalorder %v603_v35, 0  ;;  %v1029_v40 = vadd.s32 18, %v603_v35 }
  0xe1   : > { %v8125_v23 = vor.u32 %v3033_v5, %v3032_v3  ;;  %v1789_v16 = vsel %vm10010_vm6, %v1784_v10, %v1788_v25  ;;  %vm988_vm9 = vmand %vm947_vm3, %vm906_vm1  ;;  %v8129_v56 = vor.u32 %v8109_v57, %v1788_v25  ;;  %v624_v29 = vmul.u32 18, %v623_v55  ;;  %6337 = vmatpush3.bf16.msra.mxu0 %v7049_v28 }
  0xe2   : > { %6087 = vmatmul.mubr.bf16.gmra.mrb[8].mxu1 %v1789_v16  ;;  %vm907_vm10 = vcmp.ne.s32.totalorder %v614_v44, 0  ;;  %vm948_vm4 = vcmp.lt.s32.totalorder %v614_v44, 0  ;;  %v1030_v31 = vadd.s32 18, %v614_v44  ;;  %v8131_v45 = vsel %vm988_vm9, %v1029_v40, %v603_v35  ;;  %6374 = vmatprep.subr.bf16.mxu0 %v8123_v37 }
  0xe3   : > { %10011 = vst [vmem:[#allocation55_spill] sm:$0xff] %v8131_v45  ;;  %v3035_v11 = vsel %vm10012_vm2, %v3030_v33, %v8125_v23  ;;  %vm989_vm13 = vmand %vm948_vm4, %vm907_vm10  ;;  %vm1234_vm5 = vcmp.ge.s32.totalorder %v8131_v45, 1  ;;  %vm1316_vm15 = vcmp.le.s32.totalorder %v8131_v45, 16  ;;  %v625_v10 = vsub.s32 %v7691_v51, %v624_v29  ;;  %v8205_v45 = vld [vmem:[#allocation8] ss:$0 sm:$0xff] }
  0xe4   : > { %6294 = vmatprep.mubr.bf16.mxu0 %v3035_v11  ;;  %v8138_v25 = vsel %vm989_vm13, %v1030_v31, %v614_v44  ;;  %vm8140_vm1 = vmand %vm1234_vm5, %vm1316_vm15  ;;  %v10014_v52 = vmov 0  ;;  %v634_v35 = vshrl.u32 %v8103_v27, 4  ;;  %v8146_v3 = vadd.f32 %v7687_v49, %v1449_v36 }
  0xe5   : > { %10013 = vst [vmem:[#allocation56_spill] sm:$0xff] %v8138_v25  ;;  %v10015_v52 = vsel %vm8140_vm1, 4294967295, %v10014_v52  ;;  %vm1235_vm10 = vcmp.ge.s32.totalorder %v8138_v25, 1  ;;  %vm1317_vm2 = vcmp.le.s32.totalorder %v8138_v25, 16  ;;  %v10018_v51 = vmax.f32 %v8037_v61, 0.0 }
  0xe6   : > { %10016 = vst [vmem:[#allocation57_spill] sm:$0xff] %v10015_v52  ;;  %10017 = vst [vmem:[#allocation58_spill] sm:$0xff] %v8146_v3  ;;  %vm908_vm15 = vcmp.ne.s32.totalorder %v625_v10, 0  ;;  %v10019_v49 = vmov 0  ;;  %v635_v27 = vmul.u32 18, %v634_v35  ;;  %vm949_vm4 = vcmp.lt.s32.totalorder %v625_v10, 0 }
  0xe7   : > { %v1658_v28 = vsel %vm8140_vm1, %v10018_v51, 0.0  ;;  %vm8160_vm13 = vmand %vm1235_vm10, %vm1317_vm2  ;;  %v1031_v29 = vadd.s32 18, %v625_v10  ;;  %v10022_v5 = vmax.f32 %v8048_v15, 0.0  ;;  %v376_v44 = vadd.s32 144, %v7620_v1  ;;  %v8177_v51 = vld [vmem:[#allocation7] ss:$0 sm:$0xff] }
  0xe8   : > { %v10020_v49 = vsel %vm8160_vm13, 4294967295, %v10019_v49  ;;  %vm990_vm3 = vmand %vm949_vm4, %vm908_vm15  ;;  %v377_v40 = vadd.s32 152, %v7620_v1  ;;  %v1450_v16 = vmul.f32 %v5665_v41, %v7674_v42  ;;  %vm9761_vm6 = vcmask 1045504  }
  0xe9   : > { %10021 = vst [vmem:[#allocation59_spill] sm:$0xff] %v10020_v49  ;;  %v1659_v55 = vsel %vm8160_vm13, %v10022_v5, 0.0  ;;  %v636_v11 = vsub.s32 %v7732_v12, %v635_v27  ;;  %v8175_v35 = vsel %vm990_vm3, %v1031_v29, %v625_v10  ;;  %v1451_v36 = vmul.f32 %v8177_v51, %v5666_v26 }
  0xea   : > { %v8172_v31 = vpack.c.bf16 %v1659_v55, %v1658_v28  ;;  %10024 = vst [vmem:[#allocation61_spill] sm:$0xff] %v8175_v35  ;;  %vm1236_vm9 = vcmp.ge.s32.totalorder %v8175_v35, 1  ;;  %vm1318_vm10 = vcmp.le.s32.totalorder %v8175_v35, 16  ;;  %v10027_v12 = vmov 0  ;;  %v7058_v55 = vld [vmem:[#allocation5 + $0x80] sm:$0xff]  }
  0xeb   : > { %v8182_v5 = vmul.u32.u64.low 3817748708, %v376_v44  ;;  %v8183_v33 = vmul.u32.u64.high 3817748708, %v376_v44, %v8182_v5  ;;  %vm909_vm2 = vcmp.ne.s32.totalorder %v636_v11, 0  ;;  %vm950_vm15 = vcmp.lt.s32.totalorder %v636_v11, 0  ;;  %vm8191_vm4 = vmand %vm1236_vm9, %vm1318_vm10  ;;  %6166 = vmatprep.subr.bf16.mxu1 %v7058_v55 }
  0xec   : > { %10023 = vst [vmem:[#allocation60_spill] sm:$0xff] %v8172_v31  ;;  %v8186_v42 = vshll.u32 %v8172_v31, 16  ;;  %v8189_v41 = vshrl.u32 %v8172_v31, 16  ;;  %v10028_v12 = vsel %vm8191_vm4, 4294967295, %v10027_v12  ;;  %vm991_vm3 = vmand %vm950_vm15, %vm909_vm2  ;;  %v1032_v26 = vadd.s32 18, %v636_v11 }
  0xed   : > { %10029 = vst [vmem:[#allocation64_spill] sm:$0xff] %v10028_v12  ;;  %v10030_v10 = vmax.f32 %v8113_v38, 0.0  ;;  %v8199_v27 = vmul.u32.u64.low 3817748708, %v377_v40  ;;  %v8200_v29 = vmul.u32.u64.high 3817748708, %v377_v40, %v8199_v27  ;;  %v8208_v57 = vadd.f32 %v8205_v45, %v1450_v16 }
  0xee   : > { %10025 = vst [vmem:[#allocation62_spill] sm:$0xff] %v8186_v42  ;;  %10026 = vst [vmem:[#allocation63_spill] sm:$0xff] %v8189_v41  ;;  %v3036_v5 = vrot.slane %v8189_v41, 1  ;;  %v3037_v35 = vrot.slane %v8186_v42, 2  ;;  %v1796_v25 = vrot.slane %v8186_v42, 1  ;;  %v645_v27 = vshrl.u32 %v8183_v33, 4 }
  0xef   : > { %v1660_v28 = vsel %vm8191_vm4, %v10030_v10, 0.0  ;;  %10031 = vst [vmem:[#allocation65_spill] sm:$0xff] %v8208_v57  ;;  %v8215_v10 = vsel %vm991_vm3, %v1032_v26, %v636_v11  ;;  %v8219_v59 = vadd.f32 %v8205_v45, %v1451_v36  ;;  %v3395_v42 = vrot.slane %v7758_v34, 2 }
  0xf0   : > { %10032 = vst [vmem:[#allocation66_spill] sm:$0xff] %v8215_v10  ;;  %v3038_v16 = vor.u32 %v3037_v35, %v3036_v5  ;;  %vm10034_vm2 = vsmask.f32 7424  ;;  %vm1237_vm15 = vcmp.ge.s32.totalorder %v8215_v10, 1  ;;  %vm1319_vm3 = vcmp.le.s32.totalorder %v8215_v10, 16 }
  0xf1   : > { %10033 = vst [vmem:[#allocation67_spill] sm:$0xff] %v8219_v59  ;;  %v1797_v38 = vsel %vm10034_vm2, %v8129_v56, %v1796_v25  ;;  %vm8230_vm9 = vmand %vm1237_vm15, %vm1319_vm3  ;;  %v10035_v33 = vmov 0  ;;  %v1800_v36 = vor.u32 %v8189_v41, %v1796_v25  ;;  %v646_v11 = vmul.u32 18, %v645_v27 }
  0xf2   : > { %6090 = vmatprep.mubr.bf16.mxu1 %v1797_v38  ;;  %v10036_v33 = vsel %vm8230_vm9, 4294967295, %v10035_v33  ;;  %v656_v26 = vshrl.u32 %v8200_v29, 4  ;;  %vm10038_vm10 = vsmask.f32 6400  ;;  %v10039_v56 = vmax.f32 %v8146_v3, 0.0 }
  0xf3   : > { %10037 = vst [vmem:[#allocation68_spill] sm:$0xff] %v10036_v33  ;;  %v3039_v35 = vsel %vm10038_vm10, %v8125_v23, %v3038_v16  ;;  %v9766_v10 = vrot.slane %v7825_v39, 2  ;;  %v647_v25 = vsub.s32 %v376_v44, %v646_v11  ;;  %v5669_v29 = vunpack.c.l.bf16 %v5802_v58 }
  0xf4   : > { %v1661_v5 = vsel %vm8230_vm9, %v10039_v56, 0.0  ;;  %6295 = vmatmul.mubr.bf16.gmra.mrb[8].mxu0 %v3039_v35  ;;  %v657_v27 = vmul.u32 18, %v656_v26  ;;  %v5670_v23 = vunpack.c.h.bf16 %v5802_v58  ;;  %v378_v41 = vadd.s32 160, %v7620_v1 }
  0xf5   : > { %v8245_v34 = vpack.c.bf16 %v1661_v5, %v1660_v28  ;;  %v8250_v55 = vsel %vm9761_vm6, %v3395_v42, %v9766_v10  ;;  %v8254_v56 = vadd.s32 168, %v7620_v1  ;;  %vm910_vm10 = vcmp.ne.s32.totalorder %v647_v25, 0 }
  0xf6   : > { %v658_v44 = vsub.s32 %v377_v40, %v657_v27  ;;  %vm10044_vm15 = vnez %v9977_v20  ;;  %vm951_vm5 = vcmp.lt.s32.totalorder %v647_v25, 0  ;;  %v1033_v58 = vadd.s32 18, %v647_v25 }
  0xf7   : > { %10040 = vst [vmem:[#allocation69_spill] sm:$0xff] %v8245_v34  ;;  %v8257_v38 = vshll.u32 %v8245_v34, 16  ;;  %v8260_v28 = vshrl.u32 %v8245_v34, 16  ;;  %v8266_v42 = vmul.u32.u64.low 3817748708, %v378_v41  ;;  %v8267_v11 = vmul.u32.u64.high 3817748708, %v378_v41, %v8266_v42  ;;  %vm992_vm11 = vmand %vm951_vm5, %vm910_vm10 }
  0xf8   : > { %vm911_vm7 = vcmp.ne.s32.totalorder %v658_v44, 0  ;;  %vm952_vm3 = vcmp.lt.s32.totalorder %v658_v44, 0  ;;  %v1034_v5 = vadd.s32 18, %v658_v44  ;;  %v8276_v27 = vsel %vm992_vm11, %v1033_v58, %v647_v25 }
  0xf9   : > { %10041 = vst [vmem:[#allocation70_spill] sm:$0xff] %v8257_v38  ;;  %10042 = vst [vmem:[#allocation71_spill] sm:$0xff] %v8260_v28  ;;  %v3040_v26 = vrot.slane %v8260_v28, 1  ;;  %v3041_v40 = vrot.slane %v8257_v38, 2  ;;  %v1804_v35 = vrot.slane %v8257_v38, 1  ;;  %v1452_v42 = vmul.f32 %v8177_v51, %v5669_v29 }
  0xfa   : > { %10047 = vst [vmem:[#allocation72_spill] sm:$0xff] %v8276_v27  ;;  %vm10048_vm2 = vsmask.f32 7424  ;;  %vm993_vm0 = vmand %vm952_vm3, %vm911_vm7  ;;  %vm1238_vm6 = vcmp.ge.s32.totalorder %v8276_v27, 1  ;;  %vm1320_vm8 = vcmp.le.s32.totalorder %v8276_v27, 16  ;;  %v10050_v15 = vmov 0 }
  0xfb   : > { %v8279_v10 = vor.u32 %v3041_v40, %v3040_v26  ;;  %v1805_v3 = vsel %vm10048_vm2, %v1800_v36, %v1804_v35  ;;  %v8284_v38 = vsel %vm993_vm0, %v1034_v5, %v658_v44  ;;  %vm8286_vm5 = vmand %vm1238_vm6, %vm1320_vm8  ;;  %v1808_v25 = vor.u32 %v8260_v28, %v1804_v35  ;;  %v5803_v26 = vld [vmem:[%s7606_s7 + $0x58] sm:$0xff]  }
  0xfc   : > { %6091 = vmatmul.mubr.bf16.gmra.mrb[12].mxu1 %v1805_v3  ;;  %10049 = vst [vmem:[#allocation73_spill] sm:$0xff] %v8284_v38  ;;  %v10051_v15 = vsel %vm8286_vm5, 4294967295, %v10050_v15  ;;  %v667_v29 = vshrl.u32 %v8267_v11, 4  ;;  %v1453_v58 = vmul.f32 %v8177_v51, %v5670_v23  ;;  %vm10053_vm7 = vsmask.f32 6400  ;;  %vm10070_vm3 = vmmov %vm10048_vm2 }
  0xfd   : > { %10052 = vst [vmem:[#allocation74_spill] sm:$0xff] %v10051_v15  ;;  %v3043_v36 = vsel %vm10053_vm7, %v3038_v16, %v8279_v10  ;;  %vm1239_vm11 = vcmp.ge.s32.totalorder %v8284_v38, 1  ;;  %vm1321_vm10 = vcmp.le.s32.totalorder %v8284_v38, 16  ;;  %v10054_v3 = vmax.f32 %v8208_v57, 0.0 }
  0xfe   : > { %6298 = vmatprep.mubr.bf16.mxu0 %v3043_v36  ;;  %vm8302_vm8 = vmand %vm1239_vm11, %vm1321_vm10  ;;  %v10055_v40 = vmov 0  ;;  %v668_v11 = vmul.u32 18, %v667_v29  ;;  %v8307_v23 = vmul.u32.u64.low 3817748708, %v8254_v56  ;;  %v8308_v35 = vmul.u32.u64.high 3817748708, %v8254_v56, %v8307_v23 }
  0xff   : > { %v1662_v44 = vsel %vm8286_vm5, %v10054_v3, 0.0  ;;  %v10056_v40 = vsel %vm8302_vm8, 4294967295, %v10055_v40  ;;  %v8311_v16 = vadd.f32 %v8205_v45, %v1452_v42  ;;  %v10059_v5 = vmax.f32 %v8219_v59, 0.0 }
 0x100   : > { %10057 = vst [vmem:[#allocation75_spill] sm:$0xff] %v10056_v40  ;;  %v8318_v3 = vadd.f32 %v8205_v45, %v1453_v58  ;;  %v9776_v36 = vrot.slane %v7887_v19, 2  ;;  %v5673_v27 = vunpack.c.l.bf16 %v5803_v26  ;;  %vm10062_vm6 = vnez %v10003_v48 }
 0x101   : > { %10058 = vst [vmem:[#allocation76_spill] sm:$0xff] %v8311_v16  ;;  %v1663_v38 = vsel %vm8302_vm8, %v10059_v5, 0.0  ;;  %v669_v42 = vsub.s32 %v378_v41, %v668_v11  ;;  %v5674_v28 = vunpack.c.h.bf16 %v5803_v26  ;;  %v10064_v5 = vrot.slane %v7825_v39, 2 }
 0x102   : > { %10060 = vst [vmem:[#allocation77_spill] sm:$0xff] %v8318_v3  ;;  %v8325_v29 = vpack.c.bf16 %v1663_v38, %v1662_v44  ;;  %vm10065_vm7 = vcmask 1045504   ;;  %v380_v38 = vadd.s32 176, %v7620_v1  ;;  %v381_v41 = vadd.s32 184, %v7620_v1 }
 0x103   : > { %v8338_v59 = vsel %vm10065_vm7, %v10064_v5, %v9776_v36  ;;  %v678_v11 = vshrl.u32 %v8308_v35, 4  ;;  %vm912_vm11 = vcmp.ne.s32.totalorder %v669_v42, 0  ;;  %vm953_vm10 = vcmp.lt.s32.totalorder %v669_v42, 0 }
 0x104   : > { %10063 = vst [vmem:[#allocation78_spill] sm:$0xff] %v8325_v29  ;;  %v8343_v26 = vshll.u32 %v8325_v29, 16  ;;  %v8346_v44 = vshrl.u32 %v8325_v29, 16  ;;  %v1035_v58 = vadd.s32 18, %v669_v42  ;;  %vm994_vm7 = vmand %vm953_vm10, %vm912_vm11  ;;  %v1454_v35 = vmul.f32 %v8177_v51, %v5673_v27 }
 0x105   : > { %v8349_v23 = vmul.u32.u64.low 3817748708, %v380_v38  ;;  %v8350_v39 = vmul.u32.u64.high 3817748708, %v380_v38, %v8349_v23  ;;  %v679_v52 = vmul.u32 18, %v678_v11  ;;  %vm10071_vm11 = vsmask.f32 6400 }
 0x106   : > { %10066 = vst [vmem:[#allocation79_spill] sm:$0xff] %v8343_v26  ;;  %10067 = vst [vmem:[#allocation80_spill] sm:$0xff] %v8346_v44  ;;  %v3044_v5 = vrot.slane %v8346_v44, 1  ;;  %v3045_v36 = vrot.slane %v8343_v26, 2  ;;  %v1812_v57 = vrot.slane %v8343_v26, 1  ;;  %v8355_v49 = vsel %vm994_vm7, %v1035_v58, %v669_v42  ;;  %v5804_v58 = vld [vmem:[%s7606_s7 + $0x60] sm:$0xff]  }
 0x107   : > { %10068 = vst [vmem:[#allocation81_spill] sm:$0xff] %v8355_v49  ;;  %v8357_v61 = vmul.u32.u64.low 3817748708, %v381_v41  ;;  %v8358_v54 = vmul.u32.u64.high 3817748708, %v381_v41, %v8357_v61  ;;  %v680_v8 = vsub.s32 %v8254_v56, %v679_v52  ;;  %vm1240_vm2 = vcmp.ge.s32.totalorder %v8355_v49, 1 }
 0x108   : > { %v8361_v48 = vor.u32 %v3045_v36, %v3044_v5  ;;  %v1813_v23 = vsel %vm10070_vm3, %v1808_v25, %v1812_v57  ;;  %vm1322_vm1 = vcmp.le.s32.totalorder %v8355_v49, 16  ;;  %v8368_v11 = vor.u32 %v8346_v44, %v1812_v57 }
 0x109   : > { %6094 = vmatprep.mubr.bf16.mxu1 %v1813_v23  ;;  %v689_v42 = vshrl.u32 %v8350_v39, 4  ;;  %v1455_v61 = vmul.f32 %v8177_v51, %v5674_v28  ;;  %vm913_vm10 = vcmp.ne.s32.totalorder %v680_v8, 0  ;;  %vm954_vm7 = vcmp.lt.s32.totalorder %v680_v8, 0  ;;  %vm8380_vm13 = vmand %vm1240_vm2, %vm1322_vm1 }
 0x10a   : > { %10069 = vst [vmem:[#allocation82_spill] sm:$0xff] %v8361_v48  ;;  %v3047_v52 = vsel %vm10071_vm11, %v8279_v10, %v8361_v48  ;;  %v1036_v56 = vadd.s32 18, %v680_v8  ;;  %v10072_v57 = vmov 0  ;;  %vm995_vm0 = vmand %vm954_vm7, %vm913_vm10  ;;  %v10075_v39 = vmax.f32 %v8311_v16, 0.0  ;;  %v7059_v16 = vld [vmem:[#allocation5 + $0x1a0] sm:$0xff]  }
 0x10b   : > { %v10073_v57 = vsel %vm8380_vm13, 4294967295, %v10072_v57  ;;  %6299 = vmatmul.mubr.bf16.gmra.mrb[12].mxu0 %v3047_v52  ;;  %v690_v27 = vmul.u32 18, %v689_v42  ;;  %v700_v25 = vshrl.u32 %v8358_v54, 4  ;;  %v8390_v36 = vadd.f32 %v8205_v45, %v1454_v35 }
 0x10c   : > { %10074 = vst [vmem:[#allocation83_spill] sm:$0xff] %v10073_v57  ;;  %v1664_v28 = vsel %vm8380_vm13, %v10075_v39, 0.0  ;;  %6338 = vmatprep.mubr.bf16.mxu0 %v8250_v55  ;;  %v8393_v10 = vsel %vm995_vm0, %v1036_v56, %v680_v8  ;;  %v8396_v5 = vadd.f32 %v8205_v45, %v1455_v61  ;;  %v9790_v23 = vrot.slane %v7954_v4, 2 }
 0x10d   : > { %10076 = vst [vmem:[#allocation84_spill] sm:$0xff] %v8390_v36  ;;  %10077 = vst [vmem:[#allocation85_spill] sm:$0xff] %v8393_v10  ;;  %v5677_v52 = vunpack.c.l.bf16 %v5804_v58  ;;  %vm1241_vm2 = vcmp.ge.s32.totalorder %v8393_v10, 1  ;;  %vm1323_vm11 = vcmp.le.s32.totalorder %v8393_v10, 16  ;;  %v691_v54 = vsub.s32 %v380_v38, %v690_v27 }
 0x10e   : > { %10078 = vst [vmem:[#allocation86_spill] sm:$0xff] %v8396_v5  ;;  %v701_v35 = vmul.u32 18, %v700_v25  ;;  %vm8405_vm10 = vmand %vm1241_vm2, %vm1323_vm11  ;;  %v10079_v8 = vmov 0  ;;  %v10082_v61 = vrot.slane %v7887_v19, 2  ;;  %vm10083_vm0 = vcmask 1045504  }
 0x10f   : > { %v10080_v8 = vsel %vm8405_vm10, 4294967295, %v10079_v8  ;;  %v5678_v39 = vunpack.c.h.bf16 %v5804_v58  ;;  %v10084_v10 = vmax.f32 %v8318_v3, 0.0  ;;  %vm914_vm7 = vcmp.ne.s32.totalorder %v691_v54, 0 }
 0x110   : > { %10081 = vst [vmem:[#allocation87_spill] sm:$0xff] %v10080_v8  ;;  %v8416_v56 = vsel %vm10083_vm0, %v10082_v61, %v9790_v23  ;;  %v702_v27 = vsub.s32 %v381_v41, %v701_v35  ;;  %vm955_vm2 = vcmp.lt.s32.totalorder %v691_v54, 0  ;;  %v1037_v42 = vadd.s32 18, %v691_v54  ;;  %v7053_v23 = vld [vmem:[#allocation5 + $0x188] sm:$0xff]  }
 0x111   : > { %v1665_v38 = vsel %vm8405_vm10, %v10084_v10, 0.0  ;;  %vm996_vm11 = vmand %vm955_vm2, %vm914_vm7  ;;  %v8425_v55 = vadd.s32 192, %v7620_v1  ;;  %v8428_v49 = vadd.s32 200, %v7620_v1  ;;  %v1456_v61 = vmul.f32 %v8177_v51, %v5677_v52 }
 0x112   : > { %v8422_v25 = vpack.c.bf16 %v1665_v38, %v1664_v28  ;;  %vm915_vm0 = vcmp.ne.s32.totalorder %v702_v27, 0  ;;  %vm956_vm1 = vcmp.lt.s32.totalorder %v702_v27, 0  ;;  %v1038_v58 = vadd.s32 18, %v702_v27 }
 0x113   : > { %vm997_vm7 = vmand %vm956_vm1, %vm915_vm0  ;;  %v8438_v28 = vsel %vm996_vm11, %v1037_v42, %v691_v54  ;;  %v1457_v35 = vmul.f32 %v8177_v51, %v5678_v39  ;;  %6339 = vmatmul.mubr.bf16.vlgmr.msra.gmra.mrb[0].mxu0 %v8338_v59  ;;  %v8450_v38 = vadd.f32 %v8205_v45, %v1456_v61  ;;  %v10091_v42 = vmov 0 }
 0x114   : > { %10085 = vst [vmem:[#allocation88_spill] sm:$0xff] %v8422_v25  ;;  %v8436_v41 = vshll.u32 %v8422_v25, 16  ;;  %10087 = vst [vmem:[#allocation90_spill] sm:$0xff] %v8438_v28  ;;  %v8441_v10 = vshrl.u32 %v8422_v25, 16  ;;  %v8445_v52 = vsel %vm997_vm7, %v1038_v58, %v702_v27  ;;  %vm1242_vm2 = vcmp.ge.s32.totalorder %v8438_v28, 1  ;;  %6342 = vmatprep.mubr.bf16.mxu0 %v8416_v56  ;;  %6375 = vmatpush3.bf16.msra.mxu0 %v8123_v37 }
 0x115   : > { %10089 = vst [vmem:[#allocation92_spill] sm:$0xff] %v8445_v52  ;;  %vm1324_vm3 = vcmp.le.s32.totalorder %v8438_v28, 16  ;;  %10090 = vst [vmem:[#allocation93_spill] sm:$0xff] %v8450_v38  ;;  %vm1243_vm1 = vcmp.ge.s32.totalorder %v8445_v52, 1  ;;  %vm1325_vm11 = vcmp.le.s32.totalorder %v8445_v52, 16  ;;  %v8461_v39 = vadd.f32 %v8205_v45, %v1457_v35  ;;  %6376 = vmatprep.subr.bf16.mxu0 %v7053_v23  ;;  %v7055_v35 = vld [vmem:[#allocation5 + $0x190] sm:$0xff]  }
 0x116   : > { %10086 = vst [vmem:[#allocation89_spill] sm:$0xff] %v8436_v41  ;;  %10088 = vst [vmem:[#allocation91_spill] sm:$0xff] %v8441_v10  ;;  %v1820_v54 = vrot.slane %v8436_v41, 1  ;;  %v10095_v27 = vmov 0  ;;  %v10098_v58 = vmax.f32 %v8390_v36, 0.0  ;;  %v5805_v41 = vld [vmem:[%s7606_s7 + $0x68] sm:$0xff]  }
 0x117   : > { %vm8455_vm0 = vmand %vm1242_vm2, %vm1324_vm3  ;;  %10094 = vst [vmem:[#allocation95_spill] sm:$0xff] %v8461_v39  ;;  %v8473_v52 = vmul.u32.u64.low 3817748708, %v8425_v55  ;;  %v8474_v28 = vmul.u32.u64.high 3817748708, %v8425_v55, %v8473_v52  ;;  %vm10099_vm3 = vsmask.f32 7424  ;;  %v10100_v26 = vmax.f32 %v8396_v5, 0.0 }
 0x118   : > { %v10092_v42 = vsel %vm8455_vm0, 4294967295, %v10091_v42  ;;  %vm8464_vm7 = vmand %vm1243_vm1, %vm1325_vm11  ;;  %v1666_v61 = vsel %vm8455_vm0, %v10098_v58, 0.0  ;;  %v1821_v37 = vsel %vm10099_vm3, %v8368_v11, %v1820_v54  ;;  %v1824_v19 = vor.u32 %v8441_v10, %v1820_v54  ;;  %6377 = vmatpush3.bf16.msra.mxu0 %v7053_v23 }
 0x119   : > { %10093 = vst [vmem:[#allocation94_spill] sm:$0xff] %v10092_v42  ;;  %v10096_v27 = vsel %vm8464_vm7, 4294967295, %v10095_v27  ;;  %v1667_v44 = vsel %vm8464_vm7, %v10100_v26, 0.0  ;;  %6095 = vmatmul.mubr.bf16.gmra.mrb[16].mxu1 %v1821_v37  ;;  %v8493_v11 = vmul.u32.u64.low 3817748708, %v8428_v49  ;;  %v8494_v48 = vmul.u32.u64.high 3817748708, %v8428_v49, %v8493_v11  ;;  %6378 = vmatprep.subr.bf16.mxu0 %v7055_v35  ;;  %v7057_v42 = vld [vmem:[#allocation5 + $0x198] sm:$0xff]   ;;  %vm10106_vm11 = vmmov %vm10099_vm3 }
 0x11a   : > { %10097 = vst [vmem:[#allocation96_spill] sm:$0xff] %v10096_v27  ;;  %v8490_v52 = vpack.c.bf16 %v1667_v44, %v1666_v61  ;;  %v9811_v5 = vrot.slane %v8031_v47, 2  ;;  %v5681_v26 = vunpack.c.l.bf16 %v5805_v41  ;;  %v5682_v36 = vunpack.c.h.bf16 %v5805_v41  ;;  %v8514_v41 = vld [vmem:[%s7606_s7 + $0x70] sm:$0xff]  }
 0x11b   : > { %v384_v54 = vadd.s32 208, %v7620_v1  ;;  %v385_v58 = vadd.s32 216, %v7620_v1  ;;  %v711_v37 = vshrl.u32 %v8474_v28, 4  ;;  %v10104_v61 = vrot.slane %v7954_v4, 2 }
 0x11c   : > { %10101 = vst [vmem:[#allocation97_spill] sm:$0xff] %v8490_v52  ;;  %v8500_v10 = vshll.u32 %v8490_v52, 16  ;;  %v8504_v44 = vshrl.u32 %v8490_v52, 16  ;;  %vm10105_vm1 = vcmask 1045504   ;;  %v722_v40 = vshrl.u32 %v8494_v48, 4  ;;  %6379 = vmatpush3.bf16.msra.mxu0 %v7055_v35 }
 0x11d   : > { %v8511_v11 = vsel %vm10105_vm1, %v10104_v61, %v9811_v5  ;;  %v8516_v23 = vmul.u32.u64.low 3817748708, %v384_v54  ;;  %v8517_v27 = vmul.u32.u64.high 3817748708, %v384_v54, %v8516_v23  ;;  %v712_v15 = vmul.u32 18, %v711_v37  ;;  %6380 = vmatprep.subr.bf16.mxu0 %v7057_v42 }
 0x11e   : > { %10102 = vst [vmem:[#allocation98_spill] sm:$0xff] %v8500_v10  ;;  %10103 = vst [vmem:[#allocation99_spill] sm:$0xff] %v8504_v44  ;;  %v8519_v57 = vmul.u32.u64.low 3817748708, %v385_v58  ;;  %v8520_v8 = vmul.u32.u64.high 3817748708, %v385_v58, %v8519_v57  ;;  %v1828_v28 = vrot.slane %v8500_v10, 1  ;;  %6343 = vmatmul.mubr.bf16.gmra.mrb[4].mxu0 %v8511_v11  ;;  %v1458_v61 = vmul.f32 %v8177_v51, %v5681_v26 }
 0x11f   : > { %v1459_v5 = vmul.f32 %v8177_v51, %v5682_v36  ;;  %v9823_v4 = vrot.slane %v8094_v30, 2  ;;  %v713_v10 = vsub.s32 %v8425_v55, %v712_v15  ;;  %v723_v37 = vmul.u32 18, %v722_v40 }
 0x120   : > { %v1829_v57 = vsel %vm10106_vm11, %v1824_v19, %v1828_v28  ;;  %v8533_v48 = vor.u32 %v8504_v44, %v1828_v28  ;;  %v733_v36 = vshrl.u32 %v8517_v27, 4  ;;  %v744_v26 = vshrl.u32 %v8520_v8, 4  ;;  %6381 = vmatpush3.bf16.msra.mxu0 %v7057_v42 }
 0x121   : > { %6098 = vmatprep.mubr.bf16.mxu1 %v1829_v57  ;;  %v8538_v3 = vadd.f32 %v8205_v45, %v1458_v61  ;;  %v8541_v35 = vadd.f32 %v8205_v45, %v1459_v5  ;;  %v724_v19 = vsub.s32 %v8428_v49, %v723_v37  ;;  %vm916_vm3 = vcmp.ne.s32.totalorder %v713_v10, 0  ;;  %6382 = vmatprep.subr.bf16.mxu0 %v7059_v16  ;;  %v7061_v5 = vld [vmem:[#allocation5 + $0x1a8] sm:$0xff]  }
 0x122   : > { %vm957_vm1 = vcmp.lt.s32.totalorder %v713_v10, 0  ;;  %v1039_v15 = vadd.s32 18, %v713_v10  ;;  %v734_v40 = vmul.u32 18, %v733_v36  ;;  %v745_v55 = vmul.u32 18, %v744_v26 }
 0x123   : > { %vm998_vm11 = vmand %vm957_vm1, %vm916_vm3  ;;  %vm917_vm2 = vcmp.ne.s32.totalorder %v724_v19, 0  ;;  %vm958_vm0 = vcmp.lt.s32.totalorder %v724_v19, 0  ;;  %v1040_v8 = vadd.s32 18, %v724_v19  ;;  %v10109_v36 = vmov 0 }
 0x124   : > { %v8546_v61 = vsel %vm998_vm11, %v1039_v15, %v713_v10  ;;  %vm999_vm7 = vmand %vm958_vm0, %vm917_vm2  ;;  %v735_v49 = vsub.s32 %v384_v54, %v734_v40  ;;  %v746_v57 = vsub.s32 %v385_v58, %v745_v55  ;;  %v10112_v10 = vrot.slane %v8031_v47, 2  ;;  %6383 = vmatpush3.bf16.msra.mxu0 %v7059_v16  ;;  %v7063_v55 = vld [vmem:[#allocation5 + $0x1b0] sm:$0xff]  }
 0x125   : > { %10107 = vst [vmem:[#allocation100_spill] sm:$0xff] %v8546_v61  ;;  %vm1244_vm13 = vcmp.ge.s32.totalorder %v8546_v61, 1  ;;  %vm1326_vm10 = vcmp.le.s32.totalorder %v8546_v61, 16  ;;  %v8550_v37 = vsel %vm999_vm7, %v1040_v8, %v724_v19  ;;  %vm10113_vm1 = vcmask 1045504   ;;  %6384 = vmatprep.subr.bf16.mxu0 %v7061_v5 }
 0x126   : > { %10108 = vst [vmem:[#allocation101_spill] sm:$0xff] %v8550_v37  ;;  %vm8552_vm3 = vmand %vm1244_vm13, %vm1326_vm10  ;;  %v8561_v42 = vsel %vm10113_vm1, %v10112_v10, %v9823_v4  ;;  %v386_v26 = vadd.s32 224, %v7620_v1  ;;  %v8565_v15 = vadd.s32 232, %v7620_v1  ;;  %vm1245_vm0 = vcmp.ge.s32.totalorder %v8550_v37, 1 }
 0x127   : > { %v10110_v36 = vsel %vm8552_vm3, 4294967295, %v10109_v36  ;;  %10114 = vst [vmem:[#allocation103_spill] sm:$0xff] %v8561_v42  ;;  %vm1327_vm7 = vcmp.le.s32.totalorder %v8550_v37, 16  ;;  %v10115_v58 = vmax.f32 %v8450_v38, 0.0  ;;  %vm918_vm13 = vcmp.ne.s32.totalorder %v735_v49, 0  ;;  %6346 = vmatprep.mubr.bf16.mxu0 %v8561_v42 }
 0x128   : > { %10111 = vst [vmem:[#allocation102_spill] sm:$0xff] %v10110_v36  ;;  %vm8574_vm10 = vmand %vm1245_vm0, %vm1327_vm7  ;;  %v10116_v19 = vmov 0  ;;  %vm919_vm2 = vcmp.ne.s32.totalorder %v746_v57, 0  ;;  %vm959_vm11 = vcmp.lt.s32.totalorder %v735_v49, 0  ;;  %vm960_vm1 = vcmp.lt.s32.totalorder %v746_v57, 0  ;;  %6385 = vmatpush3.bf16.msra.mxu0 %v7061_v5  ;;  %v7065_v5 = vld [vmem:[#allocation5 + $0x1b8] sm:$0xff]  }
 0x129   : > { %v1668_v54 = vsel %vm8552_vm3, %v10115_v58, 0.0  ;;  %v10117_v19 = vsel %vm8574_vm10, 4294967295, %v10116_v19  ;;  %v1041_v40 = vadd.s32 18, %v735_v49  ;;  %v10119_v8 = vmax.f32 %v8461_v39, 0.0  ;;  %vm1000_vm5 = vmand %vm959_vm11, %vm918_vm13  ;;  %6386 = vmatprep.subr.bf16.mxu0 %v7063_v55 }
 0x12a   : > { %10118 = vst [vmem:[#allocation104_spill] sm:$0xff] %v10117_v19  ;;  %v1042_v58 = vadd.s32 18, %v746_v57  ;;  %v8582_v4 = vmul.u32.u64.low 3817748708, %v386_v26  ;;  %v8583_v27 = vmul.u32.u64.high 3817748708, %v386_v26, %v8582_v4  ;;  %vm1001_vm0 = vmand %vm960_vm1, %vm919_vm2  ;;  %v10134_v47 = vmax.f32 %v8541_v35, 0.0 }
 0x12b   : > { %v1669_v10 = vsel %vm8574_vm10, %v10119_v8, 0.0  ;;  %v8587_v23 = vsel %vm1000_vm5, %v1041_v40, %v735_v49  ;;  %v8590_v28 = vmul.u32.u64.low 3817748708, %v8565_v15  ;;  %v8591_v37 = vmul.u32.u64.high 3817748708, %v8565_v15, %v8590_v28 }
 0x12c   : > { %v8585_v16 = vpack.c.bf16 %v1669_v10, %v1668_v54  ;;  %10121 = vst [vmem:[#allocation106_spill] sm:$0xff] %v8587_v23  ;;  %v8593_v61 = vsel %vm1001_vm0, %v1042_v58, %v746_v57  ;;  %vm1246_vm7 = vcmp.ge.s32.totalorder %v8587_v23, 1  ;;  %vm1328_vm8 = vcmp.le.s32.totalorder %v8587_v23, 16  ;;  %6387 = vmatpush3.bf16.msra.mxu0 %v7063_v55 }
 0x12d   : > { %10122 = vst [vmem:[#allocation107_spill] sm:$0xff] %v8593_v61  ;;  %v10123_v8 = vunpack.c.l.bf16 %v8514_v41  ;;  %vm1247_vm13 = vcmp.ge.s32.totalorder %v8593_v61, 1  ;;  %vm1329_vm2 = vcmp.le.s32.totalorder %v8593_v61, 16  ;;  %vm8609_vm11 = vmand %vm1246_vm7, %vm1328_vm8  ;;  %v10125_v28 = vmov 0  ;;  %6388 = vmatprep.subr.bf16.mxu0 %v7065_v5 }
 0x12e   : > { %10120 = vst [vmem:[#allocation105_spill] sm:$0xff] %v8585_v16  ;;  %v8605_v4 = vshll.u32 %v8585_v16, 16  ;;  %v10126_v28 = vsel %vm8609_vm11, 4294967295, %v10125_v28  ;;  %v8614_v49 = vshrl.u32 %v8585_v16, 16  ;;  %vm8616_vm1 = vmand %vm1247_vm13, %vm1329_vm2  ;;  %v10129_v57 = vmov 0 }
 0x12f   : > { %v1460_v44 = vmul.f32 %v8177_v51, %v10123_v8  ;;  %10127 = vst [vmem:[#allocation109_spill] sm:$0xff] %v10126_v28  ;;  %v10130_v57 = vsel %vm8616_vm1, 4294967295, %v10129_v57  ;;  %v10132_v54 = vmax.f32 %v8538_v3, 0.0  ;;  %v755_v10 = vshrl.u32 %v8583_v27, 4 }
 0x130   : > { %10124 = vst [vmem:[#allocation108_spill] sm:$0xff] %v8605_v4  ;;  %10128 = vst [vmem:[#allocation110_spill] sm:$0xff] %v8614_v49  ;;  %v10133_v58 = vunpack.c.h.bf16 %v8514_v41  ;;  %v1836_v23 = vrot.slane %v8605_v4, 1  ;;  %v1671_v36 = vsel %vm8616_vm1, %v10134_v47, 0.0  ;;  %v766_v19 = vshrl.u32 %v8591_v37, 4  ;;  %v5807_v4 = vld [vmem:[%s7606_s7 + $0x78] sm:$0xff]   ;;  %6389 = vmatpush3.bf16.msra.mxu0 %v7065_v5 }
 0x131   : > { %10131 = vst [vmem:[#allocation111_spill] sm:$0xff] %v10130_v57  ;;  %v1670_v40 = vsel %vm8609_vm11, %v10132_v54, 0.0  ;;  %v8629_v61 = vadd.f32 %v8205_v45, %v1460_v44  ;;  %v756_v44 = vmul.u32 18, %v755_v10  ;;  %vm10135_vm0 = vsmask.f32 7424 }
 0x132   : > { %v1461_v8 = vmul.f32 %v8177_v51, %v10133_v58  ;;  %v8642_v41 = vpack.c.bf16 %v1671_v36, %v1670_v40  ;;  %v1837_v47 = vsel %vm10135_vm0, %v8533_v48, %v1836_v23  ;;  %v1840_v37 = vor.u32 %v8614_v49, %v1836_v23  ;;  %v8659_v40 = vld [vmem:[#allocation5 + $0x1c0] sm:$0xff]  }
 0x133   : > { %v767_v54 = vmul.u32 18, %v766_v19  ;;  %v10136_v28 = vrot.slane %v8172_v31, 2  ;;  %v10137_v57 = vrot.slane %v8094_v30, 2  ;;  %vm10138_vm7 = vcmask 1045504   ;;  %10140 = vst [vmem:[#allocation113_spill] sm:$0xff] %v8659_v40  ;;  %6099 = vmatmul.mubr.bf16.gmra.mrb[20].mxu1 %v1837_v47  ;;  %6426 = vmatprep.subr.bf16.mxu0 %v8659_v40  ;;  %v5808_v49 = vld [vmem:[%s7606_s7 + $0x80] sm:$0xff]  }
 0x134   : > { %v8645_v27 = vadd.f32 %v8205_v45, %v1461_v8  ;;  %v8662_v10 = vshll.u32 %v8642_v41, 16  ;;  %v757_v55 = vsub.s32 %v386_v26, %v756_v44  ;;  %v8666_v23 = vshrl.u32 %v8642_v41, 16 }
 0x135   : > { %v8657_v36 = vsel %vm10138_vm7, %v10137_v57, %v10136_v28  ;;  %v768_v19 = vsub.s32 %v8565_v15, %v767_v54  ;;  %v5689_v8 = vunpack.c.l.bf16 %v5807_v4  ;;  %v5690_v28 = vunpack.c.h.bf16 %v5807_v4 }
 0x136   : > { %10139 = vst [vmem:[#allocation112_spill] sm:$0xff] %v8657_v36  ;;  %10141 = vst [vmem:[#allocation114_spill] sm:$0xff] %v8662_v10  ;;  %6347 = vmatmul.mubr.bf16.gmra.mrb[8].mxu0 %v8657_v36  ;;  %v388_v57 = vadd.s32 240, %v7620_v1  ;;  %v1844_v58 = vrot.slane %v8662_v10, 1  ;;  %vm920_vm13 = vcmp.ne.s32.totalorder %v757_v55, 0  ;;  %vm961_vm2 = vcmp.lt.s32.totalorder %v757_v55, 0 }
 0x137   : > { %10142 = vst [vmem:[#allocation115_spill] sm:$0xff] %v8666_v23  ;;  %v1043_v47 = vadd.s32 18, %v757_v55  ;;  %vm921_vm0 = vcmp.ne.s32.totalorder %v768_v19, 0  ;;  %vm962_vm7 = vcmp.lt.s32.totalorder %v768_v19, 0  ;;  %vm1002_vm8 = vmand %vm961_vm2, %vm920_vm13  ;;  %v1044_v26 = vadd.s32 18, %v768_v19 }
 0x138   : > { %v389_v44 = vadd.s32 248, %v7620_v1  ;;  %vm10143_vm5 = vsmask.f32 7424  ;;  %vm1003_vm11 = vmand %vm962_vm7, %vm921_vm0  ;;  %v1848_v54 = vor.u32 %v8666_v23, %v1844_v58  ;;  %v1462_v48 = vmul.f32 %v8177_v51, %v5689_v8 }
 0x139   : > { %v1845_v15 = vsel %vm10143_vm5, %v1840_v37, %v1844_v58  ;;  %v8675_v4 = vsel %vm1002_vm8, %v1043_v47, %v757_v55  ;;  %v8679_v5 = vsel %vm1003_vm11, %v1044_v26, %v768_v19  ;;  %v1463_v10 = vmul.f32 %v8177_v51, %v5690_v28 }
 0x13a   : > { %10144 = vst [vmem:[#allocation116_spill] sm:$0xff] %v8675_v4  ;;  %6102 = vmatprep.mubr.bf16.mxu1 %v1845_v15  ;;  %10145 = vst [vmem:[#allocation117_spill] sm:$0xff] %v8679_v5  ;;  %vm1248_vm1 = vcmp.ge.s32.totalorder %v8675_v4, 1  ;;  %vm1330_vm13 = vcmp.le.s32.totalorder %v8675_v4, 16  ;;  %vm1249_vm2 = vcmp.ge.s32.totalorder %v8679_v5, 1  ;;  %vm1331_vm5 = vcmp.le.s32.totalorder %v8679_v5, 16 }
 0x13b   : > { %vm8687_vm8 = vmand %vm1248_vm1, %vm1330_vm13  ;;  %v10146_v37 = vmov 0  ;;  %v8691_v58 = vmul.u32.u64.low 3817748708, %v388_v57  ;;  %v8692_v55 = vmul.u32.u64.high 3817748708, %v388_v57, %v8691_v58  ;;  %v10149_v19 = vmov 0 }
 0x13c   : > { %v10147_v37 = vsel %vm8687_vm8, 4294967295, %v10146_v37  ;;  %vm8694_vm11 = vmand %vm1249_vm2, %vm1331_vm5  ;;  %v10152_v8 = vmax.f32 %v8629_v61, 0.0  ;;  %v8702_v47 = vmul.u32.u64.low 3817748708, %v389_v44  ;;  %v8703_v26 = vmul.u32.u64.high 3817748708, %v389_v44, %v8702_v47 }
 0x13d   : > { %10148 = vst [vmem:[#allocation118_spill] sm:$0xff] %v10147_v37  ;;  %v10150_v19 = vsel %vm8694_vm11, 4294967295, %v10149_v19  ;;  %v8706_v15 = vadd.f32 %v8205_v45, %v1462_v48  ;;  %v10153_v5 = vmax.f32 %v8645_v27, 0.0  ;;  %v8713_v4 = vadd.f32 %v8205_v45, %v1463_v10 }
 0x13e   : > { %10151 = vst [vmem:[#allocation119_spill] sm:$0xff] %v10150_v19  ;;  %v1672_v28 = vsel %vm8687_vm8, %v10152_v8, 0.0  ;;  %v3408_v23 = vrot.slane %v8245_v34, 2  ;;  %v5693_v30 = vunpack.c.l.bf16 %v5808_v49  ;;  %v5694_v47 = vunpack.c.h.bf16 %v5808_v49  ;;  %v8746_v19 = vld [vmem:[%s7606_s7 + $0x88] sm:$0xff]  }
 0x13f   : > { %v1673_v58 = vsel %vm8694_vm11, %v10153_v5, 0.0  ;;  %v390_v39 = vadd.s32 256, %v7620_v1  ;;  %v777_v5 = vshrl.u32 %v8692_v55, 4  ;;  %v10155_v34 = vrot.slane %v8172_v31, 2 }
 0x140   : > { %v8720_v8 = vpack.c.bf16 %v1673_v58, %v1672_v28  ;;  %vm10156_vm0 = vcmask 1045504   ;;  %v391_v37 = vadd.s32 264, %v7620_v1  ;;  %v788_v58 = vshrl.u32 %v8703_v26, 4 }
 0x141   : > { %v8729_v38 = vsel %vm10156_vm0, %v10155_v34, %v3408_v23  ;;  %v1464_v55 = vmul.f32 %v8177_v51, %v5693_v30  ;;  %v778_v10 = vmul.u32 18, %v777_v5  ;;  %v1465_v34 = vmul.f32 %v8177_v51, %v5694_v47 }
 0x142   : > { %10154 = vst [vmem:[#allocation120_spill] sm:$0xff] %v8720_v8  ;;  %10157 = vst [vmem:[#allocation121_spill] sm:$0xff] %v8729_v38  ;;  %v8733_v28 = vshll.u32 %v8720_v8, 16  ;;  %v8737_v49 = vshrl.u32 %v8720_v8, 16  ;;  %6350 = vmatprep.mubr.bf16.mxu0 %v8729_v38  ;;  %v8741_v48 = vmul.u32.u64.low 3817748708, %v390_v39  ;;  %v8742_v31 = vmul.u32.u64.high 3817748708, %v390_v39, %v8741_v48 }
 0x143   : > { %v789_v42 = vmul.u32 18, %v788_v58  ;;  %v8749_v12 = vmul.u32.u64.low 3817748708, %v391_v37  ;;  %v8750_v26 = vmul.u32.u64.high 3817748708, %v391_v37, %v8749_v12  ;;  %v779_v33 = vsub.s32 %v388_v57, %v778_v10 }
 0x144   : > { %10158 = vst [vmem:[#allocation122_spill] sm:$0xff] %v8733_v28  ;;  %10159 = vst [vmem:[#allocation123_spill] sm:$0xff] %v8737_v49  ;;  %v1852_v36 = vrot.slane %v8733_v28, 1  ;;  %v8753_v40 = vadd.f32 %v8205_v45, %v1464_v55  ;;  %v8756_v30 = vadd.f32 %v8205_v45, %v1465_v34  ;;  %v9869_v5 = vrot.slane %v8325_v29, 2 }
 0x145   : > { %vm10160_vm7 = vsmask.f32 7424  ;;  %v790_v47 = vsub.s32 %v389_v44, %v789_v42  ;;  %v5697_v58 = vunpack.c.l.bf16 %v8746_v19  ;;  %vm922_vm13 = vcmp.ne.s32.totalorder %v779_v33, 0 }
 0x146   : > { %v1853_v48 = vsel %vm10160_vm7, %v1848_v54, %v1852_v36  ;;  %v8761_v38 = vor.u32 %v8737_v49, %v1852_v36  ;;  %vm963_vm2 = vcmp.lt.s32.totalorder %v779_v33, 0  ;;  %v1045_v12 = vadd.s32 18, %v779_v33 }
 0x147   : > { %6103 = vmatmul.mubr.bf16.gmra.mrb[24].mxu1 %v1853_v48  ;;  %v799_v57 = vshrl.u32 %v8742_v31, 4  ;;  %vm923_vm5 = vcmp.ne.s32.totalorder %v790_v47, 0  ;;  %vm964_vm0 = vcmp.lt.s32.totalorder %v790_v47, 0  ;;  %vm1004_vm1 = vmand %vm963_vm2, %vm922_vm13  ;;  %v1046_v10 = vadd.s32 18, %v790_v47 }
 0x148   : > { %v810_v55 = vshrl.u32 %v8750_v26, 4  ;;  %vm1005_vm8 = vmand %vm964_vm0, %vm923_vm5  ;;  %v8766_v54 = vsel %vm1004_vm1, %v1045_v12, %v779_v33  ;;  %v10163_v26 = vmov 0  ;;  %vm10166_vm1 = vcmask 1045504  }
 0x149   : > { %10161 = vst [vmem:[#allocation124_spill] sm:$0xff] %v8766_v54  ;;  %v800_v42 = vmul.u32 18, %v799_v57  ;;  %v8770_v34 = vsel %vm1005_vm8, %v1046_v10, %v790_v47  ;;  %vm1250_vm7 = vcmp.ge.s32.totalorder %v8766_v54, 1  ;;  %vm1332_vm11 = vcmp.le.s32.totalorder %v8766_v54, 16 }
 0x14a   : > { %10162 = vst [vmem:[#allocation125_spill] sm:$0xff] %v8770_v34  ;;  %v811_v31 = vmul.u32 18, %v810_v55  ;;  %vm1251_vm13 = vcmp.ge.s32.totalorder %v8770_v34, 1  ;;  %vm1333_vm2 = vcmp.le.s32.totalorder %v8770_v34, 16  ;;  %vm8776_vm3 = vmand %vm1250_vm7, %vm1332_vm11  ;;  %v8783_v48 = vsel %vm10166_vm1, %v3408_v23, %v9869_v5 }
 0x14b   : > { %v10164_v26 = vsel %vm8776_vm3, 4294967295, %v10163_v26  ;;  %v801_v33 = vsub.s32 %v390_v39, %v800_v42  ;;  %vm8785_vm8 = vmand %vm1251_vm13, %vm1333_vm2  ;;  %v10167_v47 = vmov 0  ;;  %v10170_v12 = vmax.f32 %v8706_v15, 0.0  ;;  %6351 = vmatmul.mubr.bf16.gmra.mrb[12].mxu0 %v8783_v48 }
 0x14c   : > { %10165 = vst [vmem:[#allocation126_spill] sm:$0xff] %v10164_v26  ;;  %v10168_v47 = vsel %vm8785_vm8, 4294967295, %v10167_v47  ;;  %v812_v10 = vsub.s32 %v391_v37, %v811_v31  ;;  %v5698_v55 = vunpack.c.h.bf16 %v8746_v19  ;;  %v392_v39 = vadd.s32 272, %v7620_v1  ;;  %v5810_v26 = vld [vmem:[%s7606_s7 + $0x90] sm:$0xff]  }
 0x14d   : > { %10169 = vst [vmem:[#allocation127_spill] sm:$0xff] %v10168_v47  ;;  %v1674_v57 = vsel %vm8776_vm3, %v10170_v12, 0.0  ;;  %v10171_v42 = vmax.f32 %v8713_v4, 0.0  ;;  %vm924_vm11 = vcmp.ne.s32.totalorder %v801_v33, 0  ;;  %vm965_vm5 = vcmp.lt.s32.totalorder %v801_v33, 0 }
 0x14e   : > { %v1047_v5 = vadd.s32 18, %v801_v33  ;;  %vm925_vm7 = vcmp.ne.s32.totalorder %v812_v10, 0  ;;  %vm966_vm13 = vcmp.lt.s32.totalorder %v812_v10, 0  ;;  %vm1006_vm2 = vmand %vm965_vm5, %vm924_vm11  ;;  %v1048_v19 = vadd.s32 18, %v812_v10 }
 0x14f   : > { %v1675_v23 = vsel %vm8785_vm8, %v10171_v42, 0.0  ;;  %vm1007_vm1 = vmand %vm966_vm13, %vm925_vm7  ;;  %v393_v12 = vadd.s32 280, %v7620_v1  ;;  %v8809_v42 = vmul.u32.u64.low 3817748708, %v392_v39  ;;  %v8810_v44 = vmul.u32.u64.high 3817748708, %v392_v39, %v8809_v42 }
 0x150   : > { %v8804_v37 = vpack.c.bf16 %v1675_v23, %v1674_v57  ;;  %v8806_v31 = vsel %vm1006_vm2, %v1047_v5, %v801_v33  ;;  %v8815_v34 = vsel %vm1007_vm1, %v1048_v19, %v812_v10  ;;  %v10175_v5 = vmov 0 }
 0x151   : > { %10172 = vst [vmem:[#allocation128_spill] sm:$0xff] %v8806_v31  ;;  %10174 = vst [vmem:[#allocation130_spill] sm:$0xff] %v8815_v34  ;;  %vm1252_vm0 = vcmp.ge.s32.totalorder %v8806_v31, 1  ;;  %vm1334_vm3 = vcmp.le.s32.totalorder %v8806_v31, 16  ;;  %vm1253_vm11 = vcmp.ge.s32.totalorder %v8815_v34, 1  ;;  %vm1335_vm5 = vcmp.le.s32.totalorder %v8815_v34, 16 }
 0x152   : > { %v8813_v36 = vshll.u32 %v8804_v37, 16  ;;  %vm8821_vm7 = vmand %vm1252_vm0, %vm1334_vm3  ;;  %v8826_v33 = vshrl.u32 %v8804_v37, 16  ;;  %v1466_v57 = vmul.f32 %v8177_v51, %v5697_v58  ;;  %v10179_v23 = vmov 0 }
 0x153   : > { %v10176_v5 = vsel %vm8821_vm7, 4294967295, %v10175_v5  ;;  %vm8830_vm13 = vmand %vm1253_vm11, %vm1335_vm5  ;;  %v10182_v19 = vmax.f32 %v8753_v40, 0.0  ;;  %v8838_v34 = vmul.u32.u64.low 3817748708, %v393_v12  ;;  %v8839_v31 = vmul.u32.u64.high 3817748708, %v393_v12, %v8838_v34 }
 0x154   : > { %10173 = vst [vmem:[#allocation129_spill] sm:$0xff] %v8813_v36  ;;  %10177 = vst [vmem:[#allocation131_spill] sm:$0xff] %v10176_v5  ;;  %v1860_v10 = vrot.slane %v8813_v36, 1  ;;  %v10180_v23 = vsel %vm8830_vm13, 4294967295, %v10179_v23  ;;  %v10183_v54 = vmax.f32 %v8756_v30, 0.0  ;;  %v821_v58 = vshrl.u32 %v8810_v44, 4 }
 0x155   : > { %10178 = vst [vmem:[#allocation132_spill] sm:$0xff] %v8826_v33  ;;  %10181 = vst [vmem:[#allocation133_spill] sm:$0xff] %v10180_v23  ;;  %v1676_v42 = vsel %vm8821_vm7, %v10182_v19, 0.0  ;;  %v1467_v36 = vmul.f32 %v8177_v51, %v5698_v55  ;;  %vm10184_vm0 = vsmask.f32 7424  ;;  %v3412_v34 = vrot.slane %v8422_v25, 2 }
 0x156   : > { %v1677_v28 = vsel %vm8830_vm13, %v10183_v54, 0.0  ;;  %v1861_v19 = vsel %vm10184_vm0, %v8761_v38, %v1860_v10  ;;  %v1864_v54 = vor.u32 %v8826_v33, %v1860_v10  ;;  %v822_v47 = vmul.u32 18, %v821_v58  ;;  %vm10190_vm5 = vmmov %vm10184_vm0 }
 0x157   : > { %v8853_v49 = vpack.c.bf16 %v1677_v28, %v1676_v42  ;;  %6106 = vmatprep.mubr.bf16.mxu1 %v1861_v19  ;;  %v8859_v44 = vadd.f32 %v8205_v45, %v1466_v57  ;;  %v832_v55 = vshrl.u32 %v8839_v31, 4  ;;  %v8866_v5 = vadd.f32 %v8205_v45, %v1467_v36 }
 0x158   : > { %v10187_v38 = vrot.slane %v8325_v29, 2  ;;  %vm10188_vm2 = vcmask 1045504   ;;  %v823_v42 = vsub.s32 %v392_v39, %v822_v47  ;;  %v5701_v10 = vunpack.c.l.bf16 %v5810_v26 }
 0x159   : > { %10185 = vst [vmem:[#allocation134_spill] sm:$0xff] %v8853_v49  ;;  %v8862_v51 = vshll.u32 %v8853_v49, 16  ;;  %v394_v57 = vadd.s32 288, %v7620_v1  ;;  %v833_v19 = vmul.u32 18, %v832_v55  ;;  %v5702_v33 = vunpack.c.h.bf16 %v5810_v26  ;;  %v8885_v26 = vld [vmem:[#allocation7] ss:$0 sm:$0xff] }
 0x15a   : > { %v8871_v28 = vsel %vm10188_vm2, %v10187_v38, %v3412_v34  ;;  %vm926_vm1 = vcmp.ne.s32.totalorder %v823_v42, 0  ;;  %vm967_vm11 = vcmp.lt.s32.totalorder %v823_v42, 0  ;;  %v1049_v31 = vadd.s32 18, %v823_v42 }
 0x15b   : > { %10186 = vst [vmem:[#allocation135_spill] sm:$0xff] %v8862_v51  ;;  %10189 = vst [vmem:[#allocation136_spill] sm:$0xff] %v8871_v28  ;;  %6354 = vmatprep.mubr.bf16.mxu0 %v8871_v28  ;;  %v1868_v58 = vrot.slane %v8862_v51, 1  ;;  %v395_v45 = vadd.s32 296, %v7620_v1  ;;  %v834_v25 = vsub.s32 %v393_v12, %v833_v19  ;;  %v9899_v47 = vmax.f32 %v8859_v44, 0.0 }
 0x15c   : > { %vm1008_vm0 = vmand %vm967_vm11, %vm926_vm1  ;;  %v8882_v29 = vmul.u32.u64.low 3817748708, %v394_v57  ;;  %v8883_v51 = vmul.u32.u64.high 3817748708, %v394_v57, %v8882_v29  ;;  %v1468_v55 = vmul.f32 %v8885_v26, %v5701_v10  ;;  %v3414_v10 = vrot.slane %v8490_v52, 2 }
 0x15d   : > { %v1869_v36 = vsel %vm10190_vm5, %v1864_v54, %v1868_v58  ;;  %v8880_v38 = vsel %vm1008_vm0, %v1049_v31, %v823_v42  ;;  %vm927_vm2 = vcmp.ne.s32.totalorder %v834_v25, 0  ;;  %vm968_vm3 = vcmp.lt.s32.totalorder %v834_v25, 0 }
 0x15e   : > { %6107 = vmatmul.mubr.bf16.gmra.mrb[28].mxu1 %v1869_v36  ;;  %10191 = vst [vmem:[#allocation137_spill] sm:$0xff] %v8880_v38  ;;  %v1050_v23 = vadd.s32 18, %v834_v25  ;;  %vm1254_vm5 = vcmp.ge.s32.totalorder %v8880_v38, 1  ;;  %vm1009_vm1 = vmand %vm968_vm3, %vm927_vm2  ;;  %vm1336_vm11 = vcmp.le.s32.totalorder %v8880_v38, 16  ;;  %v1469_v42 = vmul.f32 %v8885_v26, %v5702_v33 }
 0x15f   : > { %v8890_v12 = vmul.u32.u64.low 3817748708, %v395_v45  ;;  %v8891_v54 = vmul.u32.u64.high 3817748708, %v395_v45, %v8890_v12  ;;  %vm8896_vm0 = vmand %vm1254_vm5, %vm1336_vm11  ;;  %v10193_v29 = vmov 0  ;;  %v843_v36 = vshrl.u32 %v8883_v51, 4 }
 0x160   : > { %v8894_v19 = vsel %vm1009_vm1, %v1050_v23, %v834_v25  ;;  %v10194_v29 = vsel %vm8896_vm0, 4294967295, %v10193_v29  ;;  %v1678_v31 = vsel %vm8896_vm0, %v9899_v47, 0.0  ;;  %v10196_v25 = vmov 0  ;;  %v8915_v23 = vld [vmem:[#allocation8] ss:$0 sm:$0xff] }
 0x161   : > { %10192 = vst [vmem:[#allocation138_spill] sm:$0xff] %v8894_v19  ;;  %10195 = vst [vmem:[#allocation139_spill] sm:$0xff] %v10194_v29  ;;  %vm1255_vm7 = vcmp.ge.s32.totalorder %v8894_v19, 1  ;;  %vm1337_vm13 = vcmp.le.s32.totalorder %v8894_v19, 16  ;;  %v8913_v33 = vshrl.u32 %v8853_v49, 16  ;;  %v1516_v12 = vadd.f32 %v8915_v23, %v1468_v55 }
 0x162   : > { %vm8908_vm3 = vmand %vm1255_vm7, %vm1337_vm13  ;;  %vm10200_vm2 = vcmask 1045504   ;;  %v3416_v19 = vrot.slane %v8585_v16, 2  ;;  %v10202_v47 = vmax.f32 %v8866_v5, 0.0  ;;  %v844_v38 = vmul.u32 18, %v843_v36 }
 0x163   : > { %v10197_v25 = vsel %vm8908_vm3, 4294967295, %v10196_v25  ;;  %10199 = vst [vmem:[#allocation141_spill] sm:$0xff] %v8913_v33  ;;  %v8919_v39 = vsel %vm10200_vm2, %v3412_v34, %v3414_v10  ;;  %v854_v52 = vshrl.u32 %v8891_v54, 4  ;;  %v1517_v28 = vadd.f32 %v8915_v23, %v1469_v42  ;;  %vm10203_vm13 = vmmov %vm10200_vm2 }
 0x164   : > { %10198 = vst [vmem:[#allocation140_spill] sm:$0xff] %v10197_v25  ;;  %10201 = vst [vmem:[#allocation142_spill] sm:$0xff] %v8919_v39  ;;  %v1679_v51 = vsel %vm8908_vm3, %v10202_v47, 0.0  ;;  %6355 = vmatmul.mubr.bf16.gmra.mrb[16].mxu0 %v8919_v39  ;;  %v8936_v55 = vsel %vm10203_vm13, %v3414_v10, %v3416_v19  ;;  %v3418_v16 = vrot.slane %v8642_v41, 2  ;;  %v3420_v47 = vrot.slane %v8720_v8, 2 }
 0x165   : > { %v8933_v34 = vpack.c.bf16 %v1679_v51, %v1678_v31  ;;  %v845_v36 = vsub.s32 %v394_v57, %v844_v38  ;;  %v855_v54 = vmul.u32 18, %v854_v52  ;;  %6358 = vmatprep.mubr.bf16.mxu0 %v8936_v55  ;;  %v1872_v42 = vor.u32 %v8913_v33, %v1868_v58  ;;  %vm10205_vm13 = vmmov %vm10200_vm2 }
 0x166   : > { %v1557_v25 = vmax.f32 %v1516_v12, 0.0  ;;  %v1558_v51 = vmax.f32 %v1517_v28, 0.0  ;;  %v8947_v8 = vsel %vm10200_vm2, %v3416_v19, %v3418_v16  ;;  %v8950_v52 = vsel %vm10205_vm13, %v3418_v16, %v3420_v47 }
 0x167   : > { %v8943_v29 = vshll.u32 %v8933_v34, 16  ;;  %v856_v39 = vsub.s32 %v395_v45, %v855_v54  ;;  %vm928_vm5 = vcmp.ne.s32.totalorder %v845_v36, 0  ;;  %vm969_vm1 = vcmp.lt.s32.totalorder %v845_v36, 0 }
 0x168   : > { %v1051_v31 = vadd.s32 18, %v845_v36  ;;  %vm1010_vm11 = vmand %vm969_vm1, %vm928_vm5  ;;  %vm10206_vm3 = vsmask.f32 7424  ;;  %v8954_v38 = vshrl.u32 %v8933_v34, 16  ;;  %v3422_v16 = vrot.slane %v8804_v37, 2 }
 0x169   : > { %10204 = vst [vmem:[#allocation143_spill] sm:$0xff] %v8943_v29  ;;  %v1876_v10 = vrot.slane %v8943_v29, 1  ;;  %vm929_vm7 = vcmp.ne.s32.totalorder %v856_v39, 0  ;;  %vm970_vm0 = vcmp.lt.s32.totalorder %v856_v39, 0  ;;  %v1052_v57 = vadd.s32 18, %v856_v39 }
 0x16a   : > { %v1092_v58 = vsel %vm1010_vm11, %v1051_v31, %v845_v36  ;;  %vm1011_vm8 = vmand %vm970_vm0, %vm929_vm7  ;;  %10207 = vst [vmem:[#allocation144_spill] sm:$0xff] %v8954_v38  ;;  %v3424_v12 = vrot.slane %v8853_v49, 2  ;;  %v353_v36 = vld [vmem:[%s7606_s7 + $0x98] sm:$0xf] }
 0x16b   : > { %v1877_v45 = vsel %vm10206_vm3, %v1872_v42, %v1876_v10  ;;  %vm1256_vm10 = vcmp.ge.s32.totalorder %v1092_v58, 1  ;;  %vm1338_vm4 = vcmp.le.s32.totalorder %v1092_v58, 16  ;;  %v1093_v28 = vsel %vm1011_vm8, %v1052_v57, %v856_v39  ;;  %vm10221_vm8 = vmmov %vm10206_vm3 }
 0x16c   : > { %6110 = vmatprep.mubr.bf16.mxu1 %v1877_v45  ;;  %vm1379_vm5 = vmand %vm1256_vm10, %vm1338_vm4  ;;  %6359 = vmatmul.mubr.bf16.gmra.mrb[20].mxu0 %v8947_v8  ;;  %vm1257_vm1 = vcmp.ge.s32.totalorder %v1093_v28, 1  ;;  %vm1339_vm2 = vcmp.le.s32.totalorder %v1093_v28, 16  ;;  %v396_v42 = vadd.s32 304, %v7620_v1  ;;  %v1880_v39 = vor.u32 %v8954_v38, %v1876_v10 }
 0x16d   : > { %v1680_v19 = vsel %vm1379_vm5, %v1557_v25, 0.0  ;;  %6362 = vmatprep.mubr.bf16.mxu0 %v8950_v52  ;;  %vm1380_vm0 = vmand %vm1257_vm1, %vm1339_vm2  ;;  %v1422_v28 = vunpack.c.l.bf16 %v353_v36  ;;  %v10211_v1 = vmax.f32 %v8538_v3, 0.0  ;;  %v10218_v3 = vmax.f32 %v8756_v30, 0.0 }
 0x16e   : > { %v8961_v54 = vpack.c.bf16 %v1680_v19, %v1680_v19  ;;  %v1681_v31 = vsel %vm1380_vm0, %v1558_v51, 0.0  ;;  %v8966_v58 = vmul.u32.u64.low 3817748708, %v396_v42  ;;  %v8967_v45 = vmul.u32.u64.high 3817748708, %v396_v42, %v8966_v58  ;;  %vm10209_vm4 = vmmov %vm10205_vm13 }
 0x16f   : > { %v8970_v25 = vsel %vm10209_vm4, %v3420_v47, %v3422_v16  ;;  %vm10210_vm10 = vmmov %vm10209_vm4  ;;  %v8975_v49 = vpack.c.bf16 %v1681_v31, %v1680_v19  ;;  %v10212_v51 = vmax.f32 %v8541_v35, 0.0  ;;  %v10214_v58 = vmax.f32 %v8645_v27, 0.0 }
 0x170   : > { %10208 = vst [vmem:[#allocation145_spill] sm:$0xff] %v8961_v54  ;;  %v1882_v57 = vshll.u32 %v8961_v54, 16  ;;  %v8973_v29 = vsel %vm10210_vm10, %v3422_v16, %v3424_v12  ;;  %v10213_v54 = vmax.f32 %v8629_v61, 0.0  ;;  %v10215_v47 = vmax.f32 %v8706_v15, 0.0  ;;  %vm10226_vm3 = vmmov %vm10209_vm4 }
 0x171   : > { %v8981_v10 = vpack.c.bf16 %v10212_v51, %v10211_v1  ;;  %v10216_v16 = vmax.f32 %v8713_v4, 0.0  ;;  %v10217_v19 = vmax.f32 %v8753_v40, 0.0  ;;  %v10219_v1 = vmax.f32 %v8859_v44, 0.0  ;;  %vm10227_vm7 = vmmov %vm10226_vm3 }
 0x172   : > { %v1884_v33 = vrot.slane %v1882_v57, 1  ;;  %v8987_v36 = vpack.c.bf16 %v10214_v58, %v10213_v54  ;;  %v10220_v35 = vmax.f32 %v8866_v5, 0.0  ;;  %v865_v4 = vshrl.u32 %v8967_v45, 4  ;;  %vm10228_vm2 = vmpackc.low %vm7726_vm14, %vm7711_vm12 }
 0x173   : > { %v8993_v38 = vpack.c.bf16 %v10216_v16, %v10215_v47  ;;  %v8999_v31 = vpack.c.bf16 %v10218_v3, %v10217_v19  ;;  %v1470_v15 = vmul.f32 %v8885_v26, %v1422_v28  ;;  %v3426_v40 = vrot.slane %v8933_v34, 2  ;;  %v7060_v16 = vld [vmem:[#allocation5 + $0x88] sm:$0xff]  }
 0x174   : > { %v9005_v61 = vpack.c.bf16 %v10220_v35, %v10219_v1  ;;  %v1885_v27 = vsel %vm10221_vm8, %v1880_v39, %v1884_v33  ;;  %6363 = vmatmul.mubr.bf16.gmra.mrb[24].mxu0 %v8970_v25  ;;  %v9928_v30 = vmov 0.0|0.0   ;;  %v9015_v5 = vrot.slane %v8975_v49, 2  ;;  %v7064_v35 = vld [vmem:[#allocation5 + $0x98] sm:$0xff]  }
 0x175   : > { %6111 = vmatmul.mubr.bf16.gmra.mrb[32].mxu1 %v1885_v27  ;;  %6366 = vmatprep.mubr.bf16.mxu0 %v8973_v29  ;;  %v866_v44 = vmul.u32 18, %v865_v4  ;;  %v1518_v33 = vadd.f32 %v8915_v23, %v1470_v15  ;;  %v10222_v39 = vmax.f32 %v7716_v0, 0.0  ;;  %v10223_v57 = vmax.f32 %v7719_v2, 0.0  ;;  %v10247_v4 = vld [vmem:[#allocation41_spill] sm:$0xff]  ;;  %v10295_v15 = vld [vmem:[#allocation86_spill] sm:$0xff] }
 0x176   : > { %6130 = vmatprep.mubr.bf16.mxu1 %v9928_v30  ;;  %v10224_v45 = vmax.f32 %v7737_v17, 0.0  ;;  %v10225_v28 = vmax.f32 %v7743_v22, 0.0  ;;  %v9027_v58 = vsel %vm10226_vm3, %v3424_v12, %v3426_v40  ;;  %v9031_v47 = vsel %vm10227_vm7, %v3426_v40, %v9015_v5  ;;  %v7098_v17 = vld [vmem:[#allocation5 + $0x80] sm:$0xff]   ;;  %v7062_v22 = vld [vmem:[#allocation5 + $0x90] sm:$0xff]  }
 0x177   : > { %v867_v54 = vsub.s32 %v396_v42, %v866_v44  ;;  %v5448_v26 = vpack.c.bf16 %v10223_v57, %v10222_v39  ;;  %vm1176_vm1 = vcmp.lt.s32.totalorder %v396_v42, 306  ;;  %v1559_v2 = vmax.f32 %v1518_v33, 0.0  ;;  %v10257_v40 = vld [vmem:[#allocation47_spill] sm:$0xff]  ;;  %v7071_v33 = vld [vmem:[#allocation5 + $0x1d0] sm:$0xff]   ;;  %v10259_v39 = vld [vmem:[#allocation54_spill] sm:$0xff] }
 0x178   : > { %v5451_v51 = vpack.c.bf16 %v10225_v28, %v10224_v45  ;;  %vm10229_vm10 = vnez %v9959_v18  ;;  %vm10230_vm8 = vnez %v9957_v6  ;;  %v10233_v12 = vmax.f32 %v7771_v50, 0.0  ;;  %v7066_v50 = vld [vmem:[#allocation5 + $0xa0] sm:$0xff]  }
 0x179   : > { %vm930_vm11 = vcmp.ne.s32.totalorder %v867_v54, 0  ;;  %vm971_vm13 = vcmp.lt.s32.totalorder %v867_v54, 0  ;;  %v1053_v23 = vadd.s32 18, %v867_v54  ;;  %vm10231_vm3 = vmpackc.low %vm10229_vm10, %vm10230_vm8  ;;  %v10234_v6 = vmax.f32 %v7844_v62, 0.0 }
 0x17a   : > { %vm1012_vm5 = vmand %vm971_vm13, %vm930_vm11  ;;  %v5454_v42 = vpack.c.bf16 %v10233_v12, %v10232_v63  ;;  %v10235_v18 = vmax.f32 %v7883_v9, 0.0  ;;  %vm10236_vm12 = vnez %v9968_v24  ;;  %vm10237_vm14 = vnez %v9966_v43  ;;  %v10274_v63 = vld [vmem:[#allocation65_spill] sm:$0xff] }
 0x17b   : > { %v1094_v0 = vsel %vm1012_vm5, %v1053_v23, %v867_v54  ;;  %vm10238_vm13 = vmpackc.low %vm10236_vm12, %vm10237_vm14  ;;  %vm10239_vm5 = vcmask 1045504   ;;  %v10242_v62 = vmax.f32 %v7920_v21, 0.0  ;;  %v10243_v43 = vmax.f32 %v7932_v60, 0.0  ;;  %v10251_v21 = vld [vmem:[#allocation49_spill] sm:$0xff]  ;;  %v7073_v23 = vld [vmem:[#allocation5 + $0x1d8] sm:$0xff]  }
 0x17c   : > { %6367 = vmatmul.mubr.bf16.gmra.mrb[28].mxu0 %v9027_v58  ;;  %vm1258_vm0 = vcmp.ge.s32.totalorder %v1094_v0, 1  ;;  %vm1340_vm4 = vcmp.le.s32.totalorder %v1094_v0, 16  ;;  %v5457_v3 = vpack.c.bf16 %v10235_v18, %v10234_v6  ;;  %v10244_v9 = vmax.f32 %v8008_v14, 0.0  ;;  %v7070_v60 = vld [vmem:[#allocation5 + $0xb0] sm:$0xff]   ;;  %v10269_v0 = vld [vmem:[#allocation64_spill] sm:$0xff] }
 0x17d   : > { %6131 = vmatmul.mubr.msk.bf16.vlgmr.msra.gmra.mrb[0].mxu1 %vm10228_vm2, %v5448_v26  ;;  %6370 = vmatprep.mubr.bf16.mxu0 %v9031_v47  ;;  %vm1299_vm7 = vmand %vm1176_vm1, %vm1258_vm0  ;;  %vm10240_vm1 = vnez %v9974_v13  ;;  %v5460_v24 = vpack.c.bf16 %v10243_v43, %v10242_v62  ;;  %v10245_v27 = vmax.f32 %v8022_v46, 0.0  ;;  %v7068_v13 = vld [vmem:[#allocation5 + $0xa8] sm:$0xff]   ;;  %vm10248_vm0 = vnez %v10247_v4  ;;  %v10254_v14 = vld [vmem:[#allocation113_spill] sm:$0xff] }
 0x17e   : > { %6167 = vmatpush3.bf16.msra.mxu1 %v7098_v17  ;;  %6134 = vmatprep.mubr.msk.bf16.mxu1 %vm10231_vm3, %v5451_v51  ;;  %vm1381_vm11 = vmand %vm1299_vm7, %vm1340_vm4  ;;  %vm10252_vm10 = vnez %v10251_v21  ;;  %v10258_v44 = vmax.f32 %v10257_v40, 0.0  ;;  %v10260_v57 = vmax.f32 %v10259_v39, 0.0  ;;  %v10261_v26 = vld [vmem:[#allocation58_spill] sm:$0xff]  ;;  %v10263_v51 = vld [vmem:[#allocation59_spill] sm:$0xff]  ;;  %v10275_v12 = vmax.f32 %v10274_v63, 0.0 }
 0x17f   : > { %6168 = vmatprep.subr.bf16.mxu1 %v7060_v16  ;;  %v9045_v7 = vsel %vm1381_vm11, %v1559_v2, 0.0  ;;  %vm10241_vm2 = vmpackc.low %vm10044_vm15, %vm10240_vm1  ;;  %v5463_v20 = vpack.c.bf16 %v10245_v27, %v10244_v9  ;;  %vm10246_vm15 = vnez %v9989_v53  ;;  %v10255_v53 = vld [vmem:[#allocation44_spill] sm:$0xff]  ;;  %v10262_v45 = vmax.f32 %v10261_v26, 0.0  ;;  %v10272_v2 = vld [vmem:[#allocation103_spill] sm:$0xff] }
 0x180   : > { %v9053_v19 = vpack.c.bf16 %v9045_v7, %v9045_v7  ;;  %vm10249_vm4 = vmpackc.low %vm10246_vm15, %vm10248_vm0  ;;  %v10256_v46 = vmax.f32 %v10255_v53, 0.0  ;;  %vm10270_vm11 = vnez %v10269_v0  ;;  %v7074_v17 = vld [vmem:[#allocation5 + $0xc0] sm:$0xff]   ;;  %v7077_v9 = vld [vmem:[#allocation5 + $0x1e8] sm:$0xff]   ;;  %v10296_v21 = vmax.f32 %v10295_v15, 0.0 }
 0x181   : > { %vm10253_vm8 = vmpackc.low %vm10062_vm6, %vm10252_vm10  ;;  %v5469_v28 = vpack.c.bf16 %v10262_v45, %v10260_v57  ;;  %vm10264_vm6 = vnez %v10263_v51  ;;  %v10282_v43 = vld [vmem:[#allocation75_spill] sm:$0xff]  ;;  %v10293_v4 = vld [vmem:[#allocation84_spill] sm:$0xff] }
 0x182   : > { %6169 = vmatpush3.bf16.msra.mxu1 %v7060_v16  ;;  %v3430_v1 = vrot.slane %v9053_v19, 2  ;;  %v5466_v54 = vpack.c.bf16 %v10258_v44, %v10256_v46  ;;  %vm10271_vm12 = vmpackc.low %vm8230_vm9, %vm10270_vm11  ;;  %vm10283_vm9 = vnez %v10282_v43  ;;  %v10287_v27 = vld [vmem:[#allocation87_spill] sm:$0xff]  ;;  %v10297_v53 = vld [vmem:[#allocation93_spill] sm:$0xff] }
 0x183   : > { %6170 = vmatprep.subr.bf16.mxu1 %v7062_v22  ;;  %v10298_v46 = vmax.f32 %v10297_v53, 0.0  ;;  %v10299_v40 = vld [vmem:[#allocation95_spill] sm:$0xff]  ;;  %v10303_v39 = vld [vmem:[#allocation94_spill] sm:$0xff]  ;;  %v10306_v57 = vld [vmem:[#allocation104_spill] sm:$0xff] }
 0x184   : > { %v3431_v32 = vsel %vm10239_vm5, %v9015_v5, %v3430_v1  ;;  %v10278_v1 = vld [vmem:[#allocation76_spill] sm:$0xff]  ;;  %vm10288_vm5 = vnez %v10287_v27  ;;  %v10300_v44 = vmax.f32 %v10299_v40, 0.0  ;;  %vm10304_vm0 = vnez %v10303_v39  ;;  %v10308_v26 = vld [vmem:[#allocation102_spill] sm:$0xff]  ;;  %v10313_v51 = vld [vmem:[#allocation111_spill] sm:$0xff] }
 0x185   : > { %6135 = vmatmul.mubr.msk.bf16.gmra.mrb[4].mxu1 %vm10238_vm13, %v5454_v42  ;;  %6371 = vmatmul.mubr.bf16.gmra.mrb[32].mxu0 %v3431_v32  ;;  %v10276_v42 = vld [vmem:[#allocation67_spill] sm:$0xff]  ;;  %v10280_v32 = vld [vmem:[#allocation77_spill] sm:$0xff]  ;;  %vm10307_vm10 = vnez %v10306_v57  ;;  %v10311_v45 = vld [vmem:[#allocation136_spill] sm:$0xff] }
 0x186   : > { %6138 = vmatprep.mubr.msk.bf16.mxu1 %vm10241_vm2, %v5457_v3  ;;  %6171 = vmatpush3.bf16.msra.mxu1 %v7062_v22  ;;  %v10273_v22 = vld [vmem:[#allocation112_spill] sm:$0xff]  ;;  %v10277_v6 = vmax.f32 %v10276_v42, 0.0  ;;  %v7075_v3 = vld [vmem:[#allocation5 + $0x1e0] sm:$0xff]   ;;  %v10320_v16 = vld [vmem:[#allocation118_spill] sm:$0xff]  ;;  %v7353_v42 = vmov 0.0  }
 0x187   : > { %6172 = vmatprep.subr.bf16.mxu1 %v7064_v35  ;;  %6390 = vmatprep.mubr.bf16.mxu0 %v8338_v59  ;;  %v7069_v59 = vld [vmem:[#allocation5 + $0x1c8] sm:$0xff]   ;;  %v10323_v0 = vld [vmem:[#allocation127_spill] sm:$0xff]  ;;  %v10344_v43 = vld [vmem:[#allocation34_spill] sm:$0xff] }
 0x188   : > { %v5472_v18 = vpack.c.bf16 %v10277_v6, %v10275_v12  ;;  %v10333_v63 = vld [vmem:[#allocation23_spill] sm:$0xff]  ;;  %v10339_v6 = vld [vmem:[#allocation26_spill] sm:$0xff]  ;;  %v10346_v27 = vld [vmem:[#allocation36_spill] sm:$0xff] }
 0x189   : > { %v10336_v12 = vld [vmem:[#allocation139_spill] sm:$0xff]  ;;  %v10350_v40 = vld [vmem:[#allocation37_spill] sm:$0xff] }
 0x18a   : > { %6173 = vmatpush3.bf16.msra.mxu1 %v7064_v35  ;;  %v10279_v35 = vmax.f32 %v10278_v1, 0.0 }
 0x18b   : > { %6174 = vmatprep.subr.bf16.mxu1 %v7066_v50 }
 0x18d   : > { %6139 = vmatmul.mubr.msk.bf16.gmra.mrb[8].mxu1 %vm10249_vm4, %v5460_v24  ;;  %6391 = vmatmul.mubr.bf16.vlgmr.msra.gmra.mrb[0].mxu0 %v8416_v56  ;;  %v7072_v56 = vld [vmem:[#allocation5 + $0xb8] sm:$0xff]  }
 0x18e   : > { %6142 = vmatprep.mubr.msk.bf16.mxu1 %vm10253_vm8, %v5463_v20  ;;  %6175 = vmatpush3.bf16.msra.mxu1 %v7066_v50  ;;  %v10281_v50 = vmax.f32 %v10280_v32, 0.0  ;;  %v10284_v24 = vld [vmem:[#allocation74_spill] sm:$0xff]  ;;  %v10289_v20 = vld [vmem:[#allocation83_spill] sm:$0xff]  ;;  %vm10309_vm8 = vnez %v10308_v26 }
 0x18f   : > { %6176 = vmatprep.subr.bf16.mxu1 %v7068_v13  ;;  %6394 = vmatprep.mubr.bf16.mxu0 %v8511_v11  ;;  %v10265_v11 = vld [vmem:[#allocation57_spill] sm:$0xff]  ;;  %vm10285_vm14 = vnez %v10284_v24  ;;  %vm10290_vm1 = vnez %v10289_v20  ;;  %v2398_v20 = vrot.slane %v10346_v27, 1  ;;  %v10353_v26 = vld [vmem:[#allocation51_spill] sm:$0xff] }
 0x190   : > { %6427 = vmatpush3.bf16.msra.mxu0 %v10254_v14  ;;  %vm10266_vm3 = vnez %v10265_v11  ;;  %v5475_v62 = vpack.c.bf16 %v10281_v50, %v10279_v35  ;;  %vm10286_vm13 = vmpackc.low %vm10283_vm9, %vm10285_vm14  ;;  %v7079_v14 = vld [vmem:[#allocation5 + $0x1f0] sm:$0xff]   ;;  %vm10321_vm9 = vnez %v10320_v16  ;;  %v7076_v35 = vld [vmem:[#allocation5 + $0xc8] sm:$0xff]  }
 0x191   : > { %6428 = vmatprep.subr.bf16.mxu0 %v7069_v59  ;;  %vm10267_vm7 = vmpackc.low %vm10264_vm6, %vm10266_vm3  ;;  %vm10314_vm3 = vnez %v10313_v51  ;;  %v10315_v11 = vld [vmem:[#allocation109_spill] sm:$0xff] }
 0x192   : > { %6177 = vmatpush3.bf16.msra.mxu1 %v7068_v13  ;;  %vm10291_vm2 = vmpackc.low %vm10288_vm5, %vm10290_vm1  ;;  %v10292_v13 = vld [vmem:[#allocation121_spill] sm:$0xff] }
 0x193   : > { %6178 = vmatprep.subr.bf16.mxu1 %v7070_v60  ;;  %vm10310_vm6 = vmpackc.low %vm10307_vm10, %vm10309_vm8  ;;  %vm10337_vm8 = vnez %v10336_v12  ;;  %v10345_v24 = vld [vmem:[#allocation33_spill] sm:$0xff]  ;;  %v10357_v12 = vld [vmem:[#allocation63_spill] sm:$0xff] }
 0x194   : > { %6429 = vmatpush3.bf16.msra.mxu0 %v7069_v59  ;;  %v10294_v59 = vmax.f32 %v10293_v4, 0.0 }
 0x195   : > { %6143 = vmatmul.mubr.msk.bf16.gmra.mrb[12].mxu1 %vm10267_vm7, %v5466_v54  ;;  %6430 = vmatprep.subr.bf16.mxu0 %v7071_v33  ;;  %v5481_v54 = vpack.c.bf16 %v10300_v44, %v10298_v46  ;;  %vm10316_vm7 = vnez %v10315_v11  ;;  %v10349_v46 = vld [vmem:[#allocation38_spill] sm:$0xff]  ;;  %v4025_v44 = vrot.slane %v10350_v40, 3  ;;  %v7082_v11 = vld [vmem:[#allocation5 + $0xe0] sm:$0xff]  }
 0x196   : > { %6146 = vmatprep.mubr.msk.bf16.mxu1 %vm10271_vm12, %v5469_v28  ;;  %6179 = vmatpush3.bf16.msra.mxu1 %v7070_v60  ;;  %v5478_v60 = vpack.c.bf16 %v10296_v21, %v10294_v59  ;;  %v10312_v28 = vld [vmem:[#allocation142_spill] sm:$0xff]  ;;  %vm10317_vm11 = vmpackc.low %vm10314_vm3, %vm10316_vm7  ;;  %vm10342_vm3 = vcmask 1045504   ;;  %v7078_v59 = vld [vmem:[#allocation5 + $0xd0] sm:$0xff]   ;;  %vm4016_vm7 = vsmask.f32 5376 }
 0x197   : > { %6395 = vmatmul.mubr.bf16.gmra.mrb[4].mxu0 %v10272_v2  ;;  %6180 = vmatprep.subr.bf16.mxu1 %v7072_v56  ;;  %v10325_v2 = vld [vmem:[#allocation126_spill] sm:$0xff] }
 0x198   : > { %6398 = vmatprep.mubr.bf16.mxu0 %v10273_v22  ;;  %6431 = vmatpush3.bf16.msra.mxu0 %v7071_v33  ;;  %v10301_v33 = vld [vmem:[#allocation96_spill] sm:$0xff]  ;;  %vm10326_vm5 = vnez %v10325_v2  ;;  %v10330_v22 = vld [vmem:[#allocation131_spill] sm:$0xff]  ;;  %v7089_v40 = vld [vmem:[#allocation5 + $0x218] sm:$0xff]  }
 0x199   : > { %6432 = vmatprep.subr.bf16.mxu0 %v7073_v23  ;;  %vm10302_vm15 = vnez %v10301_v33  ;;  %v10351_v33 = vld [vmem:[#allocation46_spill] sm:$0xff] }
 0x19a   : > { %6181 = vmatpush3.bf16.msra.mxu1 %v7072_v56  ;;  %vm10305_vm4 = vmpackc.low %vm10302_vm15, %vm10304_vm0  ;;  %v9154_v56 = vld [vmem:[#allocation5 + $0x200] sm:$0xff]   ;;  %vm10331_vm15 = vnez %v10330_v22  ;;  %v4028_v39 = vrot.slane %v10351_v33, 2  ;;  %v10366_v33 = vld [vmem:[#allocation97_spill] sm:$0xff] }
 0x19b   : > { %6218 = vmatprep.subr.bf16.mxu1 %v7074_v17 }
 0x19c   : > { %6433 = vmatpush3.bf16.msra.mxu0 %v7073_v23  ;;  %v10318_v23 = vld [vmem:[#allocation119_spill] sm:$0xff] }
 0x19d   : > { %6147 = vmatmul.mubr.msk.bf16.gmra.mrb[16].mxu1 %vm10286_vm13, %v5472_v18  ;;  %6434 = vmatprep.subr.bf16.mxu0 %v7075_v3  ;;  %vm10319_vm12 = vnez %v10318_v23  ;;  %vm10324_vm13 = vnez %v10323_v0  ;;  %v2394_v18 = vrot.slane %v10339_v6, 1 }
 0x19e   : > { %6150 = vmatprep.mubr.msk.bf16.mxu1 %vm10291_vm2, %v5475_v62  ;;  %vm10322_vm14 = vmpackc.low %vm10319_vm12, %vm10321_vm9  ;;  %v10343_v62 = vld [vmem:[#allocation27_spill] sm:$0xff]  ;;  %vm4398_vm12 = vcmask 1044480   ;;  %vm10389_vm9 = vsmask.f32 6400 }
 0x19f   : > { %6399 = vmatmul.mubr.bf16.gmra.mrb[8].mxu0 %v10292_v13  ;;  %vm10327_vm1 = vmpackc.low %vm10324_vm13, %vm10326_vm5  ;;  %v10347_v13 = vld [vmem:[#allocation42_spill] sm:$0xff] }
 0x1a0   : > { %6402 = vmatprep.mubr.bf16.mxu0 %v8783_v48  ;;  %6435 = vmatpush3.bf16.msra.mxu0 %v7075_v3  ;;  %v7081_v48 = vld [vmem:[#allocation5 + $0x1f8] sm:$0xff]   ;;  %v2400_v4 = vrot.slane %v10347_v13, 1  ;;  %vm10391_vm13 = vmmov %vm10389_vm9 }
 0x1a1   : > { %6436 = vmatprep.subr.bf16.mxu0 %v7077_v9  ;;  %vm10394_vm5 = vmmov %vm10389_vm9 }
 0x1a4   : > { %6437 = vmatpush3.bf16.msra.mxu0 %v7077_v9  ;;  %v4021_v9 = vrot.slane %v10345_v24, 3 }
 0x1a5   : > { %6151 = vmatmul.mubr.msk.bf16.gmra.mrb[20].mxu1 %vm10305_vm4, %v5478_v60  ;;  %6438 = vmatprep.subr.bf16.mxu0 %v7079_v14  ;;  %vm2390_vm4 = vcmask 1046528  }
 0x1a6   : > { %6154 = vmatprep.mubr.msk.bf16.mxu1 %vm10310_vm6, %v5481_v54 }
 0x1a7   : > { %6403 = vmatmul.mubr.bf16.gmra.mrb[12].mxu0 %v10311_v45  ;;  %v2402_v45 = vrot.slane %v10353_v26, 1 }
 0x1a8   : > { %6406 = vmatprep.mubr.bf16.mxu0 %v10312_v28  ;;  %6439 = vmatpush3.bf16.msra.mxu0 %v7079_v14  ;;  %v7080_v14 = vld [vmem:[#allocation5 + $0xd8] sm:$0xff]   ;;  %v10354_v28 = vld [vmem:[#allocation60_spill] sm:$0xff] }
 0x1a9   : > { %6440 = vmatprep.subr.bf16.mxu0 %v7081_v48  ;;  %v2404_v51 = vrot.slane %v10354_v28, 1  ;;  %v9237_v0 = vsel %vm2390_vm4, %v2400_v4, %v2402_v45 }
 0x1ab   : > { %v9240_v2 = vsel %vm2390_vm4, %v2402_v45, %v2404_v51  ;;  %v7090_v45 = vld [vmem:[#allocation5 + $0x220] sm:$0xff]  }
 0x1ac   : > { %6441 = vmatpush3.bf16.msra.mxu0 %v7081_v48  ;;  %v10352_v48 = vld [vmem:[#allocation45_spill] sm:$0xff] }
 0x1ad   : > { %6155 = vmatmul.mubr.msk.bf16.gmra.mrb[24].mxu1 %vm10317_vm11, %v8981_v10  ;;  %6478 = vmatprep.subr.bf16.mxu0 %v9154_v56  ;;  %v10328_v10 = vld [vmem:[#allocation133_spill] sm:$0xff]  ;;  %vm10348_vm11 = vmmov %vm10342_vm3  ;;  %v4029_v57 = vrot.slane %v10352_v48, 3 }
 0x1ae   : > { %6158 = vmatprep.mubr.msk.bf16.mxu1 %vm10322_vm14, %v8987_v36  ;;  %vm10329_vm2 = vnez %v10328_v10  ;;  %v2391_v36 = vrot.slane %v9928_v30, 1  ;;  %v7084_v10 = vld [vmem:[#allocation5 + $0xe8] sm:$0xff]   ;;  %vm10390_vm14 = vmmov %vm10389_vm9 }
 0x1af   : > { %6407 = vmatmul.mubr.bf16.gmra.mrb[16].mxu0 %v8936_v55  ;;  %vm10332_vm0 = vmpackc.low %vm10329_vm2, %vm10331_vm15  ;;  %v2392_v55 = vrot.slane %v10333_v63, 1  ;;  %v4030_v16 = vor.u32 %v4029_v57, %v4028_v39  ;;  %v2412_v39 = vrot.slane %v10366_v33, 1 }
 0x1b0   : > { %6410 = vmatprep.mubr.bf16.mxu0 %v8947_v8 }
 0x1b1   : > { %v2393_v8 = vsel %vm2390_vm4, %v2391_v36, %v2392_v55  ;;  %v9203_v1 = vsel %vm2390_vm4, %v2392_v55, %v2394_v18  ;;  %v10355_v36 = vld [vmem:[#allocation53_spill] sm:$0xff]  ;;  %v10356_v55 = vld [vmem:[#allocation52_spill] sm:$0xff] }
 0x1b2   : > { %v4032_v63 = vrot.slane %v10355_v36, 2  ;;  %v10368_v36 = vld [vmem:[#allocation89_spill] sm:$0xff] }
 0x1b5   : > { %6159 = vmatmul.mubr.msk.bf16.gmra.mrb[28].mxu1 %vm10327_vm1, %v8993_v38  ;;  %v10334_v38 = vld [vmem:[#allocation140_spill] sm:$0xff]  ;;  %vm10397_vm1 = vmmov %vm10394_vm5 }
 0x1b6   : > { %6162 = vmatprep.mubr.msk.bf16.mxu1 %vm10332_vm0, %v8999_v31  ;;  %vm10335_vm10 = vnez %v10334_v38  ;;  %v9195_v31 = vpack.c.bf16 %v7353_v42, %v9045_v7  ;;  %v10341_v7 = vld [vmem:[#allocation28_spill] sm:$0xff]  ;;  %v4036_v42 = vrot.slane %v10357_v12, 2  ;;  %v10370_v12 = vld [vmem:[#allocation98_spill] sm:$0xff]  ;;  %vm10400_vm2 = vmmov %vm10397_vm1 }
 0x1b7   : > { %6411 = vmatmul.mubr.bf16.gmra.mrb[20].mxu0 %v8950_v52  ;;  %vm10338_vm6 = vmpackc.low %vm10335_vm10, %vm10337_vm8  ;;  %v10340_v52 = vld [vmem:[#allocation31_spill] sm:$0xff]  ;;  %v4017_v32 = vrot.slane %v10341_v7, 2 }
 0x1b8   : > { %6414 = vmatprep.mubr.bf16.mxu0 %v8970_v25  ;;  %v2396_v3 = vrot.slane %v10340_v52, 1  ;;  %v3732_v25 = vrot.slane %v9195_v31, 2  ;;  %vm10403_vm15 = vmmov %vm10397_vm1 }
 0x1b9   : > { %vm10405_vm0 = vmmov %vm10397_vm1 }
 0x1ba   : > { %v3733_v50 = vsel %vm10342_vm3, %v9015_v5, %v3732_v25  ;;  %v3734_v5 = vrot.slane %v9928_v30, 2  ;;  %v9221_v60 = vsel %vm2390_vm4, %v2396_v3, %v2398_v20  ;;  %v10383_v30 = vld [vmem:[#allocation135_spill] sm:$0xff]  ;;  %vm10407_vm10 = vmmov %vm10405_vm0 }
 0x1bc   : > { %v3735_v53 = vsel %vm10348_vm11, %v3732_v25, %v3734_v5  ;;  %v7085_v25 = vld [vmem:[#allocation5 + $0x208] sm:$0xff]  }
 0x1bd   : > { %6163 = vmatmul.mubr.msk.bf16.gmra.mrb[32].mxu1 %vm10338_vm6, %v9005_v61  ;;  %v9206_v61 = vsel %vm2390_vm4, %v2394_v18, %v2396_v3  ;;  %v10358_v18 = vld [vmem:[#allocation62_spill] sm:$0xff] }
 0x1be   : > { %6182 = vmatprep.mubr.bf16.mxu1 %v2393_v8  ;;  %v4033_v8 = vrot.slane %v10356_v55, 3  ;;  %v4037_v3 = vrot.slane %v10358_v18, 3  ;;  %v7091_v18 = vld [vmem:[#allocation5 + $0x228] sm:$0xff]  }
 0x1bf   : > { %6415 = vmatmul.mubr.bf16.gmra.mrb[24].mxu0 %v8973_v29  ;;  %v4018_v29 = vrot.slane %v10343_v62, 3  ;;  %v7086_v62 = vld [vmem:[#allocation5 + $0xf0] sm:$0xff]  }
 0x1c0   : > { %6418 = vmatprep.mubr.bf16.mxu0 %v9027_v58  ;;  %v4020_v58 = vrot.slane %v10344_v43, 2  ;;  %v4038_v43 = vor.u32 %v4037_v3, %v4036_v42  ;;  %v4053_v42 = vrot.slane %v10370_v12, 3  ;;  %v10371_v3 = vld [vmem:[#allocation105_spill] sm:$0xff] }
 0x1c1   : > { %v4019_v15 = vor.u32 %v4018_v29, %v4017_v32  ;;  %v10360_v32 = vld [vmem:[#allocation78_spill] sm:$0xff]  ;;  %v4034_v29 = vor.u32 %v4033_v8, %v4032_v63  ;;  %v4049_v63 = vrot.slane %v10368_v36, 3  ;;  %v10369_v8 = vld [vmem:[#allocation99_spill] sm:$0xff] }
 0x1c2   : > { %v4022_v21 = vor.u32 %v4021_v9, %v4020_v58  ;;  %v7087_v58 = vld [vmem:[#allocation5 + $0x210] sm:$0xff]  }
 0x1c4   : > { %v4023_v54 = vsel %vm4016_vm7, %v4019_v15, %v4022_v21  ;;  %v10362_v15 = vld [vmem:[#allocation70_spill] sm:$0xff] }
 0x1c5   : > { %6183 = vmatmul.mubr.bf16.vlgmr.msra.gmra.mrb[0].mxu1 %v9203_v1 }
 0x1c6   : > { %6219 = vmatpush3.bf16.msra.mxu1 %v7074_v17  ;;  %6186 = vmatprep.mubr.bf16.mxu1 %v9206_v61  ;;  %v9224_v17 = vsel %vm2390_vm4, %v2398_v20, %v2400_v4  ;;  %v7088_v20 = vld [vmem:[#allocation5 + $0xf8] sm:$0xff]   ;;  %v4035_v4 = vsel %vm4016_vm7, %v4030_v16, %v4034_v29 }
 0x1c7   : > { %6220 = vmatprep.subr.bf16.mxu1 %v7076_v35  ;;  %6419 = vmatmul.mubr.bf16.gmra.mrb[28].mxu0 %v9031_v47  ;;  %v4024_v47 = vrot.slane %v10349_v46, 2  ;;  %v10364_v46 = vld [vmem:[#allocation79_spill] sm:$0xff] }
 0x1c8   : > { %6422 = vmatprep.mubr.bf16.mxu0 %v3733_v50  ;;  %v2408_v50 = vrot.slane %v10360_v32, 1 }
 0x1c9   : > { %v4026_v23 = vor.u32 %v4025_v44, %v4024_v47  ;;  %v4045_v47 = vrot.slane %v10364_v46, 3  ;;  %v10365_v44 = vld [vmem:[#allocation88_spill] sm:$0xff] }
 0x1ca   : > { %6221 = vmatpush3.bf16.msra.mxu1 %v7076_v35  ;;  %v10359_v35 = vld [vmem:[#allocation69_spill] sm:$0xff] }
 0x1cb   : > { %6222 = vmatprep.subr.bf16.mxu1 %v7078_v59  ;;  %v4027_v22 = vsel %vm4016_vm7, %v4022_v21, %v4026_v23  ;;  %v4031_v38 = vsel %vm4016_vm7, %v4026_v23, %v4030_v16  ;;  %v2406_v7 = vrot.slane %v10359_v35, 1  ;;  %v4041_v21 = vrot.slane %v10362_v15, 3  ;;  %v9275_v23 = vld [vmem:[#allocation5 + $0x100] sm:$0xff]  }
 0x1cd   : > { %6187 = vmatmul.mubr.bf16.gmra.mrb[4].mxu1 %v9221_v60  ;;  %v9254_v24 = vsel %vm2390_vm4, %v2404_v51, %v2406_v7  ;;  %v9257_v9 = vsel %vm2390_vm4, %v2406_v7, %v2408_v50  ;;  %v2416_v7 = vrot.slane %v8642_v41, 1 }
 0x1ce   : > { %6190 = vmatprep.mubr.bf16.mxu1 %v9224_v17  ;;  %6223 = vmatpush3.bf16.msra.mxu1 %v7078_v59  ;;  %v10361_v59 = vld [vmem:[#allocation71_spill] sm:$0xff] }
 0x1cf   : > { %6423 = vmatmul.mubr.bf16.gmra.mrb[32].mxu0 %v3735_v53  ;;  %6224 = vmatprep.subr.bf16.mxu1 %v7080_v14  ;;  %v4040_v5 = vrot.slane %v10361_v59, 2 }
 0x1d0   : > { %6442 = vmatprep.mubr.bf16.mxu0 %v4023_v54  ;;  %v2410_v54 = vrot.slane %v10365_v44, 1 }
 0x1d1   : > { %v4042_v48 = vor.u32 %v4041_v21, %v4040_v5  ;;  %v10373_v5 = vld [vmem:[#allocation108_spill] sm:$0xff] }
 0x1d2   : > { %6225 = vmatpush3.bf16.msra.mxu1 %v7080_v14  ;;  %v10363_v14 = vld [vmem:[#allocation80_spill] sm:$0xff]  ;;  %v9270_v51 = vsel %vm2390_vm4, %v2408_v50, %v2410_v54  ;;  %v4057_v15 = vrot.slane %v10373_v5, 3 }
 0x1d3   : > { %6226 = vmatprep.subr.bf16.mxu1 %v7082_v11  ;;  %v4044_v53 = vrot.slane %v10363_v14, 2  ;;  %v4043_v16 = vsel %vm4016_vm7, %v4038_v43, %v4042_v48 }
 0x1d5   : > { %6191 = vmatmul.mubr.bf16.gmra.mrb[8].mxu1 %v9237_v0  ;;  %v4046_v57 = vor.u32 %v4045_v47, %v4044_v53  ;;  %v10375_v53 = vld [vmem:[#allocation114_spill] sm:$0xff] }
 0x1d6   : > { %6194 = vmatprep.mubr.bf16.mxu1 %v9240_v2  ;;  %6227 = vmatpush3.bf16.msra.mxu1 %v7082_v11  ;;  %v9273_v11 = vsel %vm2390_vm4, %v2410_v54, %v2412_v39  ;;  %v4061_v46 = vrot.slane %v10375_v53, 3  ;;  %v7093_v47 = vld [vmem:[#allocation5 + $0x238] sm:$0xff]  }
 0x1d7   : > { %6443 = vmatmul.mubr.bf16.vlgmr.msra.gmra.mrb[0].mxu0 %v4027_v22  ;;  %6228 = vmatprep.subr.bf16.mxu1 %v7084_v10  ;;  %v4047_v55 = vsel %vm4016_vm7, %v4042_v48, %v4046_v57 }
 0x1d8   : > { %6446 = vmatprep.mubr.bf16.mxu0 %v4031_v38  ;;  %6479 = vmatpush3.bf16.msra.mxu0 %v9154_v56  ;;  %v4039_v56 = vsel %vm4016_vm7, %v4034_v29, %v4038_v43  ;;  %v4052_v38 = vrot.slane %v10369_v8, 2  ;;  %v7092_v29 = vld [vmem:[#allocation5 + $0x230] sm:$0xff]  }
 0x1d9   : > { %6480 = vmatprep.subr.bf16.mxu0 %v7085_v25 }
 0x1da   : > { %6229 = vmatpush3.bf16.msra.mxu1 %v7084_v10  ;;  %v10367_v10 = vld [vmem:[#allocation91_spill] sm:$0xff] }
 0x1db   : > { %6230 = vmatprep.subr.bf16.mxu1 %v7086_v62  ;;  %v4048_v22 = vrot.slane %v10367_v10, 2 }
 0x1dc   : > { %6481 = vmatpush3.bf16.msra.mxu0 %v7085_v25  ;;  %v2414_v25 = vrot.slane %v10371_v3, 1 }
 0x1dd   : > { %6195 = vmatmul.mubr.bf16.gmra.mrb[12].mxu1 %v9254_v24  ;;  %6482 = vmatprep.subr.bf16.mxu0 %v7087_v58  ;;  %v4050_v50 = vor.u32 %v4049_v63, %v4048_v22  ;;  %v10377_v63 = vld [vmem:[#allocation123_spill] sm:$0xff] }
 0x1de   : > { %6198 = vmatprep.mubr.bf16.mxu1 %v9257_v9  ;;  %6231 = vmatpush3.bf16.msra.mxu1 %v7086_v62  ;;  %v4054_v62 = vor.u32 %v4053_v42, %v4052_v38  ;;  %v9289_v43 = vsel %vm2390_vm4, %v2412_v39, %v2414_v25  ;;  %v2420_v39 = vrot.slane %v8804_v37, 1  ;;  %v10378_v38 = vld [vmem:[#allocation122_spill] sm:$0xff] }
 0x1df   : > { %6447 = vmatmul.mubr.bf16.gmra.mrb[4].mxu0 %v4035_v4  ;;  %6232 = vmatprep.subr.bf16.mxu1 %v7088_v20  ;;  %v10372_v4 = vld [vmem:[#allocation110_spill] sm:$0xff]  ;;  %v4065_v42 = vrot.slane %v10378_v38, 3 }
 0x1e0   : > { %6450 = vmatprep.mubr.bf16.mxu0 %v4039_v56  ;;  %6483 = vmatpush3.bf16.msra.mxu0 %v7087_v58  ;;  %v9292_v58 = vsel %vm2390_vm4, %v2414_v25, %v2416_v7  ;;  %v4056_v59 = vrot.slane %v10372_v4, 2  ;;  %v4055_v21 = vsel %vm4016_vm7, %v4050_v50, %v4054_v62  ;;  %v10374_v56 = vld [vmem:[#allocation115_spill] sm:$0xff]  ;;  %v10379_v25 = vld [vmem:[#allocation132_spill] sm:$0xff] }
 0x1e1   : > { %6484 = vmatprep.subr.bf16.mxu0 %v7089_v40  ;;  %v4060_v14 = vrot.slane %v10374_v56, 2 }
 0x1e2   : > { %6233 = vmatpush3.bf16.msra.mxu1 %v7088_v20  ;;  %v4051_v20 = vsel %vm4016_vm7, %v4046_v57, %v4050_v50  ;;  %v4058_v48 = vor.u32 %v4057_v15, %v4056_v59  ;;  %v4068_v50 = vrot.slane %v10379_v25, 2  ;;  %v9320_v15 = vrot.slane %v8933_v34, 1 }
 0x1e3   : > { %6530 = vmatprep.subr.bf16.mxu1 %v9275_v23  ;;  %v4062_v57 = vor.u32 %v4061_v46, %v4060_v14  ;;  %v4085_v25 = vshrl.u32 %v9195_v31, 16 }
 0x1e4   : > { %6485 = vmatpush3.bf16.msra.mxu0 %v7089_v40  ;;  %v10376_v40 = vld [vmem:[#allocation120_spill] sm:$0xff]  ;;  %v4059_v22 = vsel %vm4016_vm7, %v4054_v62, %v4058_v48 }
 0x1e5   : > { %6199 = vmatmul.mubr.bf16.gmra.mrb[16].mxu1 %v9270_v51  ;;  %6486 = vmatprep.subr.bf16.mxu0 %v7090_v45  ;;  %v2418_v54 = vrot.slane %v10376_v40, 1 }
 0x1e6   : > { %6202 = vmatprep.mubr.bf16.mxu1 %v9273_v11 }
 0x1e7   : > { %6451 = vmatmul.mubr.bf16.gmra.mrb[8].mxu0 %v4043_v16  ;;  %v9308_v16 = vsel %vm2390_vm4, %v2418_v54, %v2420_v39 }
 0x1e8   : > { %6454 = vmatprep.mubr.bf16.mxu0 %v4047_v55  ;;  %6487 = vmatpush3.bf16.msra.mxu0 %v7090_v45  ;;  %v9305_v45 = vsel %vm2390_vm4, %v2416_v7, %v2418_v54  ;;  %v4064_v55 = vrot.slane %v10377_v63, 2  ;;  %v10381_v7 = vld [vmem:[#allocation134_spill] sm:$0xff]  ;;  %v10382_v54 = vld [vmem:[#allocation141_spill] sm:$0xff] }
 0x1e9   : > { %6488 = vmatprep.subr.bf16.mxu0 %v7091_v18  ;;  %v2422_v59 = vrot.slane %v10381_v7, 1 }
 0x1ea   : > { %v4066_v62 = vor.u32 %v4065_v42, %v4064_v55  ;;  %v10385_v42 = vld [vmem:[#allocation143_spill] sm:$0xff] }
 0x1eb   : > { %v9323_v14 = vsel %vm2390_vm4, %v2420_v39, %v2422_v59  ;;  %v9327_v46 = vsel %vm2390_vm4, %v2422_v59, %v9320_v15  ;;  %v10386_v39 = vld [vmem:[#allocation145_spill] sm:$0xff] }
 0x1ec   : > { %6489 = vmatpush3.bf16.msra.mxu0 %v7091_v18  ;;  %v4063_v18 = vsel %vm4016_vm7, %v4058_v48, %v4062_v57  ;;  %v4072_v48 = vrot.slane %v10382_v54, 2  ;;  %v3084_v54 = vshll.u32 %v8975_v49, 16 }
 0x1ed   : > { %6203 = vmatmul.mubr.bf16.gmra.mrb[20].mxu1 %v9289_v43  ;;  %6490 = vmatprep.subr.bf16.mxu0 %v7092_v29 }
 0x1ee   : > { %6206 = vmatprep.mubr.bf16.mxu1 %v9292_v58 }
 0x1ef   : > { %6455 = vmatmul.mubr.bf16.gmra.mrb[12].mxu0 %v4051_v20 }
 0x1f0   : > { %6458 = vmatprep.mubr.bf16.mxu0 %v4055_v21  ;;  %6491 = vmatpush3.bf16.msra.mxu0 %v7092_v29  ;;  %v10380_v29 = vld [vmem:[#allocation129_spill] sm:$0xff] }
 0x1f1   : > { %6492 = vmatprep.subr.bf16.mxu0 %v7093_v47  ;;  %v4069_v20 = vrot.slane %v10380_v29, 3  ;;  %v4073_v29 = vrot.slane %v10383_v30, 3 }
 0x1f3   : > { %v4070_v21 = vor.u32 %v4069_v20, %v4068_v50  ;;  %v4077_v50 = vrot.slane %v10385_v42, 3  ;;  %v2426_v20 = vrot.slane %v10386_v39, 1  ;;  %v4074_v59 = vor.u32 %v4073_v29, %v4072_v48 }
 0x1f4   : > { %6493 = vmatpush3.bf16.msra.mxu0 %v7093_v47  ;;  %v4067_v47 = vsel %vm4016_vm7, %v4062_v57, %v4066_v62  ;;  %v9929_v57 = vshrl.u32 %v8975_v49, 16  ;;  %v4081_v29 = vrot.slane %v3084_v54, 3  ;;  %v4087_v48 = vrot.slane %v4085_v25, 2  ;;  %v7100_v25 = vld [vmem:[#allocation5 + $0x108] sm:$0xff]  }
 0x1f5   : > { %6207 = vmatmul.mubr.bf16.gmra.mrb[24].mxu1 %v9305_v45  ;;  %v4075_v42 = vsel %vm4016_vm7, %v4070_v21, %v4074_v59 }
 0x1f6   : > { %6210 = vmatprep.mubr.bf16.mxu1 %v9308_v16  ;;  %v4080_v39 = vrot.slane %v9929_v57, 2 }
 0x1f7   : > { %6459 = vmatmul.mubr.bf16.gmra.mrb[16].mxu0 %v4059_v22  ;;  %v4071_v22 = vsel %vm4016_vm7, %v4066_v62, %v4070_v21  ;;  %v4088_v62 = vshll.u32 %v9195_v31, 16  ;;  %v10387_v21 = vmov 0  }
 0x1f8   : > { %6462 = vmatprep.mubr.bf16.mxu0 %v4063_v18  ;;  %v10384_v18 = vld [vmem:[#allocation144_spill] sm:$0xff]  ;;  %v4096_v38 = vrot.slane %v10387_v21, 2  ;;  %v4099_v57 = vrot.slane %v10387_v21, 3  ;;  %v3056_v21 = vrot.slane %v10372_v4, 1  ;;  %v3060_v4 = vrot.slane %v10374_v56, 1 }
 0x1f9   : > { %v4076_v55 = vrot.slane %v10384_v18, 2  ;;  %v2427_v18 = vsel %vm2390_vm4, %v9320_v15, %v2426_v20 }
 0x1fb   : > { %v4078_v30 = vor.u32 %v4077_v50, %v4076_v55  ;;  %v4082_v55 = vor.u32 %v4081_v29, %v4080_v39 }
 0x1fd   : > { %6211 = vmatmul.mubr.bf16.gmra.mrb[28].mxu1 %v9323_v14  ;;  %v4083_v20 = vsel %vm4016_vm7, %v4078_v30, %v4082_v55 }
 0x1fe   : > { %6214 = vmatprep.mubr.bf16.mxu1 %v9327_v46 }
 0x1ff   : > { %6463 = vmatmul.mubr.bf16.gmra.mrb[20].mxu0 %v4067_v47  ;;  %v4079_v47 = vsel %vm4016_vm7, %v4074_v59, %v4078_v30  ;;  %v4400_v30 = vrot.slane %v10340_v52, 3  ;;  %v7101_v59 = vld [vmem:[#allocation5 + $0x110] sm:$0xff]   ;;  %v4404_v52 = vrot.slane %v10347_v13, 3  ;;  %v4408_v13 = vrot.slane %v10354_v28, 3 }
 0x200   : > { %6466 = vmatprep.mubr.bf16.mxu0 %v4071_v22  ;;  %v4090_v22 = vrot.slane %v4088_v62, 3  ;;  %v7105_v62 = vld [vmem:[#allocation5 + $0x130] sm:$0xff]   ;;  %v4412_v28 = vrot.slane %v10360_v32, 3  ;;  %v4418_v32 = vrot.slane %v10371_v3, 3 }
 0x202   : > { %v4091_v50 = vor.u32 %v4090_v22, %v4087_v48  ;;  %v3049_v22 = vrot.slane %v10368_v36, 2  ;;  %v3052_v36 = vrot.slane %v10369_v8, 1  ;;  %v4430_v8 = vrot.slane %v8975_v49, 3 }
 0x205   : > { %6215 = vmatmul.mubr.bf16.gmra.mrb[32].mxu1 %v2427_v18  ;;  %v4092_v18 = vsel %vm4016_vm7, %v4082_v55, %v4091_v50  ;;  %v2730_v55 = vrot.slane %v9053_v19, 1 }
 0x206   : > { %6234 = vmatprep.mubr.bf16.mxu1 %v9203_v1  ;;  %v4100_v1 = vor.u32 %v4099_v57, %v4096_v38  ;;  %v7103_v38 = vld [vmem:[#allocation5 + $0x120] sm:$0xff]  }
 0x207   : > { %6467 = vmatmul.mubr.bf16.gmra.mrb[24].mxu0 %v4075_v42  ;;  %v4399_v42 = vrot.slane %v10339_v6, 3  ;;  %v4402_v6 = vrot.slane %v10346_v27, 3  ;;  %v4406_v27 = vrot.slane %v10353_v26, 3  ;;  %v4410_v26 = vrot.slane %v10359_v35, 3 }
 0x208   : > { %6470 = vmatprep.mubr.bf16.mxu0 %v4079_v47  ;;  %v4416_v47 = vrot.slane %v10366_v33, 3  ;;  %v2728_v33 = vrot.slane %v8975_v49, 1 }
 0x209   : > { %v4403_v57 = vsel %vm4398_vm12, %v4400_v30, %v4402_v6  ;;  %v4407_v39 = vsel %vm4398_vm12, %v4404_v52, %v4406_v27  ;;  %v4411_v29 = vsel %vm4398_vm12, %v4408_v13, %v4410_v26 }
 0x20a   : > { %v2729_v3 = vsel %vm2390_vm4, %v9320_v15, %v2728_v33  ;;  %v3053_v15 = vrot.slane %v10370_v12, 2  ;;  %v4432_v12 = vrot.slane %v9195_v31, 3 }
 0x20d   : > { %6235 = vmatmul.mubr.bf16.vlgmr.msra.gmra.mrb[0].mxu1 %v9206_v61  ;;  %v4101_v61 = vsel %vm4016_vm7, %v4091_v50, %v4100_v1 }
 0x20e   : > { %6538 = vmatpush3.bf16.msra.mxu1 %v9275_v23  ;;  %6238 = vmatprep.mubr.bf16.mxu1 %v9221_v60  ;;  %v4401_v23 = vsel %vm4398_vm12, %v4399_v42, %v4400_v30  ;;  %v7102_v60 = vld [vmem:[#allocation5 + $0x118] sm:$0xff]  }
 0x20f   : > { %6531 = vmatprep.subr.bf16.mxu1 %v7100_v25  ;;  %6471 = vmatmul.mubr.bf16.gmra.mrb[28].mxu0 %v4083_v20  ;;  %v10388_v20 = vld [vmem:[#allocation82_spill] sm:$0xff] }
 0x210   : > { %6474 = vmatprep.mubr.bf16.mxu0 %v4092_v18  ;;  %v3057_v18 = vrot.slane %v10373_v5, 2  ;;  %v3061_v5 = vrot.slane %v10375_v53, 2 }
 0x212   : > { %6539 = vmatpush3.bf16.msra.mxu1 %v7100_v25  ;;  %v3058_v1 = vor.u32 %v3057_v18, %v3056_v21 }
 0x213   : > { %6532 = vmatprep.subr.bf16.mxu1 %v7101_v59 }
 0x215   : > { %6239 = vmatmul.mubr.bf16.gmra.mrb[4].mxu1 %v9224_v17  ;;  %v4405_v17 = vsel %vm4398_vm12, %v4402_v6, %v4404_v52  ;;  %v4433_v6 = vsel %vm4398_vm12, %v4430_v8, %v4432_v12  ;;  %v3062_v52 = vor.u32 %v3061_v5, %v3060_v4 }
 0x216   : > { %6242 = vmatprep.mubr.bf16.mxu1 %v9237_v0  ;;  %6540 = vmatpush3.bf16.msra.mxu1 %v7101_v59  ;;  %v7104_v0 = vld [vmem:[#allocation5 + $0x128] sm:$0xff]   ;;  %v3064_v59 = vrot.slane %v10377_v63, 1 }
 0x217   : > { %6475 = vmatmul.mubr.bf16.gmra.mrb[32].mxu0 %v4101_v61  ;;  %6533 = vmatprep.subr.bf16.mxu1 %v7102_v60  ;;  %v10392_v61 = vld [vmem:[#allocation122_spill] sm:$0xff]  ;;  %v3063_v53 = vsel %vm10394_vm5, %v3058_v1, %v3062_v52 }
 0x218   : > { %6494 = vmatprep.mubr.bf16.mxu0 %v4401_v23  ;;  %v3065_v23 = vrot.slane %v10392_v61, 2 }
 0x21a   : > { %6541 = vmatpush3.bf16.msra.mxu1 %v7102_v60  ;;  %v3066_v31 = vor.u32 %v3065_v23, %v3064_v59 }
 0x21b   : > { %6534 = vmatprep.subr.bf16.mxu1 %v7103_v38 }
 0x21d   : > { %6243 = vmatmul.mubr.bf16.gmra.mrb[8].mxu1 %v9240_v2  ;;  %v4409_v2 = vsel %vm4398_vm12, %v4406_v27, %v4408_v13  ;;  %v3067_v27 = vsel %vm10397_vm1, %v3062_v52, %v3066_v31  ;;  %v10398_v13 = vld [vmem:[#allocation141_spill] sm:$0xff] }
 0x21e   : > { %6246 = vmatprep.mubr.bf16.mxu1 %v9254_v24  ;;  %6542 = vmatpush3.bf16.msra.mxu1 %v7103_v38  ;;  %v7106_v24 = vld [vmem:[#allocation5 + $0x138] sm:$0xff]   ;;  %v10393_v38 = vmov 0.0|0.0  }
 0x21f   : > { %6495 = vmatmul.mubr.bf16.vlgmr.msra.gmra.mrb[0].mxu0 %v4403_v57  ;;  %6535 = vmatprep.subr.bf16.mxu1 %v7104_v0  ;;  %v4434_v56 = vrot.slane %v10393_v38, 3  ;;  %v10395_v57 = vld [vmem:[#allocation132_spill] sm:$0xff] }
 0x220   : > { %6498 = vmatprep.mubr.bf16.mxu0 %v4405_v17  ;;  %v3068_v17 = vrot.slane %v10395_v57, 1 }
 0x222   : > { %6543 = vmatpush3.bf16.msra.mxu1 %v7104_v0  ;;  %v10396_v0 = vld [vmem:[#allocation129_spill] sm:$0xff] }
 0x223   : > { %6536 = vmatprep.subr.bf16.mxu1 %v7105_v62  ;;  %v3069_v63 = vrot.slane %v10396_v0, 2 }
 0x225   : > { %6247 = vmatmul.mubr.bf16.gmra.mrb[12].mxu1 %v9257_v9  ;;  %v4413_v9 = vsel %vm4398_vm12, %v4410_v26, %v4412_v28  ;;  %v3070_v26 = vor.u32 %v3069_v63, %v3068_v17  ;;  %v10411_v17 = vld [vmem:[#allocation21_spill] sm:$0xff] }
 0x226   : > { %6250 = vmatprep.mubr.bf16.mxu1 %v9270_v51  ;;  %6544 = vmatpush3.bf16.msra.mxu1 %v7105_v62  ;;  %v4414_v51 = vrot.slane %v10365_v44, 3  ;;  %v3072_v62 = vrot.slane %v10398_v13, 1 }
 0x227   : > { %6499 = vmatmul.mubr.bf16.gmra.mrb[4].mxu0 %v4407_v39  ;;  %6537 = vmatprep.subr.bf16.mxu1 %v7106_v24  ;;  %v10399_v39 = vld [vmem:[#allocation135_spill] sm:$0xff] }
 0x228   : > { %6502 = vmatprep.mubr.bf16.mxu0 %v4409_v2  ;;  %v4415_v48 = vsel %vm4398_vm12, %v4412_v28, %v4414_v51  ;;  %v4417_v35 = vsel %vm4398_vm12, %v4414_v51, %v4416_v47  ;;  %v3073_v2 = vrot.slane %v10399_v39, 2  ;;  %v10412_v39 = vld [vmem:[#allocation22_spill] sm:$0xff] }
 0x229   : > { %vm4898_vm5 = vcmp.lt.s32.totalorder %v10412_v39, 16 }
 0x22a   : > { %6545 = vmatpush3.bf16.msra.mxu1 %v7106_v24  ;;  %v4435_v24 = vsel %vm4398_vm12, %v4432_v12, %v4434_v56  ;;  %v3074_v28 = vor.u32 %v3073_v2, %v3072_v62 }
 0x22d   : > { %6251 = vmatmul.mubr.bf16.gmra.mrb[16].mxu1 %v9273_v11  ;;  %v4420_v11 = vrot.slane %v8642_v41, 3  ;;  %v3048_v41 = vrot.slane %v10367_v10, 1  ;;  %v2731_v10 = vsel %vm2390_vm4, %v2728_v33, %v2730_v55  ;;  %v3090_v33 = vshrl.u32 %v9053_v19, 16  ;;  %vm10406_vm4 = vmmov %vm10405_vm0 }
 0x22e   : > { %6254 = vmatprep.mubr.bf16.mxu1 %v9289_v43  ;;  %v4419_v43 = vsel %vm4398_vm12, %v4416_v47, %v4418_v32  ;;  %v10402_v47 = vld [vmem:[#allocation143_spill] sm:$0xff] }
 0x22f   : > { %6503 = vmatmul.mubr.bf16.gmra.mrb[8].mxu0 %v4411_v29  ;;  %v4421_v44 = vsel %vm4398_vm12, %v4418_v32, %v4420_v11  ;;  %v3050_v50 = vor.u32 %v3049_v22, %v3048_v41  ;;  %v3071_v29 = vsel %vm10400_vm2, %v3066_v31, %v3070_v26  ;;  %v10404_v32 = vshrl.u32 %v8975_v49, 16 }
 0x230   : > { %6506 = vmatprep.mubr.bf16.mxu0 %v4413_v9  ;;  %v10401_v9 = vld [vmem:[#allocation144_spill] sm:$0xff]  ;;  %v3092_v41 = vrot.slane %v3090_v33, 1 }
 0x231   : > { %v3076_v51 = vrot.slane %v10401_v9, 1 }
 0x235   : > { %6255 = vmatmul.mubr.bf16.gmra.mrb[20].mxu1 %v9292_v58  ;;  %v4422_v58 = vrot.slane %v10376_v40, 3  ;;  %v4428_v40 = vrot.slane %v8933_v34, 3  ;;  %v3054_v34 = vor.u32 %v3053_v15, %v3052_v36 }
 0x236   : > { %6258 = vmatprep.mubr.bf16.mxu1 %v9305_v45  ;;  %v4424_v45 = vrot.slane %v8804_v37, 3  ;;  %v4426_v37 = vrot.slane %v10381_v7, 3 }
 0x237   : > { %6507 = vmatmul.mubr.bf16.gmra.mrb[12].mxu0 %v4415_v48  ;;  %v3055_v42 = vsel %vm10390_vm14, %v3050_v50, %v3054_v34  ;;  %v3059_v30 = vsel %vm10391_vm13, %v3054_v34, %v3058_v1  ;;  %v4431_v60 = vsel %vm4398_vm12, %v4428_v40, %v4430_v8  ;;  %v3077_v48 = vrot.slane %v10402_v47, 2 }
 0x238   : > { %6510 = vmatprep.mubr.bf16.mxu0 %v4417_v35  ;;  %v4427_v25 = vsel %vm4398_vm12, %v4424_v45, %v4426_v37  ;;  %v4429_v7 = vsel %vm4398_vm12, %v4426_v37, %v4428_v40  ;;  %v3075_v35 = vsel %vm10403_vm15, %v3070_v26, %v3074_v28  ;;  %vm4897_vm14 = vcmp.lt.s32.totalorder %v10411_v17, 16 }
 0x23d   : > { %6259 = vmatmul.mubr.bf16.gmra.mrb[24].mxu1 %v9308_v16  ;;  %v4423_v16 = vsel %vm4398_vm12, %v4420_v11, %v4422_v58  ;;  %v3083_v11 = vrot.slane %v10404_v32, 1 }
 0x23e   : > { %6262 = vmatprep.mubr.bf16.mxu1 %v9323_v14  ;;  %v4425_v14 = vsel %vm4398_vm12, %v4422_v58, %v4424_v45  ;;  %v3093_v58 = vshll.u32 %v9053_v19, 16 }
 0x23f   : > { %6511 = vmatmul.mubr.bf16.gmra.mrb[16].mxu0 %v4419_v43  ;;  %v3086_v43 = vrot.slane %v3084_v54, 2  ;;  %v10408_v54 = vld [vmem:[#allocation20_spill] sm:$0xff] }
 0x240   : > { %6514 = vmatprep.mubr.bf16.mxu0 %v4421_v44  ;;  %v3078_v44 = vor.u32 %v3077_v48, %v3076_v51  ;;  %v3095_v22 = vrot.slane %v3093_v58, 2  ;;  %v359_v55 = vadd.s32 8, %v10408_v54 }
 0x241   : > { %v3087_v45 = vor.u32 %v3086_v43, %v3083_v11  ;;  %v10413_v11 = vld [vmem:[#allocation24_spill] sm:$0xff] }
 0x242   : > { %v9452_v19 = vmul.u32.u64.low 3817748708, %v359_v55  ;;  %v9453_v40 = vmul.u32.u64.high 3817748708, %v359_v55, %v9452_v19  ;;  %vm4899_vm1 = vcmp.lt.s32.totalorder %v10413_v11, 16 }
 0x244   : > { %v458_v15 = vshrl.u32 %v9453_v40, 4  ;;  %v10416_v40 = vld [vmem:[#allocation30_spill] sm:$0xff] }
 0x245   : > { %6263 = vmatmul.mubr.bf16.gmra.mrb[28].mxu1 %v9327_v46  ;;  %v3051_v46 = vsel %vm10389_vm9, %v10388_v20, %v3050_v50  ;;  %v9449_v50 = vmul.u32.u64.low 3817748708, %v10408_v54  ;;  %v9450_v37 = vmul.u32.u64.high 3817748708, %v10408_v54, %v9449_v50 }
 0x246   : > { %6266 = vmatprep.mubr.bf16.mxu1 %v2729_v3  ;;  %v3079_v3 = vsel %vm10405_vm0, %v3074_v28, %v3078_v44  ;;  %vm4902_vm0 = vcmp.lt.s32.totalorder %v10416_v40, 16  ;;  %v10424_v40 = vld [vmem:[#allocation56_spill] sm:$0xff] }
 0x247   : > { %6515 = vmatmul.mubr.bf16.gmra.mrb[20].mxu0 %v4423_v16  ;;  %v3088_v16 = vsel %vm10406_vm4, %v3078_v44, %v3087_v45 }
 0x248   : > { %6518 = vmatprep.mubr.bf16.mxu0 %v4425_v14  ;;  %v3096_v14 = vor.u32 %v3095_v22, %v3092_v41  ;;  %v10414_v41 = vld [vmem:[#allocation29_spill] sm:$0xff] }
 0x249   : > { %vm4901_vm2 = vcmp.lt.s32.totalorder %v10414_v41, 16  ;;  %v10422_v41 = vld [vmem:[#allocation55_spill] sm:$0xff] }
 0x24a   : > { %v3097_v49 = vsel %vm10407_vm10, %v3087_v45, %v3096_v14  ;;  %v10415_v14 = vld [vmem:[#allocation25_spill] sm:$0xff] }
 0x24b   : > { %vm4900_vm15 = vcmp.lt.s32.totalorder %v10415_v14, 16  ;;  %v10423_v14 = vld [vmem:[#allocation48_spill] sm:$0xff] }
 0x24d   : > { %6267 = vmatmul.mubr.bf16.gmra.mrb[32].mxu1 %v2731_v10  ;;  %v447_v10 = vshrl.u32 %v9450_v37, 4 }
 0x24e   : > { %6302 = vmatprep.mubr.bf16.mxu1 %v3051_v46 }
 0x24f   : > { %6519 = vmatmul.mubr.bf16.gmra.mrb[24].mxu0 %v4427_v25  ;;  %v448_v21 = vmul.u32 18, %v447_v10  ;;  %v459_v25 = vmul.u32 18, %v458_v15 }
 0x250   : > { %6522 = vmatprep.mubr.bf16.mxu0 %v4429_v7 }
 0x251   : > { %v449_v7 = vsub.s32 %v10408_v54, %v448_v21  ;;  %v460_v1 = vsub.s32 %v359_v55, %v459_v25 }
 0x253   : > { %vm892_vm8 = vcmp.ne.s32.totalorder %v449_v7, 0  ;;  %vm933_vm6 = vcmp.lt.s32.totalorder %v449_v7, 0  ;;  %v1015_v4 = vadd.s32 18, %v449_v7  ;;  %vm893_vm3 = vcmp.ne.s32.totalorder %v460_v1, 0 }
 0x254   : > { %vm934_vm7 = vcmp.lt.s32.totalorder %v460_v1, 0  ;;  %vm974_vm11 = vmand %vm933_vm6, %vm892_vm8  ;;  %v1016_v5 = vadd.s32 18, %v460_v1 }
 0x255   : > { %6303 = vmatmul.mubr.bf16.vlgmr.msra.gmra.mrb[16].mxu1 %v3055_v42  ;;  %vm9458_vm12 = vmand %vm934_vm7, %vm893_vm3  ;;  %v1056_v61 = vsel %vm974_vm11, %v1015_v4, %v449_v7  ;;  %v10417_v4 = vld [vmem:[#allocation32_spill] sm:$0xff]  ;;  %vm4909_vm7 = vcmp.lt.s32.totalorder %v10422_v41, 16  ;;  %vm4908_vm11 = vcmp.lt.s32.totalorder %v10423_v14, 16 }
 0x256   : > { %6306 = vmatprep.mubr.bf16.mxu1 %v3059_v30  ;;  %v1057_v52 = vsel %vm9458_vm12, %v1016_v5, %v460_v1  ;;  %vm4895_vm9 = vcmp.lt.s32.totalorder %v1056_v61, 16  ;;  %vm4903_vm4 = vcmp.lt.s32.totalorder %v10417_v4, 16  ;;  %vm4910_vm12 = vcmp.lt.s32.totalorder %v10424_v40, 16 }
 0x257   : > { %6523 = vmatmul.mubr.bf16.gmra.mrb[28].mxu0 %v4431_v60  ;;  %vm4896_vm13 = vcmp.lt.s32.totalorder %v1057_v52, 16  ;;  %v10418_v52 = vld [vmem:[#allocation39_spill] sm:$0xff] }
 0x258   : > { %6526 = vmatprep.mubr.bf16.mxu0 %v4433_v6  ;;  %vm4905_vm10 = vcmp.lt.s32.totalorder %v10418_v52, 16 }
 0x25d   : > { %6307 = vmatmul.mubr.bf16.gmra.mrb[20].mxu1 %v3063_v53 }
 0x25e   : > { %6310 = vmatprep.mubr.bf16.mxu1 %v3067_v27 }
 0x25f   : > { %6527 = vmatmul.mubr.bf16.gmra.mrb[32].mxu0 %v4435_v24 }
 0x265   : > { %6311 = vmatmul.mubr.bf16.gmra.mrb[24].mxu1 %v3071_v29 }
 0x266   : > { %6314 = vmatprep.mubr.bf16.mxu1 %v3075_v35 }
 0x26d   : > { %6315 = vmatmul.mubr.bf16.gmra.mrb[28].mxu1 %v3079_v3 }
 0x26e   : > { %6318 = vmatprep.mubr.bf16.mxu1 %v3088_v16 }
 0x275   : > { %6319 = vmatmul.mubr.bf16.gmra.mrb[32].mxu1 %v3097_v49 }
 0x2e0   : > { %v6236_v36 = vpop.f32.mrb[0].mxu1 }
 0x2e1   : > { %v2816_v20 = vpop.f32.mrb[1].mxu1 }
 0x2e2   : > { %v6237_v46 = vpop.f32.mrb[2].mxu1 }
 0x2e3   : > { %v2819_v18 = vpop.f32.mrb[3].mxu1 }
 0x2e8   : > { %v6240_v34 = vpop.f32.mrb[4].mxu1 }
 0x2e9   : > { %v2832_v8 = vpop.f32.mrb[5].mxu1 }
 0x2ea   : > { %v6241_v12 = vpop.f32.mrb[6].mxu1 }
 0x2eb   : > { %v2835_v42 = vpop.f32.mrb[7].mxu1 }
 0x2f0   : > { %v9462_v59 = vpop.f32.mrb[8].mxu1 }
 0x2f1   : > { %v9464_v23 = vpop.f32.mrb[9].mxu1 }
 0x2f2   : > { %v9466_v60 = vpop.f32.mrb[10].mxu1  ;;  %v6496_v6 = vpop.f32.mrb[0].mxu0 }
 0x2f3   : > { %v9471_v31 = vpop.f32.mrb[11].mxu1  ;;  %v6546_v38 = vadd.f32 %v6496_v6, %v6236_v36  ;;  %v4536_v56 = vpop.f32.mrb[1].mxu0 }
 0x2f4   : > { %v6547_v53 = vadd.f32 %v4536_v56, %v2816_v20  ;;  %v6497_v57 = vpop.f32.mrb[2].mxu0 }
 0x2f5   : > { %v6548_v0 = vadd.f32 %v6497_v57, %v6237_v46  ;;  %v4539_v63 = vpop.f32.mrb[3].mxu0  ;;  %v5077_v24 = vsel %vm4897_vm14, %v6546_v38, 0.0 }
 0x2f6   : > { %v5075_v27 = vsel %vm4895_vm9, %v6547_v53, 0.0  ;;  %v6549_v13 = vadd.f32 %v4539_v63, %v2819_v18  ;;  %v5154_v44 = vmul.f32 %v5077_v24, %v5077_v24 }
 0x2f7   : > { %v5711_v62 = vpack.c.bf16 %v6548_v0, %v6546_v38  ;;  %v5152_v9 = vmul.f32 %v5075_v27, %v5075_v27  ;;  %v5078_v35 = vsel %vm4898_vm5, %v6548_v0, 0.0 }
 0x2f8   : > { %v9475_v2 = vpop.f32.mrb[12].mxu1  ;;  %v5706_v26 = vpack.c.bf16 %v6549_v13, %v6547_v53  ;;  %v5076_v28 = vsel %vm4896_vm13, %v6549_v13, 0.0  ;;  %v5155_v49 = vmul.f32 %v5078_v35, %v5078_v35  ;;  %v10419_v53 = vld [vmem:[#allocation35_spill] sm:$0xff] }
 0x2f9   : > { %v9477_v29 = vpop.f32.mrb[13].mxu1  ;;  %5811 = vst [vmem:[%s9479_s28 + $0x8] sm:$0xff] %v5711_v62   ;;  %v5111_v51 = vadd.f32 %v5076_v28, %v5075_v27  ;;  %v5153_v47 = vmul.f32 %v5076_v28, %v5076_v28  ;;  %vm4904_vm8 = vcmp.lt.s32.totalorder %v10419_v53, 16  ;;  %v10420_v62 = vld [vmem:[#allocation40_spill] sm:$0xff] }
 0x2fa   : > { %v9482_v48 = vpop.f32.mrb[14].mxu1  ;;  %5707 = vst [vmem:[%s9479_s28] sm:$0xff] %v5706_v26   ;;  %v6500_v32 = vpop.f32.mrb[4].mxu0  ;;  %vm4906_vm6 = vcmp.lt.s32.totalorder %v10420_v62, 16 }
 0x2fb   : > { %v9486_v43 = vpop.f32.mrb[15].mxu1  ;;  %v5112_v33 = vadd.f32 %v5111_v51, %v5077_v24  ;;  %v5188_v58 = vadd.f32 %v5153_v47, %v5152_v9  ;;  %v6550_v45 = vadd.f32 %v6500_v32, %v6240_v34  ;;  %v4552_v3 = vpop.f32.mrb[5].mxu0 }
 0x2fc   : > { %v6551_v22 = vadd.f32 %v4552_v3, %v2832_v8  ;;  %v6501_v16 = vpop.f32.mrb[6].mxu0 }
 0x2fd   : > { %v5189_v54 = vadd.f32 %v5188_v58, %v5154_v44  ;;  %v5113_v55 = vadd.f32 %v5112_v33, %v5078_v35  ;;  %v6552_v50 = vadd.f32 %v6501_v16, %v6241_v12  ;;  %v4555_v37 = vpop.f32.mrb[7].mxu0  ;;  %v5081_v21 = vsel %vm4901_vm2, %v6550_v45, 0.0  ;;  %v10421_v44 = vld [vmem:[#allocation43_spill] sm:$0xff] }
 0x2fe   : > { %v5079_v19 = vsel %vm4899_vm1, %v6551_v22, 0.0  ;;  %v6553_v10 = vadd.f32 %v4555_v37, %v2835_v42  ;;  %v5158_v5 = vmul.f32 %v5081_v21, %v5081_v21  ;;  %vm4907_vm3 = vcmp.lt.s32.totalorder %v10421_v44, 16 }
 0x2ff   : > { %v5114_v36 = vadd.f32 %v5113_v55, %v5079_v19  ;;  %v5156_v15 = vmul.f32 %v5079_v19, %v5079_v19  ;;  %v5190_v20 = vadd.f32 %v5189_v54, %v5155_v49  ;;  %v5721_v46 = vpack.c.bf16 %v6552_v50, %v6550_v45 }
 0x300   : > { %v5716_v18 = vpack.c.bf16 %v6553_v10, %v6551_v22  ;;  %v5080_v25 = vsel %vm4900_vm15, %v6553_v10, 0.0  ;;  %v5082_v8 = vsel %vm4902_vm0, %v6552_v50, 0.0 }
 0x301   : > { %v5191_v7 = vadd.f32 %v5190_v20, %v5156_v15  ;;  %5813 = vst [vmem:[%s9479_s28 + $0x18] sm:$0xff] %v5721_v46   ;;  %v5115_v34 = vadd.f32 %v5114_v36, %v5080_v25  ;;  %v5157_v1 = vmul.f32 %v5080_v25, %v5080_v25  ;;  %v5159_v57 = vmul.f32 %v5082_v8, %v5082_v8 }
 0x302   : > { %5812 = vst [vmem:[%s9479_s28 + $0x10] sm:$0xff] %v5716_v18   ;;  %v6504_v12 = vpop.f32.mrb[8].mxu0 }
 0x303   : > { %v5116_v42 = vadd.f32 %v5115_v34, %v5081_v21  ;;  %v5192_v30 = vadd.f32 %v5191_v7, %v5157_v1  ;;  %v6554_v61 = vadd.f32 %v6504_v12, %v9462_v59  ;;  %v4568_v6 = vpop.f32.mrb[9].mxu0 }
 0x304   : > { %v6555_v38 = vadd.f32 %v4568_v6, %v9464_v23  ;;  %v6505_v56 = vpop.f32.mrb[10].mxu0 }
 0x305   : > { %v5193_v17 = vadd.f32 %v5192_v30, %v5158_v5  ;;  %v5117_v0 = vadd.f32 %v5116_v42, %v5082_v8  ;;  %v6556_v63 = vadd.f32 %v6505_v56, %v9466_v60  ;;  %v4571_v27 = vpop.f32.mrb[11].mxu0  ;;  %v5085_v28 = vsel %vm4905_vm10, %v6554_v61, 0.0 }
 0x306   : > { %v5083_v13 = vsel %vm4903_vm4, %v6555_v38, 0.0  ;;  %v6557_v59 = vadd.f32 %v4571_v27, %v9471_v31  ;;  %v5162_v33 = vmul.f32 %v5085_v28, %v5085_v28 }
 0x307   : > { %v5118_v39 = vadd.f32 %v5117_v0, %v5083_v13  ;;  %v5160_v24 = vmul.f32 %v5083_v13, %v5083_v13  ;;  %v5194_v26 = vadd.f32 %v5193_v17, %v5159_v57  ;;  %v5731_v23 = vpack.c.bf16 %v6556_v63, %v6554_v61 }
 0x308   : > { %v5726_v9 = vpack.c.bf16 %v6557_v59, %v6555_v38  ;;  %v5084_v51 = vsel %vm4904_vm8, %v6557_v59, 0.0  ;;  %v5086_v32 = vsel %vm4906_vm6, %v6556_v63, 0.0  ;;  %v10425_v59 = vld [vmem:[#allocation61_spill] sm:$0xff] }
 0x309   : > { %v5195_v47 = vadd.f32 %v5194_v26, %v5160_v24  ;;  %5815 = vst [vmem:[%s9479_s28 + $0x28] sm:$0xff] %v5731_v23   ;;  %v5119_v35 = vadd.f32 %v5118_v39, %v5084_v51  ;;  %v5161_v60 = vmul.f32 %v5084_v51, %v5084_v51  ;;  %v5163_v49 = vmul.f32 %v5086_v32, %v5086_v32  ;;  %v10426_v23 = vld [vmem:[#allocation72_spill] sm:$0xff]  ;;  %v10427_v51 = vld [vmem:[#allocation66_spill] sm:$0xff] }
 0x30a   : > { %5814 = vst [vmem:[%s9479_s28 + $0x20] sm:$0xff] %v5726_v9   ;;  %v6508_v11 = vpop.f32.mrb[12].mxu0  ;;  %vm4911_vm9 = vcmp.lt.s32.totalorder %v10425_v59, 16  ;;  %vm4913_vm14 = vcmp.lt.s32.totalorder %v10426_v23, 16  ;;  %vm4912_vm13 = vcmp.lt.s32.totalorder %v10427_v51, 16 }
 0x30b   : > { %v5120_v31 = vadd.f32 %v5119_v35, %v5085_v28  ;;  %v5196_v58 = vadd.f32 %v5195_v47, %v5161_v60  ;;  %v6558_v45 = vadd.f32 %v6508_v11, %v9475_v2  ;;  %v4584_v3 = vpop.f32.mrb[13].mxu0 }
 0x30c   : > { %v6559_v22 = vadd.f32 %v4584_v3, %v9477_v29  ;;  %v6509_v16 = vpop.f32.mrb[14].mxu0 }
 0x30d   : > { %v5197_v54 = vadd.f32 %v5196_v58, %v5162_v33  ;;  %v5121_v55 = vadd.f32 %v5120_v31, %v5086_v32  ;;  %v6560_v50 = vadd.f32 %v6509_v16, %v9482_v48  ;;  %v4587_v37 = vpop.f32.mrb[15].mxu0  ;;  %v5089_v20 = vsel %vm4909_vm7, %v6558_v45, 0.0  ;;  %v10428_v31 = vld [vmem:[#allocation73_spill] sm:$0xff] }
 0x30e   : > { %v5087_v19 = vsel %vm4907_vm3, %v6559_v22, 0.0  ;;  %v6561_v2 = vadd.f32 %v4587_v37, %v9486_v43  ;;  %v5166_v1 = vmul.f32 %v5089_v20, %v5089_v20  ;;  %vm4914_vm5 = vcmp.lt.s32.totalorder %v10428_v31, 16 }
 0x30f   : > { %v5122_v10 = vadd.f32 %v5121_v55, %v5087_v19  ;;  %v5164_v36 = vmul.f32 %v5087_v19, %v5087_v19  ;;  %v5198_v15 = vadd.f32 %v5197_v54, %v5163_v49  ;;  %v5741_v29 = vpack.c.bf16 %v6560_v50, %v6558_v45  ;;  %v10429_v55 = vld [vmem:[#allocation81_spill] sm:$0xff] }
 0x310   : > { %v5736_v46 = vpack.c.bf16 %v6561_v2, %v6559_v22  ;;  %v5088_v21 = vsel %vm4908_vm11, %v6561_v2, 0.0  ;;  %v5090_v7 = vsel %vm4910_vm12, %v6560_v50, 0.0  ;;  %vm4915_vm1 = vcmp.lt.s32.totalorder %v10429_v55, 16 }
 0x311   : > { %v5199_v18 = vadd.f32 %v5198_v15, %v5164_v36  ;;  %5817 = vst [vmem:[%s9479_s28 + $0x38] sm:$0xff] %v5741_v29   ;;  %v5123_v25 = vadd.f32 %v5122_v10, %v5088_v21  ;;  %v5165_v48 = vmul.f32 %v5088_v21, %v5088_v21  ;;  %v5167_v5 = vmul.f32 %v5090_v7, %v5090_v7  ;;  %v10430_v10 = vld [vmem:[#allocation90_spill] sm:$0xff]  ;;  %v10431_v29 = vld [vmem:[#allocation85_spill] sm:$0xff] }
 0x312   : > { %5816 = vst [vmem:[%s9479_s28 + $0x30] sm:$0xff] %v5736_v46   ;;  %v6512_v34 = vpop.f32.mrb[16].mxu0  ;;  %vm4917_vm2 = vcmp.lt.s32.totalorder %v10430_v10, 16  ;;  %vm4916_vm15 = vcmp.lt.s32.totalorder %v10431_v29, 16 }
 0x313   : > { %v5124_v8 = vadd.f32 %v5123_v25, %v5089_v20  ;;  %v5200_v12 = vadd.f32 %v5199_v18, %v5165_v48  ;;  %v4600_v43 = vpop.f32.mrb[17].mxu0 }
 0x314   : > { %v6513_v4 = vpop.f32.mrb[18].mxu0 }
 0x315   : > { %v5201_v42 = vadd.f32 %v5200_v12, %v5166_v1  ;;  %v4603_v30 = vpop.f32.mrb[19].mxu0  ;;  %v5125_v61 = vadd.f32 %v5124_v8, %v5090_v7  ;;  %v10432_v1 = vld [vmem:[#allocation92_spill] sm:$0xff] }
 0x316   : > { %vm4918_vm0 = vcmp.lt.s32.totalorder %v10432_v1, 16 }
 0x317   : > { %v5202_v6 = vadd.f32 %v5201_v42, %v5167_v5 }
 0x31a   : > { %v6516_v52 = vpop.f32.mrb[20].mxu0 }
 0x31b   : > { %v4616_v38 = vpop.f32.mrb[21].mxu0 }
 0x31c   : > { %v6517_v56 = vpop.f32.mrb[22].mxu0 }
 0x31d   : > { %v4619_v53 = vpop.f32.mrb[23].mxu0 }
 0x322   : > { %v9521_v57 = vpop.f32.mrb[24].mxu0 }
 0x323   : > { %v9523_v17 = vpop.f32.mrb[25].mxu0 }
 0x324   : > { %v9525_v0 = vpop.f32.mrb[26].mxu0 }
 0x325   : > { %v9527_v63 = vpop.f32.mrb[27].mxu0 }
 0x328   : > { %v6304_v27 = vpop.f32.mrb[16].mxu1 }
 0x329   : > { %v6562_v13 = vadd.f32 %v6512_v34, %v6304_v27  ;;  %v3262_v62 = vpop.f32.mrb[17].mxu1 }
 0x32a   : > { %v6563_v39 = vadd.f32 %v4600_v43, %v3262_v62  ;;  %v6305_v24 = vpop.f32.mrb[18].mxu1  ;;  %v9530_v26 = vpop.f32.mrb[28].mxu0  ;;  %v10433_v62 = vld [vmem:[#allocation100_spill] sm:$0xff] }
 0x32b   : > { %v6564_v28 = vadd.f32 %v6513_v4, %v6305_v24  ;;  %v3265_v9 = vpop.f32.mrb[19].mxu1  ;;  %v9534_v47 = vpop.f32.mrb[29].mxu0  ;;  %v5093_v45 = vsel %vm4913_vm14, %v6562_v13, 0.0  ;;  %vm4919_vm4 = vcmp.lt.s32.totalorder %v10433_v62, 16 }
 0x32c   : > { %v5091_v35 = vsel %vm4911_vm9, %v6563_v39, 0.0  ;;  %v6565_v60 = vadd.f32 %v4603_v30, %v3265_v9  ;;  %v9536_v32 = vpop.f32.mrb[30].mxu0  ;;  %v5170_v50 = vmul.f32 %v5093_v45, %v5093_v45  ;;  %v10434_v9 = vld [vmem:[#allocation106_spill] sm:$0xff] }
 0x32d   : > { %v5126_v11 = vadd.f32 %v5125_v61, %v5091_v35  ;;  %v5168_v44 = vmul.f32 %v5091_v35, %v5091_v35  ;;  %v5751_v33 = vpack.c.bf16 %v6564_v28, %v6562_v13  ;;  %v9539_v58 = vpop.f32.mrb[31].mxu0  ;;  %v5094_v49 = vsel %vm4914_vm5, %v6564_v28, 0.0 }
 0x32e   : > { %v5746_v3 = vpack.c.bf16 %v6565_v60, %v6563_v39  ;;  %v5092_v41 = vsel %vm4912_vm13, %v6565_v60, 0.0  ;;  %v5171_v46 = vmul.f32 %v5094_v49, %v5094_v49  ;;  %vm4921_vm10 = vcmp.lt.s32.totalorder %v10434_v9, 16  ;;  %v10435_v60 = vld [vmem:[#allocation101_spill] sm:$0xff] }
 0x32f   : > { %v5203_v22 = vadd.f32 %v5202_v6, %v5168_v44  ;;  %5819 = vst [vmem:[%s9479_s28 + $0x48] sm:$0xff] %v5751_v33   ;;  %v5127_v16 = vadd.f32 %v5126_v11, %v5092_v41  ;;  %v5169_v14 = vmul.f32 %v5092_v41, %v5092_v41  ;;  %vm4920_vm8 = vcmp.lt.s32.totalorder %v10435_v60, 16  ;;  %v10436_v41 = vld [vmem:[#allocation107_spill] sm:$0xff]  ;;  %v10442_v9 = vld [vmem:[#allocation137_spill] sm:$0xff]  ;;  %v10443_v60 = vld [vmem:[#allocation130_spill] sm:$0xff] }
 0x330   : > { %5818 = vst [vmem:[%s9479_s28 + $0x40] sm:$0xff] %v5746_v3   ;;  %v6308_v54 = vpop.f32.mrb[20].mxu1  ;;  %vm4922_vm6 = vcmp.lt.s32.totalorder %v10436_v41, 16  ;;  %vm4929_vm14 = vcmp.lt.s32.totalorder %v10442_v9, 16  ;;  %vm4928_vm13 = vcmp.lt.s32.totalorder %v10443_v60, 16 }
 0x331   : > { %v5128_v37 = vadd.f32 %v5127_v16, %v5093_v45  ;;  %v5204_v19 = vadd.f32 %v5203_v22, %v5169_v14  ;;  %v6566_v40 = vadd.f32 %v6516_v52, %v6308_v54  ;;  %v3278_v2 = vpop.f32.mrb[21].mxu1 }
 0x332   : > { %v6567_v36 = vadd.f32 %v4616_v38, %v3278_v2  ;;  %v6309_v15 = vpop.f32.mrb[22].mxu1  ;;  %v9546_v20 = vpop.f32.mrb[32].mxu0  ;;  %v10437_v2 = vld [vmem:[#allocation116_spill] sm:$0xff] }
 0x333   : > { %v5205_v21 = vadd.f32 %v5204_v19, %v5170_v50  ;;  %v5129_v18 = vadd.f32 %v5128_v37, %v5094_v49  ;;  %v6568_v25 = vadd.f32 %v6517_v56, %v6309_v15  ;;  %v3281_v48 = vpop.f32.mrb[23].mxu1  ;;  %v9548_v7 = vpop.f32.mrb[33].mxu0  ;;  %v5097_v61 = vsel %vm4917_vm2, %v6566_v40, 0.0 }
 0x334   : > { %v5095_v34 = vsel %vm4915_vm1, %v6567_v36, 0.0  ;;  %v6569_v8 = vadd.f32 %v4619_v53, %v3281_v48  ;;  %v9553_v12 = vpop.f32.mrb[34].mxu0  ;;  %v5174_v59 = vmul.f32 %v5097_v61, %v5097_v61  ;;  %vm4923_vm3 = vcmp.lt.s32.totalorder %v10437_v2, 16 }
 0x335   : > { %v5130_v43 = vadd.f32 %v5129_v18, %v5095_v34  ;;  %v5172_v4 = vmul.f32 %v5095_v34, %v5095_v34  ;;  %v5206_v5 = vadd.f32 %v5205_v21, %v5171_v46  ;;  %v5761_v42 = vpack.c.bf16 %v6568_v25, %v6566_v40  ;;  %v9555_v30 = vpop.f32.mrb[35].mxu0  ;;  %v10438_v46 = vld [vmem:[#allocation124_spill] sm:$0xff] }
 0x336   : > { %v5756_v6 = vpack.c.bf16 %v6569_v8, %v6567_v36  ;;  %v5096_v52 = vsel %vm4916_vm15, %v6569_v8, 0.0  ;;  %v5098_v53 = vsel %vm4918_vm0, %v6568_v25, 0.0  ;;  %vm4925_vm7 = vcmp.lt.s32.totalorder %v10438_v46, 16  ;;  %v10439_v25 = vld [vmem:[#allocation117_spill] sm:$0xff] }
 0x337   : > { %v5207_v38 = vadd.f32 %v5206_v5, %v5172_v4  ;;  %5821 = vst [vmem:[%s9479_s28 + $0x58] sm:$0xff] %v5761_v42   ;;  %v5131_v56 = vadd.f32 %v5130_v43, %v5096_v52  ;;  %v5173_v27 = vmul.f32 %v5096_v52, %v5096_v52  ;;  %v5175_v11 = vmul.f32 %v5098_v53, %v5098_v53  ;;  %v10440_v5 = vld [vmem:[#allocation125_spill] sm:$0xff] }
 0x338   : > { %5820 = vst [vmem:[%s9479_s28 + $0x50] sm:$0xff] %v5756_v6   ;;  %v6312_v13 = vpop.f32.mrb[24].mxu1  ;;  %vm4924_vm11 = vcmp.lt.s32.totalorder %v10439_v25, 16  ;;  %vm4926_vm12 = vcmp.lt.s32.totalorder %v10440_v5, 16 }
 0x339   : > { %v5132_v39 = vadd.f32 %v5131_v56, %v5097_v61  ;;  %v5208_v24 = vadd.f32 %v5207_v38, %v5173_v27  ;;  %v6570_v23 = vadd.f32 %v9521_v57, %v6312_v13  ;;  %v3294_v28 = vpop.f32.mrb[25].mxu1 }
 0x33a   : > { %v6571_v51 = vadd.f32 %v9523_v17, %v3294_v28  ;;  %v6313_v35 = vpop.f32.mrb[26].mxu1 }
 0x33b   : > { %v5209_v44 = vadd.f32 %v5208_v24, %v5174_v59  ;;  %v5133_v33 = vadd.f32 %v5132_v39, %v5098_v53  ;;  %v6572_v31 = vadd.f32 %v9525_v0, %v6313_v35  ;;  %v3297_v45 = vpop.f32.mrb[27].mxu1  ;;  %v5101_v49 = vsel %vm4921_vm10, %v6570_v23, 0.0  ;;  %v10441_v59 = vld [vmem:[#allocation128_spill] sm:$0xff] }
 0x33c   : > { %v5099_v3 = vsel %vm4919_vm4, %v6571_v51, 0.0  ;;  %v6573_v57 = vadd.f32 %v9527_v63, %v3297_v45  ;;  %v5178_v10 = vmul.f32 %v5101_v49, %v5101_v49  ;;  %vm4927_vm9 = vcmp.lt.s32.totalorder %v10441_v59, 16 }
 0x33d   : > { %v5134_v22 = vadd.f32 %v5133_v33, %v5099_v3  ;;  %v5176_v16 = vmul.f32 %v5099_v3, %v5099_v3  ;;  %v5210_v14 = vadd.f32 %v5209_v44, %v5175_v11  ;;  %v5771_v17 = vpack.c.bf16 %v6572_v31, %v6570_v23  ;;  %v10444_v3 = vld [vmem:[#allocation138_spill] sm:$0xff] }
 0x33e   : > { %v5766_v54 = vpack.c.bf16 %v6573_v57, %v6571_v51  ;;  %v5100_v55 = vsel %vm4920_vm8, %v6573_v57, 0.0  ;;  %v5102_v19 = vsel %vm4922_vm6, %v6572_v31, 0.0  ;;  %vm4930_vm5 = vcmp.lt.s32.totalorder %v10444_v3, 16 }
 0x33f   : > { %v5211_v50 = vadd.f32 %v5210_v14, %v5176_v16  ;;  %5823 = vst [vmem:[%s9479_s28 + $0x68] sm:$0xff] %v5771_v17   ;;  %v5135_v37 = vadd.f32 %v5134_v22, %v5100_v55  ;;  %v5177_v0 = vmul.f32 %v5100_v55, %v5100_v55  ;;  %v5179_v48 = vmul.f32 %v5102_v19, %v5102_v19 }
 0x340   : > { %5822 = vst [vmem:[%s9479_s28 + $0x60] sm:$0xff] %v5766_v54   ;;  %v6316_v40 = vpop.f32.mrb[28].mxu1 }
 0x341   : > { %v5136_v63 = vadd.f32 %v5135_v37, %v5101_v49  ;;  %v5212_v36 = vadd.f32 %v5211_v50, %v5177_v0  ;;  %v6574_v15 = vadd.f32 %v9530_v26, %v6316_v40  ;;  %v3310_v29 = vpop.f32.mrb[29].mxu1 }
 0x342   : > { %v6575_v21 = vadd.f32 %v9534_v47, %v3310_v29  ;;  %v6317_v18 = vpop.f32.mrb[30].mxu1 }
 0x343   : > { %v5213_v34 = vadd.f32 %v5212_v36, %v5178_v10  ;;  %v5137_v1 = vadd.f32 %v5136_v63, %v5102_v19  ;;  %v6576_v8 = vadd.f32 %v9536_v32, %v6317_v18  ;;  %v3313_v43 = vpop.f32.mrb[31].mxu1  ;;  %v5105_v52 = vsel %vm4925_vm7, %v6574_v15, 0.0 }
 0x344   : > { %v5103_v4 = vsel %vm4923_vm3, %v6575_v21, 0.0  ;;  %v6577_v26 = vadd.f32 %v9539_v58, %v3313_v43  ;;  %v5182_v58 = vmul.f32 %v5105_v52, %v5105_v52 }
 0x345   : > { %v5138_v42 = vadd.f32 %v5137_v1, %v5103_v4  ;;  %v5180_v61 = vmul.f32 %v5103_v4, %v5103_v4  ;;  %v5214_v6 = vadd.f32 %v5213_v34, %v5179_v48  ;;  %v5781_v47 = vpack.c.bf16 %v6576_v8, %v6574_v15 }
 0x346   : > { %v5776_v38 = vpack.c.bf16 %v6577_v26, %v6575_v21  ;;  %v5104_v56 = vsel %vm4924_vm11, %v6577_v26, 0.0  ;;  %v5106_v13 = vsel %vm4926_vm12, %v6576_v8, 0.0 }
 0x347   : > { %v5215_v27 = vadd.f32 %v5214_v6, %v5180_v61  ;;  %5825 = vst [vmem:[%s9479_s28 + $0x78] sm:$0xff] %v5781_v47   ;;  %v5139_v32 = vadd.f32 %v5138_v42, %v5104_v56  ;;  %v5181_v53 = vmul.f32 %v5104_v56, %v5104_v56  ;;  %v5183_v11 = vmul.f32 %v5106_v13, %v5106_v13 }
 0x348   : > { %5824 = vst [vmem:[%s9479_s28 + $0x70] sm:$0xff] %v5776_v38   ;;  %v6320_v62 = vpop.f32.mrb[32].mxu1 }
 0x349   : > { %v5140_v39 = vadd.f32 %v5139_v32, %v5105_v52  ;;  %v5216_v24 = vadd.f32 %v5215_v27, %v5181_v53  ;;  %v6578_v23 = vadd.f32 %v9546_v20, %v6320_v62  ;;  %v3326_v28 = vpop.f32.mrb[33].mxu1 }
 0x34a   : > { %v6579_v51 = vadd.f32 %v9548_v7, %v3326_v28  ;;  %v6321_v35 = vpop.f32.mrb[34].mxu1 }
 0x34b   : > { %v5217_v44 = vadd.f32 %v5216_v24, %v5182_v58  ;;  %v5141_v33 = vadd.f32 %v5140_v39, %v5106_v13  ;;  %v6580_v31 = vadd.f32 %v9553_v12, %v6321_v35  ;;  %v3329_v45 = vpop.f32.mrb[35].mxu1  ;;  %v5109_v12 = vsel %vm4929_vm14, %v6578_v23, 0.0 }
 0x34c   : > { %v5107_v20 = vsel %vm4927_vm9, %v6579_v51, 0.0  ;;  %v6581_v41 = vadd.f32 %v9555_v30, %v3329_v45  ;;  %v5186_v50 = vmul.f32 %v5109_v12, %v5109_v12 }
 0x34d   : > { %v5142_v7 = vadd.f32 %v5141_v33, %v5107_v20  ;;  %v5184_v57 = vmul.f32 %v5107_v20, %v5107_v20  ;;  %v5218_v22 = vadd.f32 %v5217_v44, %v5183_v11  ;;  %v5791_v16 = vpack.c.bf16 %v6580_v31, %v6578_v23 }
 0x34e   : > { %v5786_v14 = vpack.c.bf16 %v6581_v41, %v6579_v51  ;;  %v5108_v17 = vsel %vm4928_vm13, %v6581_v41, 0.0  ;;  %v5110_v55 = vsel %vm4930_vm5, %v6580_v31, 0.0 }
 0x34f   : > { %v5219_v30 = vadd.f32 %v5218_v22, %v5184_v57  ;;  %5827 = vst [vmem:[%s9479_s28 + $0x88] sm:$0xff] %v5791_v16   ;;  %v5143_v49 = vadd.f32 %v5142_v7, %v5108_v17  ;;  %v5185_v54 = vmul.f32 %v5108_v17, %v5108_v17 }
 0x350   : > { %5826 = vst [vmem:[%s9479_s28 + $0x80] sm:$0xff] %v5786_v14  }
 0x351   : > { %v5144_v37 = vadd.f32 %v5143_v49, %v5109_v12  ;;  %v5220_v0 = vadd.f32 %v5219_v30, %v5185_v54 }
 0x352   : > { %7234 = shalt.err (!%p7231_p0)
}
 0x353   : > { %s7235_s17 = scalar_lea.hbm %s9602_s18, 2304  ;;  %s7239_s7 = scalar_lea.hbm %s9694_s4, 4608 }
 0x354   : > { %p7236_p4 = scmp.ne.s32.totalorder %s9602_s18, %s7235_s17  ;;  %p7240_p12 = scmp.lt.u32.totalorder %s9602_s18, %s9694_s4 }
 0x355   : > { %p7241_p1 = scmp.lt.u32.totalorder %s7239_s7, %s7235_s17  ;;  %p7243_p13 = scmp.lt.u32.totalorder %s7235_s17, %s9602_s18 }
 0x356   : > { %p7237_p2 = pnand %p7236_p4, %p7543_p10 }
 0x357   : > { %p7242_p11 = por %p7241_p1, %p7240_p12 }
 0x358   : > { %p7238_p8 = pneg %p7237_p2 }
 0x359   : > { %p7244_p6 = por %p7243_p13, %p7242_p11 }
 0x35b   : > { %p7245_p3 = pnand %p7244_p6, %p7238_p8 }
 0x35d   : > { %7248 = shalt.err (!%p7245_p3)
}
 0x35e   : > { %s7355_s30 = smov 64   ;;  %s7356_s6 = smov 4   ;;  %v5187_v19 = vmul.f32 %v5110_v55, %v5110_v55  ;;  %v5145_v40 = vadd.f32 %v5144_v37, %v5110_v55  ;;  %v5221_v2 = vadd.f32 %v5220_v0, %v5186_v50  ;;  %vm5229_vm1 = vcmask 1040384  }
 0x35f   : > { %6931 = dma.vmem_to_hbm [thread:$0]  (%p7543_p10), %s9608_s13, 2304, %s9602_s18, %s5233_s29, %s7355_s30, %s7355_s30, %s7356_s6  }
 0x360   : > { %v5146_v10 = vrot.slane %v5145_v40, 4  ;;  %v5222_v63 = vadd.f32 %v5221_v2, %v5187_v19  ;;  %s5428_s14 = sshll.u32 %s7602_s24, 1  ;;  %s5592_s16 = sshll.u32 %s7335_s21, 5 }
 0x361   : > { %s313_s13 = scalar_lea.vmem [#allocation11], %s5428_s14  ;;  %s9641_s10 = scalar_lea.hbm %s9695_s5, %s5592_s16 }
 0x362   : > { %v5147_v36 = vadd.f32 %v5146_v10, %v5145_v40  ;;  %v5223_v15 = vrot.slane %v5222_v63, 4  ;;  %s5270_s18 = sshll.u32 %s313_s13, 4  ;;  %s5238_s11 = scalar_lea.sflag [#allocation12], %s7602_s24  ;;  %s9643_s18 = int_to_ptr.vmem [resolvable:$true] %s5270_s18 }
 0x363   : > { %s7249_s17 = scalar_lea.vmem %s9643_s18, 32  ;;  %s7357_s21 = smov [#allocation11]  }
 0x364   : > { %v5148_v29 = vrot.slane %v5147_v36, 2  ;;  %v5224_v46 = vadd.f32 %v5223_v15, %v5222_v63  ;;  %p7250_p5 = scmp.ne.s32.totalorder %s9643_s18, %s7249_s17  ;;  %s7253_s25 = sshll.u32 %s7357_s21, 4  ;;  %s7254_s25 = int_to_ptr.vmem [resolvable:$false] %s7253_s25 }
 0x365   : > { %s7255_s9 = scalar_lea.vmem %s7254_s25, 64  ;;  %p7256_p0 = scmp.lt.s32.totalorder %s9643_s18, %s7254_s25 }
 0x366   : > { %v5149_v21 = vadd.f32 %v5148_v29, %v5147_v36  ;;  %v5225_v18 = vrot.slane %v5224_v46, 2  ;;  %p7251_p7 = pnand %p7250_p5, %p7543_p10  ;;  %p7257_p4 = scmp.lt.s32.totalorder %s7255_s9, %s7249_s17 }
 0x368   : > { %v5150_v25 = vrot.slane %v5149_v21, 1  ;;  %v5226_v48 = vadd.f32 %v5225_v18, %v5224_v46  ;;  %p7252_p9 = pneg %p7251_p7  ;;  %p7258_p2 = por %p7257_p4, %p7256_p0 }
 0x36a   : > { %v5227_v34 = vrot.slane %v5226_v48, 1  ;;  %v5151_v1 = vadd.f32 %v5150_v25, %v5149_v21  ;;  %p7259_p8 = pnand %p7258_p2, %p7252_p9 }
 0x36c   : > { %v5228_v8 = vadd.f32 %v5227_v34, %v5226_v48 }
 0x36e   : > { %v5230_v43 = vsel %vm5229_vm1, %v5151_v1, %v5228_v8 }
 0x36f   : > { %5231 = vst [vmem:[%s313_s13] sm:$0x3] %v5230_v43 }
 0x370   : > { %7262 = shalt.err (!%p7259_p8)
}
 0x371   : > { %s7263_s24 = scalar_lea.hbm %s9641_s10, 32  ;;  %s7267_s28 = scalar_lea.hbm %s9695_s5, 64 }
 0x372   : > { %p7264_p12 = scmp.ne.s32.totalorder %s9641_s10, %s7263_s24  ;;  %p7268_p13 = scmp.lt.u32.totalorder %s9641_s10, %s9695_s5 }
 0x373   : > { %p7269_p6 = scmp.lt.u32.totalorder %s7267_s28, %s7263_s24  ;;  %p7271_p5 = scmp.lt.u32.totalorder %s7263_s24, %s9641_s10 }
 0x374   : > { %p7265_p1 = pnand %p7264_p12, %p7543_p10 }
 0x375   : > { %p7270_p3 = por %p7269_p6, %p7268_p13 }
 0x376   : > { %p7266_p11 = pneg %p7265_p1 }
 0x377   : > { %p7272_p7 = por %p7271_p5, %p7270_p3 }
 0x379   : > { %p7273_p9 = pnand %p7272_p7, %p7266_p11 }
 0x37b   : > { %7276 = shalt.err (!%p7273_p9)
}
 0x37c   : > { %6932 = dma.vmem_to_hbm [thread:$0]  (%p7543_p10), %s9643_s18, 32, %s9641_s10, %s5238_s11  }
 0x37d PF: > { %s10445_s14 = sld [smem:[#allocation18_spill]]  ;;  %s10446_s16 = sld [smem:[#allocation19_spill]] }
 0x37e   : > { %p10448_p4 = scmp.ge.s32.totalorder %s7343_s23, 2 }
 0x383   : > { %s5282_s13 = sand.u32 1, %s10445_s14   ;;  %p10447_p0 = scmp.ne.s32.totalorder %s10446_s16, 0 }
 0x384   : > { %s5283_s29 = scalar_lea.sflag [#allocation4], %s5282_s13 }
 0x385   : > { %p6950_p2 = pnand %p10448_p4, %p10447_p0 }
 0x387   : > { %7314 = dma.done.wait (!%p6950_p2), %s5283_s29, 2304  }
 0x388   : > { %7316 = vsyncadd (!%p6950_p2), %s5283_s29, 4294964992  ;;  %s5292_s12 = scalar_lea.sflag [#allocation12], %s5282_s13 }
 0x389   : > { %7318 = dma.done.wait (!%p6950_p2), %s5292_s12, 32  }
 0x38a   : > { %7320 = vsyncadd (!%p6950_p2), %s5292_s12, 4294967264  ;;  %s27_s23 = sadd.s32 1, %s7343_s23   ;;  %s10449_s18 = smov %s7327_s19 }
 0x38b   : > { %p24_p8 = scmp.ge.s32.totalorder %s27_s23, 4   ;;  %s10450_s19 = smov %s7331_s20 }
 0x38c   : > { %s10451_s20 = smov %s7559_s27  ;;  %s10452_s21 = smov %s7339_s22 }
 0x38d   : > { %s10453_s22 = smov %s10455_s15  ;;  %26 = sbr.rel (!%p24_p8) target bundleno = 10 (0xa), region = 118 }
 0x394   :  { %5297 = vsyncpa [#allocation3], 1 }
 0x395   :  { %5299 = vsyncpa [#allocation3 + $0x1], 1 }
 0x396   :  { %5300 = vsyncpa [#allocation6], 1 }
 0x397   :  { %5301 = vsyncpa [#allocation9], 1 }
 0x398   :  { %5302 = vsyncpa [#allocation4], 1 }
 0x399   :  { %5304 = vsyncpa [#allocation4 + $0x1], 1 }
 0x39a   :  { %5305 = vsyncpa [#allocation12], 1 }
 0x39b   :  { %5307 = vsyncpa [#allocation12 + $0x1], 1 }

</bundles_post_ra>
